<compile_context>
chip_gen: v5e
topology: v5e:2x2
jax: 0.10.0
libtpu: 0.0.40
codegen_flags: <defaults>
</compile_context>

<pallas_src>
import functools

import numpy as np
import jax
import jax.numpy as jnp
from jax.experimental import pallas as pl
from jax.experimental.pallas import tpu as pltpu

LANES = 128  # pad every channel / feature dim to the vreg lane width


def calc_out_dims(in_dim, stride, padding, kernel_size, dilation=1):
    return int((in_dim + 2 * padding - dilation * (kernel_size - 1) - 1) / stride + 1)


def _tree_max(vals):
    vals = list(vals)
    while len(vals) > 1:
        nxt = [jnp.maximum(vals[i], vals[i + 1]) for i in range(0, len(vals) - 1, 2)]
        if len(vals) % 2:
            nxt.append(vals[-1])
        vals = nxt
    return vals[0]


def _fused_forward_kernel(a1_ref, wc_ref, bc_ref,
                          m1_ref, m2_ref, m3_ref,
                          p1_ref, p2_ref, p3_ref,
                          wf_ref, bf_ref,
                          out_ref,
                          y_ref, acc_ref, a2_ref, a3_ref,
                          *, stage_cfg):
    """Whole ConvNN forward for ONE image (grid iterates over the batch).

    Activation layout everywhere: (rows, 128) with rows = padded_H * padded_W
    (row-major over the zero-padded spatial grid), channels in lanes 0..C-1 and
    lanes C..127 kept exactly 0.  Stage-input buffers carry `slack` all-zero
    rows before/after the grid so the 9 row-shifted conv reads stay in bounds.
    """
    # Zero the pool work buffer once: its tail slack is read by the shifted pool
    # taps; a stray NaN there would leak through 0*NaN in the selection matmul.
    y_ref[...] = jnp.zeros_like(y_ref)

    def conv_relu_pool(a_ref, m_ref, p_ref, stage, slack, hp, wp):
        rdata = hp * wp
        # --- 3x3 conv (stride 1, pad 1): 9 row-shifted matmuls on the MXU -----
        for t in range(9):
            di, dj = t // 3, t % 3
            off = slack + (di - 1) * wp + (dj - 1)              # static offset
            tap = jnp.dot(a_ref[pl.ds(off, rdata), :], wc_ref[stage * 9 + t],
                          preferred_element_type=jnp.float32)
            if t == 0:
                acc_ref[pl.ds(0, rdata), :] = tap
            else:
                acc_ref[pl.ds(0, rdata), :] += tap
        # --- bias + ReLU; zero the padded ring so it cannot win the max-pool
        #     (post-ReLU values are >= 0 and every pool window holds a real
        #      pixel, so 0 here is equivalent to PyTorch's -inf pool padding).
        y_ref[pl.ds(0, rdata), :] = (
            jnp.maximum(acc_ref[pl.ds(0, rdata), :] + bc_ref[stage], 0.0)
            * m_ref[...])
        # --- fused MaxPool2d(3, stride=3, padding=1): 9-tap shifted max (tree) -
        w3 = _tree_max([y_ref[pl.ds(pi * wp + pj, rdata), :]
                        for pi in range(3) for pj in range(3)])
        acc_ref[pl.ds(0, rdata), :] = w3            # reuse acc as matmul operand
        # --- gather the pooled window anchors AND scatter them into the next
        #     stage's zero-padded buffer (or the FC input row): one 0/1 matmul.
        return jnp.dot(p_ref[...], acc_ref[pl.ds(0, rdata), :],
                       preferred_element_type=jnp.float32)

    (s1, hp1, wp1), (s2, hp2, wp2), (s3, hp3, wp3) = stage_cfg
    a2_ref[...] = conv_relu_pool(a1_ref, m1_ref, p1_ref, 0, s1, hp1, wp1)
    a3_ref[...] = conv_relu_pool(a2_ref, m2_ref, p2_ref, 1, s2, hp2, wp2)
    x = conv_relu_pool(a3_ref, m3_ref, p3_ref, 2, s3, hp3, wp3)     # (1, 128)
    # TODO(synk): nn.Dropout is identity in eval-mode forward; no mask applied.

    # --- fused FC stack (weights zero-padded to 128x128, biases to 128 lanes) --
    h = jnp.maximum(jnp.dot(x, wf_ref[0], preferred_element_type=jnp.float32)
                    + bf_ref[0], 0.0)
    h = jnp.maximum(jnp.dot(h, wf_ref[1], preferred_element_type=jnp.float32)
                    + bf_ref[1], 0.0)
    out_ref[...] = (jnp.dot(h, wf_ref[2], preferred_element_type=jnp.float32)
                    + bf_ref[2])


def conv_nn_forward(params, x_nchw):
    """Full ConvNN forward as a single pallas_call (grid over the batch)."""
    x_nchw = x_nchw.astype(jnp.float32)
    n, cin0, h0, w0 = x_nchw.shape
    assert h0 == w0, "square inputs only (as in the reference module)"

    conv_params = params["conv"]
    out_channels = [w.shape[-1] for (w, _) in conv_params]
    output_dim = params["fc3"][0].shape[1]

    # static geometry: conv(k3,s1,p1) keeps HxW, pool(k3,s3,p1) floors.
    stage_h = [h0]
    for _ in range(3):
        d = calc_out_dims(stage_h[-1], 1, 1, 3)     # conv
        stage_h.append(calc_out_dims(d, 3, 1, 3))   # max pool
    h1, h2, h3, hf = stage_h
    assert hf == 1, "fused FC path assumes the final pool output is 1x1 spatial"
    assert conv_params[0][0].shape[2] == cin0
    assert params["fc1"][0].shape[0] == out_channels[-1] * hf * hf
    assert max(out_channels + [params["fc1"][0].shape[1], output_dim]) <= LANES

    # per-stage (slack_rows, padded_H, padded_W); slack >= padded_W + 1 so the 9
    # row-shifted conv reads never go out of bounds (rounded up to 8 sublanes).
    cfg = []
    for h in (h1, h2, h3):
        hp = h + 2
        slack = ((hp + 1 + 7) // 8) * 8
        cfg.append((slack, hp, hp))

    # interior masks: 1 inside the real HxW region of the padded grid, 0 on ring.
    def make_mask(h, hp):
        m = np.zeros((hp * hp, 1), np.float32)
        for i in range(1, h + 1):
            m[i * hp + 1:i * hp + 1 + h, 0] = 1.0
        return jnp.asarray(m)

    # 0/1 selection matrices: rows = next stage's padded buffer (slack + pad ring
    # rows stay all-zero), cols = current padded grid; a 1 picks the max-pool
    # window anchor (3*oi, 3*oj) for pooled pixel (oi, oj).
    def make_select(wp_in, ho, wp_out=None, slack_out=None):
        cols = wp_in * wp_in
        rows = 1 if wp_out is None else 2 * slack_out + wp_out * wp_out
        p = np.zeros((rows, cols), np.float32)
        for oi in range(ho):
            for oj in range(ho):
                src = 3 * oi * wp_in + 3 * oj
                dst = 0 if wp_out is None else slack_out + (oi + 1) * wp_out + (oj + 1)
                p[dst, src] = 1.0
        return jnp.asarray(p)

    m1, m2, m3 = (make_mask(h, c[1]) for h, c in zip((h1, h2, h3), cfg))
    p1 = make_select(cfg[0][2], h2, cfg[1][2], cfg[1][0])
    p2 = make_select(cfg[1][2], h3, cfg[2][2], cfg[2][0])
    p3 = make_select(cfg[2][2], hf)                 # -> (1, hp3*wp3) FC gather

    # pack conv / fc weights lane-dense (zero-padded to 128).  NOTE: native HWIO
    # / (in,out) layout; PyTorch Conv2d (OIHW) / Linear (out,in) weights would
    # need transposing before packing.
    wc = jnp.zeros((27, LANES, LANES), jnp.float32)
    bc = jnp.zeros((3, 1, LANES), jnp.float32)
    for s, (w, b) in enumerate(conv_params):
        ci, co = w.shape[2], w.shape[3]
        wc = wc.at[s * 9:(s + 1) * 9, :ci, :co].set(w.reshape(9, ci, co))
        bc = bc.at[s, 0, :co].set(b)
    wf = jnp.zeros((3, LANES, LANES), jnp.float32)
    bf = jnp.zeros((3, 1, LANES), jnp.float32)
    for s, name in enumerate(("fc1", "fc2", "fc3")):
        w, b = params[name]
        wf = wf.at[s, :w.shape[0], :w.shape[1]].set(w)
        bf = bf.at[s, 0, :w.shape[1]].set(b)

    # stage-1 padded, lane-dense input buffer (per image): spatial zero ring,
    # channel pad to 128, plus `slack` zero rows on both ends.
    slack1, hp1, wp1 = cfg[0]
    x_nhwc = jnp.transpose(x_nchw, (0, 2, 3, 1))
    xp = jnp.pad(x_nhwc, ((0, 0), (1, 1), (1, 1), (0, LANES - cin0)))
    a1 = xp.reshape(n, hp1 * wp1, LANES)
    a1 = jnp.pad(a1, ((0, 0), (slack1, slack1), (0, 0)))
    rows1 = a1.shape[1]

    rdata1 = hp1 * wp1
    y_rows = ((rdata1 + 2 * wp1 + 2 + 7) // 8) * 8
    kernel = functools.partial(_fused_forward_kernel, stage_cfg=tuple(cfg))

    out = pl.pallas_call(
        kernel,
        out_shape=jax.ShapeDtypeStruct((n, 1, LANES), jnp.float32),
        grid=(n,),
        in_specs=[
            pl.BlockSpec((None, rows1, LANES), lambda i: (i, 0, 0)),  # per-image input
            pl.BlockSpec((27, LANES, LANES), lambda i: (0, 0, 0)),    # conv weights
            pl.BlockSpec((3, 1, LANES), lambda i: (0, 0, 0)),         # conv biases
            pl.BlockSpec(m1.shape, lambda i: (0, 0)),                 # stage masks
            pl.BlockSpec(m2.shape, lambda i: (0, 0)),
            pl.BlockSpec(m3.shape, lambda i: (0, 0)),
            pl.BlockSpec(p1.shape, lambda i: (0, 0)),                 # pool select/scatter
            pl.BlockSpec(p2.shape, lambda i: (0, 0)),
            pl.BlockSpec(p3.shape, lambda i: (0, 0)),
            pl.BlockSpec((3, LANES, LANES), lambda i: (0, 0, 0)),     # fc weights
            pl.BlockSpec((3, 1, LANES), lambda i: (0, 0, 0)),         # fc biases
        ],
        out_specs=pl.BlockSpec((None, 1, LANES), lambda i: (i, 0, 0)),
        scratch_shapes=[
            pltpu.VMEM((y_rows, LANES), jnp.float32),       # masked conv out (+tail)
            pltpu.VMEM((rdata1, LANES), jnp.float32),       # conv acc / pool max
            pltpu.VMEM((p1.shape[0], LANES), jnp.float32),  # stage-2 padded input
            pltpu.VMEM((p2.shape[0], LANES), jnp.float32),  # stage-3 padded input
        ],
        compiler_params=pltpu.CompilerParams(dimension_semantics=("parallel",)),
    )(a1, wc, bc, m1, m2, m3, p1, p2, p3, wf, bf)
    return out.reshape(n, LANES)[:, :output_dim]


def init_params(key, input_dim, hidden_dim, output_dim):
    in_channels = [1, 4, 8]
    out_channels = [4, 8, 16]
    keys = jax.random.split(key, 12)
    params = {"conv": []}
    d = input_dim
    ki = 0
    for i in range(3):
        w = 0.1 * jax.random.normal(keys[ki], (3, 3, in_channels[i], out_channels[i]),
                                    dtype=jnp.float32)
        b = 0.1 * jax.random.normal(keys[ki + 1], (out_channels[i],), dtype=jnp.float32)
        ki += 2
        params["conv"].append((w, b))
        d = calc_out_dims(d, 1, 1, 3)      # conv (k3, s1, p1)
        d = calc_out_dims(d, 3, 1, 3)      # max pool (k3, s3, p1)
    flat_dim = out_channels[-1] * d * d
    dims = [(flat_dim, hidden_dim), (hidden_dim, hidden_dim), (hidden_dim, output_dim)]
    for j, (din, dout) in enumerate(dims, start=1):
        w = 0.1 * jax.random.normal(keys[ki], (din, dout), dtype=jnp.float32)
        b = 0.1 * jax.random.normal(keys[ki + 1], (dout,), dtype=jnp.float32)
        ki += 2
        params[f"fc{j}"] = (w, b)
    return params


def _reference_forward(params, x_nchw):
    """Pure-JAX (XLA) reference used to validate the fused Pallas kernel."""
    x = jnp.transpose(x_nchw, (0, 2, 3, 1)).astype(jnp.float32)   # NHWC
    for (w, b) in params["conv"]:
        n, h, wd, ci = x.shape
        co = w.shape[-1]
        xp = jnp.pad(x, ((0, 0), (1, 1), (1, 1), (0, 0)))
        taps = [xp[:, di:di + h, dj:dj + wd, :] for di in range(3) for dj in range(3)]
        patches = jnp.concatenate(taps, axis=-1).reshape(n * h * wd, 9 * ci)
        y = jnp.maximum(patches @ w.reshape(9 * ci, co) + b, 0.0).reshape(n, h, wd, co)
        ho = calc_out_dims(h, 3, 1, 3)
        yp = jnp.pad(y, ((0, 0), (1, 1), (1, 1), (0, 0)), constant_values=-jnp.inf)
        wins = [yp[:, pi:pi + 3 * ho:3, pj:pj + 3 * ho:3, :]
                for pi in range(3) for pj in range(3)]
        x = functools.reduce(jnp.maximum, wins)
    n = x.shape[0]
    x = jnp.transpose(x, (0, 3, 1, 2)).reshape(n, -1)   # PyTorch .view on NCHW
    w1, b1 = params["fc1"]
    w2, b2 = params["fc2"]
    w3, b3 = params["fc3"]
    x = jnp.maximum(x @ w1 + b1, 0.0)
    x = jnp.maximum(x @ w2 + b2, 0.0)
    return x @ w3 + b3


if __name__ == "__main__":
    input_dim, hidden_dim, output_dim = 16, 32, 10
    key = jax.random.PRNGKey(0)
    kx, kp = jax.random.split(key)
    x = jax.random.normal(kx, (2, 1, input_dim, input_dim), dtype=jnp.float32)
    params = init_params(kp, input_dim, hidden_dim, output_dim)

    out = jax.block_until_ready(jax.jit(conv_nn_forward)(params, x))
    assert out.shape == (2, output_dim), out.shape
    assert bool(jnp.all(jnp.isfinite(out)))

    ref = jax.block_until_ready(_reference_forward(params, x))
    np.testing.assert_allclose(np.asarray(out), np.asarray(ref), rtol=2e-4, atol=2e-4)
    print("KERNEL_OK")
</pallas_src>

<mosaic_0001>
module attributes {stable_mosaic.version = 11 : i64} {
  func.func @_fused_forward_kernel(%arg0: i32, %arg1: memref<1x372x128xf32, #tpu.memory_space<vmem>>, %arg2: memref<27x128x128xf32, #tpu.memory_space<vmem>>, %arg3: memref<3x1x128xf32, #tpu.memory_space<vmem>>, %arg4: memref<324x1xf32, #tpu.memory_space<vmem>>, %arg5: memref<64x1xf32, #tpu.memory_space<vmem>>, %arg6: memref<16x1xf32, #tpu.memory_space<vmem>>, %arg7: memref<96x324xf32, #tpu.memory_space<vmem>>, %arg8: memref<32x64xf32, #tpu.memory_space<vmem>>, %arg9: memref<1x16xf32, #tpu.memory_space<vmem>>, %arg10: memref<3x128x128xf32, #tpu.memory_space<vmem>>, %arg11: memref<3x1x128xf32, #tpu.memory_space<vmem>>, %arg12: memref<1x1x128xf32, #tpu.memory_space<vmem>>, %arg13: memref<368x128xf32, #tpu.memory_space<vmem>>, %arg14: memref<324x128xf32, #tpu.memory_space<vmem>>, %arg15: memref<96x128xf32, #tpu.memory_space<vmem>>, %arg16: memref<32x128xf32, #tpu.memory_space<vmem>>) attributes {dimension_semantics = [#tpu.dimension_semantics<parallel>], iteration_bounds = array<i64: 2>, scalar_prefetch = 0 : i64, scratch_operands = 4 : i64, tpu.core_type = #tpu.core_type<tc>, window_params = [{transform_indices = @transform_0, window_bounds = array<i64: 1, 372, 128>}, {pipeline_mode = #tpu.pipeline_mode<synchronous>, transform_indices = @transform_1, window_bounds = array<i64: 27, 128, 128>}, {pipeline_mode = #tpu.pipeline_mode<synchronous>, transform_indices = @transform_2, window_bounds = array<i64: 3, 1, 128>}, {pipeline_mode = #tpu.pipeline_mode<synchronous>, transform_indices = @transform_3, window_bounds = array<i64: 324, 1>}, {pipeline_mode = #tpu.pipeline_mode<synchronous>, transform_indices = @transform_4, window_bounds = array<i64: 64, 1>}, {pipeline_mode = #tpu.pipeline_mode<synchronous>, transform_indices = @transform_5, window_bounds = array<i64: 16, 1>}, {pipeline_mode = #tpu.pipeline_mode<synchronous>, transform_indices = @transform_6, window_bounds = array<i64: 96, 324>}, {pipeline_mode = #tpu.pipeline_mode<synchronous>, transform_indices = @transform_7, window_bounds = array<i64: 32, 64>}, {pipeline_mode = #tpu.pipeline_mode<synchronous>, transform_indices = @transform_8, window_bounds = array<i64: 1, 16>}, {pipeline_mode = #tpu.pipeline_mode<synchronous>, transform_indices = @transform_9, window_bounds = array<i64: 3, 128, 128>}, {pipeline_mode = #tpu.pipeline_mode<synchronous>, transform_indices = @transform_10, window_bounds = array<i64: 3, 1, 128>}, {transform_indices = @transform_11, window_bounds = array<i64: 1, 1, 128>}]} {
    %cst = arith.constant 0.000000e+00 : f32
    %0 = vector.broadcast %cst : f32 to vector<368x128xf32>
    %c0 = arith.constant 0 : index
    %c0_0 = arith.constant 0 : index
    %1 = vector.load %arg13[%c0, %c0_0] : memref<368x128xf32, #tpu.memory_space<vmem>>, vector<368x128xf32>
    tpu.vector_store %arg13[%c0, %c0_0], %0 {strides = array<i32>} : memref<368x128xf32, #tpu.memory_space<vmem>>, vector<368x128xf32>,
    %c0_1 = arith.constant 0 : index
    %c5 = arith.constant 5 : index
    %c0_2 = arith.constant 0 : index
    %2 = vector.load %arg1[%c0_1, %c5, %c0_2] : memref<1x372x128xf32, #tpu.memory_space<vmem>>, vector<1x324x128xf32>
    %3 = vector.shape_cast %2 : vector<1x324x128xf32> to vector<324x128xf32>
    %c0_3 = arith.constant 0 : index
    %c0_4 = arith.constant 0 : index
    %c0_5 = arith.constant 0 : index
    %4 = vector.load %arg2[%c0_3, %c0_4, %c0_5] : memref<27x128x128xf32, #tpu.memory_space<vmem>>, vector<1x128x128xf32>
    %5 = vector.shape_cast %4 : vector<1x128x128xf32> to vector<128x128xf32>
    %cst_6 = arith.constant dense<0.000000e+00> : vector<324x128xf32>
    %6 = tpu.matmul %3, %5, %cst_6 {dimension_numbers = #tpu.dot_dimension_numbers<[1], [0], [0], [1], [0, 0, 1, 1], [], []>} : vector<324x128xf32>, vector<128x128xf32>, vector<324x128xf32> -> vector<324x128xf32>
    %c0_7 = arith.constant 0 : index
    %c0_8 = arith.constant 0 : index
    %7 = vector.load %arg14[%c0_7, %c0_8] : memref<324x128xf32, #tpu.memory_space<vmem>>, vector<324x128xf32>
    tpu.vector_store %arg14[%c0_7, %c0_8], %6 {strides = array<i32>} : memref<324x128xf32, #tpu.memory_space<vmem>>, vector<324x128xf32>,
    %c0_9 = arith.constant 0 : index
    %c6 = arith.constant 6 : index
    %c0_10 = arith.constant 0 : index
    %8 = vector.load %arg1[%c0_9, %c6, %c0_10] : memref<1x372x128xf32, #tpu.memory_space<vmem>>, vector<1x324x128xf32>
    %9 = vector.shape_cast %8 : vector<1x324x128xf32> to vector<324x128xf32>
    %c1 = arith.constant 1 : index
    %c0_11 = arith.constant 0 : index
    %c0_12 = arith.constant 0 : index
    %10 = vector.load %arg2[%c1, %c0_11, %c0_12] : memref<27x128x128xf32, #tpu.memory_space<vmem>>, vector<1x128x128xf32>
    %11 = vector.shape_cast %10 : vector<1x128x128xf32> to vector<128x128xf32>
    %cst_13 = arith.constant dense<0.000000e+00> : vector<324x128xf32>
    %12 = tpu.matmul %9, %11, %cst_13 {dimension_numbers = #tpu.dot_dimension_numbers<[1], [0], [0], [1], [0, 0, 1, 1], [], []>} : vector<324x128xf32>, vector<128x128xf32>, vector<324x128xf32> -> vector<324x128xf32>
    %c0_14 = arith.constant 0 : index
    %c0_15 = arith.constant 0 : index
    %13 = vector.load %arg14[%c0_14, %c0_15] : memref<324x128xf32, #tpu.memory_space<vmem>>, vector<324x128xf32>
    %14 = arith.addf %13, %12 : vector<324x128xf32>
    %c0_16 = arith.constant 0 : index
    %c0_17 = arith.constant 0 : index
    %15 = vector.load %arg14[%c0_16, %c0_17] : memref<324x128xf32, #tpu.memory_space<vmem>>, vector<324x128xf32>
    tpu.vector_store %arg14[%c0_16, %c0_17], %14 {strides = array<i32>} : memref<324x128xf32, #tpu.memory_space<vmem>>, vector<324x128xf32>,
    %c0_18 = arith.constant 0 : index
    %c7 = arith.constant 7 : index
    %c0_19 = arith.constant 0 : index
    %16 = vector.load %arg1[%c0_18, %c7, %c0_19] : memref<1x372x128xf32, #tpu.memory_space<vmem>>, vector<1x324x128xf32>
    %17 = vector.shape_cast %16 : vector<1x324x128xf32> to vector<324x128xf32>
    %c2 = arith.constant 2 : index
    %c0_20 = arith.constant 0 : index
    %c0_21 = arith.constant 0 : index
    %18 = vector.load %arg2[%c2, %c0_20, %c0_21] : memref<27x128x128xf32, #tpu.memory_space<vmem>>, vector<1x128x128xf32>
    %19 = vector.shape_cast %18 : vector<1x128x128xf32> to vector<128x128xf32>
    %cst_22 = arith.constant dense<0.000000e+00> : vector<324x128xf32>
    %20 = tpu.matmul %17, %19, %cst_22 {dimension_numbers = #tpu.dot_dimension_numbers<[1], [0], [0], [1], [0, 0, 1, 1], [], []>} : vector<324x128xf32>, vector<128x128xf32>, vector<324x128xf32> -> vector<324x128xf32>
    %c0_23 = arith.constant 0 : index
    %c0_24 = arith.constant 0 : index
    %21 = vector.load %arg14[%c0_23, %c0_24] : memref<324x128xf32, #tpu.memory_space<vmem>>, vector<324x128xf32>
    %22 = arith.addf %21, %20 : vector<324x128xf32>
    %c0_25 = arith.constant 0 : index
    %c0_26 = arith.constant 0 : index
    %23 = vector.load %arg14[%c0_25, %c0_26] : memref<324x128xf32, #tpu.memory_space<vmem>>, vector<324x128xf32>
    tpu.vector_store %arg14[%c0_25, %c0_26], %22 {strides = array<i32>} : memref<324x128xf32, #tpu.memory_space<vmem>>, vector<324x128xf32>,
    %c0_27 = arith.constant 0 : index
    %c23 = arith.constant 23 : index
    %c0_28 = arith.constant 0 : index
    %24 = vector.load %arg1[%c0_27, %c23, %c0_28] : memref<1x372x128xf32, #tpu.memory_space<vmem>>, vector<1x324x128xf32>
    %25 = vector.shape_cast %24 : vector<1x324x128xf32> to vector<324x128xf32>
    %c3 = arith.constant 3 : index
    %c0_29 = arith.constant 0 : index
    %c0_30 = arith.constant 0 : index
    %26 = vector.load %arg2[%c3, %c0_29, %c0_30] : memref<27x128x128xf32, #tpu.memory_space<vmem>>, vector<1x128x128xf32>
    %27 = vector.shape_cast %26 : vector<1x128x128xf32> to vector<128x128xf32>
    %cst_31 = arith.constant dense<0.000000e+00> : vector<324x128xf32>
    %28 = tpu.matmul %25, %27, %cst_31 {dimension_numbers = #tpu.dot_dimension_numbers<[1], [0], [0], [1], [0, 0, 1, 1], [], []>} : vector<324x128xf32>, vector<128x128xf32>, vector<324x128xf32> -> vector<324x128xf32>
    %c0_32 = arith.constant 0 : index
    %c0_33 = arith.constant 0 : index
    %29 = vector.load %arg14[%c0_32, %c0_33] : memref<324x128xf32, #tpu.memory_space<vmem>>, vector<324x128xf32>
    %30 = arith.addf %29, %28 : vector<324x128xf32>
    %c0_34 = arith.constant 0 : index
    %c0_35 = arith.constant 0 : index
    %31 = vector.load %arg14[%c0_34, %c0_35] : memref<324x128xf32, #tpu.memory_space<vmem>>, vector<324x128xf32>
    tpu.vector_store %arg14[%c0_34, %c0_35], %30 {strides = array<i32>} : memref<324x128xf32, #tpu.memory_space<vmem>>, vector<324x128xf32>,
    %c0_36 = arith.constant 0 : index
    %c24 = arith.constant 24 : index
    %c0_37 = arith.constant 0 : index
    %32 = vector.load %arg1[%c0_36, %c24, %c0_37] : memref<1x372x128xf32, #tpu.memory_space<vmem>>, vector<1x324x128xf32>
    %33 = vector.shape_cast %32 : vector<1x324x128xf32> to vector<324x128xf32>
    %c4 = arith.constant 4 : index
    %c0_38 = arith.constant 0 : index
    %c0_39 = arith.constant 0 : index
    %34 = vector.load %arg2[%c4, %c0_38, %c0_39] : memref<27x128x128xf32, #tpu.memory_space<vmem>>, vector<1x128x128xf32>
    %35 = vector.shape_cast %34 : vector<1x128x128xf32> to vector<128x128xf32>
    %cst_40 = arith.constant dense<0.000000e+00> : vector<324x128xf32>
    %36 = tpu.matmul %33, %35, %cst_40 {dimension_numbers = #tpu.dot_dimension_numbers<[1], [0], [0], [1], [0, 0, 1, 1], [], []>} : vector<324x128xf32>, vector<128x128xf32>, vector<324x128xf32> -> vector<324x128xf32>
    %c0_41 = arith.constant 0 : index
    %c0_42 = arith.constant 0 : index
    %37 = vector.load %arg14[%c0_41, %c0_42] : memref<324x128xf32, #tpu.memory_space<vmem>>, vector<324x128xf32>
    %38 = arith.addf %37, %36 : vector<324x128xf32>
    %c0_43 = arith.constant 0 : index
    %c0_44 = arith.constant 0 : index
    %39 = vector.load %arg14[%c0_43, %c0_44] : memref<324x128xf32, #tpu.memory_space<vmem>>, vector<324x128xf32>
    tpu.vector_store %arg14[%c0_43, %c0_44], %38 {strides = array<i32>} : memref<324x128xf32, #tpu.memory_space<vmem>>, vector<324x128xf32>,
    %c0_45 = arith.constant 0 : index
    %c25 = arith.constant 25 : index
    %c0_46 = arith.constant 0 : index
    %40 = vector.load %arg1[%c0_45, %c25, %c0_46] : memref<1x372x128xf32, #tpu.memory_space<vmem>>, vector<1x324x128xf32>
    %41 = vector.shape_cast %40 : vector<1x324x128xf32> to vector<324x128xf32>
    %c5_47 = arith.constant 5 : index
    %c0_48 = arith.constant 0 : index
    %c0_49 = arith.constant 0 : index
    %42 = vector.load %arg2[%c5_47, %c0_48, %c0_49] : memref<27x128x128xf32, #tpu.memory_space<vmem>>, vector<1x128x128xf32>
    %43 = vector.shape_cast %42 : vector<1x128x128xf32> to vector<128x128xf32>
    %cst_50 = arith.constant dense<0.000000e+00> : vector<324x128xf32>
    %44 = tpu.matmul %41, %43, %cst_50 {dimension_numbers = #tpu.dot_dimension_numbers<[1], [0], [0], [1], [0, 0, 1, 1], [], []>} : vector<324x128xf32>, vector<128x128xf32>, vector<324x128xf32> -> vector<324x128xf32>
    %c0_51 = arith.constant 0 : index
    %c0_52 = arith.constant 0 : index
    %45 = vector.load %arg14[%c0_51, %c0_52] : memref<324x128xf32, #tpu.memory_space<vmem>>, vector<324x128xf32>
    %46 = arith.addf %45, %44 : vector<324x128xf32>
    %c0_53 = arith.constant 0 : index
    %c0_54 = arith.constant 0 : index
    %47 = vector.load %arg14[%c0_53, %c0_54] : memref<324x128xf32, #tpu.memory_space<vmem>>, vector<324x128xf32>
    tpu.vector_store %arg14[%c0_53, %c0_54], %46 {strides = array<i32>} : memref<324x128xf32, #tpu.memory_space<vmem>>, vector<324x128xf32>,
    %c0_55 = arith.constant 0 : index
    %c41 = arith.constant 41 : index
    %c0_56 = arith.constant 0 : index
    %48 = vector.load %arg1[%c0_55, %c41, %c0_56] : memref<1x372x128xf32, #tpu.memory_space<vmem>>, vector<1x324x128xf32>
    %49 = vector.shape_cast %48 : vector<1x324x128xf32> to vector<324x128xf32>
    %c6_57 = arith.constant 6 : index
    %c0_58 = arith.constant 0 : index
    %c0_59 = arith.constant 0 : index
    %50 = vector.load %arg2[%c6_57, %c0_58, %c0_59] : memref<27x128x128xf32, #tpu.memory_space<vmem>>, vector<1x128x128xf32>
    %51 = vector.shape_cast %50 : vector<1x128x128xf32> to vector<128x128xf32>
    %cst_60 = arith.constant dense<0.000000e+00> : vector<324x128xf32>
    %52 = tpu.matmul %49, %51, %cst_60 {dimension_numbers = #tpu.dot_dimension_numbers<[1], [0], [0], [1], [0, 0, 1, 1], [], []>} : vector<324x128xf32>, vector<128x128xf32>, vector<324x128xf32> -> vector<324x128xf32>
    %c0_61 = arith.constant 0 : index
    %c0_62 = arith.constant 0 : index
    %53 = vector.load %arg14[%c0_61, %c0_62] : memref<324x128xf32, #tpu.memory_space<vmem>>, vector<324x128xf32>
    %54 = arith.addf %53, %52 : vector<324x128xf32>
    %c0_63 = arith.constant 0 : index
    %c0_64 = arith.constant 0 : index
    %55 = vector.load %arg14[%c0_63, %c0_64] : memref<324x128xf32, #tpu.memory_space<vmem>>, vector<324x128xf32>
    tpu.vector_store %arg14[%c0_63, %c0_64], %54 {strides = array<i32>} : memref<324x128xf32, #tpu.memory_space<vmem>>, vector<324x128xf32>,
    %c0_65 = arith.constant 0 : index
    %c42 = arith.constant 42 : index
    %c0_66 = arith.constant 0 : index
    %56 = vector.load %arg1[%c0_65, %c42, %c0_66] : memref<1x372x128xf32, #tpu.memory_space<vmem>>, vector<1x324x128xf32>
    %57 = vector.shape_cast %56 : vector<1x324x128xf32> to vector<324x128xf32>
    %c7_67 = arith.constant 7 : index
    %c0_68 = arith.constant 0 : index
    %c0_69 = arith.constant 0 : index
    %58 = vector.load %arg2[%c7_67, %c0_68, %c0_69] : memref<27x128x128xf32, #tpu.memory_space<vmem>>, vector<1x128x128xf32>
    %59 = vector.shape_cast %58 : vector<1x128x128xf32> to vector<128x128xf32>
    %cst_70 = arith.constant dense<0.000000e+00> : vector<324x128xf32>
    %60 = tpu.matmul %57, %59, %cst_70 {dimension_numbers = #tpu.dot_dimension_numbers<[1], [0], [0], [1], [0, 0, 1, 1], [], []>} : vector<324x128xf32>, vector<128x128xf32>, vector<324x128xf32> -> vector<324x128xf32>
    %c0_71 = arith.constant 0 : index
    %c0_72 = arith.constant 0 : index
    %61 = vector.load %arg14[%c0_71, %c0_72] : memref<324x128xf32, #tpu.memory_space<vmem>>, vector<324x128xf32>
    %62 = arith.addf %61, %60 : vector<324x128xf32>
    %c0_73 = arith.constant 0 : index
    %c0_74 = arith.constant 0 : index
    %63 = vector.load %arg14[%c0_73, %c0_74] : memref<324x128xf32, #tpu.memory_space<vmem>>, vector<324x128xf32>
    tpu.vector_store %arg14[%c0_73, %c0_74], %62 {strides = array<i32>} : memref<324x128xf32, #tpu.memory_space<vmem>>, vector<324x128xf32>,
    %c0_75 = arith.constant 0 : index
    %c43 = arith.constant 43 : index
    %c0_76 = arith.constant 0 : index
    %64 = vector.load %arg1[%c0_75, %c43, %c0_76] : memref<1x372x128xf32, #tpu.memory_space<vmem>>, vector<1x324x128xf32>
    %65 = vector.shape_cast %64 : vector<1x324x128xf32> to vector<324x128xf32>
    %c8 = arith.constant 8 : index
    %c0_77 = arith.constant 0 : index
    %c0_78 = arith.constant 0 : index
    %66 = vector.load %arg2[%c8, %c0_77, %c0_78] : memref<27x128x128xf32, #tpu.memory_space<vmem>>, vector<1x128x128xf32>
    %67 = vector.shape_cast %66 : vector<1x128x128xf32> to vector<128x128xf32>
    %cst_79 = arith.constant dense<0.000000e+00> : vector<324x128xf32>
    %68 = tpu.matmul %65, %67, %cst_79 {dimension_numbers = #tpu.dot_dimension_numbers<[1], [0], [0], [1], [0, 0, 1, 1], [], []>} : vector<324x128xf32>, vector<128x128xf32>, vector<324x128xf32> -> vector<324x128xf32>
    %c0_80 = arith.constant 0 : index
    %c0_81 = arith.constant 0 : index
    %69 = vector.load %arg14[%c0_80, %c0_81] : memref<324x128xf32, #tpu.memory_space<vmem>>, vector<324x128xf32>
    %70 = arith.addf %69, %68 : vector<324x128xf32>
    %c0_82 = arith.constant 0 : index
    %c0_83 = arith.constant 0 : index
    %71 = vector.load %arg14[%c0_82, %c0_83] : memref<324x128xf32, #tpu.memory_space<vmem>>, vector<324x128xf32>
    tpu.vector_store %arg14[%c0_82, %c0_83], %70 {strides = array<i32>} : memref<324x128xf32, #tpu.memory_space<vmem>>, vector<324x128xf32>,
    %c0_84 = arith.constant 0 : index
    %c0_85 = arith.constant 0 : index
    %72 = vector.load %arg14[%c0_84, %c0_85] : memref<324x128xf32, #tpu.memory_space<vmem>>, vector<324x128xf32>
    %c0_86 = arith.constant 0 : index
    %c0_87 = arith.constant 0 : index
    %c0_88 = arith.constant 0 : index
    %73 = vector.load %arg3[%c0_86, %c0_87, %c0_88] : memref<3x1x128xf32, #tpu.memory_space<vmem>>, vector<1x1x128xf32>
    %74 = vector.shape_cast %73 : vector<1x1x128xf32> to vector<1x128xf32>
    %75 = vector.broadcast %74 : vector<1x128xf32> to vector<324x128xf32>
    %76 = arith.addf %72, %75 : vector<324x128xf32>
    %cst_89 = arith.constant 0.000000e+00 : f32
    %77 = vector.broadcast %cst_89 : f32 to vector<324x128xf32>
    %78 = arith.maximumf %76, %77 : vector<324x128xf32>
    %c0_90 = arith.constant 0 : index
    %c0_91 = arith.constant 0 : index
    %79 = vector.load %arg4[%c0_90, %c0_91] : memref<324x1xf32, #tpu.memory_space<vmem>>, vector<324x1xf32>
    %80 = vector.broadcast %79 : vector<324x1xf32> to vector<324x128xf32>
    %81 = arith.mulf %78, %80 : vector<324x128xf32>
    %c0_92 = arith.constant 0 : index
    %c0_93 = arith.constant 0 : index
    %82 = vector.load %arg13[%c0_92, %c0_93] : memref<368x128xf32, #tpu.memory_space<vmem>>, vector<324x128xf32>
    tpu.vector_store %arg13[%c0_92, %c0_93], %81 {strides = array<i32>} : memref<368x128xf32, #tpu.memory_space<vmem>>, vector<324x128xf32>,
    %c0_94 = arith.constant 0 : index
    %c0_95 = arith.constant 0 : index
    %83 = vector.load %arg13[%c0_94, %c0_95] : memref<368x128xf32, #tpu.memory_space<vmem>>, vector<324x128xf32>
    %c1_96 = arith.constant 1 : index
    %c0_97 = arith.constant 0 : index
    %84 = vector.load %arg13[%c1_96, %c0_97] : memref<368x128xf32, #tpu.memory_space<vmem>>, vector<324x128xf32>
    %c2_98 = arith.constant 2 : index
    %c0_99 = arith.constant 0 : index
    %85 = vector.load %arg13[%c2_98, %c0_99] : memref<368x128xf32, #tpu.memory_space<vmem>>, vector<324x128xf32>
    %c18 = arith.constant 18 : index
    %c0_100 = arith.constant 0 : index
    %86 = vector.load %arg13[%c18, %c0_100] : memref<368x128xf32, #tpu.memory_space<vmem>>, vector<324x128xf32>
    %c19 = arith.constant 19 : index
    %c0_101 = arith.constant 0 : index
    %87 = vector.load %arg13[%c19, %c0_101] : memref<368x128xf32, #tpu.memory_space<vmem>>, vector<324x128xf32>
    %c20 = arith.constant 20 : index
    %c0_102 = arith.constant 0 : index
    %88 = vector.load %arg13[%c20, %c0_102] : memref<368x128xf32, #tpu.memory_space<vmem>>, vector<324x128xf32>
    %c36 = arith.constant 36 : index
    %c0_103 = arith.constant 0 : index
    %89 = vector.load %arg13[%c36, %c0_103] : memref<368x128xf32, #tpu.memory_space<vmem>>, vector<324x128xf32>
    %c37 = arith.constant 37 : index
    %c0_104 = arith.constant 0 : index
    %90 = vector.load %arg13[%c37, %c0_104] : memref<368x128xf32, #tpu.memory_space<vmem>>, vector<324x128xf32>
    %c38 = arith.constant 38 : index
    %c0_105 = arith.constant 0 : index
    %91 = vector.load %arg13[%c38, %c0_105] : memref<368x128xf32, #tpu.memory_space<vmem>>, vector<324x128xf32>
    %92 = arith.maximumf %83, %84 : vector<324x128xf32>
    %93 = arith.maximumf %85, %86 : vector<324x128xf32>
    %94 = arith.maximumf %87, %88 : vector<324x128xf32>
    %95 = arith.maximumf %89, %90 : vector<324x128xf32>
    %96 = arith.maximumf %92, %93 : vector<324x128xf32>
    %97 = arith.maximumf %94, %95 : vector<324x128xf32>
    %98 = arith.maximumf %96, %97 : vector<324x128xf32>
    %99 = arith.maximumf %98, %91 : vector<324x128xf32>
    %c0_106 = arith.constant 0 : index
    %c0_107 = arith.constant 0 : index
    %100 = vector.load %arg14[%c0_106, %c0_107] : memref<324x128xf32, #tpu.memory_space<vmem>>, vector<324x128xf32>
    tpu.vector_store %arg14[%c0_106, %c0_107], %99 {strides = array<i32>} : memref<324x128xf32, #tpu.memory_space<vmem>>, vector<324x128xf32>,
    %c0_108 = arith.constant 0 : index
    %c0_109 = arith.constant 0 : index
    %101 = vector.load %arg7[%c0_108, %c0_109] : memref<96x324xf32, #tpu.memory_space<vmem>>, vector<96x324xf32>
    %c0_110 = arith.constant 0 : index
    %c0_111 = arith.constant 0 : index
    %102 = vector.load %arg14[%c0_110, %c0_111] : memref<324x128xf32, #tpu.memory_space<vmem>>, vector<324x128xf32>
    %cst_112 = arith.constant dense<0.000000e+00> : vector<96x128xf32>
    %103 = tpu.matmul %101, %102, %cst_112 {dimension_numbers = #tpu.dot_dimension_numbers<[1], [0], [0], [1], [0, 0, 1, 1], [], []>} : vector<96x324xf32>, vector<324x128xf32>, vector<96x128xf32> -> vector<96x128xf32>
    %c0_113 = arith.constant 0 : index
    %c0_114 = arith.constant 0 : index
    %104 = vector.load %arg15[%c0_113, %c0_114] : memref<96x128xf32, #tpu.memory_space<vmem>>, vector<96x128xf32>
    tpu.vector_store %arg15[%c0_113, %c0_114], %103 {strides = array<i32>} : memref<96x128xf32, #tpu.memory_space<vmem>>, vector<96x128xf32>,
    %c7_115 = arith.constant 7 : index
    %c0_116 = arith.constant 0 : index
    %105 = vector.load %arg15[%c7_115, %c0_116] : memref<96x128xf32, #tpu.memory_space<vmem>>, vector<64x128xf32>
    %c9 = arith.constant 9 : index
    %c0_117 = arith.constant 0 : index
    %c0_118 = arith.constant 0 : index
    %106 = vector.load %arg2[%c9, %c0_117, %c0_118] : memref<27x128x128xf32, #tpu.memory_space<vmem>>, vector<1x128x128xf32>
    %107 = vector.shape_cast %106 : vector<1x128x128xf32> to vector<128x128xf32>
    %cst_119 = arith.constant dense<0.000000e+00> : vector<64x128xf32>
    %108 = tpu.matmul %105, %107, %cst_119 {dimension_numbers = #tpu.dot_dimension_numbers<[1], [0], [0], [1], [0, 0, 1, 1], [], []>} : vector<64x128xf32>, vector<128x128xf32>, vector<64x128xf32> -> vector<64x128xf32>
    %c0_120 = arith.constant 0 : index
    %c0_121 = arith.constant 0 : index
    %109 = vector.load %arg14[%c0_120, %c0_121] : memref<324x128xf32, #tpu.memory_space<vmem>>, vector<64x128xf32>
    tpu.vector_store %arg14[%c0_120, %c0_121], %108 {strides = array<i32>} : memref<324x128xf32, #tpu.memory_space<vmem>>, vector<64x128xf32>,
    %c8_122 = arith.constant 8 : index
    %c0_123 = arith.constant 0 : index
    %110 = vector.load %arg15[%c8_122, %c0_123] : memref<96x128xf32, #tpu.memory_space<vmem>>, vector<64x128xf32>
    %c10 = arith.constant 10 : index
    %c0_124 = arith.constant 0 : index
    %c0_125 = arith.constant 0 : index
    %111 = vector.load %arg2[%c10, %c0_124, %c0_125] : memref<27x128x128xf32, #tpu.memory_space<vmem>>, vector<1x128x128xf32>
    %112 = vector.shape_cast %111 : vector<1x128x128xf32> to vector<128x128xf32>
    %cst_126 = arith.constant dense<0.000000e+00> : vector<64x128xf32>
    %113 = tpu.matmul %110, %112, %cst_126 {dimension_numbers = #tpu.dot_dimension_numbers<[1], [0], [0], [1], [0, 0, 1, 1], [], []>} : vector<64x128xf32>, vector<128x128xf32>, vector<64x128xf32> -> vector<64x128xf32>
    %c0_127 = arith.constant 0 : index
    %c0_128 = arith.constant 0 : index
    %114 = vector.load %arg14[%c0_127, %c0_128] : memref<324x128xf32, #tpu.memory_space<vmem>>, vector<64x128xf32>
    %115 = arith.addf %114, %113 : vector<64x128xf32>
    %c0_129 = arith.constant 0 : index
    %c0_130 = arith.constant 0 : index
    %116 = vector.load %arg14[%c0_129, %c0_130] : memref<324x128xf32, #tpu.memory_space<vmem>>, vector<64x128xf32>
    tpu.vector_store %arg14[%c0_129, %c0_130], %115 {strides = array<i32>} : memref<324x128xf32, #tpu.memory_space<vmem>>, vector<64x128xf32>,
    %c9_131 = arith.constant 9 : index
    %c0_132 = arith.constant 0 : index
    %117 = vector.load %arg15[%c9_131, %c0_132] : memref<96x128xf32, #tpu.memory_space<vmem>>, vector<64x128xf32>
    %c11 = arith.constant 11 : index
    %c0_133 = arith.constant 0 : index
    %c0_134 = arith.constant 0 : index
    %118 = vector.load %arg2[%c11, %c0_133, %c0_134] : memref<27x128x128xf32, #tpu.memory_space<vmem>>, vector<1x128x128xf32>
    %119 = vector.shape_cast %118 : vector<1x128x128xf32> to vector<128x128xf32>
    %cst_135 = arith.constant dense<0.000000e+00> : vector<64x128xf32>
    %120 = tpu.matmul %117, %119, %cst_135 {dimension_numbers = #tpu.dot_dimension_numbers<[1], [0], [0], [1], [0, 0, 1, 1], [], []>} : vector<64x128xf32>, vector<128x128xf32>, vector<64x128xf32> -> vector<64x128xf32>
    %c0_136 = arith.constant 0 : index
    %c0_137 = arith.constant 0 : index
    %121 = vector.load %arg14[%c0_136, %c0_137] : memref<324x128xf32, #tpu.memory_space<vmem>>, vector<64x128xf32>
    %122 = arith.addf %121, %120 : vector<64x128xf32>
    %c0_138 = arith.constant 0 : index
    %c0_139 = arith.constant 0 : index
    %123 = vector.load %arg14[%c0_138, %c0_139] : memref<324x128xf32, #tpu.memory_space<vmem>>, vector<64x128xf32>
    tpu.vector_store %arg14[%c0_138, %c0_139], %122 {strides = array<i32>} : memref<324x128xf32, #tpu.memory_space<vmem>>, vector<64x128xf32>,
    %c15 = arith.constant 15 : index
    %c0_140 = arith.constant 0 : index
    %124 = vector.load %arg15[%c15, %c0_140] : memref<96x128xf32, #tpu.memory_space<vmem>>, vector<64x128xf32>
    %c12 = arith.constant 12 : index
    %c0_141 = arith.constant 0 : index
    %c0_142 = arith.constant 0 : index
    %125 = vector.load %arg2[%c12, %c0_141, %c0_142] : memref<27x128x128xf32, #tpu.memory_space<vmem>>, vector<1x128x128xf32>
    %126 = vector.shape_cast %125 : vector<1x128x128xf32> to vector<128x128xf32>
    %cst_143 = arith.constant dense<0.000000e+00> : vector<64x128xf32>
    %127 = tpu.matmul %124, %126, %cst_143 {dimension_numbers = #tpu.dot_dimension_numbers<[1], [0], [0], [1], [0, 0, 1, 1], [], []>} : vector<64x128xf32>, vector<128x128xf32>, vector<64x128xf32> -> vector<64x128xf32>
    %c0_144 = arith.constant 0 : index
    %c0_145 = arith.constant 0 : index
    %128 = vector.load %arg14[%c0_144, %c0_145] : memref<324x128xf32, #tpu.memory_space<vmem>>, vector<64x128xf32>
    %129 = arith.addf %128, %127 : vector<64x128xf32>
    %c0_146 = arith.constant 0 : index
    %c0_147 = arith.constant 0 : index
    %130 = vector.load %arg14[%c0_146, %c0_147] : memref<324x128xf32, #tpu.memory_space<vmem>>, vector<64x128xf32>
    tpu.vector_store %arg14[%c0_146, %c0_147], %129 {strides = array<i32>} : memref<324x128xf32, #tpu.memory_space<vmem>>, vector<64x128xf32>,
    %c16 = arith.constant 16 : index
    %c0_148 = arith.constant 0 : index
    %131 = vector.load %arg15[%c16, %c0_148] : memref<96x128xf32, #tpu.memory_space<vmem>>, vector<64x128xf32>
    %c13 = arith.constant 13 : index
    %c0_149 = arith.constant 0 : index
    %c0_150 = arith.constant 0 : index
    %132 = vector.load %arg2[%c13, %c0_149, %c0_150] : memref<27x128x128xf32, #tpu.memory_space<vmem>>, vector<1x128x128xf32>
    %133 = vector.shape_cast %132 : vector<1x128x128xf32> to vector<128x128xf32>
    %cst_151 = arith.constant dense<0.000000e+00> : vector<64x128xf32>
    %134 = tpu.matmul %131, %133, %cst_151 {dimension_numbers = #tpu.dot_dimension_numbers<[1], [0], [0], [1], [0, 0, 1, 1], [], []>} : vector<64x128xf32>, vector<128x128xf32>, vector<64x128xf32> -> vector<64x128xf32>
    %c0_152 = arith.constant 0 : index
    %c0_153 = arith.constant 0 : index
    %135 = vector.load %arg14[%c0_152, %c0_153] : memref<324x128xf32, #tpu.memory_space<vmem>>, vector<64x128xf32>
    %136 = arith.addf %135, %134 : vector<64x128xf32>
    %c0_154 = arith.constant 0 : index
    %c0_155 = arith.constant 0 : index
    %137 = vector.load %arg14[%c0_154, %c0_155] : memref<324x128xf32, #tpu.memory_space<vmem>>, vector<64x128xf32>
    tpu.vector_store %arg14[%c0_154, %c0_155], %136 {strides = array<i32>} : memref<324x128xf32, #tpu.memory_space<vmem>>, vector<64x128xf32>,
    %c17 = arith.constant 17 : index
    %c0_156 = arith.constant 0 : index
    %138 = vector.load %arg15[%c17, %c0_156] : memref<96x128xf32, #tpu.memory_space<vmem>>, vector<64x128xf32>
    %c14 = arith.constant 14 : index
    %c0_157 = arith.constant 0 : index
    %c0_158 = arith.constant 0 : index
    %139 = vector.load %arg2[%c14, %c0_157, %c0_158] : memref<27x128x128xf32, #tpu.memory_space<vmem>>, vector<1x128x128xf32>
    %140 = vector.shape_cast %139 : vector<1x128x128xf32> to vector<128x128xf32>
    %cst_159 = arith.constant dense<0.000000e+00> : vector<64x128xf32>
    %141 = tpu.matmul %138, %140, %cst_159 {dimension_numbers = #tpu.dot_dimension_numbers<[1], [0], [0], [1], [0, 0, 1, 1], [], []>} : vector<64x128xf32>, vector<128x128xf32>, vector<64x128xf32> -> vector<64x128xf32>
    %c0_160 = arith.constant 0 : index
    %c0_161 = arith.constant 0 : index
    %142 = vector.load %arg14[%c0_160, %c0_161] : memref<324x128xf32, #tpu.memory_space<vmem>>, vector<64x128xf32>
    %143 = arith.addf %142, %141 : vector<64x128xf32>
    %c0_162 = arith.constant 0 : index
    %c0_163 = arith.constant 0 : index
    %144 = vector.load %arg14[%c0_162, %c0_163] : memref<324x128xf32, #tpu.memory_space<vmem>>, vector<64x128xf32>
    tpu.vector_store %arg14[%c0_162, %c0_163], %143 {strides = array<i32>} : memref<324x128xf32, #tpu.memory_space<vmem>>, vector<64x128xf32>,
    %c23_164 = arith.constant 23 : index
    %c0_165 = arith.constant 0 : index
    %145 = vector.load %arg15[%c23_164, %c0_165] : memref<96x128xf32, #tpu.memory_space<vmem>>, vector<64x128xf32>
    %c15_166 = arith.constant 15 : index
    %c0_167 = arith.constant 0 : index
    %c0_168 = arith.constant 0 : index
    %146 = vector.load %arg2[%c15_166, %c0_167, %c0_168] : memref<27x128x128xf32, #tpu.memory_space<vmem>>, vector<1x128x128xf32>
    %147 = vector.shape_cast %146 : vector<1x128x128xf32> to vector<128x128xf32>
    %cst_169 = arith.constant dense<0.000000e+00> : vector<64x128xf32>
    %148 = tpu.matmul %145, %147, %cst_169 {dimension_numbers = #tpu.dot_dimension_numbers<[1], [0], [0], [1], [0, 0, 1, 1], [], []>} : vector<64x128xf32>, vector<128x128xf32>, vector<64x128xf32> -> vector<64x128xf32>
    %c0_170 = arith.constant 0 : index
    %c0_171 = arith.constant 0 : index
    %149 = vector.load %arg14[%c0_170, %c0_171] : memref<324x128xf32, #tpu.memory_space<vmem>>, vector<64x128xf32>
    %150 = arith.addf %149, %148 : vector<64x128xf32>
    %c0_172 = arith.constant 0 : index
    %c0_173 = arith.constant 0 : index
    %151 = vector.load %arg14[%c0_172, %c0_173] : memref<324x128xf32, #tpu.memory_space<vmem>>, vector<64x128xf32>
    tpu.vector_store %arg14[%c0_172, %c0_173], %150 {strides = array<i32>} : memref<324x128xf32, #tpu.memory_space<vmem>>, vector<64x128xf32>,
    %c24_174 = arith.constant 24 : index
    %c0_175 = arith.constant 0 : index
    %152 = vector.load %arg15[%c24_174, %c0_175] : memref<96x128xf32, #tpu.memory_space<vmem>>, vector<64x128xf32>
    %c16_176 = arith.constant 16 : index
    %c0_177 = arith.constant 0 : index
    %c0_178 = arith.constant 0 : index
    %153 = vector.load %arg2[%c16_176, %c0_177, %c0_178] : memref<27x128x128xf32, #tpu.memory_space<vmem>>, vector<1x128x128xf32>
    %154 = vector.shape_cast %153 : vector<1x128x128xf32> to vector<128x128xf32>
    %cst_179 = arith.constant dense<0.000000e+00> : vector<64x128xf32>
    %155 = tpu.matmul %152, %154, %cst_179 {dimension_numbers = #tpu.dot_dimension_numbers<[1], [0], [0], [1], [0, 0, 1, 1], [], []>} : vector<64x128xf32>, vector<128x128xf32>, vector<64x128xf32> -> vector<64x128xf32>
    %c0_180 = arith.constant 0 : index
    %c0_181 = arith.constant 0 : index
    %156 = vector.load %arg14[%c0_180, %c0_181] : memref<324x128xf32, #tpu.memory_space<vmem>>, vector<64x128xf32>
    %157 = arith.addf %156, %155 : vector<64x128xf32>
    %c0_182 = arith.constant 0 : index
    %c0_183 = arith.constant 0 : index
    %158 = vector.load %arg14[%c0_182, %c0_183] : memref<324x128xf32, #tpu.memory_space<vmem>>, vector<64x128xf32>
    tpu.vector_store %arg14[%c0_182, %c0_183], %157 {strides = array<i32>} : memref<324x128xf32, #tpu.memory_space<vmem>>, vector<64x128xf32>,
    %c25_184 = arith.constant 25 : index
    %c0_185 = arith.constant 0 : index
    %159 = vector.load %arg15[%c25_184, %c0_185] : memref<96x128xf32, #tpu.memory_space<vmem>>, vector<64x128xf32>
    %c17_186 = arith.constant 17 : index
    %c0_187 = arith.constant 0 : index
    %c0_188 = arith.constant 0 : index
    %160 = vector.load %arg2[%c17_186, %c0_187, %c0_188] : memref<27x128x128xf32, #tpu.memory_space<vmem>>, vector<1x128x128xf32>
    %161 = vector.shape_cast %160 : vector<1x128x128xf32> to vector<128x128xf32>
    %cst_189 = arith.constant dense<0.000000e+00> : vector<64x128xf32>
    %162 = tpu.matmul %159, %161, %cst_189 {dimension_numbers = #tpu.dot_dimension_numbers<[1], [0], [0], [1], [0, 0, 1, 1], [], []>} : vector<64x128xf32>, vector<128x128xf32>, vector<64x128xf32> -> vector<64x128xf32>
    %c0_190 = arith.constant 0 : index
    %c0_191 = arith.constant 0 : index
    %163 = vector.load %arg14[%c0_190, %c0_191] : memref<324x128xf32, #tpu.memory_space<vmem>>, vector<64x128xf32>
    %164 = arith.addf %163, %162 : vector<64x128xf32>
    %c0_192 = arith.constant 0 : index
    %c0_193 = arith.constant 0 : index
    %165 = vector.load %arg14[%c0_192, %c0_193] : memref<324x128xf32, #tpu.memory_space<vmem>>, vector<64x128xf32>
    tpu.vector_store %arg14[%c0_192, %c0_193], %164 {strides = array<i32>} : memref<324x128xf32, #tpu.memory_space<vmem>>, vector<64x128xf32>,
    %c0_194 = arith.constant 0 : index
    %c0_195 = arith.constant 0 : index
    %166 = vector.load %arg14[%c0_194, %c0_195] : memref<324x128xf32, #tpu.memory_space<vmem>>, vector<64x128xf32>
    %c1_196 = arith.constant 1 : index
    %c0_197 = arith.constant 0 : index
    %c0_198 = arith.constant 0 : index
    %167 = vector.load %arg3[%c1_196, %c0_197, %c0_198] : memref<3x1x128xf32, #tpu.memory_space<vmem>>, vector<1x1x128xf32>
    %168 = vector.shape_cast %167 : vector<1x1x128xf32> to vector<1x128xf32>
    %169 = vector.broadcast %168 : vector<1x128xf32> to vector<64x128xf32>
    %170 = arith.addf %166, %169 : vector<64x128xf32>
    %cst_199 = arith.constant 0.000000e+00 : f32
    %171 = vector.broadcast %cst_199 : f32 to vector<64x128xf32>
    %172 = arith.maximumf %170, %171 : vector<64x128xf32>
    %c0_200 = arith.constant 0 : index
    %c0_201 = arith.constant 0 : index
    %173 = vector.load %arg5[%c0_200, %c0_201] : memref<64x1xf32, #tpu.memory_space<vmem>>, vector<64x1xf32>
    %174 = vector.broadcast %173 : vector<64x1xf32> to vector<64x128xf32>
    %175 = arith.mulf %172, %174 : vector<64x128xf32>
    %c0_202 = arith.constant 0 : index
    %c0_203 = arith.constant 0 : index
    %176 = vector.load %arg13[%c0_202, %c0_203] : memref<368x128xf32, #tpu.memory_space<vmem>>, vector<64x128xf32>
    tpu.vector_store %arg13[%c0_202, %c0_203], %175 {strides = array<i32>} : memref<368x128xf32, #tpu.memory_space<vmem>>, vector<64x128xf32>,
    %c0_204 = arith.constant 0 : index
    %c0_205 = arith.constant 0 : index
    %177 = vector.load %arg13[%c0_204, %c0_205] : memref<368x128xf32, #tpu.memory_space<vmem>>, vector<64x128xf32>
    %c1_206 = arith.constant 1 : index
    %c0_207 = arith.constant 0 : index
    %178 = vector.load %arg13[%c1_206, %c0_207] : memref<368x128xf32, #tpu.memory_space<vmem>>, vector<64x128xf32>
    %c2_208 = arith.constant 2 : index
    %c0_209 = arith.constant 0 : index
    %179 = vector.load %arg13[%c2_208, %c0_209] : memref<368x128xf32, #tpu.memory_space<vmem>>, vector<64x128xf32>
    %c8_210 = arith.constant 8 : index
    %c0_211 = arith.constant 0 : index
    %180 = vector.load %arg13[%c8_210, %c0_211] : memref<368x128xf32, #tpu.memory_space<vmem>>, vector<64x128xf32>
    %c9_212 = arith.constant 9 : index
    %c0_213 = arith.constant 0 : index
    %181 = vector.load %arg13[%c9_212, %c0_213] : memref<368x128xf32, #tpu.memory_space<vmem>>, vector<64x128xf32>
    %c10_214 = arith.constant 10 : index
    %c0_215 = arith.constant 0 : index
    %182 = vector.load %arg13[%c10_214, %c0_215] : memref<368x128xf32, #tpu.memory_space<vmem>>, vector<64x128xf32>
    %c16_216 = arith.constant 16 : index
    %c0_217 = arith.constant 0 : index
    %183 = vector.load %arg13[%c16_216, %c0_217] : memref<368x128xf32, #tpu.memory_space<vmem>>, vector<64x128xf32>
    %c17_218 = arith.constant 17 : index
    %c0_219 = arith.constant 0 : index
    %184 = vector.load %arg13[%c17_218, %c0_219] : memref<368x128xf32, #tpu.memory_space<vmem>>, vector<64x128xf32>
    %c18_220 = arith.constant 18 : index
    %c0_221 = arith.constant 0 : index
    %185 = vector.load %arg13[%c18_220, %c0_221] : memref<368x128xf32, #tpu.memory_space<vmem>>, vector<64x128xf32>
    %186 = arith.maximumf %177, %178 : vector<64x128xf32>
    %187 = arith.maximumf %179, %180 : vector<64x128xf32>
    %188 = arith.maximumf %181, %182 : vector<64x128xf32>
    %189 = arith.maximumf %183, %184 : vector<64x128xf32>
    %190 = arith.maximumf %186, %187 : vector<64x128xf32>
    %191 = arith.maximumf %188, %189 : vector<64x128xf32>
    %192 = arith.maximumf %190, %191 : vector<64x128xf32>
    %193 = arith.maximumf %192, %185 : vector<64x128xf32>
    %c0_222 = arith.constant 0 : index
    %c0_223 = arith.constant 0 : index
    %194 = vector.load %arg14[%c0_222, %c0_223] : memref<324x128xf32, #tpu.memory_space<vmem>>, vector<64x128xf32>
    tpu.vector_store %arg14[%c0_222, %c0_223], %193 {strides = array<i32>} : memref<324x128xf32, #tpu.memory_space<vmem>>, vector<64x128xf32>,
    %c0_224 = arith.constant 0 : index
    %c0_225 = arith.constant 0 : index
    %195 = vector.load %arg8[%c0_224, %c0_225] : memref<32x64xf32, #tpu.memory_space<vmem>>, vector<32x64xf32>
    %c0_226 = arith.constant 0 : index
    %c0_227 = arith.constant 0 : index
    %196 = vector.load %arg14[%c0_226, %c0_227] : memref<324x128xf32, #tpu.memory_space<vmem>>, vector<64x128xf32>
    %cst_228 = arith.constant dense<0.000000e+00> : vector<32x128xf32>
    %197 = tpu.matmul %195, %196, %cst_228 {dimension_numbers = #tpu.dot_dimension_numbers<[1], [0], [0], [1], [0, 0, 1, 1], [], []>} : vector<32x64xf32>, vector<64x128xf32>, vector<32x128xf32> -> vector<32x128xf32>
    %c0_229 = arith.constant 0 : index
    %c0_230 = arith.constant 0 : index
    %198 = vector.load %arg16[%c0_229, %c0_230] : memref<32x128xf32, #tpu.memory_space<vmem>>, vector<32x128xf32>
    tpu.vector_store %arg16[%c0_229, %c0_230], %197 {strides = array<i32>} : memref<32x128xf32, #tpu.memory_space<vmem>>, vector<32x128xf32>,
    %c3_231 = arith.constant 3 : index
    %c0_232 = arith.constant 0 : index
    %199 = vector.load %arg16[%c3_231, %c0_232] : memref<32x128xf32, #tpu.memory_space<vmem>>, vector<16x128xf32>
    %c18_233 = arith.constant 18 : index
    %c0_234 = arith.constant 0 : index
    %c0_235 = arith.constant 0 : index
    %200 = vector.load %arg2[%c18_233, %c0_234, %c0_235] : memref<27x128x128xf32, #tpu.memory_space<vmem>>, vector<1x128x128xf32>
    %201 = vector.shape_cast %200 : vector<1x128x128xf32> to vector<128x128xf32>
    %cst_236 = arith.constant dense<0.000000e+00> : vector<16x128xf32>
    %202 = tpu.matmul %199, %201, %cst_236 {dimension_numbers = #tpu.dot_dimension_numbers<[1], [0], [0], [1], [0, 0, 1, 1], [], []>} : vector<16x128xf32>, vector<128x128xf32>, vector<16x128xf32> -> vector<16x128xf32>
    %c0_237 = arith.constant 0 : index
    %c0_238 = arith.constant 0 : index
    %203 = vector.load %arg14[%c0_237, %c0_238] : memref<324x128xf32, #tpu.memory_space<vmem>>, vector<16x128xf32>
    tpu.vector_store %arg14[%c0_237, %c0_238], %202 {strides = array<i32>} : memref<324x128xf32, #tpu.memory_space<vmem>>, vector<16x128xf32>,
    %c4_239 = arith.constant 4 : index
    %c0_240 = arith.constant 0 : index
    %204 = vector.load %arg16[%c4_239, %c0_240] : memref<32x128xf32, #tpu.memory_space<vmem>>, vector<16x128xf32>
    %c19_241 = arith.constant 19 : index
    %c0_242 = arith.constant 0 : index
    %c0_243 = arith.constant 0 : index
    %205 = vector.load %arg2[%c19_241, %c0_242, %c0_243] : memref<27x128x128xf32, #tpu.memory_space<vmem>>, vector<1x128x128xf32>
    %206 = vector.shape_cast %205 : vector<1x128x128xf32> to vector<128x128xf32>
    %cst_244 = arith.constant dense<0.000000e+00> : vector<16x128xf32>
    %207 = tpu.matmul %204, %206, %cst_244 {dimension_numbers = #tpu.dot_dimension_numbers<[1], [0], [0], [1], [0, 0, 1, 1], [], []>} : vector<16x128xf32>, vector<128x128xf32>, vector<16x128xf32> -> vector<16x128xf32>
    %c0_245 = arith.constant 0 : index
    %c0_246 = arith.constant 0 : index
    %208 = vector.load %arg14[%c0_245, %c0_246] : memref<324x128xf32, #tpu.memory_space<vmem>>, vector<16x128xf32>
    %209 = arith.addf %208, %207 : vector<16x128xf32>
    %c0_247 = arith.constant 0 : index
    %c0_248 = arith.constant 0 : index
    %210 = vector.load %arg14[%c0_247, %c0_248] : memref<324x128xf32, #tpu.memory_space<vmem>>, vector<16x128xf32>
    tpu.vector_store %arg14[%c0_247, %c0_248], %209 {strides = array<i32>} : memref<324x128xf32, #tpu.memory_space<vmem>>, vector<16x128xf32>,
    %c5_249 = arith.constant 5 : index
    %c0_250 = arith.constant 0 : index
    %211 = vector.load %arg16[%c5_249, %c0_250] : memref<32x128xf32, #tpu.memory_space<vmem>>, vector<16x128xf32>
    %c20_251 = arith.constant 20 : index
    %c0_252 = arith.constant 0 : index
    %c0_253 = arith.constant 0 : index
    %212 = vector.load %arg2[%c20_251, %c0_252, %c0_253] : memref<27x128x128xf32, #tpu.memory_space<vmem>>, vector<1x128x128xf32>
    %213 = vector.shape_cast %212 : vector<1x128x128xf32> to vector<128x128xf32>
    %cst_254 = arith.constant dense<0.000000e+00> : vector<16x128xf32>
    %214 = tpu.matmul %211, %213, %cst_254 {dimension_numbers = #tpu.dot_dimension_numbers<[1], [0], [0], [1], [0, 0, 1, 1], [], []>} : vector<16x128xf32>, vector<128x128xf32>, vector<16x128xf32> -> vector<16x128xf32>
    %c0_255 = arith.constant 0 : index
    %c0_256 = arith.constant 0 : index
    %215 = vector.load %arg14[%c0_255, %c0_256] : memref<324x128xf32, #tpu.memory_space<vmem>>, vector<16x128xf32>
    %216 = arith.addf %215, %214 : vector<16x128xf32>
    %c0_257 = arith.constant 0 : index
    %c0_258 = arith.constant 0 : index
    %217 = vector.load %arg14[%c0_257, %c0_258] : memref<324x128xf32, #tpu.memory_space<vmem>>, vector<16x128xf32>
    tpu.vector_store %arg14[%c0_257, %c0_258], %216 {strides = array<i32>} : memref<324x128xf32, #tpu.memory_space<vmem>>, vector<16x128xf32>,
    %c7_259 = arith.constant 7 : index
    %c0_260 = arith.constant 0 : index
    %218 = vector.load %arg16[%c7_259, %c0_260] : memref<32x128xf32, #tpu.memory_space<vmem>>, vector<16x128xf32>
    %c21 = arith.constant 21 : index
    %c0_261 = arith.constant 0 : index
    %c0_262 = arith.constant 0 : index
    %219 = vector.load %arg2[%c21, %c0_261, %c0_262] : memref<27x128x128xf32, #tpu.memory_space<vmem>>, vector<1x128x128xf32>
    %220 = vector.shape_cast %219 : vector<1x128x128xf32> to vector<128x128xf32>
    %cst_263 = arith.constant dense<0.000000e+00> : vector<16x128xf32>
    %221 = tpu.matmul %218, %220, %cst_263 {dimension_numbers = #tpu.dot_dimension_numbers<[1], [0], [0], [1], [0, 0, 1, 1], [], []>} : vector<16x128xf32>, vector<128x128xf32>, vector<16x128xf32> -> vector<16x128xf32>
    %c0_264 = arith.constant 0 : index
    %c0_265 = arith.constant 0 : index
    %222 = vector.load %arg14[%c0_264, %c0_265] : memref<324x128xf32, #tpu.memory_space<vmem>>, vector<16x128xf32>
    %223 = arith.addf %222, %221 : vector<16x128xf32>
    %c0_266 = arith.constant 0 : index
    %c0_267 = arith.constant 0 : index
    %224 = vector.load %arg14[%c0_266, %c0_267] : memref<324x128xf32, #tpu.memory_space<vmem>>, vector<16x128xf32>
    tpu.vector_store %arg14[%c0_266, %c0_267], %223 {strides = array<i32>} : memref<324x128xf32, #tpu.memory_space<vmem>>, vector<16x128xf32>,
    %c8_268 = arith.constant 8 : index
    %c0_269 = arith.constant 0 : index
    %225 = vector.load %arg16[%c8_268, %c0_269] : memref<32x128xf32, #tpu.memory_space<vmem>>, vector<16x128xf32>
    %c22 = arith.constant 22 : index
    %c0_270 = arith.constant 0 : index
    %c0_271 = arith.constant 0 : index
    %226 = vector.load %arg2[%c22, %c0_270, %c0_271] : memref<27x128x128xf32, #tpu.memory_space<vmem>>, vector<1x128x128xf32>
    %227 = vector.shape_cast %226 : vector<1x128x128xf32> to vector<128x128xf32>
    %cst_272 = arith.constant dense<0.000000e+00> : vector<16x128xf32>
    %228 = tpu.matmul %225, %227, %cst_272 {dimension_numbers = #tpu.dot_dimension_numbers<[1], [0], [0], [1], [0, 0, 1, 1], [], []>} : vector<16x128xf32>, vector<128x128xf32>, vector<16x128xf32> -> vector<16x128xf32>
    %c0_273 = arith.constant 0 : index
    %c0_274 = arith.constant 0 : index
    %229 = vector.load %arg14[%c0_273, %c0_274] : memref<324x128xf32, #tpu.memory_space<vmem>>, vector<16x128xf32>
    %230 = arith.addf %229, %228 : vector<16x128xf32>
    %c0_275 = arith.constant 0 : index
    %c0_276 = arith.constant 0 : index
    %231 = vector.load %arg14[%c0_275, %c0_276] : memref<324x128xf32, #tpu.memory_space<vmem>>, vector<16x128xf32>
    tpu.vector_store %arg14[%c0_275, %c0_276], %230 {strides = array<i32>} : memref<324x128xf32, #tpu.memory_space<vmem>>, vector<16x128xf32>,
    %c9_277 = arith.constant 9 : index
    %c0_278 = arith.constant 0 : index
    %232 = vector.load %arg16[%c9_277, %c0_278] : memref<32x128xf32, #tpu.memory_space<vmem>>, vector<16x128xf32>
    %c23_279 = arith.constant 23 : index
    %c0_280 = arith.constant 0 : index
    %c0_281 = arith.constant 0 : index
    %233 = vector.load %arg2[%c23_279, %c0_280, %c0_281] : memref<27x128x128xf32, #tpu.memory_space<vmem>>, vector<1x128x128xf32>
    %234 = vector.shape_cast %233 : vector<1x128x128xf32> to vector<128x128xf32>
    %cst_282 = arith.constant dense<0.000000e+00> : vector<16x128xf32>
    %235 = tpu.matmul %232, %234, %cst_282 {dimension_numbers = #tpu.dot_dimension_numbers<[1], [0], [0], [1], [0, 0, 1, 1], [], []>} : vector<16x128xf32>, vector<128x128xf32>, vector<16x128xf32> -> vector<16x128xf32>
    %c0_283 = arith.constant 0 : index
    %c0_284 = arith.constant 0 : index
    %236 = vector.load %arg14[%c0_283, %c0_284] : memref<324x128xf32, #tpu.memory_space<vmem>>, vector<16x128xf32>
    %237 = arith.addf %236, %235 : vector<16x128xf32>
    %c0_285 = arith.constant 0 : index
    %c0_286 = arith.constant 0 : index
    %238 = vector.load %arg14[%c0_285, %c0_286] : memref<324x128xf32, #tpu.memory_space<vmem>>, vector<16x128xf32>
    tpu.vector_store %arg14[%c0_285, %c0_286], %237 {strides = array<i32>} : memref<324x128xf32, #tpu.memory_space<vmem>>, vector<16x128xf32>,
    %c11_287 = arith.constant 11 : index
    %c0_288 = arith.constant 0 : index
    %239 = vector.load %arg16[%c11_287, %c0_288] : memref<32x128xf32, #tpu.memory_space<vmem>>, vector<16x128xf32>
    %c24_289 = arith.constant 24 : index
    %c0_290 = arith.constant 0 : index
    %c0_291 = arith.constant 0 : index
    %240 = vector.load %arg2[%c24_289, %c0_290, %c0_291] : memref<27x128x128xf32, #tpu.memory_space<vmem>>, vector<1x128x128xf32>
    %241 = vector.shape_cast %240 : vector<1x128x128xf32> to vector<128x128xf32>
    %cst_292 = arith.constant dense<0.000000e+00> : vector<16x128xf32>
    %242 = tpu.matmul %239, %241, %cst_292 {dimension_numbers = #tpu.dot_dimension_numbers<[1], [0], [0], [1], [0, 0, 1, 1], [], []>} : vector<16x128xf32>, vector<128x128xf32>, vector<16x128xf32> -> vector<16x128xf32>
    %c0_293 = arith.constant 0 : index
    %c0_294 = arith.constant 0 : index
    %243 = vector.load %arg14[%c0_293, %c0_294] : memref<324x128xf32, #tpu.memory_space<vmem>>, vector<16x128xf32>
    %244 = arith.addf %243, %242 : vector<16x128xf32>
    %c0_295 = arith.constant 0 : index
    %c0_296 = arith.constant 0 : index
    %245 = vector.load %arg14[%c0_295, %c0_296] : memref<324x128xf32, #tpu.memory_space<vmem>>, vector<16x128xf32>
    tpu.vector_store %arg14[%c0_295, %c0_296], %244 {strides = array<i32>} : memref<324x128xf32, #tpu.memory_space<vmem>>, vector<16x128xf32>,
    %c12_297 = arith.constant 12 : index
    %c0_298 = arith.constant 0 : index
    %246 = vector.load %arg16[%c12_297, %c0_298] : memref<32x128xf32, #tpu.memory_space<vmem>>, vector<16x128xf32>
    %c25_299 = arith.constant 25 : index
    %c0_300 = arith.constant 0 : index
    %c0_301 = arith.constant 0 : index
    %247 = vector.load %arg2[%c25_299, %c0_300, %c0_301] : memref<27x128x128xf32, #tpu.memory_space<vmem>>, vector<1x128x128xf32>
    %248 = vector.shape_cast %247 : vector<1x128x128xf32> to vector<128x128xf32>
    %cst_302 = arith.constant dense<0.000000e+00> : vector<16x128xf32>
    %249 = tpu.matmul %246, %248, %cst_302 {dimension_numbers = #tpu.dot_dimension_numbers<[1], [0], [0], [1], [0, 0, 1, 1], [], []>} : vector<16x128xf32>, vector<128x128xf32>, vector<16x128xf32> -> vector<16x128xf32>
    %c0_303 = arith.constant 0 : index
    %c0_304 = arith.constant 0 : index
    %250 = vector.load %arg14[%c0_303, %c0_304] : memref<324x128xf32, #tpu.memory_space<vmem>>, vector<16x128xf32>
    %251 = arith.addf %250, %249 : vector<16x128xf32>
    %c0_305 = arith.constant 0 : index
    %c0_306 = arith.constant 0 : index
    %252 = vector.load %arg14[%c0_305, %c0_306] : memref<324x128xf32, #tpu.memory_space<vmem>>, vector<16x128xf32>
    tpu.vector_store %arg14[%c0_305, %c0_306], %251 {strides = array<i32>} : memref<324x128xf32, #tpu.memory_space<vmem>>, vector<16x128xf32>,
    %c13_307 = arith.constant 13 : index
    %c0_308 = arith.constant 0 : index
    %253 = vector.load %arg16[%c13_307, %c0_308] : memref<32x128xf32, #tpu.memory_space<vmem>>, vector<16x128xf32>
    %c26 = arith.constant 26 : index
    %c0_309 = arith.constant 0 : index
    %c0_310 = arith.constant 0 : index
    %254 = vector.load %arg2[%c26, %c0_309, %c0_310] : memref<27x128x128xf32, #tpu.memory_space<vmem>>, vector<1x128x128xf32>
    %255 = vector.shape_cast %254 : vector<1x128x128xf32> to vector<128x128xf32>
    %cst_311 = arith.constant dense<0.000000e+00> : vector<16x128xf32>
    %256 = tpu.matmul %253, %255, %cst_311 {dimension_numbers = #tpu.dot_dimension_numbers<[1], [0], [0], [1], [0, 0, 1, 1], [], []>} : vector<16x128xf32>, vector<128x128xf32>, vector<16x128xf32> -> vector<16x128xf32>
    %c0_312 = arith.constant 0 : index
    %c0_313 = arith.constant 0 : index
    %257 = vector.load %arg14[%c0_312, %c0_313] : memref<324x128xf32, #tpu.memory_space<vmem>>, vector<16x128xf32>
    %258 = arith.addf %257, %256 : vector<16x128xf32>
    %c0_314 = arith.constant 0 : index
    %c0_315 = arith.constant 0 : index
    %259 = vector.load %arg14[%c0_314, %c0_315] : memref<324x128xf32, #tpu.memory_space<vmem>>, vector<16x128xf32>
    tpu.vector_store %arg14[%c0_314, %c0_315], %258 {strides = array<i32>} : memref<324x128xf32, #tpu.memory_space<vmem>>, vector<16x128xf32>,
    %c0_316 = arith.constant 0 : index
    %c0_317 = arith.constant 0 : index
    %260 = vector.load %arg14[%c0_316, %c0_317] : memref<324x128xf32, #tpu.memory_space<vmem>>, vector<16x128xf32>
    %c2_318 = arith.constant 2 : index
    %c0_319 = arith.constant 0 : index
    %c0_320 = arith.constant 0 : index
    %261 = vector.load %arg3[%c2_318, %c0_319, %c0_320] : memref<3x1x128xf32, #tpu.memory_space<vmem>>, vector<1x1x128xf32>
    %262 = vector.shape_cast %261 : vector<1x1x128xf32> to vector<1x128xf32>
    %263 = vector.broadcast %262 : vector<1x128xf32> to vector<16x128xf32>
    %264 = arith.addf %260, %263 : vector<16x128xf32>
    %cst_321 = arith.constant 0.000000e+00 : f32
    %265 = vector.broadcast %cst_321 : f32 to vector<16x128xf32>
    %266 = arith.maximumf %264, %265 : vector<16x128xf32>
    %c0_322 = arith.constant 0 : index
    %c0_323 = arith.constant 0 : index
    %267 = vector.load %arg6[%c0_322, %c0_323] : memref<16x1xf32, #tpu.memory_space<vmem>>, vector<16x1xf32>
    %268 = vector.broadcast %267 : vector<16x1xf32> to vector<16x128xf32>
    %269 = arith.mulf %266, %268 : vector<16x128xf32>
    %c0_324 = arith.constant 0 : index
    %c0_325 = arith.constant 0 : index
    %270 = vector.load %arg13[%c0_324, %c0_325] : memref<368x128xf32, #tpu.memory_space<vmem>>, vector<16x128xf32>
    tpu.vector_store %arg13[%c0_324, %c0_325], %269 {strides = array<i32>} : memref<368x128xf32, #tpu.memory_space<vmem>>, vector<16x128xf32>,
    %c0_326 = arith.constant 0 : index
    %c0_327 = arith.constant 0 : index
    %271 = vector.load %arg13[%c0_326, %c0_327] : memref<368x128xf32, #tpu.memory_space<vmem>>, vector<16x128xf32>
    %c1_328 = arith.constant 1 : index
    %c0_329 = arith.constant 0 : index
    %272 = vector.load %arg13[%c1_328, %c0_329] : memref<368x128xf32, #tpu.memory_space<vmem>>, vector<16x128xf32>
    %c2_330 = arith.constant 2 : index
    %c0_331 = arith.constant 0 : index
    %273 = vector.load %arg13[%c2_330, %c0_331] : memref<368x128xf32, #tpu.memory_space<vmem>>, vector<16x128xf32>
    %c4_332 = arith.constant 4 : index
    %c0_333 = arith.constant 0 : index
    %274 = vector.load %arg13[%c4_332, %c0_333] : memref<368x128xf32, #tpu.memory_space<vmem>>, vector<16x128xf32>
    %c5_334 = arith.constant 5 : index
    %c0_335 = arith.constant 0 : index
    %275 = vector.load %arg13[%c5_334, %c0_335] : memref<368x128xf32, #tpu.memory_space<vmem>>, vector<16x128xf32>
    %c6_336 = arith.constant 6 : index
    %c0_337 = arith.constant 0 : index
    %276 = vector.load %arg13[%c6_336, %c0_337] : memref<368x128xf32, #tpu.memory_space<vmem>>, vector<16x128xf32>
    %c8_338 = arith.constant 8 : index
    %c0_339 = arith.constant 0 : index
    %277 = vector.load %arg13[%c8_338, %c0_339] : memref<368x128xf32, #tpu.memory_space<vmem>>, vector<16x128xf32>
    %c9_340 = arith.constant 9 : index
    %c0_341 = arith.constant 0 : index
    %278 = vector.load %arg13[%c9_340, %c0_341] : memref<368x128xf32, #tpu.memory_space<vmem>>, vector<16x128xf32>
    %c10_342 = arith.constant 10 : index
    %c0_343 = arith.constant 0 : index
    %279 = vector.load %arg13[%c10_342, %c0_343] : memref<368x128xf32, #tpu.memory_space<vmem>>, vector<16x128xf32>
    %280 = arith.maximumf %271, %272 : vector<16x128xf32>
    %281 = arith.maximumf %273, %274 : vector<16x128xf32>
    %282 = arith.maximumf %275, %276 : vector<16x128xf32>
    %283 = arith.maximumf %277, %278 : vector<16x128xf32>
    %284 = arith.maximumf %280, %281 : vector<16x128xf32>
    %285 = arith.maximumf %282, %283 : vector<16x128xf32>
    %286 = arith.maximumf %284, %285 : vector<16x128xf32>
    %287 = arith.maximumf %286, %279 : vector<16x128xf32>
    %c0_344 = arith.constant 0 : index
    %c0_345 = arith.constant 0 : index
    %288 = vector.load %arg14[%c0_344, %c0_345] : memref<324x128xf32, #tpu.memory_space<vmem>>, vector<16x128xf32>
    tpu.vector_store %arg14[%c0_344, %c0_345], %287 {strides = array<i32>} : memref<324x128xf32, #tpu.memory_space<vmem>>, vector<16x128xf32>,
    %c0_346 = arith.constant 0 : index
    %c0_347 = arith.constant 0 : index
    %289 = vector.load %arg9[%c0_346, %c0_347] : memref<1x16xf32, #tpu.memory_space<vmem>>, vector<1x16xf32>
    %c0_348 = arith.constant 0 : index
    %c0_349 = arith.constant 0 : index
    %290 = vector.load %arg14[%c0_348, %c0_349] : memref<324x128xf32, #tpu.memory_space<vmem>>, vector<16x128xf32>
    %cst_350 = arith.constant dense<0.000000e+00> : vector<1x128xf32>
    %291 = tpu.matmul %289, %290, %cst_350 {dimension_numbers = #tpu.dot_dimension_numbers<[1], [0], [0], [1], [0, 0, 1, 1], [], []>} : vector<1x16xf32>, vector<16x128xf32>, vector<1x128xf32> -> vector<1x128xf32>
    %c0_351 = arith.constant 0 : index
    %c0_352 = arith.constant 0 : index
    %c0_353 = arith.constant 0 : index
    %292 = vector.load %arg10[%c0_351, %c0_352, %c0_353] : memref<3x128x128xf32, #tpu.memory_space<vmem>>, vector<1x128x128xf32>
    %293 = vector.shape_cast %292 : vector<1x128x128xf32> to vector<128x128xf32>
    %cst_354 = arith.constant dense<0.000000e+00> : vector<1x128xf32>
    %294 = tpu.matmul %291, %293, %cst_354 {dimension_numbers = #tpu.dot_dimension_numbers<[1], [0], [0], [1], [0, 0, 1, 1], [], []>} : vector<1x128xf32>, vector<128x128xf32>, vector<1x128xf32> -> vector<1x128xf32>
    %c0_355 = arith.constant 0 : index
    %c0_356 = arith.constant 0 : index
    %c0_357 = arith.constant 0 : index
    %295 = vector.load %arg11[%c0_355, %c0_356, %c0_357] : memref<3x1x128xf32, #tpu.memory_space<vmem>>, vector<1x1x128xf32>
    %296 = vector.shape_cast %295 : vector<1x1x128xf32> to vector<1x128xf32>
    %297 = arith.addf %294, %296 : vector<1x128xf32>
    %cst_358 = arith.constant 0.000000e+00 : f32
    %298 = vector.broadcast %cst_358 : f32 to vector<1x128xf32>
    %299 = arith.maximumf %297, %298 : vector<1x128xf32>
    %c1_359 = arith.constant 1 : index
    %c0_360 = arith.constant 0 : index
    %c0_361 = arith.constant 0 : index
    %300 = vector.load %arg10[%c1_359, %c0_360, %c0_361] : memref<3x128x128xf32, #tpu.memory_space<vmem>>, vector<1x128x128xf32>
    %301 = vector.shape_cast %300 : vector<1x128x128xf32> to vector<128x128xf32>
    %cst_362 = arith.constant dense<0.000000e+00> : vector<1x128xf32>
    %302 = tpu.matmul %299, %301, %cst_362 {dimension_numbers = #tpu.dot_dimension_numbers<[1], [0], [0], [1], [0, 0, 1, 1], [], []>} : vector<1x128xf32>, vector<128x128xf32>, vector<1x128xf32> -> vector<1x128xf32>
    %c1_363 = arith.constant 1 : index
    %c0_364 = arith.constant 0 : index
    %c0_365 = arith.constant 0 : index
    %303 = vector.load %arg11[%c1_363, %c0_364, %c0_365] : memref<3x1x128xf32, #tpu.memory_space<vmem>>, vector<1x1x128xf32>
    %304 = vector.shape_cast %303 : vector<1x1x128xf32> to vector<1x128xf32>
    %305 = arith.addf %302, %304 : vector<1x128xf32>
    %cst_366 = arith.constant 0.000000e+00 : f32
    %306 = vector.broadcast %cst_366 : f32 to vector<1x128xf32>
    %307 = arith.maximumf %305, %306 : vector<1x128xf32>
    %c2_367 = arith.constant 2 : index
    %c0_368 = arith.constant 0 : index
    %c0_369 = arith.constant 0 : index
    %308 = vector.load %arg10[%c2_367, %c0_368, %c0_369] : memref<3x128x128xf32, #tpu.memory_space<vmem>>, vector<1x128x128xf32>
    %309 = vector.shape_cast %308 : vector<1x128x128xf32> to vector<128x128xf32>
    %cst_370 = arith.constant dense<0.000000e+00> : vector<1x128xf32>
    %310 = tpu.matmul %307, %309, %cst_370 {dimension_numbers = #tpu.dot_dimension_numbers<[1], [0], [0], [1], [0, 0, 1, 1], [], []>} : vector<1x128xf32>, vector<128x128xf32>, vector<1x128xf32> -> vector<1x128xf32>
    %c2_371 = arith.constant 2 : index
    %c0_372 = arith.constant 0 : index
    %c0_373 = arith.constant 0 : index
    %311 = vector.load %arg11[%c2_371, %c0_372, %c0_373] : memref<3x1x128xf32, #tpu.memory_space<vmem>>, vector<1x1x128xf32>
    %312 = vector.shape_cast %311 : vector<1x1x128xf32> to vector<1x128xf32>
    %313 = arith.addf %310, %312 : vector<1x128xf32>
    %c0_374 = arith.constant 0 : index
    %c0_375 = arith.constant 0 : index
    %c0_376 = arith.constant 0 : index
    %314 = vector.load %arg12[%c0_374, %c0_375, %c0_376] : memref<1x1x128xf32, #tpu.memory_space<vmem>>, vector<1x1x128xf32>
    %315 = vector.shape_cast %314 : vector<1x1x128xf32> to vector<1x128xf32>
    %316 = vector.shape_cast %313 : vector<1x128xf32> to vector<1x1x128xf32>
    tpu.vector_store %arg12[%c0_374, %c0_375, %c0_376], %316 {strides = array<i32>} : memref<1x1x128xf32, #tpu.memory_space<vmem>>, vector<1x1x128xf32>,
    return
  }
  func.func @transform_0(%arg0: i32) -> (i32, i32, i32) {
    %c0_i32 = arith.constant 0 : i32
    %c0_i32_0 = arith.constant 0 : i32
    %c0_i32_1 = arith.constant 0 : i32
    return %arg0, %c0_i32, %c0_i32_0 : i32, i32, i32
  }
  func.func @transform_1(%arg0: i32) -> (i32, i32, i32) {
    %c0_i32 = arith.constant 0 : i32
    %c0_i32_0 = arith.constant 0 : i32
    %c0_i32_1 = arith.constant 0 : i32
    %c0_i32_2 = arith.constant 0 : i32
    return %c0_i32, %c0_i32_0, %c0_i32_1 : i32, i32, i32
  }
  func.func @transform_2(%arg0: i32) -> (i32, i32, i32) {
    %c0_i32 = arith.constant 0 : i32
    %c0_i32_0 = arith.constant 0 : i32
    %c0_i32_1 = arith.constant 0 : i32
    %c0_i32_2 = arith.constant 0 : i32
    return %c0_i32, %c0_i32_0, %c0_i32_1 : i32, i32, i32
  }
  func.func @transform_3(%arg0: i32) -> (i32, i32) {
    %c0_i32 = arith.constant 0 : i32
    %c0_i32_0 = arith.constant 0 : i32
    %c0_i32_1 = arith.constant 0 : i32
    return %c0_i32, %c0_i32_0 : i32, i32
  }
  func.func @transform_4(%arg0: i32) -> (i32, i32) {
    %c0_i32 = arith.constant 0 : i32
    %c0_i32_0 = arith.constant 0 : i32
    %c0_i32_1 = arith.constant 0 : i32
    return %c0_i32, %c0_i32_0 : i32, i32
  }
  func.func @transform_5(%arg0: i32) -> (i32, i32) {
    %c0_i32 = arith.constant 0 : i32
    %c0_i32_0 = arith.constant 0 : i32
    %c0_i32_1 = arith.constant 0 : i32
    return %c0_i32, %c0_i32_0 : i32, i32
  }
  func.func @transform_6(%arg0: i32) -> (i32, i32) {
    %c0_i32 = arith.constant 0 : i32
    %c0_i32_0 = arith.constant 0 : i32
    %c0_i32_1 = arith.constant 0 : i32
    return %c0_i32, %c0_i32_0 : i32, i32
  }
  func.func @transform_7(%arg0: i32) -> (i32, i32) {
    %c0_i32 = arith.constant 0 : i32
    %c0_i32_0 = arith.constant 0 : i32
    %c0_i32_1 = arith.constant 0 : i32
    return %c0_i32, %c0_i32_0 : i32, i32
  }
  func.func @transform_8(%arg0: i32) -> (i32, i32) {
    %c0_i32 = arith.constant 0 : i32
    %c0_i32_0 = arith.constant 0 : i32
    %c0_i32_1 = arith.constant 0 : i32
    return %c0_i32, %c0_i32_0 : i32, i32
  }
  func.func @transform_9(%arg0: i32) -> (i32, i32, i32) {
    %c0_i32 = arith.constant 0 : i32
    %c0_i32_0 = arith.constant 0 : i32
    %c0_i32_1 = arith.constant 0 : i32
    %c0_i32_2 = arith.constant 0 : i32
    return %c0_i32, %c0_i32_0, %c0_i32_1 : i32, i32, i32
  }
  func.func @transform_10(%arg0: i32) -> (i32, i32, i32) {
    %c0_i32 = arith.constant 0 : i32
    %c0_i32_0 = arith.constant 0 : i32
    %c0_i32_1 = arith.constant 0 : i32
    %c0_i32_2 = arith.constant 0 : i32
    return %c0_i32, %c0_i32_0, %c0_i32_1 : i32, i32, i32
  }
  func.func @transform_11(%arg0: i32) -> (i32, i32, i32) {
    %c0_i32 = arith.constant 0 : i32
    %c0_i32_0 = arith.constant 0 : i32
    %c0_i32_1 = arith.constant 0 : i32
    return %arg0, %c0_i32, %c0_i32_0 : i32, i32, i32
  }
}

</mosaic_0001>

<bundles_post_ra>
// kernel: conv_nn_forward.1
= control target key start
LH: loop header
LB: loop body
LE: loop exit
PB: predicated region body
PF: predicated region fallthrough
CT: control target
= control target key end

     0   :  { %s10145_s0 = inlined_call_operand.vmem [shape: f32[2,372,128], index: 0, kind: input, shape index: {}]   ;;  %s10146_s1 = inlined_call_operand.vmem [shape: f32[27,128,128], index: 1, kind: input, shape index: {}]   ;;  %s10147_s2 = inlined_call_operand.vmem [shape: f32[3,1,128], index: 2, kind: input, shape index: {}]   ;;  %s10148_s3 = inlined_call_operand.vmem [shape: f32[324,1], index: 3, kind: input, shape index: {}]   ;;  %s10149_s4 = inlined_call_operand.vmem [shape: f32[64,1], index: 4, kind: input, shape index: {}]   ;;  %s10150_s5 = inlined_call_operand.vmem [shape: f32[16,1], index: 5, kind: input, shape index: {}]   ;;  %s10151_s6 = inlined_call_operand.vmem [shape: f32[96,324], index: 6, kind: input, shape index: {}]   ;;  %s10152_s7 = inlined_call_operand.vmem [shape: f32[32,64], index: 7, kind: input, shape index: {}]   ;;  %s10153_s8 = inlined_call_operand.vmem [shape: f32[1,16], index: 8, kind: input, shape index: {}]   ;;  %s10154_s9 = inlined_call_operand.vmem [shape: f32[3,128,128], index: 9, kind: input, shape index: {}]   ;;  %s10155_s10 = inlined_call_operand.vmem [shape: f32[3,1,128], index: 10, kind: input, shape index: {}]   ;;  %s10156_s11 = inlined_call_operand.hbm [shape: f32[2,1,128], index: 11, kind: output, shape index: {}]  }
   0x1   :  { %10161 = sst [smem:[#allocation30_spill]] %s10145_s0 }
   0x2   :  { %16 = vsyncpa [#allocation7], 0 }
   0x3   :  { %18 = vsyncpa [#allocation7 + $0x1], 0  ;;  %s7036_s17 = smov 0   ;;  %s7038_s18 = smov 0  }
   0x4   :  { %s7040_s19 = smov 0   ;;  %s7042_s20 = smov 0  }
   0x5 LB: > { %s7057_s21 = sadd.s32 4294967295, %s6972_s20   ;;  %s6383_s22 = sadd.s32 4294967294, %s6972_s20   ;;  %s6972_s20 = sphi %s7042_s20, %s10221_s20   ;;  %s6968_s19 = sphi %s7040_s19, %s10220_s19   ;;  %s6964_s18 = sphi %s7038_s18, %s10219_s18   ;;  %s6960_s17 = sphi %s7036_s17, %s10218_s17  }
   0x6   : > { %s7061_s23 = sadd.s32 1, %s6972_s20   ;;  %s267_s24 = sadd.s32 1, %s6968_s19 }
   0x7   : > { %s264_s25 = ssub.s32 %s6972_s20, %s7061_s23  ;;  %p277_p0 = scmp.ne.s32.totalorder %s6968_s19, %s6964_s18 }
   0x8   : > { %p265_p1 = scmp.eq.s32.totalorder %s264_s25, 0  ;;  %p278_p2 = scmp.eq.s32.totalorder %s7057_s21, 1 }
   0x9   : > { %p283_p3 = scmp.ne.s32.totalorder %s6964_s18, %s6960_s17  ;;  %p284_p4 = scmp.eq.s32.totalorder %s6383_s22, 1 }
   0xa   : > { %s7072_s26 = scalar_select %p265_p1, %s6968_s19, %s267_s24  }
   0xb   : > { %p7074_p5 = por %p278_p2, %p277_p0  ;;  %p7078_p6 = por %p284_p4, %p283_p3 }
   0xc   : > { %10162 = sst [smem:[#allocation9_spill]] %s7072_s26  ;;  %p6386_p7 = scmp.ge.s32.totalorder %s6972_s20, 1 }
   0xd   : > { %p340_p8 = scmp.lt.s32.totalorder %s6972_s20, 3 }
   0xf   : > { %p341_p9 = pnand %p6386_p7, %p340_p8 }
  0x11   : > { %344 = sbr.rel (%p341_p9) target bundleno = 2600 (0xa28), region = 64 }
  0x16   : > { %v486_v0 = vld [vmem:[%s10146_s1 + $0x78] sm:$0xff]  ;;  %v485_v1 = vld [vmem:[%s10146_s1 + $0x70] sm:$0xff]  ;;  %v484_v3 = vld [vmem:[%s10146_s1 + $0x68] sm:$0xff]  ;;  %p379_p10 = scmp.lt.s32.totalorder %s7057_s21, 1  ;;  %s10165_s0 = sld [smem:[#allocation30_spill]]  ;;  %vm4467_vm0 = vcmask 1043456  }
  0x17   : > { %487 = vmatpush.msra.mxu0 %v486_v0  ;;  %v6403_v2 = vld [vmem:[%s10146_s1 + $0xf8] sm:$0xff]  ;;  %v6402_v4 = vld [vmem:[%s10146_s1 + $0xf0] sm:$0xff]  ;;  %v6401_v5 = vld [vmem:[%s10146_s1 + $0xe8] sm:$0xff]  ;;  %vm4430_vm1 = vcmask 556032   ;;  %vm5637_vm2 = vcmask 523264   ;;  %vm6173_vm3 = vcmask 130048   ;;  %s6324_s14 = scalar_lea.hbm %s10156_s11, %s7057_s21 }
  0x18   : > { %726 = vmatpush.msra.mxu1 %v6403_v2  ;;  %v6419_v6 = vld [vmem:[%s10146_s1 + $0x178] sm:$0xff]  ;;  %v483_v7 = vld [vmem:[%s10146_s1 + $0x60] sm:$0xff]  ;;  %v6418_v8 = vld [vmem:[%s10146_s1 + $0x170] sm:$0xff]  ;;  %s7196_s12 = scalar_select %p379_p10, %s7057_s21, 1 }
  0x19   : > { %488 = vmatpush.msra.mxu0 %v485_v1  ;;  %1047 = vmatpush.msra.mxu2 %v6419_v6  ;;  %v6400_v9 = vld [vmem:[%s10146_s1 + $0xe0] sm:$0xff]  ;;  %v6417_v10 = vld [vmem:[%s10146_s1 + $0x168] sm:$0xff]  ;;  %v482_v11 = vld [vmem:[%s10146_s1 + $0x58] sm:$0xff]  ;;  %s377_s30 = sand.u32 1, %s6964_s18   ;;  %s6328_s22 = sshll.u32 %s6324_s14, 4  ;;  %s6329_s22 = int_to_ptr.hbm [resolvable:$true] %s6328_s22 }
  0x1a   : > { %727 = vmatpush.msra.mxu1 %v6402_v4  ;;  %v6399_v12 = vld [vmem:[%s10146_s1 + $0xd8] sm:$0xff]  ;;  %v6416_v13 = vld [vmem:[%s10146_s1 + $0x160] sm:$0xff]  ;;  %v481_v14 = vld [vmem:[%s10146_s1 + $0x50] sm:$0xff]  ;;  %s6860_s25 = smul.u32 376, %s7196_s12  ;;  %s6316_s12 = scalar_lea.sflag [#allocation7], %s377_s30 }
  0x1b   : > { %489 = vmatpush.msra.mxu0 %v484_v3  ;;  %1048 = vmatpush.msra.mxu2 %v6418_v8  ;;  %v6435_v15 = vld [vmem:[%s10146_s1 + $0x1f8] sm:$0xff]  ;;  %v6398_v16 = vld [vmem:[%s10146_s1 + $0xd0] sm:$0xff]  ;;  %v480_v18 = vld [vmem:[%s10146_s1 + $0x48] sm:$0xff]  ;;  %s6924_s29 = sshra.s32 %s6329_s22, 4  ;;  %s6930_s26 = scalar_lea.hbm %s10156_s11, 2  ;;  %s6925_s29 = int_to_ptr.hbm [resolvable:$true] %s6924_s29 }
  0x1c   : > { %728 = vmatpush.msra.mxu1 %v6401_v5  ;;  %v6415_v17 = vld [vmem:[%s10146_s1 + $0x158] sm:$0xff]  ;;  %1368 = vmatpush.msra.mxu3 %v6435_v15  ;;  %v6434_v19 = vld [vmem:[%s10146_s1 + $0x1f0] sm:$0xff]  ;;  %v6397_v20 = vld [vmem:[%s10146_s1 + $0xc8] sm:$0xff]  ;;  %s7250_s24 = scalar_lea.vmem %s10165_s0, %s6860_s25  ;;  %s6926_s0 = scalar_lea.hbm %s6925_s29, 1 }
  0x1d   : > { %490 = vmatpush.msra.mxu0 %v483_v7  ;;  %1049 = vmatpush.msra.mxu2 %v6417_v10  ;;  %v6414_v21 = vld [vmem:[%s10146_s1 + $0x150] sm:$0xff]  ;;  %v6433_v22 = vld [vmem:[%s10146_s1 + $0x1e8] sm:$0xff]  ;;  %v479_v23 = vld [vmem:[%s10146_s1 + $0x40] sm:$0xff]  ;;  %p6927_p11 = scmp.ne.s32.totalorder %s6925_s29, %s6926_s0  ;;  %p6931_p0 = scmp.lt.s32.totalorder %s6925_s29, %s10156_s11 }
  0x1e   : > { %729 = vmatpush.msra.mxu1 %v6400_v9  ;;  %1369 = vmatpush.msra.mxu3 %v6434_v19  ;;  %v6432_v24 = vld [vmem:[%s10146_s1 + $0x1e0] sm:$0xff]  ;;  %v6413_v26 = vld [vmem:[%s10146_s1 + $0x148] sm:$0xff]  ;;  %v478_v27 = vld [vmem:[%s10146_s1 + $0x38] sm:$0xff]  ;;  %p6932_p1 = scmp.lt.s32.totalorder %s6930_s26, %s6926_s0 }
  0x1f   : > { %491 = vmatpush.msra.mxu0 %v482_v11  ;;  %1050 = vmatpush.msra.mxu2 %v6416_v13  ;;  %v6396_v25 = vld [vmem:[%s10146_s1 + $0xc0] sm:$0xff]  ;;  %v6431_v28 = vld [vmem:[%s10146_s1 + $0x1d8] sm:$0xff]  ;;  %v477_v31 = vld [vmem:[%s10146_s1 + $0x30] sm:$0xff]  ;;  %p6928_p12 = pnand %p6927_p11, %p7074_p5 }
  0x20   : > { %730 = vmatpush.msra.mxu1 %v6399_v12  ;;  %1370 = vmatpush.msra.mxu3 %v6433_v22  ;;  %v6395_v29 = vld [vmem:[%s10146_s1 + $0xb8] sm:$0xff]  ;;  %v6412_v30 = vld [vmem:[%s10146_s1 + $0x140] sm:$0xff]  ;;  %v6430_v32 = vld [vmem:[%s10146_s1 + $0x1d0] sm:$0xff]  ;;  %p6933_p2 = por %p6932_p1, %p6931_p0 }
  0x21   : > { %492 = vmatpush.msra.mxu0 %v481_v14  ;;  %1051 = vmatpush.msra.mxu2 %v6415_v17  ;;  %v6394_v33 = vld [vmem:[%s10146_s1 + $0xb0] sm:$0xff]  ;;  %v6411_v34 = vld [vmem:[%s10146_s1 + $0x138] sm:$0xff]  ;;  %v476_v35 = vld [vmem:[%s10146_s1 + $0x28] sm:$0xff]  ;;  %p6929_p13 = pneg %p6928_p12 }
  0x22   : > { %731 = vmatpush.msra.mxu1 %v6398_v16  ;;  %1371 = vmatpush.msra.mxu3 %v6432_v24  ;;  %v6429_v36 = vld [vmem:[%s10146_s1 + $0x1c8] sm:$0xff]  ;;  %v6410_v38 = vld [vmem:[%s10146_s1 + $0x130] sm:$0xff]  ;;  %v475_v39 = vld [vmem:[%s10146_s1 + $0x20] sm:$0xff] }
  0x23   : > { %493 = vmatpush.msra.mxu0 %v480_v18  ;;  %1052 = vmatpush.msra.mxu2 %v6414_v21  ;;  %v6393_v37 = vld [vmem:[%s10146_s1 + $0xa8] sm:$0xff]  ;;  %v6428_v40 = vld [vmem:[%s10146_s1 + $0x1c0] sm:$0xff]  ;;  %v474_v43 = vld [vmem:[%s10146_s1 + $0x18] sm:$0xff]  ;;  %p6934_p3 = pnand %p6933_p2, %p6929_p13 }
  0x24   : > { %732 = vmatpush.msra.mxu1 %v6397_v20  ;;  %1372 = vmatpush.msra.mxu3 %v6431_v28  ;;  %v6392_v41 = vld [vmem:[%s10146_s1 + $0xa0] sm:$0xff]  ;;  %v6409_v42 = vld [vmem:[%s10146_s1 + $0x128] sm:$0xff]  ;;  %v6427_v44 = vld [vmem:[%s10146_s1 + $0x1b8] sm:$0xff] }
  0x25   : > { %494 = vmatpush.msra.mxu0 %v479_v23  ;;  %1053 = vmatpush.msra.mxu2 %v6413_v26  ;;  %v6391_v45 = vld [vmem:[%s10146_s1 + $0x98] sm:$0xff]  ;;  %v6408_v46 = vld [vmem:[%s10146_s1 + $0x120] sm:$0xff]  ;;  %v473_v47 = vld [vmem:[%s10146_s1 + $0x10] sm:$0xff] }
  0x26   : > { %733 = vmatpush.msra.mxu1 %v6396_v25  ;;  %1373 = vmatpush.msra.mxu3 %v6430_v32  ;;  %v472_v48 = vld [vmem:[%s10146_s1 + $0x8] sm:$0xff]  ;;  %v6426_v49 = vld [vmem:[%s10146_s1 + $0x1b0] sm:$0xff]  ;;  %v6407_v51 = vld [vmem:[%s10146_s1 + $0x118] sm:$0xff] }
  0x27   : > { %495 = vmatpush.msra.mxu0 %v478_v27  ;;  %1054 = vmatpush.msra.mxu2 %v6412_v30  ;;  %v6390_v50 = vld [vmem:[%s10146_s1 + $0x90] sm:$0xff]  ;;  %v6425_v52 = vld [vmem:[%s10146_s1 + $0x1a8] sm:$0xff]  ;;  %v471_v55 = vld [vmem:[%s10146_s1] sm:$0xff] }
  0x28   : > { %734 = vmatpush.msra.mxu1 %v6395_v29  ;;  %1374 = vmatpush.msra.mxu3 %v6429_v36  ;;  %v6389_v53 = vld [vmem:[%s10146_s1 + $0x88] sm:$0xff]  ;;  %v6406_v54 = vld [vmem:[%s10146_s1 + $0x110] sm:$0xff]  ;;  %v6424_v56 = vld [vmem:[%s10146_s1 + $0x1a0] sm:$0xff] }
  0x29   : > { %496 = vmatpush.msra.mxu0 %v477_v31  ;;  %1055 = vmatpush.msra.mxu2 %v6411_v34  ;;  %v430_v57 = vld [vmem:[%s7250_s24 + $0x5] sm:$0xff]  ;;  %v6423_v61 = vld [vmem:[%s10146_s1 + $0x198] sm:$0xff]  ;;  %v6422_v0 = vld [vmem:[%s10146_s1 + $0x190] sm:$0xff] }
  0x2a   : > { %735 = vmatpush.msra.mxu1 %v6394_v33  ;;  %1375 = vmatpush.msra.mxu3 %v6428_v40  ;;  %v6388_v58 = vld [vmem:[%s10146_s1 + $0x80] sm:$0xff]  ;;  %v6405_v60 = vld [vmem:[%s10146_s1 + $0x108] sm:$0xff]  ;;  %v1310_v5 = vld [vmem:[%s7250_s24 + $0x17] sm:$0xff] }
  0x2b   : > { %497 = vmatpush.msra.mxu0 %v476_v35  ;;  %1056 = vmatpush.msra.mxu2 %v6410_v38  ;;  %v668_v59 = vld [vmem:[%s7250_s24 + $0x6] sm:$0xff]  ;;  %v669_v4 = vld [vmem:[%s7250_s24 + $0xe] sm:$0xff]  ;;  %v670_v8 = vld [vmem:[%s7250_s24 + $0x16] sm:$0xff] }
  0x2c   : > { %736 = vmatpush.msra.mxu1 %v6393_v37  ;;  %1376 = vmatpush.msra.mxu3 %v6427_v44  ;;  %v6404_v62 = vld [vmem:[%s10146_s1 + $0x100] sm:$0xff]  ;;  %v6421_v1 = vld [vmem:[%s10146_s1 + $0x188] sm:$0xff]  ;;  %v432_v7 = vld [vmem:[%s7250_s24 + $0x15] sm:$0xff] }
  0x2d   : > { %498 = vmatpush.msra.mxu0 %v475_v39  ;;  %1057 = vmatpush.msra.mxu2 %v6409_v42  ;;  %v989_v63 = vld [vmem:[%s7250_s24 + $0x7] sm:$0xff]  ;;  %v990_v6 = vld [vmem:[%s7250_s24 + $0xf] sm:$0xff]  ;;  %v1311_v9 = vld [vmem:[%s7250_s24 + $0x1f] sm:$0xff] }
  0x2e   : > { %737 = vmatpush.msra.mxu1 %v6392_v41  ;;  %1377 = vmatpush.msra.mxu3 %v6426_v49  ;;  %v431_v2 = vld [vmem:[%s7250_s24 + $0xd] sm:$0xff]  ;;  %v6420_v3 = vld [vmem:[%s10146_s1 + $0x180] sm:$0xff]  ;;  %v1314_v18 = vld [vmem:[%s7250_s24 + $0x37] sm:$0xff] }
  0x2f   : > { %499 = vmatpush.msra.mxu0 %v474_v43  ;;  %1058 = vmatpush.msra.mxu2 %v6408_v46  ;;  %v433_v10 = vld [vmem:[%s7250_s24 + $0x1d] sm:$0xff]  ;;  %v1312_v12 = vld [vmem:[%s7250_s24 + $0x27] sm:$0xff]  ;;  %v1313_v15 = vld [vmem:[%s7250_s24 + $0x2f] sm:$0xff] }
  0x30   : > { %738 = vmatpush.msra.mxu1 %v6391_v45  ;;  %1378 = vmatpush.msra.mxu3 %v6425_v52  ;;  %v671_v11 = vld [vmem:[%s7250_s24 + $0x1e] sm:$0xff]  ;;  %v672_v14 = vld [vmem:[%s7250_s24 + $0x26] sm:$0xff]  ;;  %v673_v17 = vld [vmem:[%s7250_s24 + $0x2e] sm:$0xff] }
  0x31   : > { %500 = vmatpush.msra.mxu0 %v473_v47  ;;  %1059 = vmatpush.msra.mxu2 %v6407_v51  ;;  %v434_v13 = vld [vmem:[%s7250_s24 + $0x25] sm:$0xff]  ;;  %v435_v16 = vld [vmem:[%s7250_s24 + $0x2d] sm:$0xff]  ;;  %v436_v19 = vld [vmem:[%s7250_s24 + $0x35] sm:$0xff] }
  0x32   : > { %739 = vmatpush.msra.mxu1 %v6390_v50  ;;  %1379 = vmatpush.msra.mxu3 %v6424_v56  ;;  %v674_v20 = vld [vmem:[%s7250_s24 + $0x36] sm:$0xff]  ;;  %v1315_v21 = vld [vmem:[%s7250_s24 + $0x3f] sm:$0xff]  ;;  %v1316_v24 = vld [vmem:[%s7250_s24 + $0x47] sm:$0xff] }
  0x33   : > { %501 = vmatpush.msra.mxu0 %v472_v48  ;;  %1060 = vmatpush.msra.mxu2 %v6406_v54  ;;  %v437_v22 = vld [vmem:[%s7250_s24 + $0x3d] sm:$0xff]  ;;  %v438_v25 = vld [vmem:[%s7250_s24 + $0x45] sm:$0xff]  ;;  %v1317_v27 = vld [vmem:[%s7250_s24 + $0x4f] sm:$0xff] }
  0x34   : > { %740 = vmatpush.msra.mxu1 %v6389_v53  ;;  %1380 = vmatpush.msra.mxu3 %v6423_v61  ;;  %v675_v23 = vld [vmem:[%s7250_s24 + $0x3e] sm:$0xff]  ;;  %v676_v26 = vld [vmem:[%s7250_s24 + $0x46] sm:$0xff]  ;;  %v677_v29 = vld [vmem:[%s7250_s24 + $0x4e] sm:$0xff] }
  0x35   : > { %502 = vmatpush.msra.mxu0 %v471_v55  ;;  %1061 = vmatpush.msra.mxu2 %v6405_v60  ;;  %v439_v28 = vld [vmem:[%s7250_s24 + $0x4d] sm:$0xff]  ;;  %v1318_v30 = vld [vmem:[%s7250_s24 + $0x57] sm:$0xff]  ;;  %v1319_v33 = vld [vmem:[%s7250_s24 + $0x5f] sm:$0xff] }
  0x36   : > { %503 = vmatmul.f32.vlgmr.msra.gmra.mxu0 %v430_v57  ;;  %741 = vmatpush.msra.mxu1 %v6388_v58  ;;  %v440_v31 = vld [vmem:[%s7250_s24 + $0x55] sm:$0xff]  ;;  %v441_v34 = vld [vmem:[%s7250_s24 + $0x5d] sm:$0xff]  ;;  %v1320_v36 = vld [vmem:[%s7250_s24 + $0x67] sm:$0xff] }
  0x37   : > { %742 = vmatmul.f32.vlgmr.msra.gmra.mxu1 %v668_v59  ;;  %1062 = vmatpush.msra.mxu2 %v6404_v62  ;;  %v678_v32 = vld [vmem:[%s7250_s24 + $0x56] sm:$0xff]  ;;  %v679_v35 = vld [vmem:[%s7250_s24 + $0x5e] sm:$0xff]  ;;  %v680_v38 = vld [vmem:[%s7250_s24 + $0x66] sm:$0xff] }
  0x38   : > { %1063 = vmatmul.f32.vlgmr.msra.gmra.mxu2 %v989_v63  ;;  %1381 = vmatpush.msra.mxu3 %v6422_v0  ;;  %v442_v37 = vld [vmem:[%s7250_s24 + $0x65] sm:$0xff]  ;;  %v1321_v39 = vld [vmem:[%s7250_s24 + $0x6f] sm:$0xff]  ;;  %v1322_v42 = vld [vmem:[%s7250_s24 + $0x77] sm:$0xff] }
  0x39   : > { %v443_v40 = vld [vmem:[%s7250_s24 + $0x6d] sm:$0xff]  ;;  %v444_v43 = vld [vmem:[%s7250_s24 + $0x75] sm:$0xff]  ;;  %v1323_v45 = vld [vmem:[%s7250_s24 + $0x7f] sm:$0xff] }
  0x3a   : > { %1382 = vmatpush.msra.mxu3 %v6421_v1  ;;  %v681_v41 = vld [vmem:[%s7250_s24 + $0x6e] sm:$0xff]  ;;  %v682_v44 = vld [vmem:[%s7250_s24 + $0x76] sm:$0xff]  ;;  %v683_v47 = vld [vmem:[%s7250_s24 + $0x7e] sm:$0xff] }
  0x3b   : > { %v445_v46 = vld [vmem:[%s7250_s24 + $0x7d] sm:$0xff]  ;;  %v1324_v48 = vld [vmem:[%s7250_s24 + $0x87] sm:$0xff]  ;;  %v1325_v53 = vld [vmem:[%s7250_s24 + $0x8f] sm:$0xff] }
  0x3c   : > { %1383 = vmatpush.msra.mxu3 %v6420_v3  ;;  %v446_v50 = vld [vmem:[%s7250_s24 + $0x85] sm:$0xff]  ;;  %v447_v55 = vld [vmem:[%s7250_s24 + $0x8d] sm:$0xff]  ;;  %v1326_v58 = vld [vmem:[%s7250_s24 + $0x97] sm:$0xff] }
  0x3d   : > { %1384 = vmatmul.f32.vlgmr.msra.gmra.mxu3 %v1310_v5  ;;  %v684_v52 = vld [vmem:[%s7250_s24 + $0x86] sm:$0xff]  ;;  %v685_v57 = vld [vmem:[%s7250_s24 + $0x8e] sm:$0xff]  ;;  %v686_v3 = vld [vmem:[%s7250_s24 + $0x96] sm:$0xff] }
  0x3e   : > { %506 = vmatmul.f32.gmra.mxu0 %v431_v2  ;;  %v448_v0 = vld [vmem:[%s7250_s24 + $0x95] sm:$0xff] }
  0x3f   : > { %745 = vmatmul.f32.gmra.mxu1 %v669_v4  ;;  %v1327_v4 = vld [vmem:[%s7250_s24 + $0x9f] sm:$0xff] }
  0x40   : > { %1066 = vmatmul.f32.gmra.mxu2 %v990_v6 }
  0x45   : > { %1387 = vmatmul.f32.gmra.mxu3 %v1311_v9 }
  0x46   : > { %509 = vmatmul.f32.gmra.mxu0 %v432_v7 }
  0x47   : > { %748 = vmatmul.f32.gmra.mxu1 %v670_v8 }
  0x48   : > { %1069 = vmatmul.f32.gmra.mxu2 %v1310_v5 }
  0x4d   : > { %1390 = vmatmul.f32.gmra.mxu3 %v1312_v12 }
  0x4e   : > { %512 = vmatmul.f32.gmra.mxu0 %v433_v10  ;;  %v449_v10 = vld [vmem:[%s7250_s24 + $0x9d] sm:$0xff] }
  0x4f   : > { %751 = vmatmul.f32.gmra.mxu1 %v671_v11 }
  0x50   : > { %1072 = vmatmul.f32.gmra.mxu2 %v1311_v9 }
  0x55   : > { %1393 = vmatmul.f32.gmra.mxu3 %v1313_v15 }
  0x56   : > { %515 = vmatmul.f32.gmra.mxu0 %v434_v13  ;;  %v687_v13 = vld [vmem:[%s7250_s24 + $0x9e] sm:$0xff] }
  0x57   : > { %754 = vmatmul.f32.gmra.mxu1 %v672_v14  ;;  %v1328_v14 = vld [vmem:[%s7250_s24 + $0xa7] sm:$0xff] }
  0x58   : > { %1075 = vmatmul.f32.gmra.mxu2 %v1312_v12 }
  0x5d   : > { %1396 = vmatmul.f32.gmra.mxu3 %v1314_v18 }
  0x5e   : > { %518 = vmatmul.f32.gmra.mxu0 %v435_v16 }
  0x5f   : > { %757 = vmatmul.f32.gmra.mxu1 %v673_v17 }
  0x60   : > { %1078 = vmatmul.f32.gmra.mxu2 %v1313_v15 }
  0x65   : > { %1399 = vmatmul.f32.gmra.mxu3 %v1315_v21 }
  0x66   : > { %521 = vmatmul.f32.gmra.mxu0 %v436_v19 }
  0x67   : > { %760 = vmatmul.f32.gmra.mxu1 %v674_v20  ;;  %v450_v20 = vld [vmem:[%s7250_s24 + $0xa5] sm:$0xff] }
  0x68   : > { %1081 = vmatmul.f32.gmra.mxu2 %v1314_v18 }
  0x6d   : > { %1402 = vmatmul.f32.gmra.mxu3 %v1316_v24 }
  0x6e   : > { %524 = vmatmul.f32.gmra.mxu0 %v437_v22 }
  0x6f   : > { %763 = vmatmul.f32.gmra.mxu1 %v675_v23  ;;  %v688_v23 = vld [vmem:[%s7250_s24 + $0xa6] sm:$0xff] }
  0x70   : > { %1084 = vmatmul.f32.gmra.mxu2 %v1315_v21 }
  0x75   : > { %1405 = vmatmul.f32.gmra.mxu3 %v1317_v27 }
  0x76   : > { %527 = vmatmul.f32.gmra.mxu0 %v438_v25 }
  0x77   : > { %766 = vmatmul.f32.gmra.mxu1 %v676_v26 }
  0x78   : > { %1087 = vmatmul.f32.gmra.mxu2 %v1316_v24  ;;  %v1329_v24 = vld [vmem:[%s7250_s24 + $0xaf] sm:$0xff] }
  0x7d   : > { %1408 = vmatmul.f32.gmra.mxu3 %v1318_v30 }
  0x7e   : > { %530 = vmatmul.f32.gmra.mxu0 %v439_v28 }
  0x7f   : > { %769 = vmatmul.f32.gmra.mxu1 %v677_v29 }
  0x80   : > { %1090 = vmatmul.f32.gmra.mxu2 %v1317_v27 }
  0x85   : > { %1411 = vmatmul.f32.gmra.mxu3 %v1319_v33 }
  0x86   : > { %533 = vmatmul.f32.gmra.mxu0 %v440_v31 }
  0x87   : > { %772 = vmatmul.f32.gmra.mxu1 %v678_v32 }
  0x88   : > { %1093 = vmatmul.f32.gmra.mxu2 %v1318_v30  ;;  %v451_v30 = vld [vmem:[%s7250_s24 + $0xad] sm:$0xff] }
  0x8d   : > { %1414 = vmatmul.f32.gmra.mxu3 %v1320_v36 }
  0x8e   : > { %536 = vmatmul.f32.gmra.mxu0 %v441_v34  ;;  %v1330_v34 = vld [vmem:[%s7250_s24 + $0xb7] sm:$0xff] }
  0x8f   : > { %775 = vmatmul.f32.gmra.mxu1 %v679_v35 }
  0x90   : > { %1096 = vmatmul.f32.gmra.mxu2 %v1319_v33  ;;  %v689_v33 = vld [vmem:[%s7250_s24 + $0xae] sm:$0xff] }
  0x95   : > { %1417 = vmatmul.f32.gmra.mxu3 %v1321_v39 }
  0x96   : > { %539 = vmatmul.f32.gmra.mxu0 %v442_v37 }
  0x97   : > { %778 = vmatmul.f32.gmra.mxu1 %v680_v38 }
  0x98   : > { %1099 = vmatmul.f32.gmra.mxu2 %v1320_v36 }
  0x9d   : > { %1420 = vmatmul.f32.gmra.mxu3 %v1322_v42 }
  0x9e   : > { %542 = vmatmul.f32.gmra.mxu0 %v443_v40  ;;  %v452_v40 = vld [vmem:[%s7250_s24 + $0xb5] sm:$0xff] }
  0x9f   : > { %781 = vmatmul.f32.gmra.mxu1 %v681_v41 }
  0xa0   : > { %1102 = vmatmul.f32.gmra.mxu2 %v1321_v39 }
  0xa5   : > { %1423 = vmatmul.f32.gmra.mxu3 %v1323_v45 }
  0xa6   : > { %545 = vmatmul.f32.gmra.mxu0 %v444_v43  ;;  %v690_v43 = vld [vmem:[%s7250_s24 + $0xb6] sm:$0xff] }
  0xa7   : > { %784 = vmatmul.f32.gmra.mxu1 %v682_v44  ;;  %v1331_v44 = vld [vmem:[%s7250_s24 + $0xbf] sm:$0xff] }
  0xa8   : > { %1105 = vmatmul.f32.gmra.mxu2 %v1322_v42 }
  0xad   : > { %1426 = vmatmul.f32.gmra.mxu3 %v1324_v48 }
  0xae   : > { %548 = vmatmul.f32.gmra.mxu0 %v445_v46 }
  0xaf   : > { %787 = vmatmul.f32.gmra.mxu1 %v683_v47 }
  0xb0   : > { %1108 = vmatmul.f32.gmra.mxu2 %v1323_v45 }
  0xb3   : > { %v504_v49 = vpop.f32.mrf.mxu0 }
  0xb4   : > { %v743_v51 = vpop.f32.mrf.mxu1 }
  0xb5   : > { %1429 = vmatmul.f32.gmra.mxu3 %v1325_v53  ;;  %v907_v59 = vadd.f32 %v743_v51, %v504_v49 }
  0xb6   : > { %551 = vmatmul.f32.gmra.mxu0 %v446_v50  ;;  %v453_v50 = vld [vmem:[%s7250_s24 + $0xbd] sm:$0xff] }
  0xb7   : > { %790 = vmatmul.f32.gmra.mxu1 %v684_v52 }
  0xb8   : > { %1111 = vmatmul.f32.gmra.mxu2 %v1324_v48 }
  0xbb   : > { %v507_v54 = vpop.f32.mrf.mxu0  ;;  %v1064_v60 = vpop.f32.mrf.mxu2 }
  0xbc   : > { %v746_v56 = vpop.f32.mrf.mxu1  ;;  %v1228_v61 = vadd.f32 %v1064_v60, %v907_v59  ;;  %v454_v60 = vld [vmem:[%s7250_s24 + $0xc5] sm:$0xff] }
  0xbd   : > { %1432 = vmatmul.f32.gmra.mxu3 %v1326_v58  ;;  %v908_v5 = vadd.f32 %v746_v56, %v507_v54  ;;  %v1332_v54 = vld [vmem:[%s7250_s24 + $0xc7] sm:$0xff] }
  0xbe   : > { %554 = vmatmul.f32.gmra.mxu0 %v447_v55 }
  0xbf   : > { %793 = vmatmul.f32.gmra.mxu1 %v685_v57 }
  0xc0   : > { %1114 = vmatmul.f32.gmra.mxu2 %v1325_v53  ;;  %v1385_v62 = vpop.f32.mrf.mxu3  ;;  %v691_v53 = vld [vmem:[%s7250_s24 + $0xbe] sm:$0xff] }
  0xc1   : > { %v1549_v1 = vadd.f32 %v1385_v62, %v1228_v61 }
  0xc3   : > { %v510_v63 = vpop.f32.mrf.mxu0  ;;  %v1067_v6 = vpop.f32.mrf.mxu2  ;;  %1590 = vst [vmem:[#allocation3 + $0xb0] sm:$0xff] %v1549_v1 }
  0xc4   : > { %v749_v2 = vpop.f32.mrf.mxu1  ;;  %v1229_v7 = vadd.f32 %v1067_v6, %v908_v5  ;;  %v455_v6 = vld [vmem:[%s7250_s24 + $0xcd] sm:$0xff] }
  0xc5   : > { %1435 = vmatmul.f32.gmra.mxu3 %v1327_v4  ;;  %v909_v15 = vadd.f32 %v749_v2, %v510_v63  ;;  %v692_v63 = vld [vmem:[%s7250_s24 + $0xc6] sm:$0xff] }
  0xc6   : > { %557 = vmatmul.f32.gmra.mxu0 %v448_v0  ;;  %v1333_v0 = vld [vmem:[%s7250_s24 + $0xcf] sm:$0xff] }
  0xc7   : > { %796 = vmatmul.f32.gmra.mxu1 %v686_v3 }
  0xc8   : > { %1117 = vmatmul.f32.gmra.mxu2 %v1326_v58  ;;  %v1388_v8 = vpop.f32.mrf.mxu3 }
  0xc9   : > { %v1550_v11 = vadd.f32 %v1388_v8, %v1229_v7 }
  0xcb   : > { %v513_v9 = vpop.f32.mrf.mxu0  ;;  %v1070_v16 = vpop.f32.mrf.mxu2  ;;  %1591 = vst [vmem:[#allocation3 + $0xd0] sm:$0xff] %v1550_v11 }
  0xcc   : > { %v752_v12 = vpop.f32.mrf.mxu1  ;;  %v1230_v17 = vadd.f32 %v1070_v16, %v909_v15  ;;  %v456_v16 = vld [vmem:[%s7250_s24 + $0xd5] sm:$0xff] }
  0xcd   : > { %1438 = vmatmul.f32.gmra.mxu3 %v1328_v14  ;;  %v910_v25 = vadd.f32 %v752_v12, %v513_v9  ;;  %v693_v9 = vld [vmem:[%s7250_s24 + $0xce] sm:$0xff] }
  0xce   : > { %560 = vmatmul.f32.gmra.mxu0 %v449_v10  ;;  %v1334_v10 = vld [vmem:[%s7250_s24 + $0xd7] sm:$0xff] }
  0xcf   : > { %799 = vmatmul.f32.gmra.mxu1 %v687_v13 }
  0xd0   : > { %1120 = vmatmul.f32.gmra.mxu2 %v1327_v4  ;;  %v1391_v18 = vpop.f32.mrf.mxu3 }
  0xd1   : > { %v1551_v21 = vadd.f32 %v1391_v18, %v1230_v17 }
  0xd3   : > { %v516_v19 = vpop.f32.mrf.mxu0  ;;  %v1073_v26 = vpop.f32.mrf.mxu2  ;;  %1592 = vst [vmem:[#allocation3 + $0x10] sm:$0xff] %v1551_v21 }
  0xd4   : > { %v755_v22 = vpop.f32.mrf.mxu1  ;;  %v1231_v27 = vadd.f32 %v1073_v26, %v910_v25  ;;  %v457_v26 = vld [vmem:[%s7250_s24 + $0xdd] sm:$0xff] }
  0xd5   : > { %1441 = vmatmul.f32.gmra.mxu3 %v1329_v24  ;;  %v911_v35 = vadd.f32 %v755_v22, %v516_v19  ;;  %v694_v19 = vld [vmem:[%s7250_s24 + $0xd6] sm:$0xff] }
  0xd6   : > { %563 = vmatmul.f32.gmra.mxu0 %v450_v20  ;;  %v1335_v20 = vld [vmem:[%s7250_s24 + $0xdf] sm:$0xff] }
  0xd7   : > { %802 = vmatmul.f32.gmra.mxu1 %v688_v23 }
  0xd8   : > { %1123 = vmatmul.f32.gmra.mxu2 %v1328_v14  ;;  %v1394_v28 = vpop.f32.mrf.mxu3 }
  0xd9   : > { %v1552_v31 = vadd.f32 %v1394_v28, %v1231_v27 }
  0xdb   : > { %v519_v29 = vpop.f32.mrf.mxu0  ;;  %v1076_v36 = vpop.f32.mrf.mxu2  ;;  %1593 = vst [vmem:[#allocation3 + $0x48] sm:$0xff] %v1552_v31 }
  0xdc   : > { %v758_v32 = vpop.f32.mrf.mxu1  ;;  %v1232_v37 = vadd.f32 %v1076_v36, %v911_v35  ;;  %v458_v36 = vld [vmem:[%s7250_s24 + $0xe5] sm:$0xff] }
  0xdd   : > { %1444 = vmatmul.f32.gmra.mxu3 %v1330_v34  ;;  %v912_v45 = vadd.f32 %v758_v32, %v519_v29  ;;  %v695_v29 = vld [vmem:[%s7250_s24 + $0xde] sm:$0xff] }
  0xde   : > { %566 = vmatmul.f32.gmra.mxu0 %v451_v30  ;;  %v1336_v30 = vld [vmem:[%s7250_s24 + $0xe7] sm:$0xff] }
  0xdf   : > { %805 = vmatmul.f32.gmra.mxu1 %v689_v33 }
  0xe0   : > { %1126 = vmatmul.f32.gmra.mxu2 %v1329_v24  ;;  %v1397_v38 = vpop.f32.mrf.mxu3 }
  0xe1   : > { %v1553_v41 = vadd.f32 %v1397_v38, %v1232_v37 }
  0xe3   : > { %v522_v39 = vpop.f32.mrf.mxu0  ;;  %v1079_v46 = vpop.f32.mrf.mxu2  ;;  %1594 = vst [vmem:[#allocation3 + $0x120] sm:$0xff] %v1553_v41 }
  0xe4   : > { %v761_v42 = vpop.f32.mrf.mxu1  ;;  %v1233_v47 = vadd.f32 %v1079_v46, %v912_v45  ;;  %v459_v46 = vld [vmem:[%s7250_s24 + $0xed] sm:$0xff] }
  0xe5   : > { %1447 = vmatmul.f32.gmra.mxu3 %v1331_v44  ;;  %v913_v55 = vadd.f32 %v761_v42, %v522_v39  ;;  %v696_v39 = vld [vmem:[%s7250_s24 + $0xe6] sm:$0xff] }
  0xe6   : > { %569 = vmatmul.f32.gmra.mxu0 %v452_v40  ;;  %v1337_v40 = vld [vmem:[%s7250_s24 + $0xef] sm:$0xff] }
  0xe7   : > { %808 = vmatmul.f32.gmra.mxu1 %v690_v43 }
  0xe8   : > { %1129 = vmatmul.f32.gmra.mxu2 %v1330_v34  ;;  %v1400_v48 = vpop.f32.mrf.mxu3 }
  0xe9   : > { %v1554_v51 = vadd.f32 %v1400_v48, %v1233_v47 }
  0xeb   : > { %v525_v49 = vpop.f32.mrf.mxu0  ;;  %v1082_v56 = vpop.f32.mrf.mxu2  ;;  %1595 = vst [vmem:[#allocation3 + $0x38] sm:$0xff] %v1554_v51 }
  0xec   : > { %v764_v52 = vpop.f32.mrf.mxu1  ;;  %v1234_v57 = vadd.f32 %v1082_v56, %v913_v55  ;;  %v460_v56 = vld [vmem:[%s7250_s24 + $0xf5] sm:$0xff] }
  0xed   : > { %1450 = vmatmul.f32.gmra.mxu3 %v1332_v54  ;;  %v914_v1 = vadd.f32 %v764_v52, %v525_v49  ;;  %v697_v49 = vld [vmem:[%s7250_s24 + $0xee] sm:$0xff] }
  0xee   : > { %572 = vmatmul.f32.gmra.mxu0 %v453_v50  ;;  %v1338_v50 = vld [vmem:[%s7250_s24 + $0xf7] sm:$0xff] }
  0xef   : > { %811 = vmatmul.f32.gmra.mxu1 %v691_v53 }
  0xf0   : > { %1132 = vmatmul.f32.gmra.mxu2 %v1331_v44  ;;  %v1403_v58 = vpop.f32.mrf.mxu3 }
  0xf1   : > { %v1555_v61 = vadd.f32 %v1403_v58, %v1234_v57 }
  0xf3   : > { %v528_v59 = vpop.f32.mrf.mxu0  ;;  %v1085_v2 = vpop.f32.mrf.mxu2  ;;  %1596 = vst [vmem:[#allocation3 + $0xf8] sm:$0xff] %v1555_v61 }
  0xf4   : > { %v767_v62 = vpop.f32.mrf.mxu1  ;;  %v1235_v3 = vadd.f32 %v1085_v2, %v914_v1  ;;  %v461_v2 = vld [vmem:[%s7250_s24 + $0xfd] sm:$0xff] }
  0xf5   : > { %1453 = vmatmul.f32.gmra.mxu3 %v1333_v0  ;;  %v915_v11 = vadd.f32 %v767_v62, %v528_v59  ;;  %v698_v59 = vld [vmem:[%s7250_s24 + $0xf6] sm:$0xff] }
  0xf6   : > { %575 = vmatmul.f32.gmra.mxu0 %v454_v60  ;;  %v1339_v60 = vld [vmem:[%s7250_s24 + $0xff] sm:$0xff] }
  0xf7   : > { %814 = vmatmul.f32.gmra.mxu1 %v692_v63 }
  0xf8   : > { %1135 = vmatmul.f32.gmra.mxu2 %v1332_v54  ;;  %v1406_v4 = vpop.f32.mrf.mxu3 }
  0xf9   : > { %v1556_v7 = vadd.f32 %v1406_v4, %v1235_v3 }
  0xfb   : > { %v531_v5 = vpop.f32.mrf.mxu0  ;;  %v1088_v12 = vpop.f32.mrf.mxu2  ;;  %1597 = vst [vmem:[#allocation3 + $0x100] sm:$0xff] %v1556_v7 }
  0xfc   : > { %v770_v8 = vpop.f32.mrf.mxu1  ;;  %v1236_v13 = vadd.f32 %v1088_v12, %v915_v11  ;;  %v462_v12 = vld [vmem:[%s7250_s24 + $0x105] sm:$0xff] }
  0xfd   : > { %1456 = vmatmul.f32.gmra.mxu3 %v1334_v10  ;;  %v916_v21 = vadd.f32 %v770_v8, %v531_v5  ;;  %v699_v5 = vld [vmem:[%s7250_s24 + $0xfe] sm:$0xff] }
  0xfe   : > { %578 = vmatmul.f32.gmra.mxu0 %v455_v6  ;;  %v1340_v6 = vld [vmem:[%s7250_s24 + $0x107] sm:$0xff] }
  0xff   : > { %817 = vmatmul.f32.gmra.mxu1 %v693_v9 }
 0x100   : > { %1138 = vmatmul.f32.gmra.mxu2 %v1333_v0  ;;  %v1409_v14 = vpop.f32.mrf.mxu3 }
 0x101   : > { %v1557_v17 = vadd.f32 %v1409_v14, %v1236_v13 }
 0x103   : > { %v534_v15 = vpop.f32.mrf.mxu0  ;;  %v1091_v22 = vpop.f32.mrf.mxu2  ;;  %1598 = vst [vmem:[#allocation3 + $0x80] sm:$0xff] %v1557_v17 }
 0x104   : > { %v773_v18 = vpop.f32.mrf.mxu1  ;;  %v1237_v23 = vadd.f32 %v1091_v22, %v916_v21  ;;  %v463_v22 = vld [vmem:[%s7250_s24 + $0x10d] sm:$0xff] }
 0x105   : > { %1459 = vmatmul.f32.gmra.mxu3 %v1335_v20  ;;  %v917_v31 = vadd.f32 %v773_v18, %v534_v15  ;;  %v700_v15 = vld [vmem:[%s7250_s24 + $0x106] sm:$0xff] }
 0x106   : > { %581 = vmatmul.f32.gmra.mxu0 %v456_v16  ;;  %v1341_v16 = vld [vmem:[%s7250_s24 + $0x10f] sm:$0xff] }
 0x107   : > { %820 = vmatmul.f32.gmra.mxu1 %v694_v19 }
 0x108   : > { %1141 = vmatmul.f32.gmra.mxu2 %v1334_v10  ;;  %v1412_v24 = vpop.f32.mrf.mxu3 }
 0x109   : > { %v1558_v27 = vadd.f32 %v1412_v24, %v1237_v23 }
 0x10b   : > { %v537_v25 = vpop.f32.mrf.mxu0  ;;  %v1094_v32 = vpop.f32.mrf.mxu2  ;;  %1599 = vst [vmem:[#allocation3 + $0x108] sm:$0xff] %v1558_v27 }
 0x10c   : > { %v776_v28 = vpop.f32.mrf.mxu1  ;;  %v1238_v33 = vadd.f32 %v1094_v32, %v917_v31  ;;  %v6450_v31 = vld [vmem:[%s10146_s1 + $0x270] sm:$0xff] }
 0x10d   : > { %1462 = vmatmul.f32.gmra.mxu3 %v1336_v30  ;;  %v918_v41 = vadd.f32 %v776_v28, %v537_v25  ;;  %v701_v25 = vld [vmem:[%s7250_s24 + $0x10e] sm:$0xff] }
 0x10e   : > { %584 = vmatmul.f32.gmra.mxu0 %v457_v26  ;;  %v1342_v26 = vld [vmem:[%s7250_s24 + $0x117] sm:$0xff] }
 0x10f   : > { %823 = vmatmul.f32.gmra.mxu1 %v695_v29  ;;  %v6451_v29 = vld [vmem:[%s10146_s1 + $0x278] sm:$0xff] }
 0x110   : > { %1144 = vmatmul.f32.gmra.mxu2 %v1335_v20  ;;  %v1415_v34 = vpop.f32.mrf.mxu3  ;;  %1689 = vmatpush.msrb.mxu0 %v6451_v29  ;;  %v6460_v29 = vld [vmem:[%s10146_s1 + $0x2c0] sm:$0xff] }
 0x111   : > { %v1559_v37 = vadd.f32 %v1415_v34, %v1238_v33  ;;  %v464_v34 = vld [vmem:[%s7250_s24 + $0x115] sm:$0xff] }
 0x112   : > { %1690 = vmatpush.msrb.mxu0 %v6450_v31  ;;  %v6440_v31 = vld [vmem:[%s10146_s1 + $0x220] sm:$0xff] }
 0x113   : > { %v540_v35 = vpop.f32.mrf.mxu0  ;;  %v1097_v42 = vpop.f32.mrf.mxu2  ;;  %1600 = vst [vmem:[#allocation3 + $0x138] sm:$0xff] %v1559_v37 }
 0x114   : > { %v779_v38 = vpop.f32.mrf.mxu1  ;;  %v1239_v43 = vadd.f32 %v1097_v42, %v918_v41  ;;  %v6448_v42 = vld [vmem:[%s10146_s1 + $0x260] sm:$0xff] }
 0x115   : > { %1465 = vmatmul.f32.gmra.mxu3 %v1337_v40  ;;  %v919_v51 = vadd.f32 %v779_v38, %v540_v35  ;;  %v702_v38 = vld [vmem:[%s7250_s24 + $0x116] sm:$0xff] }
 0x116   : > { %587 = vmatmul.f32.gmra.mxu0 %v458_v36  ;;  %v6449_v36 = vld [vmem:[%s10146_s1 + $0x268] sm:$0xff] }
 0x117   : > { %826 = vmatmul.f32.gmra.mxu1 %v696_v39  ;;  %v1343_v39 = vld [vmem:[%s7250_s24 + $0x11f] sm:$0xff]  ;;  %1691 = vmatpush.msrb.mxu0 %v6449_v36 }
 0x118   : > { %1147 = vmatmul.f32.gmra.mxu2 %v1336_v30  ;;  %v1418_v44 = vpop.f32.mrf.mxu3 }
 0x119   : > { %v1560_v47 = vadd.f32 %v1418_v44, %v1239_v43  ;;  %v6483_v43 = vld [vmem:[%s10146_s1 + $0x378] sm:$0xff]  ;;  %1692 = vmatpush.msrb.mxu0 %v6448_v42 }
 0x11a   : > { %v6467_v44 = vld [vmem:[%s10146_s1 + $0x2f8] sm:$0xff]  ;;  %2331 = vmatpush.msrb.mxu2 %v6483_v43 }
 0x11b   : > { %v543_v45 = vpop.f32.mrf.mxu0  ;;  %v1100_v52 = vpop.f32.mrf.mxu2  ;;  %1601 = vst [vmem:[#allocation3 + $0xf0] sm:$0xff] %v1560_v47  ;;  %v6482_v47 = vld [vmem:[%s10146_s1 + $0x370] sm:$0xff]  ;;  %2010 = vmatpush.msrb.mxu1 %v6467_v44 }
 0x11c   : > { %v782_v48 = vpop.f32.mrf.mxu1  ;;  %v1240_v53 = vadd.f32 %v1100_v52, %v919_v51  ;;  %2332 = vmatpush.msrb.mxu2 %v6482_v47  ;;  %v6481_v51 = vld [vmem:[%s10146_s1 + $0x368] sm:$0xff]  ;;  %v6498_v52 = vld [vmem:[%s10146_s1 + $0x3f0] sm:$0xff] }
 0x11d   : > { %1468 = vmatmul.f32.gmra.mxu3 %v1338_v50  ;;  %v920_v61 = vadd.f32 %v782_v48, %v543_v45  ;;  %v6499_v48 = vld [vmem:[%s10146_s1 + $0x3f8] sm:$0xff]  ;;  %v6473_v47 = vld [vmem:[%s10146_s1 + $0x328] sm:$0xff] }
 0x11e   : > { %590 = vmatmul.f32.gmra.mxu0 %v459_v46  ;;  %v6447_v46 = vld [vmem:[%s10146_s1 + $0x258] sm:$0xff]  ;;  %2652 = vmatpush.msrb.mxu3 %v6499_v48  ;;  %v6490_v48 = vld [vmem:[%s10146_s1 + $0x3b0] sm:$0xff] }
 0x11f   : > { %829 = vmatmul.f32.gmra.mxu1 %v697_v49  ;;  %v6446_v49 = vld [vmem:[%s10146_s1 + $0x250] sm:$0xff]  ;;  %1693 = vmatpush.msrb.mxu0 %v6447_v46 }
 0x120   : > { %1150 = vmatmul.f32.gmra.mxu2 %v1337_v40  ;;  %v1421_v54 = vpop.f32.mrf.mxu3  ;;  %2653 = vmatpush.msrb.mxu3 %v6498_v52  ;;  %v7530_v42 = vld [vmem:[%s7250_s24 + $0x137] sm:$0xff]  ;;  %v6472_v52 = vld [vmem:[%s10146_s1 + $0x320] sm:$0xff] }
 0x121   : > { %v1561_v57 = vadd.f32 %v1421_v54, %v1240_v53  ;;  %2333 = vmatpush.msrb.mxu2 %v6481_v51  ;;  %1694 = vmatpush.msrb.mxu0 %v6446_v49  ;;  %v6458_v46 = vld [vmem:[%s10146_s1 + $0x2b0] sm:$0xff]  ;;  %v6457_v51 = vld [vmem:[%s10146_s1 + $0x2a8] sm:$0xff] }
 0x123   : > { %v546_v55 = vpop.f32.mrf.mxu0  ;;  %v1103_v62 = vpop.f32.mrf.mxu2  ;;  %1602 = vst [vmem:[#allocation3 + $0x18] sm:$0xff] %v1561_v57  ;;  %v6465_v57 = vld [vmem:[%s10146_s1 + $0x2e8] sm:$0xff] }
 0x124   : > { %v785_v58 = vpop.f32.mrf.mxu1  ;;  %v1241_v63 = vadd.f32 %v1103_v62, %v920_v61  ;;  %v6480_v61 = vld [vmem:[%s10146_s1 + $0x360] sm:$0xff] }
 0x125   : > { %1471 = vmatmul.f32.gmra.mxu3 %v1339_v60  ;;  %v921_v7 = vadd.f32 %v785_v58, %v546_v55  ;;  %v465_v55 = vld [vmem:[%s7250_s24 + $0x11d] sm:$0xff]  ;;  %2334 = vmatpush.msrb.mxu2 %v6480_v61 }
 0x126   : > { %593 = vmatmul.f32.gmra.mxu0 %v460_v56  ;;  %v6488_v61 = vld [vmem:[%s10146_s1 + $0x3a0] sm:$0xff] }
 0x127   : > { %832 = vmatmul.f32.gmra.mxu1 %v698_v59  ;;  %v703_v59 = vld [vmem:[%s7250_s24 + $0x11e] sm:$0xff] }
 0x128   : > { %1153 = vmatmul.f32.gmra.mxu2 %v1338_v50  ;;  %v1424_v0 = vpop.f32.mrf.mxu3  ;;  %v6466_v50 = vld [vmem:[%s10146_s1 + $0x2f0] sm:$0xff] }
 0x129   : > { %v1562_v3 = vadd.f32 %v1424_v0, %v1241_v63  ;;  %2011 = vmatpush.msrb.mxu1 %v6466_v50  ;;  %v6445_v0 = vld [vmem:[%s10146_s1 + $0x248] sm:$0xff]  ;;  %v6438_v50 = vld [vmem:[%s10146_s1 + $0x210] sm:$0xff] }
 0x12a   : > { %1695 = vmatpush.msrb.mxu0 %v6445_v0  ;;  %v1347_v0 = vld [vmem:[%s7250_s24 + $0x13f] sm:$0xff] }
 0x12b   : > { %v549_v1 = vpop.f32.mrf.mxu0  ;;  %v1106_v8 = vpop.f32.mrf.mxu2  ;;  %1603 = vst [vmem:[#allocation3 + $0xc8] sm:$0xff] %v1562_v3  ;;  %2012 = vmatpush.msrb.mxu1 %v6465_v57  ;;  %v6479_v3 = vld [vmem:[%s10146_s1 + $0x358] sm:$0xff] }
 0x12c   : > { %v788_v4 = vpop.f32.mrf.mxu1  ;;  %v1242_v9 = vadd.f32 %v1106_v8, %v921_v7  ;;  %v6463_v7 = vld [vmem:[%s10146_s1 + $0x2d8] sm:$0xff]  ;;  %v6478_v8 = vld [vmem:[%s10146_s1 + $0x350] sm:$0xff]  ;;  %2335 = vmatpush.msrb.mxu2 %v6479_v3  ;;  %v6436_v3 = vld [vmem:[%s10146_s1 + $0x200] sm:$0xff] }
 0x12d   : > { %1474 = vmatmul.f32.gmra.mxu3 %v1340_v6  ;;  %v922_v17 = vadd.f32 %v788_v4, %v549_v1  ;;  %v6464_v1 = vld [vmem:[%s10146_s1 + $0x2e0] sm:$0xff]  ;;  %v6471_v57 = vld [vmem:[%s10146_s1 + $0x318] sm:$0xff] }
 0x12e   : > { %596 = vmatmul.f32.gmra.mxu0 %v461_v2  ;;  %v6497_v2 = vld [vmem:[%s10146_s1 + $0x3e8] sm:$0xff]  ;;  %2013 = vmatpush.msrb.mxu1 %v6464_v1 }
 0x12f   : > { %835 = vmatmul.f32.gmra.mxu1 %v699_v5  ;;  %2654 = vmatpush.msrb.mxu3 %v6497_v2  ;;  %v6444_v5 = vld [vmem:[%s10146_s1 + $0x240] sm:$0xff] }
 0x130   : > { %1156 = vmatmul.f32.gmra.mxu2 %v1339_v60  ;;  %v1427_v10 = vpop.f32.mrf.mxu3  ;;  %v7439_v60 = vld [vmem:[%s7250_s24 + $0x127] sm:$0xff]  ;;  %1696 = vmatpush.msrb.mxu0 %v6444_v5  ;;  %v6470_v5 = vld [vmem:[%s10146_s1 + $0x310] sm:$0xff] }
 0x131   : > { %v1563_v13 = vadd.f32 %v1427_v10, %v1242_v9  ;;  %v6443_v9 = vld [vmem:[%s10146_s1 + $0x238] sm:$0xff]  ;;  %2014 = vmatpush.msrb.mxu1 %v6463_v7  ;;  %2336 = vmatpush.msrb.mxu2 %v6478_v8  ;;  %v6454_v8 = vld [vmem:[%s10146_s1 + $0x290] sm:$0xff] }
 0x132   : > { %v6495_v10 = vld [vmem:[%s10146_s1 + $0x3d8] sm:$0xff]  ;;  %1697 = vmatpush.msrb.mxu0 %v6443_v9  ;;  %v6469_v9 = vld [vmem:[%s10146_s1 + $0x308] sm:$0xff] }
 0x133   : > { %v552_v11 = vpop.f32.mrf.mxu0  ;;  %v1109_v18 = vpop.f32.mrf.mxu2  ;;  %1604 = vst [vmem:[#allocation3 + $0x70] sm:$0xff] %v1563_v13  ;;  %v6477_v13 = vld [vmem:[%s10146_s1 + $0x348] sm:$0xff] }
 0x134   : > { %v791_v14 = vpop.f32.mrf.mxu1  ;;  %v1243_v19 = vadd.f32 %v1109_v18, %v922_v17  ;;  %v6494_v17 = vld [vmem:[%s10146_s1 + $0x3d0] sm:$0xff]  ;;  %2337 = vmatpush.msrb.mxu2 %v6477_v13  ;;  %v6468_v13 = vld [vmem:[%s10146_s1 + $0x300] sm:$0xff] }
 0x135   : > { %1477 = vmatmul.f32.gmra.mxu3 %v1341_v16  ;;  %v923_v27 = vadd.f32 %v791_v14, %v552_v11 }
 0x136   : > { %599 = vmatmul.f32.gmra.mxu0 %v462_v12  ;;  %v6462_v12 = vld [vmem:[%s10146_s1 + $0x2d0] sm:$0xff] }
 0x137   : > { %838 = vmatmul.f32.gmra.mxu1 %v700_v15  ;;  %v466_v15 = vld [vmem:[%s7250_s24 + $0x125] sm:$0xff] }
 0x138   : > { %1159 = vmatmul.f32.gmra.mxu2 %v1340_v6  ;;  %v1430_v20 = vpop.f32.mrf.mxu3  ;;  %v6496_v6 = vld [vmem:[%s10146_s1 + $0x3e0] sm:$0xff]  ;;  %2015 = vmatpush.msrb.mxu1 %v6462_v12 }
 0x139   : > { %v1564_v23 = vadd.f32 %v1430_v20, %v1243_v19  ;;  %2655 = vmatpush.msrb.mxu3 %v6496_v6  ;;  %v704_v19 = vld [vmem:[%s7250_s24 + $0x126] sm:$0xff]  ;;  %v7487_v20 = vld [vmem:[%s7250_s24 + $0x12f] sm:$0xff]  ;;  %v6487_v6 = vld [vmem:[%s10146_s1 + $0x398] sm:$0xff] }
 0x13b   : > { %v555_v21 = vpop.f32.mrf.mxu0  ;;  %v1112_v28 = vpop.f32.mrf.mxu2  ;;  %1605 = vst [vmem:[#allocation3 + $0x20] sm:$0xff] %v1564_v23  ;;  %2656 = vmatpush.msrb.mxu3 %v6495_v10  ;;  %v6442_v23 = vld [vmem:[%s10146_s1 + $0x230] sm:$0xff] }
 0x13c   : > { %v794_v24 = vpop.f32.mrf.mxu1  ;;  %v1244_v30 = vadd.f32 %v1112_v28, %v923_v27  ;;  %v6441_v28 = vld [vmem:[%s10146_s1 + $0x228] sm:$0xff]  ;;  %1698 = vmatpush.msrb.mxu0 %v6442_v23  ;;  %v6486_v10 = vld [vmem:[%s10146_s1 + $0x390] sm:$0xff] }
 0x13d   : > { %1480 = vmatmul.f32.gmra.mxu3 %v1342_v26  ;;  %v924_v40 = vadd.f32 %v794_v24, %v555_v21  ;;  %v6461_v24 = vld [vmem:[%s10146_s1 + $0x2c8] sm:$0xff] }
 0x13e   : > { %602 = vmatmul.f32.gmra.mxu0 %v463_v22  ;;  %2657 = vmatpush.msrb.mxu3 %v6494_v17 }
 0x13f   : > { %841 = vmatmul.f32.gmra.mxu1 %v701_v25  ;;  %v6476_v25 = vld [vmem:[%s10146_s1 + $0x340] sm:$0xff]  ;;  %1699 = vmatpush.msrb.mxu0 %v6441_v28 }
 0x140   : > { %1162 = vmatmul.f32.gmra.mxu2 %v1341_v16  ;;  %v1433_v32 = vpop.f32.mrf.mxu3  ;;  %2016 = vmatpush.msrb.mxu1 %v6461_v24  ;;  %v6484_v24 = vld [vmem:[%s10146_s1 + $0x380] sm:$0xff] }
 0x141   : > { %v1565_v35 = vadd.f32 %v1433_v32, %v1244_v30  ;;  %v6475_v30 = vld [vmem:[%s10146_s1 + $0x338] sm:$0xff]  ;;  %2338 = vmatpush.msrb.mxu2 %v6476_v25  ;;  %v6492_v32 = vld [vmem:[%s10146_s1 + $0x3c0] sm:$0xff]  ;;  %1700 = vmatpush.msrb.mxu0 %v6440_v31 }
 0x142   : > { %2017 = vmatpush.msrb.mxu1 %v6460_v29  ;;  %v470_v28 = vld [vmem:[%s7250_s24 + $0x145] sm:$0xf] }
 0x143   : > { %v558_v33 = vpop.f32.mrf.mxu0  ;;  %v1115_v41 = vpop.f32.mrf.mxu2  ;;  %1606 = vst [vmem:[#allocation3 + $0x128] sm:$0xff] %v1565_v35  ;;  %v6474_v35 = vld [vmem:[%s10146_s1 + $0x330] sm:$0xff]  ;;  %2339 = vmatpush.msrb.mxu2 %v6475_v30  ;;  %v708_v31 = vld [vmem:[%s7250_s24 + $0x146] sm:$0xf] }
 0x144   : > { %v797_v37 = vpop.f32.mrf.mxu1  ;;  %v1245_v45 = vadd.f32 %v1115_v41, %v924_v40  ;;  %v705_v41 = vld [vmem:[%s7250_s24 + $0x12e] sm:$0xff] }
 0x145   : > { %1483 = vmatmul.f32.gmra.mxu3 %v1343_v39  ;;  %v925_v62 = vadd.f32 %v797_v37, %v558_v33  ;;  %v467_v37 = vld [vmem:[%s7250_s24 + $0x12d] sm:$0xff]  ;;  %2340 = vmatpush.msrb.mxu2 %v6474_v35 }
 0x146   : > { %605 = vmatmul.f32.gmra.mxu0 %v464_v34  ;;  %v6459_v34 = vld [vmem:[%s10146_s1 + $0x2b8] sm:$0xff] }
 0x147   : > { %844 = vmatmul.f32.gmra.mxu1 %v702_v38  ;;  %2341 = vmatpush.msrb.mxu2 %v6473_v47  ;;  %v2273_v47 = vld [vmem:[%s7250_s24 + $0x29] sm:$0xff] }
 0x148   : > { %1165 = vmatmul.f32.gmra.mxu2 %v1342_v26  ;;  %v1436_v53 = vpop.f32.mrf.mxu3  ;;  %v6493_v26 = vld [vmem:[%s10146_s1 + $0x3c8] sm:$0xff]  ;;  %2018 = vmatpush.msrb.mxu1 %v6459_v34 }
 0x149   : > { %v1566_v56 = vadd.f32 %v1436_v53, %v1245_v45  ;;  %2658 = vmatpush.msrb.mxu3 %v6493_v26  ;;  %v6439_v45 = vld [vmem:[%s10146_s1 + $0x218] sm:$0xff]  ;;  %v6437_v53 = vld [vmem:[%s10146_s1 + $0x208] sm:$0xff]  ;;  %2342 = vmatpush.msrb.mxu2 %v6472_v52 }
 0x14a   : > { %1701 = vmatpush.msrb.mxu0 %v6439_v45  ;;  %2019 = vmatpush.msrb.mxu1 %v6458_v46 }
 0x14b   : > { %v561_v54 = vpop.f32.mrf.mxu0  ;;  %v1118_v63 = vpop.f32.mrf.mxu2  ;;  %1607 = vst [vmem:[#allocation3 + $0x110] sm:$0xff] %v1566_v56  ;;  %2659 = vmatpush.msrb.mxu3 %v6492_v32  ;;  %v6456_v56 = vld [vmem:[%s10146_s1 + $0x2a0] sm:$0xff]  ;;  %2343 = vmatpush.msrb.mxu2 %v6471_v57  ;;  %v1349_v32 = vld [vmem:[%s7250_s24 + $0x14f] sm:$0xff] }
 0x14c   : > { %v800_v58 = vpop.f32.mrf.mxu1  ;;  %v1246_v4 = vadd.f32 %v1118_v63, %v925_v62  ;;  %1702 = vmatpush.msrb.mxu0 %v6438_v50  ;;  %2020 = vmatpush.msrb.mxu1 %v6457_v51  ;;  %v706_v63 = vld [vmem:[%s7250_s24 + $0x136] sm:$0xff]  ;;  %v1632_v50 = vld [vmem:[%s7250_s24 + $0x20] sm:$0xff] }
 0x14d   : > { %1486 = vmatmul.f32.gmra.mxu3 %v7439_v60  ;;  %v926_v21 = vadd.f32 %v800_v58, %v561_v54  ;;  %v6489_v54 = vld [vmem:[%s10146_s1 + $0x3a8] sm:$0xff]  ;;  %2344 = vmatpush.msrb.mxu2 %v6470_v5 }
 0x14e   : > { %608 = vmatmul.f32.gmra.mxu0 %v465_v55  ;;  %2021 = vmatpush.msrb.mxu1 %v6456_v56 }
 0x14f   : > { %847 = vmatmul.f32.gmra.mxu1 %v703_v59  ;;  %v468_v59 = vld [vmem:[%s7250_s24 + $0x135] sm:$0xff]  ;;  %1703 = vmatpush.msrb.mxu0 %v6437_v53  ;;  %v1953_v53 = vld [vmem:[%s7250_s24 + $0x21] sm:$0xff] }
 0x150   : > { %1168 = vmatmul.f32.gmra.mxu2 %v1343_v39  ;;  %v1439_v11 = vpop.f32.mrf.mxu3  ;;  %v6491_v39 = vld [vmem:[%s10146_s1 + $0x3b8] sm:$0xff] }
 0x151   : > { %v1567_v16 = vadd.f32 %v1439_v11, %v1246_v4  ;;  %2660 = vmatpush.msrb.mxu3 %v6491_v39  ;;  %v6455_v4 = vld [vmem:[%s10146_s1 + $0x298] sm:$0xff]  ;;  %1704 = vmatpush.msrb.mxu0 %v6436_v3  ;;  %v6453_v11 = vld [vmem:[%s10146_s1 + $0x288] sm:$0xff] }
 0x152   : > { %2022 = vmatpush.msrb.mxu1 %v6455_v4  ;;  %2345 = vmatpush.msrb.mxu2 %v6469_v9  ;;  %v1631_v39 = vld [vmem:[%s7250_s24 + $0x18] sm:$0xff] }
 0x153   : > { %v564_v14 = vpop.f32.mrf.mxu0  ;;  %v1121_v22 = vpop.f32.mrf.mxu2  ;;  %1608 = vst [vmem:[#allocation3 + $0x8] sm:$0xff] %v1567_v16  ;;  %2661 = vmatpush.msrb.mxu3 %v6490_v48  ;;  %v469_v16 = vld [vmem:[%s7250_s24 + $0x13d] sm:$0xff] }
 0x154   : > { %v803_v18 = vpop.f32.mrf.mxu1  ;;  %v1247_v27 = vadd.f32 %v1121_v22, %v926_v21  ;;  %2023 = vmatpush.msrb.mxu1 %v6454_v8  ;;  %v1348_v21 = vld [vmem:[%s7250_s24 + $0x147] sm:$0xff]  ;;  %2346 = vmatpush.msrb.mxu2 %v6468_v13  ;;  %v2275_v4 = vld [vmem:[%s7250_s24 + $0x39] sm:$0xff] }
 0x155   : > { %1489 = vmatmul.f32.gmra.mxu3 %v7487_v20  ;;  %v927_v43 = vadd.f32 %v803_v18, %v564_v14  ;;  %v6485_v14 = vld [vmem:[%s10146_s1 + $0x388] sm:$0xff]  ;;  %v6452_v18 = vld [vmem:[%s10146_s1 + $0x280] sm:$0xff] }
 0x156   : > { %611 = vmatmul.f32.gmra.mxu0 %v466_v15  ;;  %2662 = vmatpush.msrb.mxu3 %v6489_v54  ;;  %v2594_v54 = vld [vmem:[%s7250_s24 + $0x2a] sm:$0xff] }
 0x157   : > { %850 = vmatmul.f32.gmra.mxu1 %v704_v19 }
 0x158   : > { %1171 = vmatmul.f32.gmra.mxu2 %v7439_v60  ;;  %v1442_v33 = vpop.f32.mrf.mxu3  ;;  %2663 = vmatpush.msrb.mxu3 %v6488_v61  ;;  %v1633_v61 = vld [vmem:[%s7250_s24 + $0x28] sm:$0xff] }
 0x159   : > { %v1568_v38 = vadd.f32 %v1442_v33, %v1247_v27  ;;  %2024 = vmatpush.msrb.mxu1 %v6453_v11 }
 0x15a   : > { %2664 = vmatpush.msrb.mxu3 %v6487_v6 }
 0x15b   : > { %v567_v36 = vpop.f32.mrf.mxu0  ;;  %v1124_v44 = vpop.f32.mrf.mxu2  ;;  %1609 = vst [vmem:[#allocation3 + $0x98] sm:$0xff] %v1568_v38  ;;  %2025 = vmatpush.msrb.mxu1 %v6452_v18 }
 0x15c   : > { %v806_v40 = vpop.f32.mrf.mxu1  ;;  %v1248_v49 = vadd.f32 %v1124_v44, %v927_v43  ;;  %2665 = vmatpush.msrb.mxu3 %v6486_v10  ;;  %v1350_v43 = vld [vmem:[%s7250_s24 + $0x157] sm:$0xf] }
 0x15d   : > { %1492 = vmatmul.f32.gmra.mxu3 %v7530_v42  ;;  %v928_v1 = vadd.f32 %v806_v40, %v567_v36  ;;  %v1029_v36 = vld [vmem:[%s7250_s24 + $0x147] sm:$0xf]  ;;  %v2596_v10 = vld [vmem:[%s7250_s24 + $0x3a] sm:$0xff] }
 0x15e   : > { %614 = vmatmul.f32.gmra.mxu0 %v467_v37  ;;  %2666 = vmatpush.msrb.mxu3 %v6485_v14  ;;  %v2276_v14 = vld [vmem:[%s7250_s24 + $0x41] sm:$0xff] }
 0x15f   : > { %853 = vmatmul.f32.gmra.mxu1 %v705_v41 }
 0x160   : > { %1174 = vmatmul.f32.gmra.mxu2 %v7487_v20  ;;  %v1445_v55 = vpop.f32.mrf.mxu3  ;;  %v707_v20 = vld [vmem:[%s7250_s24 + $0x13e] sm:$0xff]  ;;  %2667 = vmatpush.msrb.mxu3 %v6484_v24  ;;  %v2277_v24 = vld [vmem:[%s7250_s24 + $0x49] sm:$0xff] }
 0x161   : > { %v1569_v60 = vadd.f32 %v1445_v55, %v1248_v49 }
 0x163   : > { %v570_v58 = vpop.f32.mrf.mxu0  ;;  %v1127_v2 = vpop.f32.mrf.mxu2  ;;  %1610 = vst [vmem:[#allocation3 + $0xa8] sm:$0xff] %v1569_v60 }
 0x164   : > { %v809_v62 = vpop.f32.mrf.mxu1  ;;  %v1249_v7 = vadd.f32 %v1127_v2, %v928_v1 }
 0x165   : > { %1495 = vmatmul.f32.gmra.mxu3 %v1347_v0  ;;  %v929_v22 = vadd.f32 %v809_v62, %v570_v58  ;;  %v2274_v58 = vld [vmem:[%s7250_s24 + $0x31] sm:$0xff] }
 0x166   : > { %617 = vmatmul.f32.gmra.mxu0 %v468_v59 }
 0x167   : > { %856 = vmatmul.f32.gmra.mxu1 %v706_v63 }
 0x168   : > { %1177 = vmatmul.f32.gmra.mxu2 %v7530_v42  ;;  %v1448_v12 = vpop.f32.mrf.mxu3  ;;  %v1952_v42 = vld [vmem:[%s7250_s24 + $0x19] sm:$0xff] }
 0x169   : > { %v1570_v17 = vadd.f32 %v1448_v12, %v1249_v7  ;;  %v1634_v7 = vld [vmem:[%s7250_s24 + $0x30] sm:$0xff] }
 0x16b   : > { %v573_v15 = vpop.f32.mrf.mxu0  ;;  %v1130_v23 = vpop.f32.mrf.mxu2  ;;  %1611 = vst [vmem:[#allocation3 + $0x90] sm:$0xff] %v1570_v17  ;;  %v1635_v17 = vld [vmem:[%s7250_s24 + $0x38] sm:$0xff] }
 0x16c   : > { %v812_v19 = vpop.f32.mrf.mxu1  ;;  %v1250_v25 = vadd.f32 %v1130_v23, %v929_v22 }
 0x16d   : > { %1498 = vmatmul.f32.gmra.mxu3 %v1348_v21  ;;  %v930_v33 = vadd.f32 %v812_v19, %v573_v15 }
 0x16e   : > { %620 = vmatmul.f32.gmra.mxu0 %v469_v16 }
 0x16f   : > { %859 = vmatmul.f32.gmra.mxu1 %v707_v20  ;;  %v2597_v20 = vld [vmem:[%s7250_s24 + $0x42] sm:$0xff] }
 0x170   : > { %1180 = vmatmul.f32.gmra.mxu2 %v1347_v0  ;;  %v1451_v26 = vpop.f32.mrf.mxu3  ;;  %v2595_v0 = vld [vmem:[%s7250_s24 + $0x32] sm:$0xff] }
 0x171   : > { %v1571_v29 = vadd.f32 %v1451_v26, %v1250_v25 }
 0x173   : > { %v576_v27 = vpop.f32.mrf.mxu0  ;;  %v1133_v34 = vpop.f32.mrf.mxu2  ;;  %1612 = vst [vmem:[#allocation3 + $0xe0] sm:$0xff] %v1571_v29 }
 0x174   : > { %v815_v30 = vpop.f32.mrf.mxu1  ;;  %v1251_v35 = vadd.f32 %v1133_v34, %v930_v33  ;;  %v2278_v34 = vld [vmem:[%s7250_s24 + $0x51] sm:$0xff] }
 0x175   : > { %1501 = vmatmul.f32.gmra.mxu3 %v1349_v32  ;;  %v931_v44 = vadd.f32 %v815_v30, %v576_v27  ;;  %v1636_v27 = vld [vmem:[%s7250_s24 + $0x40] sm:$0xff]  ;;  %v2598_v30 = vld [vmem:[%s7250_s24 + $0x4a] sm:$0xff] }
 0x176   : > { %623 = vmatmul.f32.gmra.mxu0 %v470_v28 }
 0x177   : > { %862 = vmatmul.f32.gmra.mxu1 %v708_v31 }
 0x178   : > { %1183 = vmatmul.f32.gmra.mxu2 %v1029_v36  ;;  %v1454_v37 = vpop.f32.mrf.mxu3 }
 0x179   : > { %v1572_v40 = vadd.f32 %v1454_v37, %v1251_v35  ;;  %v1637_v37 = vld [vmem:[%s7250_s24 + $0x48] sm:$0xff] }
 0x17b   : > { %v579_v38 = vpop.f32.mrf.mxu0  ;;  %v1136_v45 = vpop.f32.mrf.mxu2  ;;  %1613 = vst [vmem:[#allocation3 + $0x88] sm:$0xff] %v1572_v40  ;;  %v2599_v40 = vld [vmem:[%s7250_s24 + $0x52] sm:$0xff] }
 0x17c   : > { %v818_v41 = vpop.f32.mrf.mxu1  ;;  %v1252_v46 = vadd.f32 %v1136_v45, %v931_v44  ;;  %v2279_v44 = vld [vmem:[%s7250_s24 + $0x59] sm:$0xff] }
 0x17d   : > { %1504 = vmatmul.f32.gmra.mxu3 %v1350_v43  ;;  %v932_v55 = vadd.f32 %v818_v41, %v579_v38 }
 0x17e   : > { %1705 = vmatmul.f32.vlgmr.msrb.gmra.mxu0 %v1631_v39 }
 0x17f   : > { %2026 = vmatmul.f32.vlgmr.msrb.gmra.mxu1 %v1952_v42 }
 0x180   : > { %2347 = vmatmul.f32.vlgmr.msrb.gmra.mxu2 %v2273_v47  ;;  %v1457_v48 = vpop.f32.mrf.mxu3 }
 0x181   : > { %v1573_v51 = vadd.f32 %v1457_v48, %v1252_v46 }
 0x183   : > { %v582_v49 = vpop.f32.mrf.mxu0  ;;  %v1139_v56 = vpop.f32.mrf.mxu2  ;;  %1614 = vst [vmem:[#allocation3 + $0xc0] sm:$0xff] %v1573_v51 }
 0x184   : > { %v821_v52 = vpop.f32.mrf.mxu1  ;;  %v1253_v57 = vadd.f32 %v1139_v56, %v932_v55 }
 0x185   : > { %2668 = vmatmul.f32.vlgmr.msrb.gmra.mxu3 %v2594_v54  ;;  %v933_v1 = vadd.f32 %v821_v52, %v582_v49  ;;  %v2280_v54 = vld [vmem:[%s7250_s24 + $0x61] sm:$0xff] }
 0x186   : > { %1708 = vmatmul.f32.gmra.mxu0 %v1632_v50  ;;  %v2600_v50 = vld [vmem:[%s7250_s24 + $0x5a] sm:$0xff] }
 0x187   : > { %2029 = vmatmul.f32.gmra.mxu1 %v1953_v53 }
 0x188   : > { %2350 = vmatmul.f32.gmra.mxu2 %v2274_v58  ;;  %v1460_v59 = vpop.f32.mrf.mxu3 }
 0x189   : > { %v1574_v62 = vadd.f32 %v1460_v59, %v1253_v57  ;;  %v1639_v57 = vld [vmem:[%s7250_s24 + $0x58] sm:$0xff] }
 0x18b   : > { %v585_v60 = vpop.f32.mrf.mxu0  ;;  %v1142_v2 = vpop.f32.mrf.mxu2  ;;  %1615 = vst [vmem:[#allocation3 + $0x118] sm:$0xff] %v1574_v62 }
 0x18c   : > { %v824_v63 = vpop.f32.mrf.mxu1  ;;  %v1254_v3 = vadd.f32 %v1142_v2, %v933_v1 }
 0x18d   : > { %2671 = vmatmul.f32.gmra.mxu3 %v2595_v0  ;;  %v934_v11 = vadd.f32 %v824_v63, %v585_v60  ;;  %v2601_v60 = vld [vmem:[%s7250_s24 + $0x62] sm:$0xff] }
 0x18e   : > { %1711 = vmatmul.f32.gmra.mxu0 %v1633_v61  ;;  %v2281_v0 = vld [vmem:[%s7250_s24 + $0x69] sm:$0xff] }
 0x18f   : > { %2032 = vmatmul.f32.gmra.mxu1 %v2273_v47  ;;  %v1638_v47 = vld [vmem:[%s7250_s24 + $0x50] sm:$0xff] }
 0x190   : > { %2353 = vmatmul.f32.gmra.mxu2 %v2275_v4  ;;  %v1463_v5 = vpop.f32.mrf.mxu3 }
 0x191   : > { %v1575_v8 = vadd.f32 %v1463_v5, %v1254_v3  ;;  %v1640_v3 = vld [vmem:[%s7250_s24 + $0x60] sm:$0xff] }
 0x193   : > { %v588_v6 = vpop.f32.mrf.mxu0  ;;  %v1145_v12 = vpop.f32.mrf.mxu2  ;;  %1616 = vst [vmem:[#allocation3 + $0xd8] sm:$0xff] %v1575_v8 }
 0x194   : > { %v827_v9 = vpop.f32.mrf.mxu1  ;;  %v1255_v13 = vadd.f32 %v1145_v12, %v934_v11 }
 0x195   : > { %2674 = vmatmul.f32.gmra.mxu3 %v2596_v10  ;;  %v935_v21 = vadd.f32 %v827_v9, %v588_v6  ;;  %v2602_v6 = vld [vmem:[%s7250_s24 + $0x6a] sm:$0xff] }
 0x196   : > { %1714 = vmatmul.f32.gmra.mxu0 %v1634_v7  ;;  %v2282_v10 = vld [vmem:[%s7250_s24 + $0x71] sm:$0xff] }
 0x197   : > { %2035 = vmatmul.f32.gmra.mxu1 %v2274_v58 }
 0x198   : > { %2356 = vmatmul.f32.gmra.mxu2 %v2276_v14  ;;  %v1466_v15 = vpop.f32.mrf.mxu3 }
 0x199   : > { %v1576_v18 = vadd.f32 %v1466_v15, %v1255_v13  ;;  %v1641_v13 = vld [vmem:[%s7250_s24 + $0x68] sm:$0xff] }
 0x19b   : > { %v591_v16 = vpop.f32.mrf.mxu0  ;;  %v1148_v22 = vpop.f32.mrf.mxu2  ;;  %1617 = vst [vmem:[#allocation3 + $0xa0] sm:$0xff] %v1576_v18 }
 0x19c   : > { %v830_v19 = vpop.f32.mrf.mxu1  ;;  %v1256_v23 = vadd.f32 %v1148_v22, %v935_v21 }
 0x19d   : > { %2677 = vmatmul.f32.gmra.mxu3 %v2597_v20  ;;  %v936_v31 = vadd.f32 %v830_v19, %v591_v16  ;;  %v2603_v16 = vld [vmem:[%s7250_s24 + $0x72] sm:$0xff] }
 0x19e   : > { %1717 = vmatmul.f32.gmra.mxu0 %v1635_v17  ;;  %v2283_v20 = vld [vmem:[%s7250_s24 + $0x79] sm:$0xff] }
 0x19f   : > { %2038 = vmatmul.f32.gmra.mxu1 %v2275_v4 }
 0x1a0   : > { %2359 = vmatmul.f32.gmra.mxu2 %v2277_v24  ;;  %v1469_v25 = vpop.f32.mrf.mxu3 }
 0x1a1   : > { %v1577_v28 = vadd.f32 %v1469_v25, %v1256_v23  ;;  %v1642_v23 = vld [vmem:[%s7250_s24 + $0x70] sm:$0xff] }
 0x1a3   : > { %v594_v26 = vpop.f32.mrf.mxu0  ;;  %v1151_v32 = vpop.f32.mrf.mxu2  ;;  %1618 = vst [vmem:[#allocation3 + $0x68] sm:$0xff] %v1577_v28 }
 0x1a4   : > { %v833_v29 = vpop.f32.mrf.mxu1  ;;  %v1257_v33 = vadd.f32 %v1151_v32, %v936_v31 }
 0x1a5   : > { %2680 = vmatmul.f32.gmra.mxu3 %v2598_v30  ;;  %v937_v41 = vadd.f32 %v833_v29, %v594_v26  ;;  %v2604_v26 = vld [vmem:[%s7250_s24 + $0x7a] sm:$0xff] }
 0x1a6   : > { %1720 = vmatmul.f32.gmra.mxu0 %v1636_v27  ;;  %v2284_v30 = vld [vmem:[%s7250_s24 + $0x81] sm:$0xff] }
 0x1a7   : > { %2041 = vmatmul.f32.gmra.mxu1 %v2276_v14 }
 0x1a8   : > { %2362 = vmatmul.f32.gmra.mxu2 %v2278_v34  ;;  %v1472_v35 = vpop.f32.mrf.mxu3 }
 0x1a9   : > { %v1578_v38 = vadd.f32 %v1472_v35, %v1257_v33  ;;  %v1643_v33 = vld [vmem:[%s7250_s24 + $0x78] sm:$0xff] }
 0x1ab   : > { %v597_v36 = vpop.f32.mrf.mxu0  ;;  %v1154_v42 = vpop.f32.mrf.mxu2  ;;  %1619 = vst [vmem:[#allocation3 + $0x130] sm:$0xff] %v1578_v38 }
 0x1ac   : > { %v836_v39 = vpop.f32.mrf.mxu1  ;;  %v1258_v43 = vadd.f32 %v1154_v42, %v937_v41 }
 0x1ad   : > { %2683 = vmatmul.f32.gmra.mxu3 %v2599_v40  ;;  %v938_v51 = vadd.f32 %v836_v39, %v597_v36  ;;  %v2605_v36 = vld [vmem:[%s7250_s24 + $0x82] sm:$0xff] }
 0x1ae   : > { %1723 = vmatmul.f32.gmra.mxu0 %v1637_v37  ;;  %v2285_v40 = vld [vmem:[%s7250_s24 + $0x89] sm:$0xff] }
 0x1af   : > { %2044 = vmatmul.f32.gmra.mxu1 %v2277_v24 }
 0x1b0   : > { %2365 = vmatmul.f32.gmra.mxu2 %v2279_v44  ;;  %v1475_v45 = vpop.f32.mrf.mxu3 }
 0x1b1   : > { %v1579_v48 = vadd.f32 %v1475_v45, %v1258_v43  ;;  %v1644_v43 = vld [vmem:[%s7250_s24 + $0x80] sm:$0xff] }
 0x1b3   : > { %v600_v46 = vpop.f32.mrf.mxu0  ;;  %v1157_v52 = vpop.f32.mrf.mxu2  ;;  %1620 = vst [vmem:[#allocation3 + $0x50] sm:$0xff] %v1579_v48 }
 0x1b4   : > { %v839_v49 = vpop.f32.mrf.mxu1  ;;  %v1259_v53 = vadd.f32 %v1157_v52, %v938_v51 }
 0x1b5   : > { %2686 = vmatmul.f32.gmra.mxu3 %v2600_v50  ;;  %v939_v61 = vadd.f32 %v839_v49, %v600_v46  ;;  %v2606_v46 = vld [vmem:[%s7250_s24 + $0x8a] sm:$0xff] }
 0x1b6   : > { %1726 = vmatmul.f32.gmra.mxu0 %v1638_v47  ;;  %v2286_v50 = vld [vmem:[%s7250_s24 + $0x91] sm:$0xff] }
 0x1b7   : > { %2047 = vmatmul.f32.gmra.mxu1 %v2278_v34 }
 0x1b8   : > { %2368 = vmatmul.f32.gmra.mxu2 %v2280_v54  ;;  %v1478_v55 = vpop.f32.mrf.mxu3 }
 0x1b9   : > { %v1580_v58 = vadd.f32 %v1478_v55, %v1259_v53  ;;  %v1645_v53 = vld [vmem:[%s7250_s24 + $0x88] sm:$0xff] }
 0x1bb   : > { %v603_v56 = vpop.f32.mrf.mxu0  ;;  %v1160_v62 = vpop.f32.mrf.mxu2  ;;  %1621 = vst [vmem:[#allocation3 + $0xe8] sm:$0xff] %v1580_v58 }
 0x1bc   : > { %v842_v59 = vpop.f32.mrf.mxu1  ;;  %v1260_v63 = vadd.f32 %v1160_v62, %v939_v61 }
 0x1bd   : > { %2689 = vmatmul.f32.gmra.mxu3 %v2601_v60  ;;  %v940_v7 = vadd.f32 %v842_v59, %v603_v56  ;;  %v2607_v56 = vld [vmem:[%s7250_s24 + $0x92] sm:$0xff] }
 0x1be   : > { %1729 = vmatmul.f32.gmra.mxu0 %v1639_v57  ;;  %v2287_v60 = vld [vmem:[%s7250_s24 + $0x99] sm:$0xff] }
 0x1bf   : > { %2050 = vmatmul.f32.gmra.mxu1 %v2279_v44 }
 0x1c0   : > { %2371 = vmatmul.f32.gmra.mxu2 %v2281_v0  ;;  %v1481_v1 = vpop.f32.mrf.mxu3 }
 0x1c1   : > { %v1581_v4 = vadd.f32 %v1481_v1, %v1260_v63  ;;  %v1646_v63 = vld [vmem:[%s7250_s24 + $0x90] sm:$0xff] }
 0x1c3   : > { %v606_v2 = vpop.f32.mrf.mxu0  ;;  %v1163_v8 = vpop.f32.mrf.mxu2  ;;  %1622 = vst [vmem:[#allocation3] sm:$0xff] %v1581_v4 }
 0x1c4   : > { %v845_v5 = vpop.f32.mrf.mxu1  ;;  %v1261_v9 = vadd.f32 %v1163_v8, %v940_v7 }
 0x1c5   : > { %2692 = vmatmul.f32.gmra.mxu3 %v2602_v6  ;;  %v941_v17 = vadd.f32 %v845_v5, %v606_v2  ;;  %v2608_v2 = vld [vmem:[%s7250_s24 + $0x9a] sm:$0xff] }
 0x1c6   : > { %1732 = vmatmul.f32.gmra.mxu0 %v1640_v3  ;;  %v2288_v6 = vld [vmem:[%s7250_s24 + $0xa1] sm:$0xff] }
 0x1c7   : > { %2053 = vmatmul.f32.gmra.mxu1 %v2280_v54 }
 0x1c8   : > { %2374 = vmatmul.f32.gmra.mxu2 %v2282_v10  ;;  %v1484_v11 = vpop.f32.mrf.mxu3 }
 0x1c9   : > { %v1582_v14 = vadd.f32 %v1484_v11, %v1261_v9 }
 0x1cb   : > { %v609_v12 = vpop.f32.mrf.mxu0  ;;  %v1166_v18 = vpop.f32.mrf.mxu2  ;;  %1623 = vst [vmem:[#allocation3 + $0x40] sm:$0xff] %v1582_v14  ;;  %v2609_v14 = vld [vmem:[%s7250_s24 + $0xa2] sm:$0xff] }
 0x1cc   : > { %v848_v15 = vpop.f32.mrf.mxu1  ;;  %v1262_v19 = vadd.f32 %v1166_v18, %v941_v17  ;;  %v1829_v17 = vld [vmem:[#allocation3 + $0xb0] sm:$0xff] }
 0x1cd   : > { %2695 = vmatmul.f32.gmra.mxu3 %v2603_v16  ;;  %v942_v27 = vadd.f32 %v848_v15, %v609_v12  ;;  %v2289_v16 = vld [vmem:[%s7250_s24 + $0xa9] sm:$0xff] }
 0x1ce   : > { %1735 = vmatmul.f32.gmra.mxu0 %v1641_v13 }
 0x1cf   : > { %2056 = vmatmul.f32.gmra.mxu1 %v2281_v0 }
 0x1d0   : > { %2377 = vmatmul.f32.gmra.mxu2 %v2283_v20  ;;  %v1487_v21 = vpop.f32.mrf.mxu3 }
 0x1d1   : > { %v1583_v24 = vadd.f32 %v1487_v21, %v1262_v19  ;;  %v1648_v21 = vld [vmem:[%s7250_s24 + $0xa0] sm:$0xff] }
 0x1d3   : > { %v612_v22 = vpop.f32.mrf.mxu0  ;;  %v1169_v28 = vpop.f32.mrf.mxu2  ;;  %1624 = vst [vmem:[#allocation3 + $0x78] sm:$0xff] %v1583_v24 }
 0x1d4   : > { %v851_v25 = vpop.f32.mrf.mxu1  ;;  %v1263_v29 = vadd.f32 %v1169_v28, %v942_v27 }
 0x1d5   : > { %2698 = vmatmul.f32.gmra.mxu3 %v2604_v26  ;;  %v943_v37 = vadd.f32 %v851_v25, %v612_v22 }
 0x1d6   : > { %1738 = vmatmul.f32.gmra.mxu0 %v1642_v23  ;;  %v2610_v23 = vld [vmem:[%s7250_s24 + $0xaa] sm:$0xff] }
 0x1d7   : > { %2059 = vmatmul.f32.gmra.mxu1 %v2282_v10  ;;  %v1647_v10 = vld [vmem:[%s7250_s24 + $0x98] sm:$0xff] }
 0x1d8   : > { %2380 = vmatmul.f32.gmra.mxu2 %v2284_v30  ;;  %v1490_v31 = vpop.f32.mrf.mxu3 }
 0x1d9   : > { %v1584_v34 = vadd.f32 %v1490_v31, %v1263_v29  ;;  %v2290_v29 = vld [vmem:[%s7250_s24 + $0xb1] sm:$0xff] }
 0x1db   : > { %v615_v32 = vpop.f32.mrf.mxu0  ;;  %v1172_v38 = vpop.f32.mrf.mxu2  ;;  %1625 = vst [vmem:[#allocation3 + $0x30] sm:$0xff] %v1584_v34  ;;  %v1649_v34 = vld [vmem:[%s7250_s24 + $0xa8] sm:$0xff] }
 0x1dc   : > { %v854_v35 = vpop.f32.mrf.mxu1  ;;  %v1264_v39 = vadd.f32 %v1172_v38, %v943_v37  ;;  %v2611_v37 = vld [vmem:[%s7250_s24 + $0xb2] sm:$0xff] }
 0x1dd   : > { %2701 = vmatmul.f32.gmra.mxu3 %v2605_v36  ;;  %v944_v47 = vadd.f32 %v854_v35, %v615_v32 }
 0x1de   : > { %1741 = vmatmul.f32.gmra.mxu0 %v1643_v33 }
 0x1df   : > { %2062 = vmatmul.f32.gmra.mxu1 %v2283_v20 }
 0x1e0   : > { %2383 = vmatmul.f32.gmra.mxu2 %v2285_v40  ;;  %v1493_v41 = vpop.f32.mrf.mxu3 }
 0x1e1   : > { %v1585_v44 = vadd.f32 %v1493_v41, %v1264_v39 }
 0x1e3   : > { %v618_v42 = vpop.f32.mrf.mxu0  ;;  %v1175_v48 = vpop.f32.mrf.mxu2  ;;  %1626 = vst [vmem:[#allocation3 + $0xb8] sm:$0xff] %v1585_v44 }
 0x1e4   : > { %v857_v45 = vpop.f32.mrf.mxu1  ;;  %v1265_v49 = vadd.f32 %v1175_v48, %v944_v47  ;;  %v1650_v48 = vld [vmem:[%s7250_s24 + $0xb0] sm:$0xff] }
 0x1e5   : > { %2704 = vmatmul.f32.gmra.mxu3 %v2606_v46  ;;  %v945_v57 = vadd.f32 %v857_v45, %v618_v42  ;;  %v2291_v42 = vld [vmem:[%s7250_s24 + $0xb9] sm:$0xff] }
 0x1e6   : > { %1744 = vmatmul.f32.gmra.mxu0 %v1644_v43  ;;  %v1831_v43 = vld [vmem:[#allocation3 + $0x10] sm:$0xff] }
 0x1e7   : > { %2065 = vmatmul.f32.gmra.mxu1 %v2284_v30  ;;  %v1830_v30 = vld [vmem:[#allocation3 + $0xd0] sm:$0xff] }
 0x1e8   : > { %2386 = vmatmul.f32.gmra.mxu2 %v2286_v50  ;;  %v1496_v51 = vpop.f32.mrf.mxu3 }
 0x1e9   : > { %v1586_v54 = vadd.f32 %v1496_v51, %v1265_v49  ;;  %v2612_v51 = vld [vmem:[%s7250_s24 + $0xba] sm:$0xff] }
 0x1eb   : > { %v621_v52 = vpop.f32.mrf.mxu0  ;;  %v1178_v58 = vpop.f32.mrf.mxu2  ;;  %1627 = vst [vmem:[#allocation3 + $0x60] sm:$0xff] %v1586_v54 }
 0x1ec   : > { %v860_v55 = vpop.f32.mrf.mxu1  ;;  %v1266_v59 = vadd.f32 %v1178_v58, %v945_v57 }
 0x1ed   : > { %2707 = vmatmul.f32.gmra.mxu3 %v2607_v56  ;;  %v946_v3 = vadd.f32 %v860_v55, %v621_v52  ;;  %v2292_v55 = vld [vmem:[%s7250_s24 + $0xc1] sm:$0xff]  ;;  %v1832_v56 = vld [vmem:[#allocation3 + $0x48] sm:$0xff] }
 0x1ee   : > { %1747 = vmatmul.f32.gmra.mxu0 %v1645_v53 }
 0x1ef   : > { %2068 = vmatmul.f32.gmra.mxu1 %v2285_v40 }
 0x1f0   : > { %2389 = vmatmul.f32.gmra.mxu2 %v2287_v60  ;;  %v1499_v61 = vpop.f32.mrf.mxu3 }
 0x1f1   : > { %v1587_v0 = vadd.f32 %v1499_v61, %v1266_v59 }
 0x1f3   : > { %v624_v62 = vpop.f32.mrf.mxu0  ;;  %v1181_v4 = vpop.f32.mrf.mxu2  ;;  %1628 = vst [vmem:[#allocation3 + $0x28] sm:$0xff] %v1587_v0 }
 0x1f4   : > { %667 = vst [vmem:[#allocation3 + $0x58] sm:$0xf] %v624_v62  ;;  %v863_v1 = vpop.f32.mrf.mxu1  ;;  %v1267_v5 = vadd.f32 %v1181_v4, %v946_v3  ;;  %v2293_v3 = vld [vmem:[%s7250_s24 + $0xc9] sm:$0xff] }
 0x1f5   : > { %2710 = vmatmul.f32.gmra.mxu3 %v2608_v2  ;;  %v1833_v4 = vld [vmem:[#allocation3 + $0x120] sm:$0xff] }
 0x1f6   : > { %1750 = vmatmul.f32.gmra.mxu0 %v1646_v63  ;;  %v2613_v63 = vld [vmem:[%s7250_s24 + $0xc2] sm:$0xff] }
 0x1f7   : > { %2071 = vmatmul.f32.gmra.mxu1 %v2286_v50 }
 0x1f8   : > { %2392 = vmatmul.f32.gmra.mxu2 %v2288_v6  ;;  %v1502_v7 = vpop.f32.mrf.mxu3 }
 0x1f9   : > { %v1588_v11 = vadd.f32 %v1502_v7, %v1267_v5 }
 0x1fb   : > { %v906_v8 = vld [vmem:[#allocation3 + $0x58] sm:$0xf]  ;;  %v1706_v9 = vpop.f32.mrf.mxu0  ;;  %v1184_v15 = vpop.f32.mrf.mxu2  ;;  %1629 = vst [vmem:[#allocation3 + $0x140] sm:$0xff] %v1588_v11 }
 0x1fc   : > { %v947_v12 = vadd.f32 %v906_v8, %v863_v1  ;;  %v2027_v13 = vpop.f32.mrf.mxu1  ;;  %v1870_v18 = vadd.f32 %v1829_v17, %v1706_v9  ;;  %v1652_v8 = vld [vmem:[%s7250_s24 + $0xc0] sm:$0xff]  ;;  %v2614_v11 = vld [vmem:[%s7250_s24 + $0xca] sm:$0xff] }
 0x1fd   : > { %2713 = vmatmul.f32.gmra.mxu3 %v2609_v14 }
 0x1fe   : > { %988 = vst [vmem:[#allocation3 + $0x58] sm:$0xf] %v947_v12  ;;  %1753 = vmatmul.f32.gmra.mxu0 %v1647_v10  ;;  %v2191_v25 = vadd.f32 %v2027_v13, %v1870_v18 }
 0x1ff   : > { %2074 = vmatmul.f32.gmra.mxu1 %v2287_v60  ;;  %v1651_v60 = vld [vmem:[%s7250_s24 + $0xb8] sm:$0xff] }
 0x200   : > { %2395 = vmatmul.f32.gmra.mxu2 %v2289_v16  ;;  %v1505_v19 = vpop.f32.mrf.mxu3 }
 0x203   : > { %v1709_v20 = vpop.f32.mrf.mxu0  ;;  %v2348_v26 = vpop.f32.mrf.mxu2 }
 0x204   : > { %v2030_v22 = vpop.f32.mrf.mxu1  ;;  %v2512_v28 = vadd.f32 %v2348_v26, %v2191_v25  ;;  %v1871_v31 = vadd.f32 %v1830_v30, %v1709_v20  ;;  %v1653_v20 = vld [vmem:[%s7250_s24 + $0xc8] sm:$0xff] }
 0x205   : > { %v1227_v24 = vld [vmem:[#allocation3 + $0x58] sm:$0xf]  ;;  %2716 = vmatmul.f32.gmra.mxu3 %v2610_v23  ;;  %v2615_v23 = vld [vmem:[%s7250_s24 + $0xd2] sm:$0xff] }
 0x206   : > { %v1268_v27 = vadd.f32 %v1227_v24, %v1184_v15  ;;  %1756 = vmatmul.f32.gmra.mxu0 %v1648_v21  ;;  %v2192_v38 = vadd.f32 %v2030_v22, %v1871_v31  ;;  %v2294_v15 = vld [vmem:[%s7250_s24 + $0xd1] sm:$0xff] }
 0x207   : > { %2077 = vmatmul.f32.gmra.mxu1 %v2288_v6 }
 0x208   : > { %1309 = vst [vmem:[#allocation3 + $0x58] sm:$0xf] %v1268_v27  ;;  %2398 = vmatmul.f32.gmra.mxu2 %v2290_v29  ;;  %v2669_v32 = vpop.f32.mrf.mxu3  ;;  %v2295_v27 = vld [vmem:[%s7250_s24 + $0xd9] sm:$0xff] }
 0x209   : > { %v2833_v35 = vadd.f32 %v2669_v32, %v2512_v28  ;;  %v1835_v28 = vld [vmem:[#allocation3 + $0xf8] sm:$0xff]  ;;  %v1654_v32 = vld [vmem:[%s7250_s24 + $0xd0] sm:$0xff] }
 0x20b   : > { %v1712_v33 = vpop.f32.mrf.mxu0  ;;  %v2351_v39 = vpop.f32.mrf.mxu2  ;;  %2874 = vst [vmem:[#allocation3 + $0xb0] sm:$0xff] %v2833_v35  ;;  %v2616_v35 = vld [vmem:[%s7250_s24 + $0xda] sm:$0xff] }
 0x20c   : > { %v2033_v36 = vpop.f32.mrf.mxu1  ;;  %v2513_v41 = vadd.f32 %v2351_v39, %v2192_v38  ;;  %v1872_v45 = vadd.f32 %v1831_v43, %v1712_v33  ;;  %v2296_v39 = vld [vmem:[%s7250_s24 + $0xe1] sm:$0xff] }
 0x20d   : > { %2719 = vmatmul.f32.gmra.mxu3 %v2611_v37 }
 0x20e   : > { %1759 = vmatmul.f32.gmra.mxu0 %v1649_v34  ;;  %v2193_v52 = vadd.f32 %v2033_v36, %v1872_v45 }
 0x20f   : > { %v1548_v40 = vld [vmem:[#allocation3 + $0x58] sm:$0xf]  ;;  %2080 = vmatmul.f32.gmra.mxu1 %v2289_v16 }
 0x210   : > { %v1589_v44 = vadd.f32 %v1548_v40, %v1505_v19  ;;  %2401 = vmatmul.f32.gmra.mxu2 %v2291_v42  ;;  %v2672_v46 = vpop.f32.mrf.mxu3  ;;  %v1834_v16 = vld [vmem:[#allocation3 + $0x38] sm:$0xff]  ;;  %v1836_v40 = vld [vmem:[#allocation3 + $0x100] sm:$0xff] }
 0x211   : > { %v2834_v49 = vadd.f32 %v2672_v46, %v2513_v41 }
 0x212   : > { %1630 = vst [vmem:[#allocation3 + $0x58] sm:$0xf] %v1589_v44  ;;  %v1655_v44 = vld [vmem:[%s7250_s24 + $0xd8] sm:$0xff] }
 0x213   : > { %v1715_v47 = vpop.f32.mrf.mxu0  ;;  %v2354_v53 = vpop.f32.mrf.mxu2  ;;  %2875 = vst [vmem:[#allocation3 + $0xd0] sm:$0xff] %v2834_v49 }
 0x214   : > { %v2036_v50 = vpop.f32.mrf.mxu1  ;;  %v2514_v54 = vadd.f32 %v2354_v53, %v2193_v52  ;;  %v1873_v57 = vadd.f32 %v1832_v56, %v1715_v47  ;;  %v2617_v47 = vld [vmem:[%s7250_s24 + $0xe2] sm:$0xff]  ;;  %v1837_v52 = vld [vmem:[#allocation3 + $0x80] sm:$0xff] }
 0x215   : > { %2722 = vmatmul.f32.gmra.mxu3 %v2612_v51  ;;  %v2297_v51 = vld [vmem:[%s7250_s24 + $0xe9] sm:$0xff]  ;;  %v1656_v56 = vld [vmem:[%s7250_s24 + $0xe0] sm:$0xff] }
 0x216   : > { %1762 = vmatmul.f32.gmra.mxu0 %v1650_v48  ;;  %v2194_v0 = vadd.f32 %v2036_v50, %v1873_v57 }
 0x217   : > { %2083 = vmatmul.f32.gmra.mxu1 %v2290_v29 }
 0x218   : > { %2404 = vmatmul.f32.gmra.mxu2 %v2292_v55  ;;  %v2675_v58 = vpop.f32.mrf.mxu3 }
 0x219   : > { %v2835_v61 = vadd.f32 %v2675_v58, %v2514_v54 }
 0x21b   : > { %v1718_v59 = vpop.f32.mrf.mxu0  ;;  %v2357_v1 = vpop.f32.mrf.mxu2  ;;  %2876 = vst [vmem:[#allocation3 + $0x10] sm:$0xff] %v2835_v61 }
 0x21c   : > { %v2039_v62 = vpop.f32.mrf.mxu1  ;;  %v2515_v2 = vadd.f32 %v2357_v1, %v2194_v0  ;;  %v1874_v5 = vadd.f32 %v1833_v4, %v1718_v59  ;;  %v2618_v59 = vld [vmem:[%s7250_s24 + $0xea] sm:$0xff]  ;;  %v1838_v0 = vld [vmem:[#allocation3 + $0x108] sm:$0xff] }
 0x21d   : > { %2725 = vmatmul.f32.gmra.mxu3 %v2613_v63  ;;  %v2298_v63 = vld [vmem:[%s7250_s24 + $0xf1] sm:$0xff]  ;;  %v1657_v4 = vld [vmem:[%s7250_s24 + $0xe8] sm:$0xff] }
 0x21e   : > { %1765 = vmatmul.f32.gmra.mxu0 %v1651_v60  ;;  %v2195_v12 = vadd.f32 %v2039_v62, %v1874_v5 }
 0x21f   : > { %2086 = vmatmul.f32.gmra.mxu1 %v2291_v42 }
 0x220   : > { %2407 = vmatmul.f32.gmra.mxu2 %v2293_v3  ;;  %v2678_v6 = vpop.f32.mrf.mxu3 }
 0x221   : > { %v2836_v9 = vadd.f32 %v2678_v6, %v2515_v2 }
 0x223   : > { %v1721_v7 = vpop.f32.mrf.mxu0  ;;  %v2360_v13 = vpop.f32.mrf.mxu2  ;;  %2877 = vst [vmem:[#allocation3 + $0x48] sm:$0xff] %v2836_v9 }
 0x224   : > { %v2042_v10 = vpop.f32.mrf.mxu1  ;;  %v2516_v14 = vadd.f32 %v2360_v13, %v2195_v12  ;;  %v1875_v17 = vadd.f32 %v1834_v16, %v1721_v7  ;;  %v2619_v7 = vld [vmem:[%s7250_s24 + $0xf2] sm:$0xff]  ;;  %v1839_v12 = vld [vmem:[#allocation3 + $0x138] sm:$0xff] }
 0x225   : > { %2728 = vmatmul.f32.gmra.mxu3 %v2614_v11  ;;  %v2299_v11 = vld [vmem:[%s7250_s24 + $0xf9] sm:$0xff]  ;;  %v1658_v16 = vld [vmem:[%s7250_s24 + $0xf0] sm:$0xff] }
 0x226   : > { %1768 = vmatmul.f32.gmra.mxu0 %v1652_v8  ;;  %v2196_v24 = vadd.f32 %v2042_v10, %v1875_v17 }
 0x227   : > { %2089 = vmatmul.f32.gmra.mxu1 %v2292_v55 }
 0x228   : > { %2410 = vmatmul.f32.gmra.mxu2 %v2294_v15  ;;  %v2681_v18 = vpop.f32.mrf.mxu3 }
 0x229   : > { %v2837_v21 = vadd.f32 %v2681_v18, %v2516_v14 }
 0x22b   : > { %v1724_v19 = vpop.f32.mrf.mxu0  ;;  %v2363_v25 = vpop.f32.mrf.mxu2  ;;  %2878 = vst [vmem:[#allocation3 + $0x120] sm:$0xff] %v2837_v21 }
 0x22c   : > { %v2045_v22 = vpop.f32.mrf.mxu1  ;;  %v2517_v26 = vadd.f32 %v2363_v25, %v2196_v24  ;;  %v1876_v29 = vadd.f32 %v1835_v28, %v1724_v19  ;;  %v2620_v19 = vld [vmem:[%s7250_s24 + $0xfa] sm:$0xff] }
 0x22d   : > { %2731 = vmatmul.f32.gmra.mxu3 %v2615_v23  ;;  %v3396_v23 = vld [vmem:[%s10148_s3 + $0x108] sm:$0xff] }
 0x22e   : > { %1771 = vmatmul.f32.gmra.mxu0 %v1653_v20  ;;  %v2197_v36 = vadd.f32 %v2045_v22, %v1876_v29  ;;  %v6974_v22 = vmov 0   ;;  %v2300_v25 = vld [vmem:[%s7250_s24 + $0x101] sm:$0xff] }
 0x22f   : > { %2092 = vmatmul.f32.gmra.mxu1 %v2293_v3  ;;  %6903 = vset.pattern.permute.xlu1 %v6974_v22 }
 0x230   : > { %2413 = vmatmul.f32.gmra.mxu2 %v2295_v27  ;;  %v2684_v30 = vpop.f32.mrf.mxu3  ;;  %6902 = vset.pattern.permute.xlu0 %v6974_v22 }
 0x231   : > { %v2838_v33 = vadd.f32 %v2684_v30, %v2517_v26  ;;  %3571 = vperm.xlu1 %6903, %v3396_v23   ;;  %v1840_v26 = vld [vmem:[#allocation3 + $0xf0] sm:$0xff]  ;;  %6904 = vset.pattern.permute.xlu2 %v6974_v22  ;;  %v1659_v30 = vld [vmem:[%s7250_s24 + $0xf8] sm:$0xff] }
 0x232   : > { %v1663_v22 = vld [vmem:[%s7250_s24 + $0x118] sm:$0xff] }
 0x233   : > { %v1727_v31 = vpop.f32.mrf.mxu0  ;;  %v2366_v37 = vpop.f32.mrf.mxu2  ;;  %2879 = vst [vmem:[#allocation3 + $0x38] sm:$0xff] %v2838_v33  ;;  %v2621_v33 = vld [vmem:[%s7250_s24 + $0x102] sm:$0xff] }
 0x234   : > { %v2048_v34 = vpop.f32.mrf.mxu1  ;;  %v2518_v38 = vadd.f32 %v2366_v37, %v2197_v36  ;;  %v1877_v41 = vadd.f32 %v1836_v40, %v1727_v31  ;;  %v3397_v36 = vld [vmem:[%s10148_s3 + $0x110] sm:$0xff]  ;;  %v3394_v37 = vld [vmem:[%s10148_s3 + $0xf8] sm:$0xff]  ;;  %v1841_v40 = vld [vmem:[#allocation3 + $0x18] sm:$0xff] }
 0x235   : > { %2734 = vmatmul.f32.gmra.mxu3 %v2616_v35  ;;  %3561 = vperm.xlu0 %6902, %v3394_v37  }
 0x236   : > { %1774 = vmatmul.f32.gmra.mxu0 %v1654_v32  ;;  %v2198_v48 = vadd.f32 %v2048_v34, %v1877_v41 }
 0x237   : > { %2095 = vmatmul.f32.gmra.mxu1 %v2294_v15 }
 0x238   : > { %2416 = vmatmul.f32.gmra.mxu2 %v2296_v39  ;;  %v2687_v42 = vpop.f32.mrf.mxu3 }
 0x239   : > { %v2839_v45 = vadd.f32 %v2687_v42, %v2518_v38  ;;  %3576 = vperm.xlu1 %6903, %v3397_v36   ;;  %v1664_v36 = vld [vmem:[%s7250_s24 + $0x120] sm:$0xff] }
 0x23b   : > { %v1730_v43 = vpop.f32.mrf.mxu0  ;;  %v2369_v49 = vpop.f32.mrf.mxu2  ;;  %2880 = vst [vmem:[#allocation3 + $0xf8] sm:$0xff] %v2839_v45 }
 0x23c   : > { %v2051_v46 = vpop.f32.mrf.mxu1  ;;  %v2519_v50 = vadd.f32 %v2369_v49, %v2198_v48  ;;  %v1878_v53 = vadd.f32 %v1837_v52, %v1730_v43 }
 0x23d   : > { %2737 = vmatmul.f32.gmra.mxu3 %v2617_v47  ;;  %v2622_v47 = vld [vmem:[%s7250_s24 + $0x10a] sm:$0xff] }
 0x23e   : > { %1777 = vmatmul.f32.gmra.mxu0 %v1655_v44  ;;  %v2199_v60 = vadd.f32 %v2051_v46, %v1878_v53  ;;  %v1660_v44 = vld [vmem:[%s7250_s24 + $0x100] sm:$0xff]  ;;  %v2302_v53 = vld [vmem:[%s7250_s24 + $0x111] sm:$0xff] }
 0x23f   : > { %2098 = vmatmul.f32.gmra.mxu1 %v2295_v27 }
 0x240   : > { %2419 = vmatmul.f32.gmra.mxu2 %v2297_v51  ;;  %v2690_v54 = vpop.f32.mrf.mxu3 }
 0x241   : > { %v2840_v57 = vadd.f32 %v2690_v54, %v2519_v50  ;;  %v3395_v50 = vld [vmem:[%s10148_s3 + $0x100] sm:$0xff]  ;;  %v1842_v54 = vld [vmem:[#allocation3 + $0xc8] sm:$0xff] }
 0x242   : > { %3566 = vperm.xlu0 %6902, %v3395_v50  }
 0x243   : > { %v1733_v55 = vpop.f32.mrf.mxu0  ;;  %v2372_v61 = vpop.f32.mrf.mxu2  ;;  %2881 = vst [vmem:[#allocation3 + $0x100] sm:$0xff] %v2840_v57 }
 0x244   : > { %v2054_v58 = vpop.f32.mrf.mxu1  ;;  %v2520_v62 = vadd.f32 %v2372_v61, %v2199_v60  ;;  %v1879_v1 = vadd.f32 %v1838_v0, %v1733_v55  ;;  %v2623_v61 = vld [vmem:[%s7250_s24 + $0x112] sm:$0xff] }
 0x245   : > { %2740 = vmatmul.f32.gmra.mxu3 %v2618_v59  ;;  %v3393_v0 = vld [vmem:[%s10148_s3 + $0xf0] sm:$0xff] }
 0x246   : > { %1780 = vmatmul.f32.gmra.mxu0 %v1656_v56  ;;  %v2200_v8 = vadd.f32 %v2054_v58, %v1879_v1  ;;  %v1661_v58 = vld [vmem:[%s7250_s24 + $0x108] sm:$0xff] }
 0x247   : > { %2101 = vmatmul.f32.gmra.mxu1 %v2296_v39  ;;  %v2301_v39 = vld [vmem:[%s7250_s24 + $0x109] sm:$0xff] }
 0x248   : > { %2422 = vmatmul.f32.gmra.mxu2 %v2298_v63  ;;  %v2693_v2 = vpop.f32.mrf.mxu3  ;;  %v3380_v1 = vld [vmem:[%s10148_s3 + $0x88] sm:$0xff] }
 0x249   : > { %v2841_v5 = vadd.f32 %v2693_v2, %v2520_v62 }
 0x24a   : > { %3556 = vperm.xlu0 %6902, %v3393_v0  }
 0x24b   : > { %v1736_v3 = vpop.f32.mrf.mxu0  ;;  %v2375_v9 = vpop.f32.mrf.mxu2  ;;  %2882 = vst [vmem:[#allocation3 + $0x80] sm:$0xff] %v2841_v5 }
 0x24c   : > { %v2057_v6 = vpop.f32.mrf.mxu1  ;;  %v2521_v10 = vadd.f32 %v2375_v9, %v2200_v8  ;;  %v1880_v13 = vadd.f32 %v1839_v12, %v1736_v3  ;;  %v2303_v3 = vld [vmem:[%s7250_s24 + $0x119] sm:$0xff]  ;;  %v1662_v8 = vld [vmem:[%s7250_s24 + $0x110] sm:$0xff] }
 0x24d   : > { %2743 = vmatmul.f32.gmra.mxu3 %v2619_v7 }
 0x24e   : > { %1783 = vmatmul.f32.gmra.mxu0 %v1657_v4  ;;  %v2201_v20 = vadd.f32 %v2057_v6, %v1880_v13  ;;  %v1843_v4 = vld [vmem:[#allocation3 + $0x70] sm:$0xff] }
 0x24f   : > { %2104 = vmatmul.f32.gmra.mxu1 %v2297_v51  ;;  %v3392_v51 = vld [vmem:[%s10148_s3 + $0xe8] sm:$0xff] }
 0x250   : > { %2425 = vmatmul.f32.gmra.mxu2 %v2299_v11  ;;  %v2696_v14 = vpop.f32.mrf.mxu3  ;;  %3551 = vperm.xlu1 %6903, %v3392_v51  }
 0x251   : > { %v2842_v17 = vadd.f32 %v2696_v14, %v2521_v10  ;;  %v3383_v14 = vld [vmem:[%s10148_s3 + $0xa0] sm:$0xff] }
 0x253   : > { %v1739_v15 = vpop.f32.mrf.mxu0  ;;  %v2378_v21 = vpop.f32.mrf.mxu2  ;;  %2883 = vst [vmem:[#allocation3 + $0x108] sm:$0xff] %v2842_v17  ;;  %v2304_v17 = vld [vmem:[%s7250_s24 + $0x121] sm:$0xff] }
 0x254   : > { %v2060_v18 = vpop.f32.mrf.mxu1  ;;  %v2522_v24 = vadd.f32 %v2378_v21, %v2201_v20  ;;  %v1881_v27 = vadd.f32 %v1840_v26, %v1739_v15  ;;  %v3379_v15 = vld [vmem:[%s10148_s3 + $0x80] sm:$0xff] }
 0x255   : > { %2746 = vmatmul.f32.gmra.mxu3 %v2620_v19  ;;  %3486 = vperm.xlu0 %6902, %v3379_v15   ;;  %v3378_v15 = vld [vmem:[%s10148_s3 + $0x78] sm:$0xff] }
 0x256   : > { %1786 = vmatmul.f32.gmra.mxu0 %v1658_v16  ;;  %v2202_v34 = vadd.f32 %v2060_v18, %v1881_v27  ;;  %v1844_v18 = vld [vmem:[#allocation3 + $0x20] sm:$0xff] }
 0x257   : > { %2107 = vmatmul.f32.gmra.mxu1 %v2298_v63 }
 0x258   : > { %2428 = vmatmul.f32.gmra.mxu2 %v2300_v25  ;;  %v2699_v28 = vpop.f32.mrf.mxu3  ;;  %3491 = vperm.xlu1 %6903, %v3380_v1   ;;  %v2307_v1 = vld [vmem:[%s7250_s24 + $0x139] sm:$0xff] }
 0x259   : > { %v2843_v31 = vadd.f32 %v2699_v28, %v2522_v24  ;;  %v3390_v28 = vld [vmem:[%s10148_s3 + $0xd8] sm:$0xff] }
 0x25b   : > { %v1742_v29 = vpop.f32.mrf.mxu0  ;;  %v2381_v35 = vpop.f32.mrf.mxu2  ;;  %2884 = vst [vmem:[#allocation3 + $0x138] sm:$0xff] %v2843_v31  ;;  %v2305_v31 = vld [vmem:[%s7250_s24 + $0x129] sm:$0xff] }
 0x25c   : > { %v2063_v32 = vpop.f32.mrf.mxu1  ;;  %v2523_v38 = vadd.f32 %v2381_v35, %v2202_v34  ;;  %v1882_v41 = vadd.f32 %v1841_v40, %v1742_v29  ;;  %v3382_v29 = vld [vmem:[%s10148_s3 + $0x98] sm:$0xff] }
 0x25d   : > { %2749 = vmatmul.f32.gmra.mxu3 %v2621_v33  ;;  %3501 = vperm.xlu0 %6902, %v3382_v29   ;;  %v2629_v29 = vld [vmem:[%s7250_s24 + $0x142] sm:$0xff] }
 0x25e   : > { %1789 = vmatmul.f32.gmra.mxu0 %v1659_v30  ;;  %v2203_v48 = vadd.f32 %v2063_v32, %v1882_v41  ;;  %v1845_v32 = vld [vmem:[#allocation3 + $0x128] sm:$0xff] }
 0x25f   : > { %2110 = vmatmul.f32.gmra.mxu1 %v2299_v11  ;;  %v2624_v11 = vld [vmem:[%s7250_s24 + $0x11a] sm:$0xff] }
 0x260   : > { %2431 = vmatmul.f32.gmra.mxu2 %v2301_v39  ;;  %v2702_v42 = vpop.f32.mrf.mxu3  ;;  %3506 = vperm.xlu1 %6903, %v3383_v14   ;;  %v6509_v14 = vld [vmem:[%s10146_s1 + $0x448] sm:$0xff] }
 0x261   : > { %v2844_v45 = vadd.f32 %v2702_v42, %v2523_v38  ;;  %v3398_v42 = vld [vmem:[%s10148_s3 + $0x118] sm:$0xff] }
 0x262   : > { %3581 = vperm.xlu2 %6904, %v3398_v42  }
 0x263   : > { %v1745_v43 = vpop.f32.mrf.mxu0  ;;  %v2384_v49 = vpop.f32.mrf.mxu2  ;;  %2885 = vst [vmem:[#allocation3 + $0xf0] sm:$0xff] %v2844_v45 }
 0x264   : > { %v2066_v46 = vpop.f32.mrf.mxu1  ;;  %v2524_v52 = vadd.f32 %v2384_v49, %v2203_v48  ;;  %v1883_v55 = vadd.f32 %v1842_v54, %v1745_v43  ;;  %v3377_v43 = vld [vmem:[%s10148_s3 + $0x70] sm:$0xff]  ;;  %v1846_v48 = vld [vmem:[#allocation3 + $0x110] sm:$0xff] }
 0x265   : > { %2752 = vmatmul.f32.gmra.mxu3 %v2622_v47  ;;  %v6515_v47 = vld [vmem:[%s10146_s1 + $0x478] sm:$0xff]  ;;  %3476 = vperm.xlu0 %6902, %v3377_v43   ;;  %v6514_v49 = vld [vmem:[%s10146_s1 + $0x470] sm:$0xff] }
 0x266   : > { %1792 = vmatmul.f32.gmra.mxu0 %v1660_v44  ;;  %v2204_v62 = vadd.f32 %v2066_v46, %v1883_v55  ;;  %v3375_v44 = vld [vmem:[%s10148_s3 + $0x60] sm:$0xff]  ;;  %v2306_v46 = vld [vmem:[%s7250_s24 + $0x131] sm:$0xff] }
 0x267   : > { %2113 = vmatmul.f32.gmra.mxu1 %v2300_v25  ;;  %v2625_v25 = vld [vmem:[%s7250_s24 + $0x122] sm:$0xff]  ;;  %2973 = vmatpush.msra.mxu0 %v6515_v47  ;;  %v2630_v47 = vld [vmem:[%s7250_s24 + $0x14a] sm:$0xff] }
 0x268   : > { %2434 = vmatmul.f32.gmra.mxu2 %v2302_v53  ;;  %v2705_v56 = vpop.f32.mrf.mxu3  ;;  %3541 = vperm.xlu1 %6903, %v3390_v28  }
 0x269   : > { %v2845_v59 = vadd.f32 %v2705_v56, %v2524_v52  ;;  %2974 = vmatpush.msra.mxu0 %v6514_v49  ;;  %v2627_v56 = vld [vmem:[%s7250_s24 + $0x132] sm:$0xff] }
 0x26b   : > { %v1748_v57 = vpop.f32.mrf.mxu0  ;;  %v2387_v63 = vpop.f32.mrf.mxu2  ;;  %2886 = vst [vmem:[#allocation3 + $0x18] sm:$0xff] %v2845_v59 }
 0x26c   : > { %v2069_v60 = vpop.f32.mrf.mxu1  ;;  %v2525_v2 = vadd.f32 %v2387_v63, %v2204_v62  ;;  %v1884_v5 = vadd.f32 %v1843_v4, %v1748_v57  ;;  %v6513_v57 = vld [vmem:[%s10146_s1 + $0x468] sm:$0xff]  ;;  %v3389_v62 = vld [vmem:[%s10148_s3 + $0xd0] sm:$0xff]  ;;  %v3387_v63 = vld [vmem:[%s10148_s3 + $0xc0] sm:$0xff] }
 0x26d   : > { %2755 = vmatmul.f32.gmra.mxu3 %v2623_v61  ;;  %2975 = vmatpush.msra.mxu0 %v6513_v57  ;;  %v3399_v61 = vld [vmem:[%s10148_s3 + $0x120] sm:$0xff] }
 0x26e   : > { %1795 = vmatmul.f32.gmra.mxu0 %v1661_v58  ;;  %v2205_v12 = vadd.f32 %v2069_v60, %v1884_v5  ;;  %v6512_v60 = vld [vmem:[%s10146_s1 + $0x460] sm:$0xff]  ;;  %3586 = vperm.xlu2 %6904, %v3399_v61   ;;  %v6510_v5 = vld [vmem:[%s10146_s1 + $0x450] sm:$0xff] }
 0x26f   : > { %2116 = vmatmul.f32.gmra.mxu1 %v2301_v39  ;;  %v2626_v39 = vld [vmem:[%s7250_s24 + $0x12a] sm:$0xff]  ;;  %2976 = vmatpush.msra.mxu0 %v6512_v60  ;;  %v1850_v57 = vld [vmem:[#allocation3 + $0x90] sm:$0xff] }
 0x270   : > { %2437 = vmatmul.f32.gmra.mxu2 %v2303_v3  ;;  %v2708_v6 = vpop.f32.mrf.mxu3  ;;  %3466 = vperm.xlu1 %6903, %v3375_v44   ;;  %v1668_v44 = vld [vmem:[%s7250_s24 + $0x140] sm:$0xff] }
 0x271   : > { %v2846_v9 = vadd.f32 %v2708_v6, %v2525_v2  ;;  %v6511_v2 = vld [vmem:[%s10146_s1 + $0x458] sm:$0xff]  ;;  %3536 = vperm.xlu0 %6902, %v3389_v62   ;;  %v1669_v62 = vld [vmem:[%s7250_s24 + $0x148] sm:$0xff] }
 0x272   : > { %2977 = vmatpush.msra.mxu0 %v6511_v2 }
 0x273   : > { %v1751_v7 = vpop.f32.mrf.mxu0  ;;  %v2390_v13 = vpop.f32.mrf.mxu2  ;;  %2887 = vst [vmem:[#allocation3 + $0xc8] sm:$0xff] %v2846_v9 }
 0x274   : > { %v2072_v10 = vpop.f32.mrf.mxu1  ;;  %v2526_v16 = vadd.f32 %v2390_v13, %v2205_v12  ;;  %v1885_v19 = vadd.f32 %v1844_v18, %v1751_v7  ;;  %2978 = vmatpush.msra.mxu0 %v6510_v5  ;;  %v3376_v5 = vld [vmem:[%s10148_s3 + $0x68] sm:$0xff] }
 0x275   : > { %2758 = vmatmul.f32.gmra.mxu3 %v2624_v11  ;;  %v2628_v11 = vld [vmem:[%s7250_s24 + $0x13a] sm:$0xff] }
 0x276   : > { %1798 = vmatmul.f32.gmra.mxu0 %v1662_v8  ;;  %v2206_v26 = vadd.f32 %v2072_v10, %v1885_v19  ;;  %v1666_v8 = vld [vmem:[%s7250_s24 + $0x130] sm:$0xff]  ;;  %v2308_v19 = vld [vmem:[%s7250_s24 + $0x141] sm:$0xff]  ;;  %3481 = vperm.xlu2 %6904, %v3378_v15  }
 0x277   : > { %2119 = vmatmul.f32.gmra.mxu1 %v2302_v53  ;;  %v1665_v53 = vld [vmem:[%s7250_s24 + $0x128] sm:$0xff]  ;;  %2979 = vmatpush.msra.mxu0 %v6509_v14  ;;  %v1670_v14 = vld [vmem:[%s7250_s24 + $0x150] sm:$0xff] }
 0x278   : > { %2440 = vmatmul.f32.gmra.mxu2 %v2304_v17  ;;  %v2711_v20 = vpop.f32.mrf.mxu3  ;;  %3526 = vperm.xlu1 %6903, %v3387_v63  }
 0x279   : > { %v2847_v23 = vadd.f32 %v2711_v20, %v2526_v16  ;;  %v3403_v16 = vld [vmem:[%s10148_s3 + $0x140] sm:$0xf] }
 0x27a   : > { %v6508_v20 = vld [vmem:[%s10146_s1 + $0x440] sm:$0xff] }
 0x27b   : > { %v1754_v21 = vpop.f32.mrf.mxu0  ;;  %v2393_v27 = vpop.f32.mrf.mxu2  ;;  %2888 = vst [vmem:[#allocation3 + $0x70] sm:$0xff] %v2847_v23  ;;  %v6507_v23 = vld [vmem:[%s10146_s1 + $0x438] sm:$0xff]  ;;  %2980 = vmatpush.msra.mxu0 %v6508_v20  ;;  %v3388_v20 = vld [vmem:[%s10148_s3 + $0xc8] sm:$0xff] }
 0x27c   : > { %v2075_v24 = vpop.f32.mrf.mxu1  ;;  %v2527_v30 = vadd.f32 %v2393_v27, %v2206_v26  ;;  %v1886_v33 = vadd.f32 %v1845_v32, %v1754_v21  ;;  %v1848_v21 = vld [vmem:[#allocation3 + $0x98] sm:$0xff]  ;;  %v1667_v26 = vld [vmem:[%s7250_s24 + $0x138] sm:$0xff]  ;;  %v6506_v32 = vld [vmem:[%s10146_s1 + $0x430] sm:$0xff] }
 0x27d   : > { %2761 = vmatmul.f32.gmra.mxu3 %v2625_v25  ;;  %2981 = vmatpush.msra.mxu0 %v6507_v23 }
 0x27e   : > { %1801 = vmatmul.f32.gmra.mxu0 %v1663_v22  ;;  %v2207_v40 = vadd.f32 %v2075_v24, %v1886_v33  ;;  %v3381_v33 = vld [vmem:[%s10148_s3 + $0x90] sm:$0xff] }
 0x27f   : > { %2122 = vmatmul.f32.gmra.mxu1 %v2303_v3  ;;  %v1847_v3 = vld [vmem:[#allocation3 + $0x8] sm:$0xff]  ;;  %2982 = vmatpush.msra.mxu0 %v6506_v32 }
 0x280   : > { %2443 = vmatmul.f32.gmra.mxu2 %v2305_v31  ;;  %v2714_v34 = vpop.f32.mrf.mxu3  ;;  %3606 = vperm.xlu1 %6903, %v3403_v16   ;;  %v1992_v32 = vld [vmem:[%s7250_s24 + $0x159] sm:$0xf] }
 0x281   : > { %v2848_v37 = vadd.f32 %v2714_v34, %v2527_v30  ;;  %v3402_v34 = vld [vmem:[%s10148_s3 + $0x138] sm:$0xff]  ;;  %3496 = vperm.xlu2 %6904, %v3381_v33   ;;  %v2633_v33 = vld [vmem:[%s7250_s24 + $0x162] sm:$0xff] }
 0x283   : > { %v1757_v35 = vpop.f32.mrf.mxu0  ;;  %v2396_v41 = vpop.f32.mrf.mxu2  ;;  %2889 = vst [vmem:[#allocation3 + $0x20] sm:$0xff] %v2848_v37  ;;  %v2309_v37 = vld [vmem:[%s7250_s24 + $0x149] sm:$0xff] }
 0x284   : > { %v2078_v38 = vpop.f32.mrf.mxu1  ;;  %v2528_v45 = vadd.f32 %v2396_v41, %v2207_v40  ;;  %v1887_v50 = vadd.f32 %v1846_v48, %v1757_v35  ;;  %v3386_v35 = vld [vmem:[%s10148_s3 + $0xb8] sm:$0xff]  ;;  %v6504_v41 = vld [vmem:[%s10146_s1 + $0x420] sm:$0xff] }
 0x285   : > { %2764 = vmatmul.f32.gmra.mxu3 %v2626_v39  ;;  %v1849_v39 = vld [vmem:[#allocation3 + $0xa8] sm:$0xff] }
 0x286   : > { %1804 = vmatmul.f32.gmra.mxu0 %v1664_v36  ;;  %v2208_v58 = vadd.f32 %v2078_v38, %v1887_v50  ;;  %v6505_v38 = vld [vmem:[%s10146_s1 + $0x428] sm:$0xff]  ;;  %v6503_v50 = vld [vmem:[%s10146_s1 + $0x418] sm:$0xff] }
 0x287   : > { %2125 = vmatmul.f32.gmra.mxu1 %v2304_v17  ;;  %v3374_v17 = vld [vmem:[%s10148_s3 + $0x58] sm:$0xff]  ;;  %2983 = vmatpush.msra.mxu0 %v6505_v38  ;;  %v3363_v38 = vld [vmem:[%s10148_s3] sm:$0xff] }
 0x288   : > { %2446 = vmatmul.f32.gmra.mxu2 %v2306_v46  ;;  %v2717_v51 = vpop.f32.mrf.mxu3  ;;  %3461 = vperm.xlu0 %6902, %v3374_v17   ;;  %v2632_v17 = vld [vmem:[%s7250_s24 + $0x15a] sm:$0xff] }
 0x289   : > { %v2849_v54 = vadd.f32 %v2717_v51, %v2528_v45  ;;  %3601 = vperm.xlu1 %6903, %v3402_v34   ;;  %2984 = vmatpush.msra.mxu0 %v6504_v41  ;;  %v3391_v51 = vld [vmem:[%s10148_s3 + $0xe0] sm:$0xff]  ;;  %v1853_v41 = vld [vmem:[#allocation3 + $0xc0] sm:$0xff] }
 0x28a   : > { %3546 = vperm.xlu2 %6904, %v3391_v51   ;;  %v3372_v51 = vld [vmem:[%s10148_s3 + $0x48] sm:$0xff] }
 0x28b   : > { %v1760_v52 = vpop.f32.mrf.mxu0  ;;  %v2399_v59 = vpop.f32.mrf.mxu2  ;;  %2890 = vst [vmem:[#allocation3 + $0x128] sm:$0xff] %v2849_v54  ;;  %2985 = vmatpush.msra.mxu0 %v6503_v50 }
 0x28c   : > { %v2081_v55 = vpop.f32.mrf.mxu1  ;;  %v2529_v0 = vadd.f32 %v2399_v59, %v2208_v58  ;;  %v1888_v4 = vadd.f32 %v1847_v3, %v1760_v52  ;;  %v3401_v52 = vld [vmem:[%s10148_s3 + $0x130] sm:$0xff]  ;;  %v6501_v59 = vld [vmem:[%s10146_s1 + $0x408] sm:$0xff] }
 0x28d   : > { %2767 = vmatmul.f32.gmra.mxu3 %v2627_v56  ;;  %v6502_v56 = vld [vmem:[%s10146_s1 + $0x410] sm:$0xff] }
 0x28e   : > { %1807 = vmatmul.f32.gmra.mxu0 %v1665_v53  ;;  %v2209_v12 = vadd.f32 %v2081_v55, %v1888_v4  ;;  %v3385_v53 = vld [vmem:[%s10148_s3 + $0xb0] sm:$0xff]  ;;  %v6500_v4 = vld [vmem:[%s10146_s1 + $0x400] sm:$0xff] }
 0x28f   : > { %2128 = vmatmul.f32.gmra.mxu1 %v2305_v31  ;;  %v2310_v55 = vld [vmem:[%s7250_s24 + $0x151] sm:$0xff]  ;;  %2986 = vmatpush.msra.mxu0 %v6502_v56 }
 0x290   : > { %2449 = vmatmul.f32.gmra.mxu2 %v2307_v1  ;;  %v2720_v6 = vpop.f32.mrf.mxu3  ;;  %3521 = vperm.xlu0 %6902, %v3386_v35  }
 0x291   : > { %v2850_v9 = vadd.f32 %v2720_v6, %v2529_v0  ;;  %3596 = vperm.xlu1 %6903, %v3401_v52   ;;  %2987 = vmatpush.msra.mxu0 %v6501_v59  ;;  %v3384_v6 = vld [vmem:[%s10148_s3 + $0xa8] sm:$0xff]  ;;  %v2916_v59 = vld [vmem:[%s7250_s24 + $0x33] sm:$0xff] }
 0x292   : > { %3471 = vperm.xlu2 %6904, %v3376_v5   ;;  %v3364_v52 = vld [vmem:[%s10148_s3 + $0x8] sm:$0xff] }
 0x293   : > { %v1763_v7 = vpop.f32.mrf.mxu0  ;;  %v2402_v13 = vpop.f32.mrf.mxu2  ;;  %2891 = vst [vmem:[#allocation3 + $0x110] sm:$0xff] %v2850_v9  ;;  %v2311_v9 = vld [vmem:[%s7250_s24 + $0x159] sm:$0xff]  ;;  %2988 = vmatpush.msra.mxu0 %v6500_v4 }
 0x294   : > { %v2084_v10 = vpop.f32.mrf.mxu1  ;;  %v2530_v18 = vadd.f32 %v2402_v13, %v2209_v12  ;;  %v1889_v22 = vadd.f32 %v1848_v21, %v1763_v7  ;;  %v3369_v7 = vld [vmem:[%s10148_s3 + $0x30] sm:$0xff]  ;;  %v3400_v21 = vld [vmem:[%s10148_s3 + $0x128] sm:$0xff] }
 0x295   : > { %2770 = vmatmul.f32.gmra.mxu3 %v2628_v11 }
 0x296   : > { %1810 = vmatmul.f32.gmra.mxu0 %v1666_v8  ;;  %v2210_v30 = vadd.f32 %v2084_v10, %v1889_v22  ;;  %v1851_v10 = vld [vmem:[#allocation3 + $0xe0] sm:$0xff]  ;;  %v3366_v22 = vld [vmem:[%s10148_s3 + $0x18] sm:$0xff] }
 0x297   : > { %2131 = vmatmul.f32.gmra.mxu1 %v2306_v46 }
 0x298   : > { %2452 = vmatmul.f32.gmra.mxu2 %v2308_v19  ;;  %v2723_v24 = vpop.f32.mrf.mxu3  ;;  %3516 = vperm.xlu0 %6902, %v3385_v53  }
 0x299   : > { %v2851_v27 = vadd.f32 %v2723_v24, %v2530_v18  ;;  %3436 = vperm.xlu1 %6903, %v3369_v7   ;;  %v2312_v24 = vld [vmem:[%s7250_s24 + $0x161] sm:$0xff] }
 0x29a   : > { %3531 = vperm.xlu2 %6904, %v3388_v20   ;;  %v2917_v7 = vld [vmem:[%s7250_s24 + $0x3b] sm:$0xff]  ;;  %v2918_v20 = vld [vmem:[%s7250_s24 + $0x43] sm:$0xff] }
 0x29b   : > { %v1766_v25 = vpop.f32.mrf.mxu0  ;;  %v2405_v31 = vpop.f32.mrf.mxu2  ;;  %2892 = vst [vmem:[#allocation3 + $0x8] sm:$0xff] %v2851_v27 }
 0x29c   : > { %v2087_v28 = vpop.f32.mrf.mxu1  ;;  %v2531_v36 = vadd.f32 %v2405_v31, %v2210_v30  ;;  %v1890_v40 = vadd.f32 %v1849_v39, %v1766_v25  ;;  %v1852_v25 = vld [vmem:[#allocation3 + $0x88] sm:$0xff] }
 0x29d   : > { %2773 = vmatmul.f32.gmra.mxu3 %v2629_v29  ;;  %v1671_v29 = vld [vmem:[%s7250_s24 + $0x158] sm:$0xf] }
 0x29e   : > { %1813 = vmatmul.f32.gmra.mxu0 %v1667_v26  ;;  %v2211_v48 = vadd.f32 %v2087_v28, %v1890_v40  ;;  %v2313_v40 = vld [vmem:[%s7250_s24 + $0x169] sm:$0xf] }
 0x29f   : > { %2134 = vmatmul.f32.gmra.mxu1 %v2307_v1  ;;  %v2631_v1 = vld [vmem:[%s7250_s24 + $0x152] sm:$0xff] }
 0x2a0   : > { %2455 = vmatmul.f32.gmra.mxu2 %v2309_v37  ;;  %v2726_v42 = vpop.f32.mrf.mxu3  ;;  %3511 = vperm.xlu0 %6902, %v3384_v6  }
 0x2a1   : > { %v2852_v45 = vadd.f32 %v2726_v42, %v2531_v36  ;;  %3421 = vperm.xlu1 %6903, %v3366_v22   ;;  %v3373_v36 = vld [vmem:[%s10148_s3 + $0x50] sm:$0xff] }
 0x2a2   : > { %3456 = vperm.xlu2 %6904, %v3373_v36  }
 0x2a3   : > { %v1769_v43 = vpop.f32.mrf.mxu0  ;;  %v2408_v49 = vpop.f32.mrf.mxu2  ;;  %2893 = vst [vmem:[#allocation3 + $0x98] sm:$0xff] %v2852_v45  ;;  %v2915_v45 = vld [vmem:[%s7250_s24 + $0x2b] sm:$0xff] }
 0x2a4   : > { %v2090_v46 = vpop.f32.mrf.mxu1  ;;  %v2532_v54 = vadd.f32 %v2408_v49, %v2211_v48  ;;  %v1891_v58 = vadd.f32 %v1850_v57, %v1769_v43  ;;  %v2634_v48 = vld [vmem:[%s7250_s24 + $0x16a] sm:$0xf] }
 0x2a5   : > { %2776 = vmatmul.f32.gmra.mxu3 %v2630_v47 }
 0x2a6   : > { %1816 = vmatmul.f32.gmra.mxu0 %v1668_v44  ;;  %v2212_v2 = vadd.f32 %v2090_v46, %v1891_v58 }
 0x2a7   : > { %2137 = vmatmul.f32.gmra.mxu1 %v2308_v19 }
 0x2a8   : > { %2458 = vmatmul.f32.gmra.mxu2 %v2310_v55  ;;  %v2729_v60 = vpop.f32.mrf.mxu3  ;;  %3591 = vperm.xlu0 %6902, %v3400_v21  }
 0x2a9   : > { %v2853_v63 = vadd.f32 %v2729_v60, %v2532_v54  ;;  %3406 = vperm.xlu1 %6903, %v3363_v38   ;;  %v1854_v54 = vld [vmem:[#allocation3 + $0x118] sm:$0xff] }
 0x2aa   : > { %3451 = vperm.xlu2 %6904, %v3372_v51  }
 0x2ab   : > { %v1772_v61 = vpop.f32.mrf.mxu0  ;;  %v2411_v3 = vpop.f32.mrf.mxu2  ;;  %2894 = vst [vmem:[#allocation3 + $0xa8] sm:$0xff] %v2853_v63 }
 0x2ac   : > { %v2093_v0 = vpop.f32.mrf.mxu1  ;;  %v2533_v8 = vadd.f32 %v2411_v3, %v2212_v2  ;;  %v1892_v11 = vadd.f32 %v1851_v10, %v1772_v61  ;;  %v1855_v2 = vld [vmem:[#allocation3 + $0xd8] sm:$0xff] }
 0x2ad   : > { %2779 = vmatmul.f32.gmra.mxu3 %v2631_v1 }
 0x2ae   : > { %1819 = vmatmul.f32.gmra.mxu0 %v1669_v62  ;;  %v2213_v18 = vadd.f32 %v2093_v0, %v1892_v11  ;;  %v3371_v0 = vld [vmem:[%s10148_s3 + $0x40] sm:$0xff] }
 0x2af   : > { %2140 = vmatmul.f32.gmra.mxu1 %v2309_v37  ;;  %v3367_v37 = vld [vmem:[%s10148_s3 + $0x20] sm:$0xff] }
 0x2b0   : > { %2461 = vmatmul.f32.gmra.mxu2 %v2311_v9  ;;  %v2732_v12 = vpop.f32.mrf.mxu3  ;;  %3426 = vperm.xlu0 %6902, %v3367_v37   ;;  %v7913_v9 = vpop.permute.xlu0 %3561 }
 0x2b1   : > { %v2854_v15 = vadd.f32 %v2732_v12, %v2533_v8  ;;  %10168 = vst [vmem:[#allocation12_spill] sm:$0xff] %v7913_v9 }
 0x2b2   : > { %3446 = vperm.xlu2 %6904, %v3371_v0  }
 0x2b3   : > { %v1775_v13 = vpop.f32.mrf.mxu0  ;;  %v2414_v19 = vpop.f32.mrf.mxu2  ;;  %2895 = vst [vmem:[#allocation3 + $0x90] sm:$0xff] %v2854_v15  ;;  %v1856_v15 = vld [vmem:[#allocation3 + $0xa0] sm:$0xff] }
 0x2b4   : > { %v2096_v16 = vpop.f32.mrf.mxu1  ;;  %v2534_v23 = vadd.f32 %v2414_v19, %v2213_v18  ;;  %v1893_v26 = vadd.f32 %v1852_v25, %v1775_v13  ;;  %v3370_v13 = vld [vmem:[%s10148_s3 + $0x38] sm:$0xff] }
 0x2b5   : > { %2782 = vmatmul.f32.gmra.mxu3 %v2632_v17 }
 0x2b6   : > { %1822 = vmatmul.f32.gmra.mxu0 %v1670_v14  ;;  %v2214_v34 = vadd.f32 %v2096_v16, %v1893_v26  ;;  %v3368_v26 = vld [vmem:[%s10148_s3 + $0x28] sm:$0xff] }
 0x2b7   : > { %2143 = vmatmul.f32.gmra.mxu1 %v2310_v55  ;;  %v7904_v55 = vpop.permute.xlu1 %3571 }
 0x2b8   : > { %2464 = vmatmul.f32.gmra.mxu2 %v2312_v24  ;;  %v2735_v27 = vpop.f32.mrf.mxu3  ;;  %10166 = vst [vmem:[#allocation10_spill] sm:$0xff] %v7904_v55  ;;  %3411 = vperm.xlu0 %6902, %v3364_v52   ;;  %v7921_v22 = vpop.permute.xlu0 %3566 }
 0x2b9   : > { %v2855_v30 = vadd.f32 %v2735_v27, %v2534_v23  ;;  %10170 = vst [vmem:[#allocation14_spill] sm:$0xff] %v7921_v22 }
 0x2ba   : > { %3441 = vperm.xlu2 %6904, %v3370_v13  }
 0x2bb   : > { %v1778_v28 = vpop.f32.mrf.mxu0  ;;  %v2417_v35 = vpop.f32.mrf.mxu2  ;;  %2896 = vst [vmem:[#allocation3 + $0xe0] sm:$0xff] %v2855_v30 }
 0x2bc   : > { %v2099_v31 = vpop.f32.mrf.mxu1  ;;  %v2535_v39 = vadd.f32 %v2417_v35, %v2214_v34  ;;  %v1894_v42 = vadd.f32 %v1853_v41, %v1778_v28  ;;  %v1857_v28 = vld [vmem:[#allocation3 + $0x68] sm:$0xff] }
 0x2bd   : > { %2785 = vmatmul.f32.gmra.mxu3 %v2633_v33  ;;  %v2919_v33 = vld [vmem:[%s7250_s24 + $0x4b] sm:$0xff] }
 0x2be   : > { %1825 = vmatmul.f32.gmra.mxu0 %v1671_v29  ;;  %v2215_v49 = vadd.f32 %v2099_v31, %v1894_v42  ;;  %v7926_v31 = vpop.permute.xlu2 %3581  ;;  %v1858_v42 = vld [vmem:[#allocation3 + $0x130] sm:$0xff] }
 0x2bf   : > { %2146 = vmatmul.f32.gmra.mxu1 %v1992_v32  ;;  %v7910_v5 = vpop.permute.xlu1 %3576  ;;  %10171 = vst [vmem:[#allocation15_spill] sm:$0xff] %v7926_v31  ;;  %v2954_v31 = vld [vmem:[%s7250_s24 + $0x163] sm:$0xff] }
 0x2c0   : > { %2467 = vmatmul.f32.gmra.mxu2 %v2313_v40  ;;  %v2738_v43 = vpop.f32.mrf.mxu3  ;;  %10167 = vst [vmem:[#allocation11_spill] sm:$0xff] %v7910_v5  ;;  %v7929_v35 = vpop.permute.xlu0 %3556  ;;  %v3365_v40 = vld [vmem:[%s10148_s3 + $0x10] sm:$0xff] }
 0x2c1   : > { %v2856_v46 = vadd.f32 %v2738_v43, %v2535_v39  ;;  %10172 = vst [vmem:[#allocation16_spill] sm:$0xff] %v7929_v35 }
 0x2c2   : > { %3431 = vperm.xlu2 %6904, %v3368_v26   ;;  %v2923_v26 = vld [vmem:[%s7250_s24 + $0x6b] sm:$0xff] }
 0x2c3   : > { %v1781_v44 = vpop.f32.mrf.mxu0  ;;  %v2420_v50 = vpop.f32.mrf.mxu2  ;;  %2897 = vst [vmem:[#allocation3 + $0x88] sm:$0xff] %v2856_v46 }
 0x2c4   : > { %v2102_v47 = vpop.f32.mrf.mxu1  ;;  %v2536_v53 = vadd.f32 %v2420_v50, %v2215_v49  ;;  %v1895_v56 = vadd.f32 %v1854_v54, %v1781_v44 }
 0x2c5   : > { %2788 = vmatmul.f32.gmra.mxu3 %v2634_v48 }
 0x2c6   : > { %2989 = vmatmul.f32.vlgmr.msra.gmra.mxu0 %v2915_v45  ;;  %v2216_v62 = vadd.f32 %v2102_v47, %v1895_v56  ;;  %v2920_v47 = vld [vmem:[%s7250_s24 + $0x53] sm:$0xff]  ;;  %v1859_v56 = vld [vmem:[#allocation3 + $0x50] sm:$0xff] }
 0x2c7   : > { %v7918_v18 = vpop.permute.xlu1 %3551 }
 0x2c8   : > { %v2741_v57 = vpop.f32.mrf.mxu3  ;;  %10169 = vst [vmem:[#allocation13_spill] sm:$0xff] %v7918_v18  ;;  %v7936_v45 = vpop.permute.xlu2 %3586 }
 0x2c9   : > { %v2857_v60 = vadd.f32 %v2741_v57, %v2536_v53  ;;  %10173 = vst [vmem:[#allocation17_spill] sm:$0xff] %v7936_v45  ;;  %v7939_v49 = vpop.permute.xlu0 %3486 }
 0x2ca   : > { %3416 = vperm.xlu2 %6904, %v3365_v40  }
 0x2cb   : > { %v1784_v58 = vpop.f32.mrf.mxu0  ;;  %v2423_v63 = vpop.f32.mrf.mxu2  ;;  %2898 = vst [vmem:[#allocation3 + $0xc0] sm:$0xff] %v2857_v60 }
 0x2cc   : > { %v2105_v61 = vpop.f32.mrf.mxu1  ;;  %v2537_v1 = vadd.f32 %v2423_v63, %v2216_v62  ;;  %v1896_v3 = vadd.f32 %v1855_v2, %v1784_v58 }
 0x2ce   : > { %2992 = vmatmul.f32.gmra.mxu0 %v2916_v59  ;;  %v2217_v11 = vadd.f32 %v2105_v61, %v1896_v3  ;;  %v2921_v61 = vld [vmem:[%s7250_s24 + $0x5b] sm:$0xff] }
 0x2cf   : > { %v7931_v37 = vpop.permute.xlu1 %3491 }
 0x2d0   : > { %v2744_v4 = vpop.f32.mrf.mxu3  ;;  %v7943_v59 = vpop.permute.xlu2 %3481 }
 0x2d1   : > { %v2858_v8 = vadd.f32 %v2744_v4, %v2537_v1  ;;  %v7946_v2 = vpop.permute.xlu0 %3501 }
 0x2d3   : > { %v1787_v6 = vpop.f32.mrf.mxu0  ;;  %v2426_v12 = vpop.f32.mrf.mxu2  ;;  %2899 = vst [vmem:[#allocation3 + $0x118] sm:$0xff] %v2858_v8 }
 0x2d4   : > { %v2108_v10 = vpop.f32.mrf.mxu1  ;;  %v2538_v14 = vadd.f32 %v2426_v12, %v2217_v11  ;;  %v1897_v16 = vadd.f32 %v1856_v15, %v1787_v6  ;;  %v1860_v6 = vld [vmem:[#allocation3 + $0xe8] sm:$0xff]  ;;  %v2922_v11 = vld [vmem:[%s7250_s24 + $0x63] sm:$0xff] }
 0x2d6   : > { %2995 = vmatmul.f32.gmra.mxu0 %v2917_v7  ;;  %v2218_v24 = vadd.f32 %v2108_v10, %v1897_v16 }
 0x2d7   : > { %v7941_v53 = vpop.permute.xlu1 %3506 }
 0x2d8   : > { %v2747_v17 = vpop.f32.mrf.mxu3 }
 0x2d9   : > { %v2859_v21 = vadd.f32 %v2747_v17, %v2538_v14 }
 0x2db   : > { %v1790_v19 = vpop.f32.mrf.mxu0  ;;  %v2429_v25 = vpop.f32.mrf.mxu2  ;;  %2900 = vst [vmem:[#allocation3 + $0xd8] sm:$0xff] %v2859_v21 }
 0x2dc   : > { %v2111_v23 = vpop.f32.mrf.mxu1  ;;  %v2539_v27 = vadd.f32 %v2429_v25, %v2218_v24  ;;  %v1898_v29 = vadd.f32 %v1857_v28, %v1790_v19  ;;  %v7951_v14 = vpop.permute.xlu2 %3496 }
 0x2dd   : > { %v7953_v19 = vpop.permute.xlu0 %3476 }
 0x2de   : > { %2998 = vmatmul.f32.gmra.mxu0 %v2918_v20  ;;  %v2219_v38 = vadd.f32 %v2111_v23, %v1898_v29  ;;  %v1861_v20 = vld [vmem:[#allocation3] sm:$0xff] }
 0x2df   : > { %v7948_v4 = vpop.permute.xlu1 %3541 }
 0x2e0   : > { %v2750_v30 = vpop.f32.mrf.mxu3  ;;  %10174 = vst [vmem:[#allocation18_spill] sm:$0xff] %v7948_v4 }
 0x2e1   : > { %v2860_v34 = vadd.f32 %v2750_v30, %v2539_v27 }
 0x2e3   : > { %v1793_v32 = vpop.f32.mrf.mxu0  ;;  %v2432_v39 = vpop.f32.mrf.mxu2  ;;  %2901 = vst [vmem:[#allocation3 + $0xa0] sm:$0xff] %v2860_v34  ;;  %v1862_v34 = vld [vmem:[#allocation3 + $0x40] sm:$0xff] }
 0x2e4   : > { %v2114_v36 = vpop.f32.mrf.mxu1  ;;  %v2540_v41 = vadd.f32 %v2432_v39, %v2219_v38  ;;  %v1899_v43 = vadd.f32 %v1858_v42, %v1793_v32  ;;  %v7958_v32 = vpop.permute.xlu2 %3546 }
 0x2e5   : > { %10175 = vst [vmem:[#allocation19_spill] sm:$0xff] %v7958_v32  ;;  %v7960_v38 = vpop.permute.xlu0 %3536 }
 0x2e6   : > { %3001 = vmatmul.f32.gmra.mxu0 %v2919_v33  ;;  %v2220_v51 = vadd.f32 %v2114_v36, %v1899_v43  ;;  %10176 = vst [vmem:[#allocation20_spill] sm:$0xff] %v7960_v38 }
 0x2e7   : > { %v7955_v23 = vpop.permute.xlu1 %3466 }
 0x2e8   : > { %v2753_v44 = vpop.f32.mrf.mxu3 }
 0x2e9   : > { %v2861_v48 = vadd.f32 %v2753_v44, %v2540_v41  ;;  %v2924_v41 = vld [vmem:[%s7250_s24 + $0x73] sm:$0xff] }
 0x2eb   : > { %v1796_v46 = vpop.f32.mrf.mxu0  ;;  %v2435_v52 = vpop.f32.mrf.mxu2  ;;  %2902 = vst [vmem:[#allocation3 + $0x68] sm:$0xff] %v2861_v48 }
 0x2ec   : > { %v2117_v50 = vpop.f32.mrf.mxu1  ;;  %v2541_v54 = vadd.f32 %v2435_v52, %v2220_v51  ;;  %v1900_v57 = vadd.f32 %v1859_v56, %v1796_v46  ;;  %v7965_v51 = vpop.permute.xlu2 %3471 }
 0x2ee   : > { %3004 = vmatmul.f32.gmra.mxu0 %v2920_v47  ;;  %v2221_v0 = vadd.f32 %v2117_v50, %v1900_v57  ;;  %v1863_v50 = vld [vmem:[#allocation3 + $0x78] sm:$0xff]  ;;  %v2925_v57 = vld [vmem:[%s7250_s24 + $0x7b] sm:$0xff] }
 0x2ef   : > { %v7963_v43 = vpop.permute.xlu1 %3526 }
 0x2f0   : > { %v2756_v58 = vpop.f32.mrf.mxu3 }
 0x2f1   : > { %v2862_v62 = vadd.f32 %v2756_v58, %v2541_v54 }
 0x2f3   : > { %v1799_v60 = vpop.f32.mrf.mxu0  ;;  %v2438_v1 = vpop.f32.mrf.mxu2  ;;  %2903 = vst [vmem:[#allocation3 + $0x130] sm:$0xff] %v2862_v62 }
 0x2f4   : > { %v2120_v63 = vpop.f32.mrf.mxu1  ;;  %v2542_v3 = vadd.f32 %v2438_v1, %v2221_v0  ;;  %v1901_v7 = vadd.f32 %v1860_v6, %v1799_v60 }
 0x2f6   : > { %3007 = vmatmul.f32.gmra.mxu0 %v2921_v61  ;;  %v2222_v15 = vadd.f32 %v2120_v63, %v1901_v7 }
 0x2f7   : > { %v7970_v0 = vpop.permute.xlu1 %3606 }
 0x2f8   : > { %v2759_v8 = vpop.f32.mrf.mxu3  ;;  %10177 = vst [vmem:[#allocation21_spill] sm:$0xff] %v7970_v0 }
 0x2f9   : > { %v2863_v12 = vadd.f32 %v2759_v8, %v2542_v3  ;;  %v1864_v3 = vld [vmem:[#allocation3 + $0x30] sm:$0xff]  ;;  %v7972_v8 = vpop.permute.xlu2 %3531 }
 0x2fa   : > { %v7968_v60 = vpop.permute.xlu0 %3461  ;;  %10178 = vst [vmem:[#allocation22_spill] sm:$0xff] %v7972_v8 }
 0x2fb   : > { %v1802_v10 = vpop.f32.mrf.mxu0  ;;  %v2441_v16 = vpop.f32.mrf.mxu2  ;;  %2904 = vst [vmem:[#allocation3 + $0x50] sm:$0xff] %v2863_v12 }
 0x2fc   : > { %v2123_v13 = vpop.f32.mrf.mxu1  ;;  %v2543_v17 = vadd.f32 %v2441_v16, %v2222_v15  ;;  %v1902_v21 = vadd.f32 %v1861_v20, %v1802_v10 }
 0x2fe   : > { %3010 = vmatmul.f32.gmra.mxu0 %v2922_v11  ;;  %v2223_v29 = vadd.f32 %v2123_v13, %v1902_v21  ;;  %v2926_v11 = vld [vmem:[%s7250_s24 + $0x83] sm:$0xff] }
 0x2ff   : > { %v7977_v21 = vpop.permute.xlu1 %3601 }
 0x300   : > { %v2762_v24 = vpop.f32.mrf.mxu3  ;;  %10179 = vst [vmem:[#allocation23_spill] sm:$0xff] %v7977_v21  ;;  %v2948_v21 = vld [vmem:[%s7250_s24 + $0x133] sm:$0xff] }
 0x301   : > { %v2864_v27 = vadd.f32 %v2762_v24, %v2543_v17  ;;  %v1865_v24 = vld [vmem:[#allocation3 + $0xb8] sm:$0xff] }
 0x302   : > { %v7975_v17 = vpop.permute.xlu0 %3521 }
 0x303   : > { %v1805_v25 = vpop.f32.mrf.mxu0  ;;  %v2444_v30 = vpop.f32.mrf.mxu2  ;;  %2905 = vst [vmem:[#allocation3 + $0xe8] sm:$0xff] %v2864_v27 }
 0x304   : > { %v2126_v28 = vpop.f32.mrf.mxu1  ;;  %v2544_v33 = vadd.f32 %v2444_v30, %v2223_v29  ;;  %v1903_v36 = vadd.f32 %v1862_v34, %v1805_v25  ;;  %v7980_v30 = vpop.permute.xlu2 %3456 }
 0x306   : > { %3013 = vmatmul.f32.gmra.mxu0 %v2923_v26  ;;  %v2224_v46 = vadd.f32 %v2126_v28, %v1903_v36  ;;  %v2927_v28 = vld [vmem:[%s7250_s24 + $0x8b] sm:$0xff] }
 0x308   : > { %v2765_v39 = vpop.f32.mrf.mxu3 }
 0x309   : > { %v2865_v42 = vadd.f32 %v2765_v39, %v2544_v33 }
 0x30b   : > { %v1808_v40 = vpop.f32.mrf.mxu0  ;;  %v2447_v47 = vpop.f32.mrf.mxu2  ;;  %2906 = vst [vmem:[#allocation3] sm:$0xff] %v2865_v42 }
 0x30c   : > { %v2129_v44 = vpop.f32.mrf.mxu1  ;;  %v2545_v48 = vadd.f32 %v2447_v47, %v2224_v46  ;;  %v1904_v52 = vadd.f32 %v1863_v50, %v1808_v40  ;;  %v7982_v40 = vpop.permute.xlu0 %3516 }
 0x30e   : > { %3016 = vmatmul.f32.gmra.mxu0 %v2924_v41  ;;  %v2225_v62 = vadd.f32 %v2129_v44, %v1904_v52  ;;  %v1866_v41 = vld [vmem:[#allocation3 + $0x60] sm:$0xff]  ;;  %v7984_v44 = vpop.permute.xlu1 %3596 }
 0x30f   : > { %10180 = vst [vmem:[#allocation24_spill] sm:$0xff] %v7984_v44 }
 0x310   : > { %v2768_v54 = vpop.f32.mrf.mxu3 }
 0x311   : > { %v2866_v58 = vadd.f32 %v2768_v54, %v2545_v48  ;;  %v2928_v48 = vld [vmem:[%s7250_s24 + $0x93] sm:$0xff] }
 0x313   : > { %v1811_v56 = vpop.f32.mrf.mxu0  ;;  %v2450_v63 = vpop.f32.mrf.mxu2  ;;  %2907 = vst [vmem:[#allocation3 + $0x40] sm:$0xff] %v2866_v58  ;;  %v1867_v58 = vld [vmem:[#allocation3 + $0x28] sm:$0xff] }
 0x314   : > { %v2132_v61 = vpop.f32.mrf.mxu1  ;;  %v2546_v1 = vadd.f32 %v2450_v63, %v2225_v62  ;;  %v1905_v6 = vadd.f32 %v1864_v3, %v1811_v56  ;;  %v7987_v56 = vpop.permute.xlu2 %3451 }
 0x315   : > { %v7989_v63 = vpop.permute.xlu0 %3511 }
 0x316   : > { %3019 = vmatmul.f32.gmra.mxu0 %v2925_v57  ;;  %v2226_v15 = vadd.f32 %v2132_v61, %v1905_v6  ;;  %v2929_v6 = vld [vmem:[%s7250_s24 + $0x9b] sm:$0xff] }
 0x318   : > { %v2771_v7 = vpop.f32.mrf.mxu3 }
 0x319   : > { %v2867_v12 = vadd.f32 %v2771_v7, %v2546_v1  ;;  %v7992_v7 = vpop.permute.xlu1 %3436 }
 0x31b   : > { %v1814_v10 = vpop.f32.mrf.mxu0  ;;  %v2453_v16 = vpop.f32.mrf.mxu2  ;;  %2908 = vst [vmem:[#allocation3 + $0x78] sm:$0xff] %v2867_v12 }
 0x31c   : > { %v2135_v13 = vpop.f32.mrf.mxu1  ;;  %v2547_v20 = vadd.f32 %v2453_v16, %v2226_v15  ;;  %v1906_v25 = vadd.f32 %v1865_v24, %v1814_v10  ;;  %v1868_v16 = vld [vmem:[#allocation3 + $0x140] sm:$0xff] }
 0x31e   : > { %3022 = vmatmul.f32.gmra.mxu0 %v2926_v11  ;;  %v2227_v33 = vadd.f32 %v2135_v13, %v1906_v25  ;;  %v6975_v11 = vmov 0.0  }
 0x31f   : > { %424 = vst [vmem:[#allocation2 + $0x140] sm:$0xff] %v6975_v11 }
 0x320   : > { %v2774_v26 = vpop.f32.mrf.mxu3  ;;  %425 = vst [vmem:[#allocation2 + $0x148] sm:$0xff] %v6975_v11 }
 0x321   : > { %v2868_v29 = vadd.f32 %v2774_v26, %v2547_v20  ;;  %426 = vst [vmem:[#allocation2 + $0x150] sm:$0xff] %v6975_v11  ;;  %v7994_v20 = vpop.permute.xlu2 %3446 }
 0x322   : > { %427 = vst [vmem:[#allocation2 + $0x158] sm:$0xff] %v6975_v11 }
 0x323   : > { %v1817_v27 = vpop.f32.mrf.mxu0  ;;  %v2456_v34 = vpop.f32.mrf.mxu2  ;;  %2909 = vst [vmem:[#allocation3 + $0x30] sm:$0xff] %v2868_v29  ;;  %v2930_v29 = vld [vmem:[%s7250_s24 + $0xa3] sm:$0xff] }
 0x324   : > { %v2138_v36 = vpop.f32.mrf.mxu1  ;;  %v2548_v39 = vadd.f32 %v2456_v34, %v2227_v33  ;;  %v1907_v42 = vadd.f32 %v1866_v41, %v1817_v27  ;;  %428 = vst [vmem:[#allocation2 + $0x160] sm:$0xff] %v6975_v11  ;;  %v7997_v33 = vpop.permute.xlu0 %3591 }
 0x325   : > { %429 = vst [vmem:[#allocation2 + $0x168] sm:$0xff] %v6975_v11 }
 0x326   : > { %3025 = vmatmul.f32.gmra.mxu0 %v2927_v28  ;;  %v2228_v52 = vadd.f32 %v2138_v36, %v1907_v42  ;;  %v1869_v28 = vld [vmem:[#allocation3 + $0x58] sm:$0xf]  ;;  %10181 = vst [vmem:[#allocation25_spill] sm:$0xff] %v7997_v33  ;;  %v3422_v42 = vpop.permute.xlu1 %3421 }
 0x328   : > { %v2777_v46 = vpop.f32.mrf.mxu3 }
 0x329   : > { %v2869_v50 = vadd.f32 %v2777_v46, %v2548_v39 }
 0x32b   : > { %v1820_v47 = vpop.f32.mrf.mxu0  ;;  %v2459_v54 = vpop.f32.mrf.mxu2  ;;  %2910 = vst [vmem:[#allocation3 + $0xb8] sm:$0xff] %v2869_v50 }
 0x32c   : > { %v2549_v57 = vadd.f32 %v2459_v54, %v2228_v52  ;;  %v2141_v61 = vpop.f32.mrf.mxu1  ;;  %v1908_v62 = vadd.f32 %v1867_v58, %v1820_v47  ;;  %v7999_v47 = vpop.permute.xlu2 %3441  ;;  %v3113_v54 = vld [vmem:[#allocation3 + $0xb0] sm:$0xff]  ;;  %v2931_v58 = vld [vmem:[%s7250_s24 + $0xab] sm:$0xff] }
 0x32e   : > { %3028 = vmatmul.f32.gmra.mxu0 %v2928_v48  ;;  %v2229_v12 = vadd.f32 %v2141_v61, %v1908_v62  ;;  %v8004_v48 = vld [vmem:[%s10147_s2] ss:$0 sm:$0xff]  ;;  %v3407_v11 = vpop.permute.xlu1 %3406 }
 0x330   : > { %v2780_v1 = vpop.f32.mrf.mxu3 }
 0x331   : > { %v2870_v10 = vadd.f32 %v2780_v1, %v2549_v57 }
 0x333   : > { %v1823_v3 = vpop.f32.mrf.mxu0  ;;  %v2462_v13 = vpop.f32.mrf.mxu2  ;;  %2911 = vst [vmem:[#allocation3 + $0x60] sm:$0xff] %v2870_v10 }
 0x334   : > { %v2550_v15 = vadd.f32 %v2462_v13, %v2229_v12  ;;  %v1909_v24 = vadd.f32 %v1868_v16, %v1823_v3  ;;  %v2144_v25 = vpop.f32.mrf.mxu1  ;;  %v3427_v3 = vpop.permute.xlu0 %3426  ;;  %v3114_v16 = vld [vmem:[#allocation3 + $0xd0] sm:$0xff] }
 0x336   : > { %3031 = vmatmul.f32.gmra.mxu0 %v2929_v6  ;;  %v2230_v39 = vadd.f32 %v2144_v25, %v1909_v24  ;;  %v2932_v24 = vld [vmem:[%s7250_s24 + $0xb3] sm:$0xff] }
 0x338   : > { %v2783_v26 = vpop.f32.mrf.mxu3 }
 0x339   : > { %v2871_v34 = vadd.f32 %v2783_v26, %v2550_v15 }
 0x33b   : > { %v1826_v27 = vpop.f32.mrf.mxu0  ;;  %v2465_v41 = vpop.f32.mrf.mxu2  ;;  %2912 = vst [vmem:[#allocation3 + $0x28] sm:$0xff] %v2871_v34 }
 0x33c   : > { %v1910_v36 = vadd.f32 %v1869_v28, %v1826_v27  ;;  %v2551_v46 = vadd.f32 %v2465_v41, %v2230_v39  ;;  %v2147_v57 = vpop.f32.mrf.mxu1  ;;  %v3432_v27 = vpop.permute.xlu2 %3431 }
 0x33d   : > { %v3412_v34 = vpop.permute.xlu0 %3411 }
 0x33e   : > { %1951 = vst [vmem:[#allocation3 + $0x58] sm:$0xf] %v1910_v36  ;;  %3034 = vmatmul.f32.gmra.mxu0 %v2930_v29 }
 0x340   : > { %v2786_v50 = vpop.f32.mrf.mxu3 }
 0x341   : > { %v2872_v61 = vadd.f32 %v2786_v50, %v2551_v46  ;;  %v3115_v50 = vld [vmem:[#allocation3 + $0x10] sm:$0xff] }
 0x343   : > { %v2990_v52 = vpop.f32.mrf.mxu0  ;;  %2913 = vst [vmem:[#allocation3 + $0x140] sm:$0xff] %v2872_v61  ;;  %v2468_v26 = vpop.f32.mrf.mxu2 }
 0x344   : > { %v3154_v62 = vadd.f32 %v3113_v54, %v2990_v52  ;;  %v2933_v52 = vld [vmem:[%s7250_s24 + $0xbb] sm:$0xff]  ;;  %v3417_v61 = vpop.permute.xlu2 %3416 }
 0x345   : > { %v2190_v1 = vld [vmem:[#allocation3 + $0x58] sm:$0xf] }
 0x346   : > { %v2231_v6 = vadd.f32 %v2190_v1, %v2147_v57  ;;  %3037 = vmatmul.f32.gmra.mxu0 %v2931_v58  ;;  %v3281_v10 = vadd.f32 %v8004_v48, %v3154_v62 }
 0x348   : > { %2272 = vst [vmem:[#allocation3 + $0x58] sm:$0xf] %v2231_v6  ;;  %v3322_v12 = vmax.f32 %v3281_v10, 0.0  ;;  %v2789_v58 = vpop.f32.mrf.mxu3 }
 0x34a   : > { %v3609_v13 = vmul.f32 %v3407_v11, %v3322_v12  ;;  %v3116_v12 = vld [vmem:[#allocation3 + $0x48] sm:$0xff] }
 0x34b   : > { %v2993_v15 = vpop.f32.mrf.mxu0 }
 0x34c   : > { %v3155_v25 = vadd.f32 %v3114_v16, %v2993_v15  ;;  %3650 = vst [vmem:[#allocation2] sm:$0xff] %v3609_v13  ;;  %v2934_v13 = vld [vmem:[%s7250_s24 + $0xc3] sm:$0xff] }
 0x34e   : > { %3040 = vmatmul.f32.gmra.mxu0 %v2932_v24  ;;  %v3282_v28 = vadd.f32 %v8004_v48, %v3155_v25 }
 0x34f   : > { %v2511_v29 = vld [vmem:[#allocation3 + $0x58] sm:$0xf] }
 0x350   : > { %v2552_v36 = vadd.f32 %v2511_v29, %v2468_v26  ;;  %v3323_v39 = vmax.f32 %v3282_v28, 0.0  ;;  %v3117_v28 = vld [vmem:[#allocation3 + $0x120] sm:$0xff] }
 0x351   : > { %v2935_v29 = vld [vmem:[%s7250_s24 + $0xcb] sm:$0xff] }
 0x352   : > { %2593 = vst [vmem:[#allocation3 + $0x58] sm:$0xf] %v2552_v36  ;;  %v8010_v41 = vmul.f32 %v3412_v34, %v3323_v39 }
 0x353   : > { %v2996_v46 = vpop.f32.mrf.mxu0 }
 0x354   : > { %v3156_v54 = vadd.f32 %v3115_v50, %v2996_v46  ;;  %3651 = vst [vmem:[#allocation2 + $0x8] sm:$0xff] %v8010_v41 }
 0x356   : > { %3043 = vmatmul.f32.gmra.mxu0 %v2933_v52  ;;  %v3283_v57 = vadd.f32 %v8004_v48, %v3156_v54  ;;  %v3118_v52 = vld [vmem:[#allocation3 + $0x38] sm:$0xff]  ;;  %v2936_v54 = vld [vmem:[%s7250_s24 + $0xd3] sm:$0xff] }
 0x358   : > { %v3324_v62 = vmax.f32 %v3283_v57, 0.0 }
 0x359   : > { %v2832_v1 = vld [vmem:[#allocation3 + $0x58] sm:$0xf] }
 0x35a   : > { %v2873_v6 = vadd.f32 %v2832_v1, %v2789_v58  ;;  %v8015_v10 = vmul.f32 %v3417_v61, %v3324_v62  ;;  %v3119_v1 = vld [vmem:[#allocation3 + $0xf8] sm:$0xff] }
 0x35b   : > { %v2999_v11 = vpop.f32.mrf.mxu0 }
 0x35c   : > { %2914 = vst [vmem:[#allocation3 + $0x58] sm:$0xf] %v2873_v6  ;;  %v3157_v15 = vadd.f32 %v3116_v12, %v2999_v11  ;;  %v2937_v6 = vld [vmem:[%s7250_s24 + $0xdb] sm:$0xff] }
 0x35d   : > { %3652 = vst [vmem:[#allocation2 + $0x10] sm:$0xff] %v8015_v10 }
 0x35e   : > { %v3284_v16 = vadd.f32 %v8004_v48, %v3157_v15  ;;  %3046 = vmatmul.f32.gmra.mxu0 %v2934_v13 }
 0x360   : > { %v3325_v24 = vmax.f32 %v3284_v16, 0.0  ;;  %v3120_v16 = vld [vmem:[#allocation3 + $0x100] sm:$0xff] }
 0x362   : > { %v3612_v25 = vmul.f32 %v3422_v42, %v3325_v24  ;;  %v2938_v24 = vld [vmem:[%s7250_s24 + $0xe3] sm:$0xff] }
 0x363   : > { %v3002_v26 = vpop.f32.mrf.mxu0 }
 0x364   : > { %3653 = vst [vmem:[#allocation2 + $0x18] sm:$0xff] %v3612_v25  ;;  %v3158_v34 = vadd.f32 %v3117_v28, %v3002_v26 }
 0x366   : > { %3049 = vmatmul.f32.gmra.mxu0 %v2935_v29  ;;  %v3285_v36 = vadd.f32 %v8004_v48, %v3158_v34  ;;  %v3121_v34 = vld [vmem:[#allocation3 + $0x80] sm:$0xff] }
 0x368   : > { %v3326_v39 = vmax.f32 %v3285_v36, 0.0  ;;  %v2939_v36 = vld [vmem:[%s7250_s24 + $0xeb] sm:$0xff] }
 0x36a   : > { %v8022_v46 = vmul.f32 %v3427_v3, %v3326_v39 }
 0x36b   : > { %v3005_v50 = vpop.f32.mrf.mxu0 }
 0x36c   : > { %v3159_v57 = vadd.f32 %v3118_v52, %v3005_v50  ;;  %3654 = vst [vmem:[#allocation2 + $0x20] sm:$0xff] %v8022_v46 }
 0x36e   : > { %3052 = vmatmul.f32.gmra.mxu0 %v2936_v54  ;;  %v3286_v42 = vadd.f32 %v8004_v48, %v3159_v57  ;;  %v3122_v57 = vld [vmem:[#allocation3 + $0x108] sm:$0xff] }
 0x370   : > { %v3327_v58 = vmax.f32 %v3286_v42, 0.0  ;;  %v2940_v42 = vld [vmem:[%s7250_s24 + $0xf3] sm:$0xff] }
 0x372   : > { %v8027_v61 = vmul.f32 %v3432_v27, %v3327_v58 }
 0x373   : > { %v3008_v62 = vpop.f32.mrf.mxu0 }
 0x374   : > { %v3160_v11 = vadd.f32 %v3119_v1, %v3008_v62  ;;  %3655 = vst [vmem:[#allocation2 + $0x28] sm:$0xff] %v8027_v61 }
 0x376   : > { %3055 = vmatmul.f32.gmra.mxu0 %v2937_v6  ;;  %v3287_v3 = vadd.f32 %v8004_v48, %v3160_v11  ;;  %v3123_v11 = vld [vmem:[#allocation3 + $0x138] sm:$0xff] }
 0x378   : > { %v3328_v12 = vmax.f32 %v3287_v3, 0.0  ;;  %v2941_v3 = vld [vmem:[%s7250_s24 + $0xfb] sm:$0xff] }
 0x37a   : > { %v3615_v13 = vmul.f32 %v7992_v7, %v3328_v12 }
 0x37b   : > { %v3011_v15 = vpop.f32.mrf.mxu0  ;;  %v8286_v35 = vld [vmem:[#allocation2 + $0x24] sm:$0xff] }
 0x37c   : > { %v3161_v25 = vadd.f32 %v3120_v16, %v3011_v15  ;;  %3656 = vst [vmem:[#allocation2 + $0x30] sm:$0xff] %v3615_v13 }
 0x37e   : > { %3058 = vmatmul.f32.gmra.mxu0 %v2938_v24  ;;  %v3288_v27 = vadd.f32 %v8004_v48, %v3161_v25  ;;  %v3124_v24 = vld [vmem:[#allocation3 + $0xf0] sm:$0xff] }
 0x380   : > { %v3329_v26 = vmax.f32 %v3288_v27, 0.0 }
 0x382   : > { %v8036_v28 = vmul.f32 %v7999_v47, %v3329_v26  ;;  %v2942_v26 = vld [vmem:[%s7250_s24 + $0x103] sm:$0xff] }
 0x383   : > { %v3014_v29 = vpop.f32.mrf.mxu0  ;;  %v8319_v8 = vld [vmem:[#allocation2 + $0x2a] sm:$0xff] }
 0x384   : > { %v3162_v39 = vadd.f32 %v3121_v34, %v3014_v29  ;;  %3657 = vst [vmem:[#allocation2 + $0x38] sm:$0xff] %v8036_v28 }
 0x386   : > { %3061 = vmatmul.f32.gmra.mxu0 %v2939_v36  ;;  %v3289_v7 = vadd.f32 %v8004_v48, %v3162_v39 }
 0x388   : > { %v3330_v50 = vmax.f32 %v3289_v7, 0.0 }
 0x38a   : > { %v8042_v52 = vmul.f32 %v7994_v20, %v3330_v50 }
 0x38b   : > { %v3017_v54 = vpop.f32.mrf.mxu0  ;;  %v3738_v16 = vld [vmem:[#allocation2 + $0x31] sm:$0xff] }
 0x38c   : > { %v3163_v58 = vadd.f32 %v3122_v57, %v3017_v54  ;;  %3658 = vst [vmem:[#allocation2 + $0x40] sm:$0xff] %v8042_v52  ;;  %v8059_v29 = vld [vmem:[#allocation2 + $0x32] sm:$0xff]  ;;  %v3990_v36 = vmax.f32 %v3615_v13, %v3738_v16 }
 0x38d   : > { %v8297_v18 = vld [vmem:[#allocation2 + $0x33] sm:$0xff] }
 0x38e   : > { %3064 = vmatmul.f32.gmra.mxu0 %v2940_v42  ;;  %v3290_v47 = vadd.f32 %v8004_v48, %v3163_v58  ;;  %v3125_v42 = vld [vmem:[#allocation3 + $0x18] sm:$0xff]  ;;  %v8299_v32 = vld [vmem:[#allocation2 + $0x34] sm:$0xff] }
 0x38f   : > { %v2943_v58 = vld [vmem:[%s7250_s24 + $0x10b] sm:$0xff] }
 0x390   : > { %v3331_v62 = vmax.f32 %v3290_v47, 0.0 }
 0x392   : > { %v8048_v1 = vmul.f32 %v7987_v56, %v3331_v62 }
 0x393   : > { %v3020_v6 = vpop.f32.mrf.mxu0  ;;  %v8313_v4 = vld [vmem:[#allocation2 + $0x3c] sm:$0xff] }
 0x394   : > { %v3164_v12 = vadd.f32 %v3123_v11, %v3020_v6  ;;  %3659 = vst [vmem:[#allocation2 + $0x48] sm:$0xff] %v8048_v1  ;;  %v3126_v6 = vld [vmem:[#allocation3 + $0xc8] sm:$0xff] }
 0x395   : > { %v2944_v11 = vld [vmem:[%s7250_s24 + $0x113] sm:$0xff] }
 0x396   : > { %3067 = vmatmul.f32.gmra.mxu0 %v2941_v3  ;;  %v3291_v20 = vadd.f32 %v8004_v48, %v3164_v12 }
 0x398   : > { %v3332_v15 = vmax.f32 %v3291_v20, 0.0 }
 0x39a   : > { %v8054_v25 = vmul.f32 %v7980_v30, %v3332_v15 }
 0x39b   : > { %v3023_v27 = vpop.f32.mrf.mxu0  ;;  %v8057_v56 = vld [vmem:[#allocation2 + $0x42] sm:$0xff] }
 0x39c   : > { %v3165_v34 = vadd.f32 %v3124_v24, %v3023_v27  ;;  %3660 = vst [vmem:[#allocation2 + $0x50] sm:$0xff] %v8054_v25  ;;  %v4031_v39 = vmax.f32 %v8059_v29, %v8057_v56  ;;  %v3823_v20 = vld [vmem:[#allocation2 + $0x43] sm:$0xff] }
 0x39d   : > { %v8080_v15 = vld [vmem:[#allocation2 + $0x44] sm:$0xff] }
 0x39e   : > { %3070 = vmatmul.f32.gmra.mxu0 %v2942_v26  ;;  %v3292_v7 = vadd.f32 %v8004_v48, %v3165_v34  ;;  %v8065_v30 = vmax.f32 %v3990_v36, %v4031_v39  ;;  %v5470_v27 = vld [vmem:[%s10149_s4 + $0x28] sm:$0xff]  ;;  %v4072_v34 = vmax.f32 %v3823_v20, %v8080_v15 }
 0x39f   : > { %5500 = vperm.xlu1 %6903, %v5470_v27  }
 0x3a0   : > { %v3333_v50 = vmax.f32 %v3292_v7, 0.0 }
 0x3a2   : > { %v8068_v54 = vmul.f32 %v7968_v60, %v3333_v50  ;;  %v5471_v60 = vld [vmem:[%s10149_s4 + $0x30] sm:$0xff] }
 0x3a3   : > { %v3026_v57 = vpop.f32.mrf.mxu0  ;;  %5505 = vperm.xlu0 %6902, %v5471_v60   ;;  %v3128_v60 = vld [vmem:[#allocation3 + $0x20] sm:$0xff] }
 0x3a4   : > { %v3166_v47 = vadd.f32 %v3125_v42, %v3026_v57  ;;  %3661 = vst [vmem:[#allocation2 + $0x58] sm:$0xff] %v8068_v54  ;;  %v3824_v22 = vld [vmem:[#allocation2 + $0x4b] sm:$0xff] }
 0x3a5   : > { %v8284_v9 = vld [vmem:[#allocation2 + $0x4c] sm:$0xff] }
 0x3a6   : > { %3073 = vmatmul.f32.gmra.mxu0 %v2943_v58  ;;  %v3293_v13 = vadd.f32 %v8004_v48, %v3166_v47  ;;  %v3127_v58 = vld [vmem:[#allocation3 + $0x70] sm:$0xff] }
 0x3a7   : > { %v2945_v47 = vld [vmem:[%s7250_s24 + $0x11b] sm:$0xff] }
 0x3a8   : > { %v3334_v62 = vmax.f32 %v3293_v13, 0.0  ;;  %v5468_v13 = vld [vmem:[%s10149_s4 + $0x18] sm:$0xff] }
 0x3aa   : > { %v8075_v3 = vmul.f32 %v7955_v23, %v3334_v62 }
 0x3ab   : > { %v3029_v12 = vpop.f32.mrf.mxu0  ;;  %v3866_v24 = vld [vmem:[#allocation2 + $0x54] sm:$0xff]  ;;  %5490 = vperm.xlu0 %6902, %v5468_v13  }
 0x3ac   : > { %v3167_v16 = vadd.f32 %v3126_v6, %v3029_v12  ;;  %3662 = vst [vmem:[#allocation2 + $0x60] sm:$0xff] %v8075_v3  ;;  %v3908_v23 = vld [vmem:[#allocation2 + $0x55] sm:$0xff] }
 0x3ad   : > { %v4113_v36 = vmax.f32 %v3866_v24, %v3908_v23  ;;  %v8104_v12 = vld [vmem:[#allocation2 + $0x52] sm:$0xff]  ;;  %v2946_v23 = vld [vmem:[%s7250_s24 + $0x123] sm:$0xff] }
 0x3ae   : > { %3076 = vmatmul.f32.gmra.mxu0 %v2944_v11  ;;  %v3294_v26 = vadd.f32 %v8004_v48, %v3167_v16  ;;  %v3740_v16 = vld [vmem:[#allocation2 + $0x41] sm:$0xff] }
 0x3af   : > { %v8088_v7 = vmax.f32 %v4072_v34, %v4113_v36  ;;  %v3825_v34 = vld [vmem:[#allocation2 + $0x53] sm:$0xff] }
 0x3b0   : > { %v3335_v39 = vmax.f32 %v3294_v26, 0.0  ;;  %v5465_v26 = vld [vmem:[%s10149_s4] sm:$0xff] }
 0x3b2   : > { %v8091_v50 = vmul.f32 %v7965_v51, %v3335_v39  ;;  %v5467_v51 = vld [vmem:[%s10149_s4 + $0x10] sm:$0xff] }
 0x3b3   : > { %v3032_v42 = vpop.f32.mrf.mxu0  ;;  %5485 = vperm.xlu1 %6903, %v5467_v51   ;;  %5475 = vperm.xlu0 %6902, %v5465_v26   ;;  %v3741_v26 = vld [vmem:[#allocation2 + $0x49] sm:$0xff]  ;;  %v3909_v5 = vld [vmem:[#allocation2 + $0x5d] sm:$0xff] }
 0x3b4   : > { %v3168_v62 = vadd.f32 %v3127_v58, %v3032_v42  ;;  %3663 = vst [vmem:[#allocation2 + $0x68] sm:$0xff] %v8091_v50  ;;  %v4033_v42 = vmax.f32 %v8057_v56, %v8104_v12 }
 0x3b6   : > { %3079 = vmatmul.f32.gmra.mxu0 %v2945_v47  ;;  %v3295_v6 = vadd.f32 %v8004_v48, %v3168_v62  ;;  %v3992_v47 = vmax.f32 %v8042_v52, %v3740_v16  ;;  %v4074_v62 = vmax.f32 %v3825_v34, %v3866_v24  ;;  %v8132_v16 = vld [vmem:[#allocation2 + $0x4a] sm:$0xff]  ;;  %v3826_v24 = vld [vmem:[#allocation2 + $0x5b] sm:$0xff] }
 0x3b8   : > { %v3336_v11 = vmax.f32 %v3295_v6, 0.0 }
 0x3ba   : > { %v8107_v20 = vmul.f32 %v7953_v19, %v3336_v11  ;;  %v6123_v19 = vld [vmem:[%s10150_s5 + $0x8] sm:$0xff]  ;;  %v8124_v11 = vld [vmem:[#allocation2 + $0x5a] sm:$0xff] }
 0x3bb   : > { %v3035_v27 = vpop.f32.mrf.mxu0  ;;  %v8114_v39 = vld [vmem:[#allocation2 + $0x64] sm:$0xff]  ;;  %6131 = vperm.xlu1 %6903, %v6123_v19   ;;  %v3129_v19 = vld [vmem:[#allocation3 + $0x128] sm:$0xff] }
 0x3bc   : > { %v3169_v36 = vadd.f32 %v3128_v60, %v3035_v27  ;;  %3664 = vst [vmem:[#allocation2 + $0x70] sm:$0xff] %v8107_v20  ;;  %v3910_v58 = vld [vmem:[#allocation2 + $0x65] sm:$0xff]  ;;  %v4156_v60 = vmax.f32 %v3992_v47, %v4033_v42  ;;  %v5472_v27 = vld [vmem:[%s10149_s4 + $0x38] sm:$0xff]  ;;  %v4034_v42 = vmax.f32 %v8132_v16, %v8124_v11 }
 0x3bd   : > { %v4115_v51 = vmax.f32 %v8114_v39, %v3910_v58  ;;  %5510 = vperm.xlu2 %6904, %v5472_v27   ;;  %v2947_v58 = vld [vmem:[%s7250_s24 + $0x12b] sm:$0xff] }
 0x3be   : > { %v3296_v13 = vadd.f32 %v8004_v48, %v3169_v36  ;;  %3082 = vmatmul.f32.gmra.mxu0 %v2946_v23  ;;  %v8134_v23 = vld [vmem:[#allocation2 + $0x5c] sm:$0xff]  ;;  %v3951_v47 = vld [vmem:[#allocation2 + $0x66] sm:$0xff] }
 0x3bf   : > { %v4197_v56 = vmax.f32 %v4074_v62, %v4115_v51  ;;  %v4075_v27 = vmax.f32 %v3826_v24, %v8134_v23  ;;  %v3742_v24 = vld [vmem:[#allocation2 + $0x51] sm:$0xff] }
 0x3c0   : > { %v3337_v6 = vmax.f32 %v3296_v13, 0.0 }
 0x3c1   : > { %v4238_v34 = vmax.f32 %v4156_v60, %v4197_v56 }
 0x3c2   : > { %v8130_v52 = vmul.f32 %v7943_v59, %v3337_v6  ;;  %v3993_v6 = vmax.f32 %v8048_v1, %v3741_v26 }
 0x3c3   : > { %v3038_v36 = vpop.f32.mrf.mxu0  ;;  %v8140_v62 = vld [vmem:[#allocation2 + $0x6c] sm:$0xff]  ;;  %v8142_v51 = vmax.f32 %v4238_v34, %v3951_v47  ;;  %v5469_v34 = vld [vmem:[%s10149_s4 + $0x20] sm:$0xff] }
 0x3c4   : > { %3665 = vst [vmem:[#allocation2 + $0x78] sm:$0xff] %v8130_v52  ;;  %v3170_v13 = vadd.f32 %v3129_v19, %v3038_v36  ;;  %v3911_v59 = vld [vmem:[#allocation2 + $0x6d] sm:$0xff]  ;;  %v4157_v57 = vmax.f32 %v3993_v6, %v4034_v42  ;;  %v8149_v19 = vld [vmem:[#allocation2 + $0x62] sm:$0xff] }
 0x3c5   : > { %v4116_v60 = vmax.f32 %v8140_v62, %v3911_v59  ;;  %4320 = vst [vmem:[#allocation3 + $0x80] sm:$0xff] %v8142_v51  ;;  %5495 = vperm.xlu2 %6904, %v5469_v34   ;;  %v3827_v47 = vld [vmem:[#allocation2 + $0x63] sm:$0xff]  ;;  %v4035_v42 = vmax.f32 %v8104_v12, %v8149_v19 }
 0x3c6   : > { %v3297_v56 = vadd.f32 %v8004_v48, %v3170_v13  ;;  %3085 = vmatmul.f32.gmra.mxu0 %v2947_v58  ;;  %v3952_v13 = vld [vmem:[#allocation2 + $0x6e] sm:$0xff]  ;;  %v3130_v58 = vld [vmem:[#allocation3 + $0x110] sm:$0xff] }
 0x3c7   : > { %v4198_v0 = vmax.f32 %v4075_v27, %v4116_v60 }
 0x3c8   : > { %v3338_v36 = vmax.f32 %v3297_v56, 0.0 }
 0x3c9   : > { %v4239_v1 = vmax.f32 %v4157_v57, %v4198_v0  ;;  %v3994_v0 = vmax.f32 %v8054_v25, %v3742_v24  ;;  %v3828_v24 = vld [vmem:[#allocation2 + $0x6b] sm:$0xff] }
 0x3ca   : > { %v3625_v26 = vmul.f32 %v7939_v49, %v3338_v36  ;;  %v4076_v49 = vmax.f32 %v3827_v47, %v8114_v39  ;;  %v3743_v39 = vld [vmem:[#allocation2 + $0x59] sm:$0xff] }
 0x3cb   : > { %v3041_v59 = vpop.f32.mrf.mxu0  ;;  %v8158_v6 = vmax.f32 %v4239_v1, %v3952_v13  ;;  %v3870_v60 = vld [vmem:[#allocation2 + $0x74] sm:$0xff]  ;;  %v4158_v34 = vmax.f32 %v3994_v0, %v4035_v42  ;;  %v8164_v1 = vld [vmem:[#allocation2 + $0x6a] sm:$0xff] }
 0x3cc   : > { %3666 = vst [vmem:[#allocation2 + $0x80] sm:$0xff] %v3625_v26  ;;  %v3171_v27 = vadd.f32 %v3130_v58, %v3041_v59  ;;  %v3912_v56 = vld [vmem:[#allocation2 + $0x75] sm:$0xff]  ;;  %v5466_v13 = vld [vmem:[%s10149_s4 + $0x8] sm:$0xff] }
 0x3cd   : > { %v4117_v57 = vmax.f32 %v3870_v60, %v3912_v56  ;;  %4321 = vst [vmem:[#allocation3 + $0x108] sm:$0xff] %v8158_v6  ;;  %v3953_v47 = vld [vmem:[#allocation2 + $0x76] sm:$0xff]  ;;  %5480 = vperm.xlu2 %6904, %v5466_v13  }
 0x3ce   : > { %v3298_v36 = vadd.f32 %v8004_v48, %v3171_v27  ;;  %3088 = vmatmul.f32.gmra.mxu0 %v2948_v21  ;;  %v3131_v58 = vld [vmem:[#allocation3 + $0x8] sm:$0xff]  ;;  %v4036_v21 = vmax.f32 %v8124_v11, %v8164_v1 }
 0x3cf   : > { %v4199_v44 = vmax.f32 %v4076_v49, %v4117_v57  ;;  %v2949_v27 = vld [vmem:[%s7250_s24 + $0x13b] sm:$0xff]  ;;  %v3995_v49 = vmax.f32 %v8068_v54, %v3743_v39  ;;  %v3829_v39 = vld [vmem:[#allocation2 + $0x73] sm:$0xff] }
 0x3d0   : > { %v3339_v12 = vmax.f32 %v3298_v36, 0.0 }
 0x3d1   : > { %v4240_v26 = vmax.f32 %v4158_v34, %v4199_v44  ;;  %v4159_v34 = vmax.f32 %v3995_v49, %v4036_v21 }
 0x3d2   : > { %v3626_v25 = vmul.f32 %v7931_v37, %v3339_v12  ;;  %v4077_v37 = vmax.f32 %v3828_v24, %v8140_v62  ;;  %v3744_v62 = vld [vmem:[#allocation2 + $0x61] sm:$0xff] }
 0x3d3   : > { %v3044_v59 = vpop.f32.mrf.mxu0  ;;  %v8173_v42 = vmax.f32 %v4240_v26, %v3953_v47  ;;  %v3871_v56 = vld [vmem:[#allocation2 + $0x7c] sm:$0xff]  ;;  %v8179_v26 = vld [vmem:[#allocation2 + $0x72] sm:$0xff] }
 0x3d4   : > { %3667 = vst [vmem:[#allocation2 + $0x88] sm:$0xff] %v3626_v25  ;;  %v3172_v44 = vadd.f32 %v3131_v58, %v3044_v59  ;;  %v3913_v0 = vld [vmem:[#allocation2 + $0x7d] sm:$0xff]  ;;  %v3132_v59 = vld [vmem:[#allocation3 + $0x98] sm:$0xff]  ;;  %v4037_v21 = vmax.f32 %v8149_v19, %v8179_v26 }
 0x3d5   : > { %v4118_v57 = vmax.f32 %v3871_v56, %v3913_v0  ;;  %4322 = vst [vmem:[#allocation3 + $0x138] sm:$0xff] %v8173_v42  ;;  %v6122_v25 = vld [vmem:[%s10150_s5] sm:$0xff] }
 0x3d6   : > { %v3299_v36 = vadd.f32 %v8004_v48, %v3172_v44  ;;  %3091 = vmatmul.f32.gmra.mxu0 %v2949_v27  ;;  %v3954_v24 = vld [vmem:[#allocation2 + $0x7e] sm:$0xff]  ;;  %6126 = vperm.xlu2 %6904, %v6122_v25  }
 0x3d7   : > { %v4200_v12 = vmax.f32 %v4077_v37, %v4118_v57  ;;  %v2950_v58 = vld [vmem:[%s7250_s24 + $0x143] sm:$0xff]  ;;  %v3996_v37 = vmax.f32 %v8075_v3, %v3744_v62  ;;  %v4078_v57 = vmax.f32 %v3829_v39, %v3870_v60  ;;  %v8193_v25 = vld [vmem:[#allocation2 + $0x7a] sm:$0xff]  ;;  %v2951_v62 = vld [vmem:[%s7250_s24 + $0x14b] sm:$0xff] }
 0x3d8   : > { %v3340_v11 = vmax.f32 %v3299_v36, 0.0  ;;  %v3133_v60 = vld [vmem:[#allocation3 + $0xa8] sm:$0xff]  ;;  %v3707_v33 = vld [vmem:[#allocation2 + $0x80] sm:$0xff] }
 0x3d9   : > { %v4241_v13 = vmax.f32 %v4159_v34, %v4200_v12  ;;  %v4160_v34 = vmax.f32 %v3996_v37, %v4037_v21 }
 0x3da   : > { %v3627_v54 = vmul.f32 %v7951_v14, %v3340_v11 }
 0x3db   : > { %v3047_v47 = vpop.f32.mrf.mxu0  ;;  %v3872_v27 = vld [vmem:[#allocation2 + $0x84] sm:$0xff]  ;;  %v8188_v44 = vmax.f32 %v4241_v13, %v3954_v24  ;;  %v3830_v24 = vld [vmem:[#allocation2 + $0x7b] sm:$0xff] }
 0x3dc   : > { %3668 = vst [vmem:[#allocation2 + $0x90] sm:$0xff] %v3627_v54  ;;  %v3173_v0 = vadd.f32 %v3132_v59, %v3047_v47  ;;  %v3914_v49 = vld [vmem:[#allocation2 + $0x85] sm:$0xff]  ;;  %v4038_v59 = vmax.f32 %v8164_v1, %v8193_v25  ;;  %v4079_v37 = vmax.f32 %v3830_v24, %v3871_v56 }
 0x3dd   : > { %v4119_v14 = vmax.f32 %v3872_v27, %v3914_v49  ;;  %4323 = vst [vmem:[#allocation3 + $0xf0] sm:$0xff] %v8188_v44  ;;  %v3745_v54 = vld [vmem:[#allocation2 + $0x69] sm:$0xff] }
 0x3de   : > { %v3300_v36 = vadd.f32 %v8004_v48, %v3173_v0  ;;  %3094 = vmatmul.f32.gmra.mxu0 %v2950_v58  ;;  %v3955_v47 = vld [vmem:[#allocation2 + $0x86] sm:$0xff]  ;;  %v3997_v49 = vmax.f32 %v8091_v50, %v3745_v54 }
 0x3df   : > { %v4201_v12 = vmax.f32 %v4078_v57, %v4119_v14  ;;  %v8207_v14 = vld [vmem:[#allocation2 + $0x82] sm:$0xff] }
 0x3e0   : > { %v3341_v11 = vmax.f32 %v3300_v36, 0.0  ;;  %v4161_v36 = vmax.f32 %v3997_v49, %v4038_v59  ;;  %v3134_v50 = vld [vmem:[#allocation3 + $0x90] sm:$0xff]  ;;  %v4039_v56 = vmax.f32 %v8179_v26, %v8207_v14 }
 0x3e1   : > { %v4242_v19 = vmax.f32 %v4160_v34, %v4201_v12  ;;  %v3746_v12 = vld [vmem:[#allocation2 + $0x71] sm:$0xff] }
 0x3e2   : > { %v3628_v13 = vmul.f32 %v7946_v2, %v3341_v11  ;;  %v3831_v11 = vld [vmem:[#allocation2 + $0x83] sm:$0xff] }
 0x3e3   : > { %v3050_v3 = vpop.f32.mrf.mxu0  ;;  %v8197_v39 = vld [vmem:[#allocation2 + $0x8c] sm:$0xff]  ;;  %v8201_v58 = vmax.f32 %v4242_v19, %v3955_v47 }
 0x3e4   : > { %3669 = vst [vmem:[#allocation2 + $0x98] sm:$0xff] %v3628_v13  ;;  %v3174_v21 = vadd.f32 %v3133_v60, %v3050_v3  ;;  %v3915_v0 = vld [vmem:[#allocation2 + $0x8d] sm:$0xff] }
 0x3e5   : > { %v4120_v2 = vmax.f32 %v8197_v39, %v3915_v0  ;;  %4324 = vst [vmem:[#allocation3 + $0x18] sm:$0xff] %v8201_v58  ;;  %v3956_v54 = vld [vmem:[#allocation2 + $0x8e] sm:$0xff]  ;;  %v4080_v0 = vmax.f32 %v3831_v11, %v3872_v27 }
 0x3e6   : > { %v3301_v57 = vadd.f32 %v8004_v48, %v3174_v21  ;;  %3097 = vmatmul.f32.gmra.mxu0 %v2951_v62  ;;  %v2952_v47 = vld [vmem:[%s7250_s24 + $0x153] sm:$0xff]  ;;  %v3998_v21 = vmax.f32 %v8107_v20, %v3746_v12 }
 0x3e7   : > { %v4202_v1 = vmax.f32 %v4079_v37, %v4120_v2  ;;  %v8221_v2 = vld [vmem:[#allocation2 + $0x8a] sm:$0xff] }
 0x3e8   : > { %v3342_v34 = vmax.f32 %v3301_v57, 0.0  ;;  %v4162_v26 = vmax.f32 %v3998_v21, %v4039_v56  ;;  %v3135_v27 = vld [vmem:[#allocation3 + $0xe0] sm:$0xff]  ;;  %v4040_v12 = vmax.f32 %v8193_v25, %v8221_v2 }
 0x3e9   : > { %v4243_v19 = vmax.f32 %v4161_v36, %v4202_v1  ;;  %v3747_v1 = vld [vmem:[#allocation2 + $0x79] sm:$0xff]  ;;  %v8237_v25 = vld [vmem:[#allocation2 + $0x11] sm:$0xff] }
 0x3ea   : > { %v3629_v13 = vmul.f32 %v7941_v53, %v3342_v34  ;;  %v3832_v34 = vld [vmem:[#allocation2 + $0x8b] sm:$0xff] }
 0x3eb   : > { %v3053_v24 = vpop.f32.mrf.mxu0  ;;  %v8213_v3 = vld [vmem:[#allocation2 + $0x94] sm:$0xff]  ;;  %v8215_v62 = vmax.f32 %v4243_v19, %v3956_v54 }
 0x3ec   : > { %v3916_v60 = vld [vmem:[#allocation2 + $0x95] sm:$0xff]  ;;  %3670 = vst [vmem:[#allocation2 + $0xa0] sm:$0xff] %v3629_v13  ;;  %v3175_v59 = vadd.f32 %v3134_v50, %v3053_v24 }
 0x3ed   : > { %v4121_v49 = vmax.f32 %v8213_v3, %v3916_v60  ;;  %4325 = vst [vmem:[#allocation3 + $0xc8] sm:$0xff] %v8215_v62  ;;  %v3957_v19 = vld [vmem:[#allocation2 + $0x96] sm:$0xff]  ;;  %v4081_v60 = vmax.f32 %v3832_v34, %v8197_v39  ;;  %v8246_v39 = vld [vmem:[#allocation2 + $0x2] sm:$0xff] }
 0x3ee   : > { %v3302_v53 = vadd.f32 %v8004_v48, %v3175_v59  ;;  %3100 = vmatmul.f32.gmra.mxu0 %v2952_v47  ;;  %v2953_v50 = vld [vmem:[%s7250_s24 + $0x15b] sm:$0xff]  ;;  %v3999_v47 = vmax.f32 %v8130_v52, %v3747_v1  ;;  %10185 = vst [vmem:[#allocation29_spill] sm:$0xff] %v8246_v39  ;;  %v8252_v34 = vld [vmem:[#allocation2 + $0x92] sm:$0xff] }
 0x3ef   : > { %v4203_v37 = vmax.f32 %v4080_v0, %v4121_v49  ;;  %v8244_v52 = vld [vmem:[#allocation2 + $0x14] sm:$0xff] }
 0x3f0   : > { %v3343_v57 = vmax.f32 %v3302_v53, 0.0  ;;  %v4163_v0 = vmax.f32 %v3999_v47, %v4040_v12  ;;  %v8240_v53 = vld [vmem:[#allocation2 + $0x12] sm:$0xff]  ;;  %10184 = vst [vmem:[#allocation28_spill] sm:$0xff] %v8244_v52  ;;  %v8250_v1 = vld [vmem:[#allocation2 + $0x1a] sm:$0xff] }
 0x3f1   : > { %v4244_v36 = vmax.f32 %v4162_v26, %v4203_v37  ;;  %v8242_v26 = vld [vmem:[#allocation2 + $0x13] sm:$0xff]  ;;  %v8256_v12 = vld [vmem:[#allocation2 + $0x1b] sm:$0xff] }
 0x3f2   : > { %v3630_v20 = vmul.f32 %v7989_v63, %v3343_v57  ;;  %v8235_v63 = vld [vmem:[#allocation2 + $0x9] sm:$0xff]  ;;  %10183 = vst [vmem:[#allocation27_spill] sm:$0xff] %v8242_v26  ;;  %v8263_v47 = vld [vmem:[#allocation2 + $0x21] sm:$0xff] }
 0x3f3   : > { %v8226_v11 = vmax.f32 %v4244_v36, %v3957_v19  ;;  %v3056_v13 = vpop.f32.mrf.mxu0  ;;  %v8229_v54 = vld [vmem:[#allocation2 + $0x9c] sm:$0xff]  ;;  %10182 = vst [vmem:[#allocation26_spill] sm:$0xff] %v8235_v63  ;;  %v3137_v26 = vld [vmem:[#allocation3 + $0xc0] sm:$0xff] }
 0x3f4   : > { %v3917_v56 = vld [vmem:[#allocation2 + $0x9d] sm:$0xff]  ;;  %3671 = vst [vmem:[#allocation2 + $0xa8] sm:$0xff] %v3630_v20  ;;  %v3176_v24 = vadd.f32 %v3135_v27, %v3056_v13 }
 0x3f5   : > { %v4122_v59 = vmax.f32 %v8229_v54, %v3917_v56  ;;  %4326 = vst [vmem:[#allocation3 + $0x70] sm:$0xff] %v8226_v11  ;;  %v8248_v36 = vld [vmem:[#allocation2 + $0x19] sm:$0xff] }
 0x3f6   : > { %v3303_v21 = vadd.f32 %v8004_v48, %v3176_v24  ;;  %3103 = vmatmul.f32.gmra.mxu0 %v2953_v50  ;;  %v3136_v19 = vld [vmem:[#allocation3 + $0x88] sm:$0xff]  ;;  %v8260_v50 = vld [vmem:[#allocation2 + $0xa] sm:$0xff] }
 0x3f7   : > { %v4204_v49 = vmax.f32 %v4081_v60, %v4122_v59  ;;  %v3958_v20 = vld [vmem:[#allocation2 + $0x9e] sm:$0xff] }
 0x3f8   : > { %v3344_v37 = vmax.f32 %v3303_v21, 0.0  ;;  %v8254_v27 = vld [vmem:[#allocation2 + $0x18] sm:$0xff]  ;;  %v8265_v60 = vld [vmem:[#allocation2 + $0x22] sm:$0xff] }
 0x3f9   : > { %v4245_v57 = vmax.f32 %v4163_v0, %v4204_v49  ;;  %v8258_v13 = vld [vmem:[#allocation2 + $0x1c] sm:$0xff]  ;;  %v3833_v21 = vld [vmem:[#allocation2 + $0x93] sm:$0xff]  ;;  %v8295_v0 = vld [vmem:[#allocation2 + $0x29] sm:$0xff] }
 0x3fa   : > { %v3631_v56 = vmul.f32 %v7982_v40, %v3344_v37  ;;  %v3748_v59 = vld [vmem:[#allocation2 + $0x81] sm:$0xff]  ;;  %v4041_v37 = vmax.f32 %v8207_v14, %v8252_v34  ;;  %v4073_v14 = vmax.f32 %v3824_v22, %v8284_v9  ;;  %v4070_v22 = vmax.f32 %v8297_v18, %v8299_v32 }
 0x3fb   : > { %v4286_v24 = vmax.f32 %v4245_v57, %v3958_v20  ;;  %v3059_v45 = vpop.f32.mrf.mxu0  ;;  %v8274_v40 = vld [vmem:[#allocation2 + $0x23] sm:$0xff]  ;;  %v4000_v57 = vmax.f32 %v3707_v33, %v3748_v59  ;;  %v3739_v59 = vld [vmem:[#allocation2 + $0x39] sm:$0xff] }
 0x3fc   : > { %3672 = vst [vmem:[#allocation2 + $0xb0] sm:$0xff] %v3631_v56  ;;  %v3177_v20 = vadd.f32 %v3136_v19, %v3059_v45  ;;  %v8282_v49 = vld [vmem:[#allocation2 + $0xa4] sm:$0xff]  ;;  %v4082_v45 = vmax.f32 %v3833_v21, %v8213_v3  ;;  %v8303_v3 = vld [vmem:[#allocation2 + $0x3a] sm:$0xff] }
 0x3fd   : > { %4471 = vmatpush.msra.mxu1 %v4286_v24  ;;  %v3918_v55 = vld [vmem:[#allocation2 + $0xa5] sm:$0xff]  ;;  %4327 = vst [vmem:[#allocation3 + $0x20] sm:$0xff] %v4286_v24  ;;  %v4114_v24 = vmax.f32 %v8134_v23, %v3909_v5  ;;  %v4164_v5 = vmax.f32 %v4000_v57, %v4041_v37  ;;  %v3822_v33 = vld [vmem:[#allocation2 + $0x3b] sm:$0xff]  ;;  %v3989_v37 = vmax.f32 %v8027_v61, %v8295_v0 }
 0x3fe   : > { %v4123_v19 = vmax.f32 %v8282_v49, %v3918_v55  ;;  %v3304_v56 = vadd.f32 %v8004_v48, %v3177_v20  ;;  %3106 = vmatmul.f32.gmra.mxu0 %v2954_v31  ;;  %v3907_v55 = vld [vmem:[#allocation2 + $0x4d] sm:$0xff]  ;;  %v4032_v20 = vmax.f32 %v8303_v3, %v8132_v16  ;;  %v8317_v31 = vld [vmem:[#allocation2 + $0x9a] sm:$0xff]  ;;  %v4029_v16 = vmax.f32 %v8265_v60, %v8059_v29 }
 0x3ff   : > { %4472 = vmatpush.msra.mxu1 %v8226_v11  ;;  %v3905_v57 = vld [vmem:[#allocation2 + $0x3d] sm:$0xff]  ;;  %v4196_v11 = vmax.f32 %v4073_v14, %v4114_v24  ;;  %v4112_v38 = vmax.f32 %v8284_v9, %v3907_v55  ;;  %v3749_v61 = vld [vmem:[#allocation2 + $0x89] sm:$0xff]  ;;  %v4030_v18 = vmax.f32 %v8319_v8, %v8303_v3 }
 0x400   : > { %v4205_v23 = vmax.f32 %v4082_v45, %v4123_v19  ;;  %v3345_v21 = vmax.f32 %v3304_v56, 0.0  ;;  %v3991_v56 = vmax.f32 %v8036_v28, %v3739_v59  ;;  %v3834_v0 = vld [vmem:[#allocation2 + $0x9b] sm:$0xff]  ;;  %v3959_v39 = vld [vmem:[#allocation2 + $0xa6] sm:$0xff] }
 0x401   : > { %4473 = vmatpush.msra.mxu1 %v8215_v62  ;;  %v3906_v62 = vld [vmem:[#allocation2 + $0x45] sm:$0xff] }
 0x402   : > { %v4246_v45 = vmax.f32 %v4164_v5, %v4205_v23  ;;  %v3632_v19 = vmul.f32 %v7975_v17, %v3345_v21  ;;  %v2955_v29 = vld [vmem:[%s7250_s24 + $0x16b] sm:$0xf]  ;;  %v4071_v5 = vmax.f32 %v3822_v33, %v8313_v4  ;;  %v3904_v23 = vld [vmem:[#allocation2 + $0x35] sm:$0xff]  ;;  %v4042_v17 = vmax.f32 %v8221_v2, %v8317_v31  ;;  %s378_s24 = scalar_lea.vmem [#allocation6], %s377_s30 }
 0x403   : > { %4474 = vmatpush.msra.mxu1 %v8201_v58  ;;  %v3062_v52 = vpop.f32.mrf.mxu0  ;;  %v4155_v9 = vmax.f32 %v3991_v56, %v4032_v20  ;;  %v4111_v14 = vmax.f32 %v8080_v15, %v3906_v62  ;;  %v8341_v24 = vld [vmem:[#allocation2 + $0xac] sm:$0xff]  ;;  %v4110_v33 = vmax.f32 %v8313_v4, %v3905_v57  ;;  %v4083_v2 = vmax.f32 %v3834_v0, %v8229_v54  ;;  %s6326_s16 = sshll.u32 %s378_s24, 4  ;;  %s6327_s16 = int_to_ptr.vmem [resolvable:$true] %s6326_s16 }
 0x404   : > { %v8337_v58 = vmax.f32 %v4246_v45, %v3959_v39  ;;  %3673 = vst [vmem:[#allocation2 + $0xb8] sm:$0xff] %v3632_v19  ;;  %v3178_v28 = vadd.f32 %v3137_v26, %v3062_v52  ;;  %v3708_v59 = vld [vmem:[#allocation2 + $0x88] sm:$0xff]  ;;  %v4194_v26 = vmax.f32 %v4071_v5, %v4112_v38  ;;  %v4028_v4 = vmax.f32 %v8250_v1, %v8319_v8  ;;  %v3950_v38 = vld [vmem:[#allocation2 + $0x5e] sm:$0xff] }
 0x405   : > { %4475 = vmatpush.msra.mxu1 %v8188_v44  ;;  %v3919_v55 = vld [vmem:[#allocation2 + $0xad] sm:$0xff]  ;;  %v4001_v63 = vmax.f32 %v3708_v59, %v3749_v61  ;;  %v4237_v15 = vmax.f32 %v4155_v9, %v4196_v11  ;;  %v8351_v20 = vld [vmem:[#allocation2 + $0x25] sm:$0xff]  ;;  %v4109_v62 = vmax.f32 %v8299_v32, %v3904_v23  ;;  %v4153_v19 = vmax.f32 %v3989_v37, %v4030_v18 }
 0x406   : > { %v3820_v3 = vld [vmem:[#allocation2 + $0x2b] sm:$0xff]  ;;  %v4124_v39 = vmax.f32 %v8341_v24, %v3919_v55  ;;  %4328 = vst [vmem:[#allocation3 + $0x128] sm:$0xff] %v8337_v58  ;;  %v3305_v44 = vadd.f32 %v8004_v48, %v3178_v28  ;;  %3109 = vmatmul.f32.gmra.mxu0 %v2955_v29  ;;  %v4193_v48 = vmax.f32 %v4070_v22, %v4111_v14  ;;  %v3835_v18 = vld [vmem:[#allocation2 + $0xa3] sm:$0xff] }
 0x407   : > { %v8343_v21 = vld [vmem:[#allocation2 + $0x2c] sm:$0xff]  ;;  %4476 = vmatpush.msra.mxu1 %v8173_v42  ;;  %v4165_v54 = vmax.f32 %v4001_v63, %v4042_v17  ;;  %v8358_v42 = vld [vmem:[#allocation2 + $0xa2] sm:$0xff]  ;;  %v10186_v11 = vmax.f32 %v8022_v46, %v8263_v47  ;;  %v4107_v32 = vmax.f32 %v8286_v35, %v8351_v20  ;;  %v4235_v37 = vmax.f32 %v4153_v19, %v4194_v26  ;;  %v3949_v47 = vld [vmem:[#allocation2 + $0x56] sm:$0xff] }
 0x408   : > { %v3903_v52 = vld [vmem:[#allocation2 + $0x2d] sm:$0xff]  ;;  %v4206_v57 = vmax.f32 %v4083_v2, %v4124_v39  ;;  %v3346_v45 = vmax.f32 %v3305_v44, 0.0  ;;  %v4069_v56 = vmax.f32 %v3820_v3, %v8343_v21  ;;  %v3732_v23 = vld [vmem:[#allocation2 + $0x1] sm:$0xff]  ;;  %v10188_v9 = vmax.f32 %v8274_v40, %v8286_v35 }
 0x409   : > { %4477 = vmatpush.msra.mxu1 %v8158_v6  ;;  %v4152_v61 = vmax.f32 %v10186_v11, %v4029_v16  ;;  %v4108_v8 = vmax.f32 %v8343_v21, %v3903_v52  ;;  %v4278_v6 = vmax.f32 %v4237_v15, %v3950_v38  ;;  %v3750_v29 = vld [vmem:[#allocation2 + $0x91] sm:$0xff]  ;;  %v3138_v46 = vld [vmem:[#allocation3 + $0x118] sm:$0xff]  ;;  %v10187_v16 = vmax.f32 %v8254_v27, %v8248_v36  ;;  %v6909_v52 = vld [vmem:[#allocation2] sm:$0xff] }
 0x40a   : > { %v4247_v63 = vmax.f32 %v4165_v54, %v4206_v57  ;;  %v3633_v0 = vmul.f32 %v7963_v43, %v3346_v45  ;;  %v4192_v22 = vmax.f32 %v4069_v56, %v4110_v33  ;;  %v3960_v5 = vld [vmem:[#allocation2 + $0xae] sm:$0xff]  ;;  %v4191_v43 = vmax.f32 %v10188_v9, %v4109_v62  ;;  %v3947_v20 = vld [vmem:[#allocation2 + $0x46] sm:$0xff]  ;;  %v10194_v62 = vld [vmem:[#allocation26_spill] sm:$0xff] }
 0x40b   : > { %4478 = vmatpush.msra.mxu1 %v8142_v51  ;;  %v3065_v17 = vpop.f32.mrf.mxu0  ;;  %v4151_v28 = vmax.f32 %v10187_v16, %v4028_v4  ;;  %v4043_v51 = vmax.f32 %v8252_v34, %v8358_v42  ;;  %v10189_v55 = vmax.f32 %v8065_v30, %v8088_v7  ;;  %v4234_v21 = vmax.f32 %v4152_v61, %v4193_v48  ;;  %v8381_v33 = vld [vmem:[#allocation2 + $0xb4] sm:$0xff]  ;;  %v8395_v30 = vld [vmem:[%s10147_s2] ss:$0 sm:$0xff]  ;;  %v10196_v11 = vld [vmem:[#allocation27_spill] sm:$0xff] }
 0x40c   : > { %v8376_v14 = vmax.f32 %v4247_v63, %v3960_v5  ;;  %3674 = vst [vmem:[#allocation2 + $0xc0] sm:$0xff] %v3633_v0  ;;  %v3179_v59 = vadd.f32 %v3138_v46, %v3065_v17  ;;  %v3709_v36 = vld [vmem:[#allocation2 + $0x90] sm:$0xff]  ;;  %v10190_v35 = vmax.f32 %v8240_v53, %v8265_v60  ;;  %v10191_v34 = vmax.f32 %v8015_v10, %v8237_v25  ;;  %v3946_v63 = vld [vmem:[#allocation2 + $0x3e] sm:$0xff]  ;;  %v3139_v46 = vld [vmem:[#allocation3 + $0xd8] sm:$0xff] }
 0x40d   : > { %4479 = vmatpush.msra.mxu1 %v4278_v6  ;;  %v4277_v3 = vmax.f32 %v10189_v55, %v3949_v47  ;;  %v3920_v27 = vld [vmem:[#allocation2 + $0xb5] sm:$0xff]  ;;  %v4002_v39 = vmax.f32 %v3709_v36, %v3750_v29  ;;  %v4084_v44 = vmax.f32 %v3835_v18, %v8282_v49  ;;  %v4233_v26 = vmax.f32 %v4151_v28, %v4192_v22  ;;  %v10197_v61 = vld [vmem:[#allocation28_spill] sm:$0xff] }
 0x40e   : > { %v3948_v2 = vld [vmem:[#allocation2 + $0x4e] sm:$0xff]  ;;  %v4150_v40 = vmax.f32 %v10191_v34, %v10190_v35  ;;  %v4125_v15 = vmax.f32 %v8381_v33, %v3920_v27  ;;  %4329 = vst [vmem:[#allocation3 + $0x110] sm:$0xff] %v8376_v14  ;;  %v3306_v7 = vadd.f32 %v8395_v30, %v3179_v59  ;;  %v10192_v10 = vmax.f32 %v8256_v12, %v8258_v13  ;;  %v3751_v18 = vld [vmem:[#allocation2 + $0x99] sm:$0xff] }
 0x40f   : > { %4480 = vmatpush.msra.mxu1 %v4277_v3  ;;  %v4276_v60 = vmax.f32 %v4235_v37, %v3948_v2  ;;  %v3984_v49 = vmax.f32 %v6909_v52, %v3732_v23  ;;  %v10193_v4 = vmax.f32 %v8260_v50, %v8250_v1  ;;  %v10195_v54 = vmax.f32 %v8010_v41, %v10194_v62  ;;  %v10199_v6 = vld [vmem:[#allocation29_spill] sm:$0xff]  ;;  %v10201_v41 = vld [vmem:[#allocation22_spill] sm:$0xff]  ;;  %v3943_v2 = vld [vmem:[#allocation2 + $0x26] sm:$0xff] }
 0x410   : > { %v4190_v25 = vmax.f32 %v10192_v10, %v4108_v8  ;;  %v4166_v45 = vmax.f32 %v4002_v39, %v4043_v51  ;;  %v4207_v19 = vmax.f32 %v4084_v44, %v4125_v15  ;;  %v3347_v48 = vmax.f32 %v3306_v7, 0.0  ;;  %v8410_v8 = vld [vmem:[#allocation2 + $0xaa] sm:$0xff]  ;;  %v3961_v23 = vld [vmem:[#allocation2 + $0xb6] sm:$0xff] }
 0x411   : > { %v4149_v57 = vmax.f32 %v10195_v54, %v10193_v4  ;;  %4481 = vmatpush.msra.mxu1 %v4276_v60  ;;  %v4275_v56 = vmax.f32 %v4234_v21, %v3947_v20  ;;  %v4232_v38 = vmax.f32 %v4150_v40, %v4191_v43  ;;  %v10198_v12 = vmax.f32 %v10196_v11, %v10197_v61  ;;  %v3836_v5 = vld [vmem:[#allocation2 + $0xab] sm:$0xff]  ;;  %v3945_v47 = vld [vmem:[#allocation2 + $0x36] sm:$0xff]  ;;  %v3711_v54 = vld [vmem:[#allocation2 + $0xa0] sm:$0xff] }
 0x412   : > { %v4248_v0 = vmax.f32 %v4166_v45, %v4207_v19  ;;  %v10200_v1 = vmax.f32 %v10199_v6, %v8240_v53  ;;  %v3634_v37 = vmul.f32 %v10201_v41, %v3347_v48  ;;  %v4274_v22 = vmax.f32 %v4233_v26, %v3946_v63  ;;  %v3710_v51 = vld [vmem:[#allocation2 + $0x98] sm:$0xff]  ;;  %v3944_v55 = vld [vmem:[#allocation2 + $0x2e] sm:$0xff] }
 0x413   : > { %v4189_v13 = vmax.f32 %v10198_v12, %v4107_v32  ;;  %4482 = vmatpush.msra.mxu1 %v4275_v56  ;;  %v4231_v29 = vmax.f32 %v4149_v57, %v4190_v25  ;;  %v3068_v17 = vpop.f32.mrf.mxu0  ;;  %v4044_v32 = vmax.f32 %v8317_v31, %v8410_v8  ;;  %v4273_v53 = vmax.f32 %v4232_v38, %v3945_v47  ;;  %v8420_v43 = vld [vmem:[#allocation2 + $0xbc] sm:$0xff]  ;;  %v8426_v44 = vld [vmem:[#allocation2 + $0xb2] sm:$0xff]  ;;  %v10202_v7 = vld [vmem:[#allocation20_spill] sm:$0xff] }
 0x414   : > { %v4148_v50 = vmax.f32 %v3984_v49, %v10200_v1  ;;  %v8418_v16 = vmax.f32 %v4248_v0, %v3961_v23  ;;  %3675 = vst [vmem:[#allocation2 + $0xc8] sm:$0xff] %v3634_v37  ;;  %v3180_v28 = vadd.f32 %v3139_v46, %v3068_v17  ;;  %v3921_v59 = vld [vmem:[#allocation2 + $0xbd] sm:$0xff]  ;;  %v4003_v3 = vmax.f32 %v3710_v51, %v3751_v18  ;;  %v3837_v26 = vld [vmem:[#allocation2 + $0xb3] sm:$0xff]  ;;  %v3753_v0 = vld [vmem:[#allocation2 + $0xa9] sm:$0xff] }
 0x415   : > { %4483 = vmatpush.msra.mxu1 %v4274_v22  ;;  %v4085_v21 = vmax.f32 %v3836_v5, %v8341_v24  ;;  %v4126_v36 = vmax.f32 %v8420_v43, %v3921_v59  ;;  %v4272_v27 = vmax.f32 %v4231_v29, %v3944_v55  ;;  %v3752_v24 = vld [vmem:[#allocation2 + $0xa1] sm:$0xff]  ;;  %v3140_v52 = vld [vmem:[#allocation3 + $0xa0] sm:$0xff]  ;;  %v4045_v49 = vmax.f32 %v8358_v42, %v8426_v44  ;;  %v3141_v41 = vld [vmem:[#allocation3 + $0x68] sm:$0xff] }
 0x416   : > { %v4230_v9 = vmax.f32 %v4148_v50, %v4189_v13  ;;  %4330 = vst [vmem:[#allocation3 + $0x8] sm:$0xff] %v8418_v16  ;;  %v3307_v31 = vadd.f32 %v8395_v30, %v3180_v28  ;;  %v4167_v35 = vmax.f32 %v4003_v3, %v4044_v32  ;;  %v3962_v10 = vld [vmem:[#allocation2 + $0xbe] sm:$0xff]  ;;  %v4004_v45 = vmax.f32 %v3711_v54, %v3752_v24  ;;  %v3712_v18 = vld [vmem:[#allocation2 + $0xa8] sm:$0xff]  ;;  %v3754_v55 = vld [vmem:[#allocation2 + $0xb1] sm:$0xff] }
 0x417   : > { %4484 = vmatpush.msra.mxu1 %v4273_v53  ;;  %v4208_v34 = vmax.f32 %v4085_v21, %v4126_v36  ;;  %v4086_v19 = vmax.f32 %v3837_v26, %v8381_v33  ;;  %v8439_v42 = vld [vmem:[#allocation2 + $0xba] sm:$0xff]  ;;  %v4005_v23 = vmax.f32 %v3712_v18, %v3753_v0  ;;  %v10204_v51 = vld [vmem:[#allocation19_spill] sm:$0xff]  ;;  %v10206_v18 = vld [vmem:[#allocation16_spill] sm:$0xff] }
 0x418   : > { %v3348_v40 = vmax.f32 %v3307_v31, 0.0  ;;  %v4271_v39 = vmax.f32 %v4230_v9, %v3943_v2  ;;  %v4168_v38 = vmax.f32 %v4004_v45, %v4045_v49  ;;  %v10203_v13 = vld [vmem:[#allocation18_spill] sm:$0xff]  ;;  %v4046_v33 = vmax.f32 %v8410_v8, %v8439_v42  ;;  %v10205_v49 = vld [vmem:[#allocation13_spill] sm:$0xff] }
 0x419   : > { %4485 = vmatpush.msra.mxu1 %v4272_v27  ;;  %v4249_v15 = vmax.f32 %v4167_v35, %v4208_v34  ;;  %v3838_v6 = vld [vmem:[#allocation2 + $0xbb] sm:$0xff]  ;;  %v3713_v34 = vld [vmem:[#allocation2 + $0xb0] sm:$0xff] }
 0x41a   : > { %v8429_v60 = vmul.f32 %v10202_v7, %v3348_v40  ;;  %v4087_v17 = vmax.f32 %v3838_v6, %v8420_v43  ;;  %v4169_v32 = vmax.f32 %v4005_v23, %v4046_v33  ;;  %v3142_v31 = vld [vmem:[#allocation3 + $0x130] sm:$0xff] }
 0x41b   : > { %4486 = vmatpush.msra.mxu1 %v4271_v39  ;;  %v3071_v25 = vpop.f32.mrf.mxu0  ;;  %v8433_v20 = vmax.f32 %v4249_v15, %v3962_v10  ;;  %v3880_v62 = vld [vmem:[#allocation2 + $0xc4] sm:$0xff]  ;;  %v4006_v39 = vmax.f32 %v3713_v34, %v3754_v55  ;;  %v3755_v54 = vld [vmem:[#allocation2 + $0xb9] sm:$0xff] }
 0x41c   : > { %3676 = vst [vmem:[#allocation2 + $0xd0] sm:$0xff] %v8429_v60  ;;  %v3181_v4 = vadd.f32 %v3140_v52, %v3071_v25  ;;  %v3922_v57 = vld [vmem:[#allocation2 + $0xc5] sm:$0xff] }
 0x41d   : > { %v4127_v48 = vmax.f32 %v3880_v62, %v3922_v57  ;;  %4331 = vst [vmem:[#allocation3 + $0x98] sm:$0xff] %v8433_v20  ;;  %v3963_v1 = vld [vmem:[#allocation2 + $0xc6] sm:$0xff] }
 0x41e   : > { %v3308_v56 = vadd.f32 %v8395_v30, %v3181_v4  ;;  %v8452_v8 = vld [vmem:[#allocation2 + $0xc2] sm:$0xff] }
 0x41f   : > { %v4209_v11 = vmax.f32 %v4086_v19, %v4127_v48  ;;  %v3839_v3 = vld [vmem:[#allocation2 + $0xc3] sm:$0xff]  ;;  %v4047_v43 = vmax.f32 %v8426_v44, %v8452_v8 }
 0x420   : > { %v3349_v61 = vmax.f32 %v3308_v56, 0.0  ;;  %v4088_v15 = vmax.f32 %v3839_v3, %v3880_v62  ;;  %v3143_v48 = vld [vmem:[#allocation3 + $0x50] sm:$0xff] }
 0x421   : > { %v4250_v12 = vmax.f32 %v4168_v38, %v4209_v11  ;;  %v4170_v26 = vmax.f32 %v4006_v39, %v4047_v43  ;;  %v3756_v23 = vld [vmem:[#allocation2 + $0xc1] sm:$0xff]  ;;  %v10207_v39 = vld [vmem:[#allocation12_spill] sm:$0xff] }
 0x422   : > { %v8442_v63 = vmul.f32 %v10203_v13, %v3349_v61  ;;  %v3714_v61 = vld [vmem:[#allocation2 + $0xb8] sm:$0xff] }
 0x423   : > { %v3074_v50 = vpop.f32.mrf.mxu0  ;;  %v8446_v37 = vmax.f32 %v4250_v12, %v3963_v1  ;;  %v3881_v29 = vld [vmem:[#allocation2 + $0xcc] sm:$0xff]  ;;  %v4007_v13 = vmax.f32 %v3714_v61, %v3755_v54 }
 0x424   : > { %3677 = vst [vmem:[#allocation2 + $0xd8] sm:$0xff] %v8442_v63  ;;  %v3182_v22 = vadd.f32 %v3141_v41, %v3074_v50  ;;  %v3923_v5 = vld [vmem:[#allocation2 + $0xcd] sm:$0xff] }
 0x425   : > { %v4128_v46 = vmax.f32 %v3881_v29, %v3923_v5  ;;  %4332 = vst [vmem:[#allocation3 + $0xa8] sm:$0xff] %v8446_v37  ;;  %v3964_v21 = vld [vmem:[#allocation2 + $0xce] sm:$0xff] }
 0x426   : > { %v3309_v47 = vadd.f32 %v8395_v30, %v3182_v22  ;;  %v8464_v52 = vld [vmem:[#allocation2 + $0xca] sm:$0xff] }
 0x427   : > { %v4210_v28 = vmax.f32 %v4087_v17, %v4128_v46  ;;  %v3840_v57 = vld [vmem:[#allocation2 + $0xcb] sm:$0xff]  ;;  %v4048_v62 = vmax.f32 %v8439_v42, %v8464_v52 }
 0x428   : > { %v3350_v53 = vmax.f32 %v3309_v47, 0.0  ;;  %v4089_v0 = vmax.f32 %v3840_v57, %v3881_v29  ;;  %v3716_v57 = vld [vmem:[#allocation2 + $0xc8] sm:$0xff] }
 0x429   : > { %v4251_v9 = vmax.f32 %v4169_v32, %v4210_v28  ;;  %v4171_v50 = vmax.f32 %v4007_v13, %v4048_v62  ;;  %v3144_v32 = vld [vmem:[#allocation3 + $0xe8] sm:$0xff] }
 0x42a   : > { %v8455_v59 = vmul.f32 %v10204_v51, %v3350_v53  ;;  %v3715_v51 = vld [vmem:[#allocation2 + $0xc0] sm:$0xff] }
 0x42b   : > { %v3077_v36 = vpop.f32.mrf.mxu0  ;;  %v8459_v27 = vmax.f32 %v4251_v9, %v3964_v21  ;;  %v3882_v35 = vld [vmem:[#allocation2 + $0xd4] sm:$0xff]  ;;  %v4008_v3 = vmax.f32 %v3715_v51, %v3756_v23 }
 0x42c   : > { %3678 = vst [vmem:[#allocation2 + $0xe0] sm:$0xff] %v8455_v59  ;;  %v3183_v2 = vadd.f32 %v3142_v31, %v3077_v36  ;;  %v3924_v40 = vld [vmem:[#allocation2 + $0xd5] sm:$0xff] }
 0x42d   : > { %v4129_v7 = vmax.f32 %v3882_v35, %v3924_v40  ;;  %4333 = vst [vmem:[#allocation3 + $0x90] sm:$0xff] %v8459_v27  ;;  %v3965_v45 = vld [vmem:[#allocation2 + $0xd6] sm:$0xff] }
 0x42e   : > { %v3310_v24 = vadd.f32 %v8395_v30, %v3183_v2  ;;  %v8476_v22 = vld [vmem:[#allocation2 + $0xd2] sm:$0xff] }
 0x42f   : > { %v4211_v10 = vmax.f32 %v4088_v15, %v4129_v7  ;;  %v3841_v17 = vld [vmem:[#allocation2 + $0xd3] sm:$0xff]  ;;  %v4049_v29 = vmax.f32 %v8452_v8, %v8476_v22  ;;  %v3757_v7 = vld [vmem:[#allocation2 + $0xc9] sm:$0xff] }
 0x430   : > { %v3351_v25 = vmax.f32 %v3310_v24, 0.0  ;;  %v4090_v21 = vmax.f32 %v3841_v17, %v3882_v35 }
 0x431   : > { %v4252_v44 = vmax.f32 %v4170_v26, %v4211_v10  ;;  %v4172_v43 = vmax.f32 %v4008_v3, %v4049_v29 }
 0x432   : > { %v8467_v4 = vmul.f32 %v10205_v49, %v3351_v25  ;;  %v3145_v25 = vld [vmem:[#allocation3] sm:$0xff] }
 0x433   : > { %v3080_v19 = vpop.f32.mrf.mxu0  ;;  %v8471_v56 = vmax.f32 %v4252_v44, %v3965_v45  ;;  %v3883_v11 = vld [vmem:[#allocation2 + $0xdc] sm:$0xff] }
 0x434   : > { %3679 = vst [vmem:[#allocation2 + $0xe8] sm:$0xff] %v8467_v4  ;;  %v3184_v38 = vadd.f32 %v3143_v48, %v3080_v19  ;;  %v3925_v12 = vld [vmem:[#allocation2 + $0xdd] sm:$0xff]  ;;  %v4009_v19 = vmax.f32 %v3716_v57, %v3757_v7 }
 0x435   : > { %v4130_v6 = vmax.f32 %v3883_v11, %v3925_v12  ;;  %4334 = vst [vmem:[#allocation3 + $0xe0] sm:$0xff] %v8471_v56  ;;  %v3966_v46 = vld [vmem:[#allocation2 + $0xde] sm:$0xff] }
 0x436   : > { %v3311_v1 = vadd.f32 %v8395_v30, %v3184_v38  ;;  %v8488_v40 = vld [vmem:[#allocation2 + $0xda] sm:$0xff] }
 0x437   : > { %v4212_v41 = vmax.f32 %v4089_v0, %v4130_v6  ;;  %v3842_v24 = vld [vmem:[#allocation2 + $0xdb] sm:$0xff]  ;;  %v4050_v35 = vmax.f32 %v8464_v52, %v8488_v40 }
 0x438   : > { %v3352_v33 = vmax.f32 %v3311_v1, 0.0  ;;  %v4091_v48 = vmax.f32 %v3842_v24, %v3883_v11  ;;  %v10208_v6 = vld [vmem:[#allocation14_spill] sm:$0xff] }
 0x439   : > { %v4253_v42 = vmax.f32 %v4171_v50, %v4212_v41  ;;  %v4173_v61 = vmax.f32 %v4009_v19, %v4050_v35  ;;  %v3758_v50 = vld [vmem:[#allocation2 + $0xd1] sm:$0xff] }
 0x43a   : > { %v8479_v5 = vmul.f32 %v10206_v18, %v3352_v33  ;;  %v3146_v18 = vld [vmem:[#allocation3 + $0x40] sm:$0xff] }
 0x43b   : > { %v3083_v47 = vpop.f32.mrf.mxu0  ;;  %v8483_v28 = vmax.f32 %v4253_v42, %v3966_v46  ;;  %v3884_v9 = vld [vmem:[#allocation2 + $0xe4] sm:$0xff] }
 0x43c   : > { %3680 = vst [vmem:[#allocation2 + $0xf0] sm:$0xff] %v8479_v5  ;;  %v3185_v53 = vadd.f32 %v3144_v32, %v3083_v47  ;;  %v3926_v55 = vld [vmem:[#allocation2 + $0xe5] sm:$0xff]  ;;  %v4010_v32 = vmax.f32 %v8429_v60, %v3758_v50 }
 0x43d   : > { %v4131_v36 = vmax.f32 %v3884_v9, %v3926_v55  ;;  %4335 = vst [vmem:[#allocation3 + $0x88] sm:$0xff] %v8483_v28  ;;  %v3967_v26 = vld [vmem:[#allocation2 + $0xe6] sm:$0xff] }
 0x43e   : > { %v3312_v31 = vadd.f32 %v8395_v30, %v3185_v53  ;;  %v8500_v0 = vld [vmem:[#allocation2 + $0xe2] sm:$0xff] }
 0x43f   : > { %v4213_v2 = vmax.f32 %v4090_v21, %v4131_v36  ;;  %v3843_v41 = vld [vmem:[#allocation2 + $0xe3] sm:$0xff]  ;;  %v4051_v11 = vmax.f32 %v8476_v22, %v8500_v0 }
 0x440   : > { %v3353_v34 = vmax.f32 %v3312_v31, 0.0  ;;  %v4092_v29 = vmax.f32 %v3843_v41, %v3884_v9  ;;  %v10209_v31 = vld [vmem:[#allocation10_spill] sm:$0xff]  ;;  %v3147_v60 = vld [vmem:[#allocation3 + $0x78] sm:$0xff] }
 0x441   : > { %v4254_v8 = vmax.f32 %v4172_v43, %v4213_v2  ;;  %v4174_v55 = vmax.f32 %v4010_v32, %v4051_v11  ;;  %v3759_v2 = vld [vmem:[#allocation2 + $0xd9] sm:$0xff] }
 0x442   : > { %v8491_v15 = vmul.f32 %v10207_v39, %v3353_v34 }
 0x443   : > { %v3086_v10 = vpop.f32.mrf.mxu0  ;;  %v8495_v44 = vmax.f32 %v4254_v8, %v3967_v26  ;;  %v3885_v54 = vld [vmem:[#allocation2 + $0xec] sm:$0xff] }
 0x444   : > { %3681 = vst [vmem:[#allocation2 + $0xf8] sm:$0xff] %v8491_v15  ;;  %v3186_v49 = vadd.f32 %v3145_v25, %v3086_v10  ;;  %v3927_v45 = vld [vmem:[#allocation2 + $0xed] sm:$0xff]  ;;  %v4011_v25 = vmax.f32 %v8442_v63, %v3759_v2  ;;  %v3148_v63 = vld [vmem:[#allocation3 + $0x30] sm:$0xff] }
 0x445   : > { %v4132_v62 = vmax.f32 %v3885_v54, %v3927_v45  ;;  %4336 = vst [vmem:[#allocation3 + $0xc0] sm:$0xff] %v8495_v44  ;;  %v3968_v33 = vld [vmem:[#allocation2 + $0xee] sm:$0xff] }
 0x446   : > { %v3313_v38 = vadd.f32 %v8395_v30, %v3186_v49  ;;  %v8510_v36 = vld [vmem:[#allocation2 + $0xea] sm:$0xff] }
 0x447   : > { %v4214_v12 = vmax.f32 %v4091_v48, %v4132_v62  ;;  %v3844_v34 = vld [vmem:[#allocation2 + $0xeb] sm:$0xff]  ;;  %v4052_v9 = vmax.f32 %v8488_v40, %v8510_v36 }
 0x448   : > { %v3354_v13 = vmax.f32 %v3313_v38, 0.0  ;;  %v4093_v35 = vmax.f32 %v3844_v34, %v3885_v54  ;;  %v10210_v38 = vld [vmem:[#allocation11_spill] sm:$0xff] }
 0x449   : > { %v4255_v52 = vmax.f32 %v4173_v61, %v4214_v12  ;;  %v4175_v45 = vmax.f32 %v4011_v25, %v4052_v9  ;;  %v3760_v12 = vld [vmem:[#allocation2 + $0xe1] sm:$0xff] }
 0x44a   : > { %v3641_v1 = vmul.f32 %v10208_v6, %v3354_v13 }
 0x44b   : > { %v3089_v42 = vpop.f32.mrf.mxu0  ;;  %v8505_v23 = vmax.f32 %v4255_v52, %v3968_v33  ;;  %v3886_v46 = vld [vmem:[#allocation2 + $0xf4] sm:$0xff] }
 0x44c   : > { %3682 = vst [vmem:[#allocation2 + $0x100] sm:$0xff] %v3641_v1  ;;  %v3187_v17 = vadd.f32 %v3146_v18, %v3089_v42  ;;  %v3928_v47 = vld [vmem:[#allocation2 + $0xf5] sm:$0xff]  ;;  %v4012_v42 = vmax.f32 %v8455_v59, %v3760_v12  ;;  %v3149_v59 = vld [vmem:[#allocation3 + $0xb8] sm:$0xff] }
 0x44d   : > { %v4133_v53 = vmax.f32 %v3886_v46, %v3928_v47  ;;  %4337 = vst [vmem:[#allocation3 + $0x118] sm:$0xff] %v8505_v23  ;;  %v3969_v8 = vld [vmem:[#allocation2 + $0xf6] sm:$0xff] }
 0x44e   : > { %v3314_v51 = vadd.f32 %v8395_v30, %v3187_v17  ;;  %v8523_v62 = vld [vmem:[#allocation2 + $0xf2] sm:$0xff] }
 0x44f   : > { %v4215_v3 = vmax.f32 %v4092_v29, %v4133_v53  ;;  %v3845_v13 = vld [vmem:[#allocation2 + $0xf3] sm:$0xff]  ;;  %v4053_v1 = vmax.f32 %v8500_v0, %v8523_v62 }
 0x450   : > { %v3355_v21 = vmax.f32 %v3314_v51, 0.0  ;;  %v4094_v18 = vmax.f32 %v3845_v13, %v3886_v46  ;;  %v10211_v51 = vld [vmem:[#allocation15_spill] sm:$0xff]  ;;  %v3150_v12 = vld [vmem:[#allocation3 + $0x60] sm:$0xff] }
 0x451   : > { %v4256_v22 = vmax.f32 %v4174_v55, %v4215_v3  ;;  %v4176_v47 = vmax.f32 %v4012_v42, %v4053_v1  ;;  %v3761_v3 = vld [vmem:[#allocation2 + $0xe9] sm:$0xff] }
 0x452   : > { %v8513_v43 = vmul.f32 %v10209_v31, %v3355_v21 }
 0x453   : > { %v3092_v39 = vpop.f32.mrf.mxu0  ;;  %v8517_v7 = vmax.f32 %v4256_v22, %v3969_v8  ;;  %v3887_v26 = vld [vmem:[#allocation2 + $0xfc] sm:$0xff] }
 0x454   : > { %3683 = vst [vmem:[#allocation2 + $0x108] sm:$0xff] %v8513_v43  ;;  %v3188_v24 = vadd.f32 %v3147_v60, %v3092_v39  ;;  %v3929_v10 = vld [vmem:[#allocation2 + $0xfd] sm:$0xff]  ;;  %v4013_v60 = vmax.f32 %v8467_v4, %v3761_v3 }
 0x455   : > { %v4134_v49 = vmax.f32 %v3887_v26, %v3929_v10  ;;  %4338 = vst [vmem:[#allocation3 + $0xd8] sm:$0xff] %v8517_v7  ;;  %v3970_v52 = vld [vmem:[#allocation2 + $0xfe] sm:$0xff] }
 0x456   : > { %v3315_v57 = vadd.f32 %v8395_v30, %v3188_v24  ;;  %v8536_v53 = vld [vmem:[#allocation2 + $0xfa] sm:$0xff] }
 0x457   : > { %v4216_v19 = vmax.f32 %v4093_v35, %v4134_v49  ;;  %v3846_v21 = vld [vmem:[#allocation2 + $0xfb] sm:$0xff]  ;;  %v4054_v2 = vmax.f32 %v8510_v36, %v8536_v53  ;;  %v3762_v36 = vld [vmem:[#allocation2 + $0xf1] sm:$0xff] }
 0x458   : > { %v3356_v48 = vmax.f32 %v3315_v57, 0.0  ;;  %v4095_v9 = vmax.f32 %v3846_v21, %v3887_v26  ;;  %v4014_v1 = vmax.f32 %v8479_v5, %v3762_v36 }
 0x459   : > { %v4257_v40 = vmax.f32 %v4175_v45, %v4216_v19  ;;  %v4177_v35 = vmax.f32 %v4013_v60, %v4054_v2 }
 0x45a   : > { %v8526_v61 = vmul.f32 %v10210_v38, %v3356_v48  ;;  %v10212_v48 = vld [vmem:[#allocation17_spill] sm:$0xff] }
 0x45b   : > { %v3095_v6 = vpop.f32.mrf.mxu0  ;;  %v3888_v54 = vld [vmem:[#allocation2 + $0x104] sm:$0xff]  ;;  %v8530_v50 = vmax.f32 %v4257_v40, %v3970_v52 }
 0x45c   : > { %3684 = vst [vmem:[#allocation2 + $0x110] sm:$0xff] %v8526_v61  ;;  %v3189_v41 = vadd.f32 %v3148_v63, %v3095_v6  ;;  %v3930_v33 = vld [vmem:[#allocation2 + $0x105] sm:$0xff] }
 0x45d   : > { %v4135_v11 = vmax.f32 %v3888_v54, %v3930_v33  ;;  %4339 = vst [vmem:[#allocation3 + $0xa0] sm:$0xff] %v8530_v50  ;;  %v3971_v22 = vld [vmem:[#allocation2 + $0x106] sm:$0xff] }
 0x45e   : > { %v3316_v17 = vadd.f32 %v8395_v30, %v3189_v41  ;;  %v8549_v25 = vld [vmem:[#allocation2 + $0x102] sm:$0xff] }
 0x45f   : > { %v4217_v32 = vmax.f32 %v4094_v18, %v4135_v11  ;;  %v3847_v45 = vld [vmem:[#allocation2 + $0x103] sm:$0xff]  ;;  %v4055_v4 = vmax.f32 %v8523_v62, %v8549_v25 }
 0x460   : > { %v3357_v29 = vmax.f32 %v3316_v17, 0.0  ;;  %v4096_v41 = vmax.f32 %v3847_v45, %v3888_v54 }
 0x461   : > { %v4258_v0 = vmax.f32 %v4176_v47, %v4217_v32  ;;  %v4178_v18 = vmax.f32 %v4014_v1, %v4055_v4  ;;  %v3763_v32 = vld [vmem:[#allocation2 + $0xf9] sm:$0xff]  ;;  %v3152_v4 = vld [vmem:[#allocation3 + $0x140] sm:$0xff] }
 0x462   : > { %v8539_v55 = vmul.f32 %v10211_v51, %v3357_v29  ;;  %v10213_v51 = vld [vmem:[#allocation25_spill] sm:$0xff] }
 0x463   : > { %v3098_v31 = vpop.f32.mrf.mxu0  ;;  %v3889_v46 = vld [vmem:[#allocation2 + $0x10c] sm:$0xff]  ;;  %v8543_v34 = vmax.f32 %v4258_v0, %v3971_v22  ;;  %v3151_v22 = vld [vmem:[#allocation3 + $0x28] sm:$0xff] }
 0x464   : > { %3685 = vst [vmem:[#allocation2 + $0x118] sm:$0xff] %v8539_v55  ;;  %v3190_v8 = vadd.f32 %v3149_v59, %v3098_v31  ;;  %v3931_v39 = vld [vmem:[#allocation2 + $0x10d] sm:$0xff] }
 0x465   : > { %v4136_v24 = vmax.f32 %v3889_v46, %v3931_v39  ;;  %4340 = vst [vmem:[#allocation3 + $0x68] sm:$0xff] %v8543_v34  ;;  %v3972_v26 = vld [vmem:[#allocation2 + $0x10e] sm:$0xff] }
 0x466   : > { %v3317_v10 = vadd.f32 %v8395_v30, %v3190_v8  ;;  %v8559_v17 = vld [vmem:[#allocation2 + $0x10a] sm:$0xff]  ;;  %v4015_v8 = vmax.f32 %v8491_v15, %v3763_v32  ;;  %v10215_v32 = vld [vmem:[#allocation23_spill] sm:$0xff] }
 0x467   : > { %v4218_v49 = vmax.f32 %v4095_v9, %v4136_v24  ;;  %v3848_v29 = vld [vmem:[#allocation2 + $0x10b] sm:$0xff]  ;;  %v4056_v5 = vmax.f32 %v8536_v53, %v8559_v17 }
 0x468   : > { %v3358_v57 = vmax.f32 %v3317_v10, 0.0  ;;  %v4097_v39 = vmax.f32 %v3848_v29, %v3889_v46  ;;  %v3764_v46 = vld [vmem:[#allocation2 + $0x101] sm:$0xff] }
 0x469   : > { %v4259_v19 = vmax.f32 %v4177_v35, %v4218_v49  ;;  %v4179_v24 = vmax.f32 %v4015_v8, %v4056_v5  ;;  %v3153_v5 = vld [vmem:[#allocation3 + $0x58] sm:$0xf] }
 0x46a   : > { %v8552_v40 = vmul.f32 %v10212_v48, %v3358_v57  ;;  %v10214_v57 = vld [vmem:[#allocation24_spill] sm:$0xff] }
 0x46b   : > { %v3101_v38 = vpop.f32.mrf.mxu0  ;;  %v3890_v13 = vld [vmem:[#allocation2 + $0x114] sm:$0xff]  ;;  %v4300_v6 = vmax.f32 %v4259_v19, %v3972_v26 }
 0x46c   : > { %v3932_v52 = vld [vmem:[#allocation2 + $0x115] sm:$0xff]  ;;  %3686 = vst [vmem:[#allocation2 + $0x120] sm:$0xff] %v8552_v40  ;;  %v3191_v63 = vadd.f32 %v3150_v12, %v3101_v38 }
 0x46d   : > { %v4137_v33 = vmax.f32 %v3890_v13, %v3932_v52  ;;  %4341 = vst [vmem:[#allocation3 + $0x130] sm:$0xff] %v4300_v6  ;;  %v3973_v0 = vld [vmem:[#allocation2 + $0x116] sm:$0xff] }
 0x46e   : > { %v3318_v42 = vadd.f32 %v8395_v30, %v3191_v63  ;;  %v8572_v19 = vld [vmem:[#allocation2 + $0x112] sm:$0xff]  ;;  %v3723_v63 = vld [vmem:[#allocation2 + $0x100] sm:$0xff] }
 0x46f   : > { %v4219_v11 = vmax.f32 %v4096_v41, %v4137_v33  ;;  %v3849_v26 = vld [vmem:[#allocation2 + $0x113] sm:$0xff]  ;;  %v4057_v38 = vmax.f32 %v8549_v25, %v8572_v19  ;;  %v4016_v41 = vmax.f32 %v3723_v63, %v3764_v46  ;;  %v3765_v25 = vld [vmem:[#allocation2 + $0x109] sm:$0xff] }
 0x470   : > { %v3359_v62 = vmax.f32 %v3318_v42, 0.0  ;;  %v4098_v33 = vmax.f32 %v3849_v26, %v3890_v13 }
 0x471   : > { %v4260_v47 = vmax.f32 %v4178_v18, %v4219_v11 }
 0x472   : > { %v8562_v3 = vmul.f32 %v10213_v51, %v3359_v62  ;;  %v4180_v62 = vmax.f32 %v4016_v41, %v4057_v38 }
 0x473   : > { %v4301_v54 = vmax.f32 %v4260_v47, %v3973_v0  ;;  %v3104_v21 = vpop.f32.mrf.mxu0  ;;  %v3891_v31 = vld [vmem:[#allocation2 + $0x11c] sm:$0xff] }
 0x474   : > { %v3933_v59 = vld [vmem:[#allocation2 + $0x11d] sm:$0xff]  ;;  %3687 = vst [vmem:[#allocation2 + $0x128] sm:$0xff] %v8562_v3  ;;  %v3192_v2 = vadd.f32 %v3151_v22, %v3104_v21 }
 0x475   : > { %v4138_v60 = vmax.f32 %v3891_v31, %v3933_v59  ;;  %4342 = vst [vmem:[#allocation3 + $0x50] sm:$0xff] %v4301_v54  ;;  %v3974_v53 = vld [vmem:[#allocation2 + $0x11e] sm:$0xff] }
 0x476   : > { %v3319_v9 = vadd.f32 %v8395_v30, %v3192_v2  ;;  %v8581_v11 = vld [vmem:[#allocation2 + $0x11a] sm:$0xff]  ;;  %v4017_v2 = vmax.f32 %v8513_v43, %v3765_v25 }
 0x477   : > { %v4220_v10 = vmax.f32 %v4097_v39, %v4138_v60  ;;  %v3850_v0 = vld [vmem:[#allocation2 + $0x11b] sm:$0xff]  ;;  %v4058_v13 = vmax.f32 %v8559_v17, %v8581_v11 }
 0x478   : > { %v3360_v35 = vmax.f32 %v3319_v9, 0.0 }
 0x479   : > { %v4261_v49 = vmax.f32 %v4179_v24, %v4220_v10  ;;  %v4181_v17 = vmax.f32 %v4017_v2, %v4058_v13  ;;  %v3938_v10 = vld [vmem:[#allocation2 + $0x145] sm:$0xff]  ;;  %v3900_v13 = vld [vmem:[#allocation2 + $0x15c] sm:$0xff] }
 0x47a   : > { %v8570_v36 = vmul.f32 %v10214_v57, %v3360_v35  ;;  %v3767_v2 = vld [vmem:[#allocation2 + $0x119] sm:$0xff] }
 0x47b   : > { %v4302_v45 = vmax.f32 %v4261_v49, %v3974_v53  ;;  %v3107_v48 = vpop.f32.mrf.mxu0  ;;  %v8578_v52 = vld [vmem:[#allocation2 + $0x124] sm:$0xff] }
 0x47c   : > { %3688 = vst [vmem:[#allocation2 + $0x130] sm:$0xff] %v8570_v36  ;;  %v3193_v15 = vadd.f32 %v3152_v4, %v3107_v48  ;;  %v3934_v1 = vld [vmem:[#allocation2 + $0x125] sm:$0xff] }
 0x47d   : > { %4524 = vmatpush.msra.mxu2 %v4302_v45  ;;  %4343 = vst [vmem:[#allocation3 + $0xe8] sm:$0xff] %v4302_v45  ;;  %v4139_v42 = vmax.f32 %v8578_v52, %v3934_v1  ;;  %v3975_v59 = vld [vmem:[#allocation2 + $0x126] sm:$0xff] }
 0x47e   : > { %v3320_v12 = vadd.f32 %v8395_v30, %v3193_v15  ;;  %v3768_v9 = vld [vmem:[#allocation2 + $0x121] sm:$0xff] }
 0x47f   : > { %4525 = vmatpush.msra.mxu2 %v4301_v54  ;;  %v4221_v47 = vmax.f32 %v4098_v33, %v4139_v42  ;;  %v3809_v24 = vld [vmem:[#allocation2 + $0x122] sm:$0xff] }
 0x480   : > { %v3361_v18 = vmax.f32 %v3320_v12, 0.0  ;;  %v3851_v35 = vld [vmem:[#allocation2 + $0x123] sm:$0xff]  ;;  %v4059_v4 = vmax.f32 %v8572_v19, %v3809_v24 }
 0x481   : > { %4526 = vmatpush.msra.mxu2 %v4300_v6  ;;  %v4262_v54 = vmax.f32 %v4180_v62, %v4221_v47  ;;  %v4100_v38 = vmax.f32 %v3851_v35, %v8578_v52  ;;  %v3979_v42 = vld [vmem:[#allocation2 + $0x146] sm:$0xff]  ;;  %v3857_v62 = vld [vmem:[#allocation2 + $0x153] sm:$0xf] }
 0x482   : > { %v8584_v29 = vmul.f32 %v10215_v32, %v3361_v18  ;;  %v10216_v18 = vld [vmem:[#allocation21_spill] sm:$0xff]  ;;  %v3901_v32 = vld [vmem:[#allocation2 + $0x164] sm:$0xf]  ;;  %v4354_v35 = vld [vmem:[%s10151_s6 + $0x8] sm:$0xff] }
 0x483   : > { %4527 = vmatpush.msra.mxu2 %v8543_v34  ;;  %v3110_v51 = vpop.f32.mrf.mxu0  ;;  %v8591_v21 = vld [vmem:[#allocation2 + $0x12c] sm:$0xff]  ;;  %v4099_v34 = vmax.f32 %v3850_v0, %v3891_v31  ;;  %v8595_v39 = vmax.f32 %v4262_v54, %v3975_v59  ;;  %v3898_v52 = vld [vmem:[#allocation2 + $0x154] sm:$0xf]  ;;  %v3941_v54 = vld [vmem:[#allocation2 + $0x15d] sm:$0xff] }
 0x484   : > { %3689 = vst [vmem:[#allocation2 + $0x138] sm:$0xff] %v8584_v29  ;;  %v3194_v6 = vadd.f32 %v3153_v5, %v3110_v51  ;;  %v3935_v22 = vld [vmem:[#allocation2 + $0x12d] sm:$0xff] }
 0x485   : > { %4528 = vmatpush.msra.mxu2 %v8530_v50  ;;  %v4140_v8 = vmax.f32 %v8591_v21, %v3935_v22  ;;  %4344 = vst [vmem:[#allocation3] sm:$0xff] %v8595_v39  ;;  %v8600_v50 = vld [vmem:[#allocation2 + $0x144] sm:$0xff]  ;;  %v3766_v31 = vld [vmem:[#allocation2 + $0x111] sm:$0xff] }
 0x486   : > { %3235 = vst [vmem:[#allocation3 + $0x58] sm:$0xf] %v3194_v6  ;;  %v3976_v49 = vld [vmem:[#allocation2 + $0x12e] sm:$0xff]  ;;  %v4143_v48 = vmax.f32 %v8600_v50, %v3938_v10  ;;  %v4018_v26 = vmax.f32 %v8526_v61, %v3766_v31  ;;  %v4106_v6 = vmax.f32 %v3857_v62, %v3898_v52  ;;  %v4019_v31 = vmax.f32 %v8539_v55, %v3767_v2 }
 0x487   : > { %4529 = vmatpush.msra.mxu2 %v8517_v7  ;;  %v4222_v60 = vmax.f32 %v4099_v34, %v4140_v8  ;;  %v3856_v0 = vld [vmem:[#allocation2 + $0x14b] sm:$0xff]  ;;  %v4146_v34 = vmax.f32 %v3900_v13, %v3941_v54  ;;  %v3899_v8 = vld [vmem:[#allocation2 + $0x154] sm:$0xff] }
 0x488   : > { %v4182_v41 = vmax.f32 %v4018_v26, %v4059_v4  ;;  %v3897_v5 = vld [vmem:[#allocation2 + $0x14c] sm:$0xff] }
 0x489   : > { %4530 = vmatpush.msra.mxu2 %v8505_v23  ;;  %v4263_v43 = vmax.f32 %v4181_v17, %v4222_v60  ;;  %v4020_v23 = vmax.f32 %v8552_v40, %v3768_v9  ;;  %v3810_v59 = vld [vmem:[#allocation2 + $0x12a] sm:$0xff]  ;;  %v3940_v17 = vld [vmem:[#allocation2 + $0x155] sm:$0xff] }
 0x48a   : > { %v3939_v60 = vld [vmem:[#allocation2 + $0x14d] sm:$0xff]  ;;  %v4060_v4 = vmax.f32 %v8581_v11, %v3810_v59 }
 0x48b   : > { %4531 = vmatpush.msra.mxu2 %v8495_v44  ;;  %v8603_v53 = vld [vmem:[#allocation2 + $0x132] sm:$0xff]  ;;  %v8605_v57 = vmax.f32 %v4263_v43, %v3976_v49 }
 0x48c   : > { %v3853_v7 = vld [vmem:[#allocation2 + $0x133] sm:$0xff]  ;;  %v4061_v45 = vmax.f32 %v3809_v24, %v8603_v53  ;;  %v3852_v43 = vld [vmem:[#allocation2 + $0x12b] sm:$0xff] }
 0x48d   : > { %4532 = vmatpush.msra.mxu2 %v8483_v28  ;;  %v3276_v15 = vld [vmem:[#allocation3 + $0x58] sm:$0xf]  ;;  %v3894_v44 = vld [vmem:[#allocation2 + $0x134] sm:$0xff]  ;;  %4345 = vst [vmem:[#allocation3 + $0x40] sm:$0xff] %v8605_v57 }
 0x48e   : > { %v3936_v46 = vld [vmem:[#allocation2 + $0x135] sm:$0xff]  ;;  %v3321_v12 = vadd.f32 %v8395_v30, %v3276_v15  ;;  %v4102_v28 = vmax.f32 %v3853_v7, %v3894_v44  ;;  %v4184_v40 = vmax.f32 %v4020_v23, %v4061_v45  ;;  %v4145_v23 = vmax.f32 %v3899_v8, %v3940_v17 }
 0x48f   : > { %4533 = vmatpush.msra.mxu2 %v8471_v56  ;;  %v4141_v63 = vmax.f32 %v3894_v44, %v3936_v46  ;;  %v3942_v56 = vld [vmem:[#allocation2 + $0x165] sm:$0xf]  ;;  %v3977_v25 = vld [vmem:[#allocation2 + $0x136] sm:$0xff]  ;;  %v3816_v9 = vld [vmem:[#allocation2 + $0x152] sm:$0xf] }
 0x490   : > { %v3362_v1 = vmax.f32 %v3321_v12, 0.0  ;;  %v4225_v19 = vmax.f32 %v4102_v28, %v4143_v48  ;;  %v4147_v22 = vmax.f32 %v3901_v32, %v3942_v56  ;;  %v3770_v24 = vld [vmem:[#allocation2 + $0x131] sm:$0xff]  ;;  %v4144_v48 = vmax.f32 %v3897_v5, %v3939_v60 }
 0x491   : > { %4534 = vmatpush.msra.mxu2 %v8459_v27  ;;  %v4223_v33 = vmax.f32 %v4100_v38, %v4141_v63  ;;  %v4022_v38 = vmax.f32 %v8570_v36, %v3770_v24  ;;  %v4356_v17 = vld [vmem:[%s10151_s6 + $0x18] sm:$0xff]  ;;  %v4359_v24 = vld [vmem:[%s10151_s6 + $0x30] sm:$0xff] }
 0x492   : > { %v3649_v61 = vmul.f32 %v10216_v18, %v3362_v1  ;;  %v4266_v47 = vmax.f32 %v4184_v40, %v4225_v19  ;;  %v4229_v10 = vmax.f32 %v4106_v6, %v4147_v22  ;;  %v4101_v18 = vmax.f32 %v3852_v43, %v8591_v21  ;;  %v3981_v21 = vld [vmem:[#allocation2 + $0x156] sm:$0xff]  ;;  %v4366_v43 = vld [vmem:[%s10151_s6 + $0x68] sm:$0xff] }
 0x493   : > { %4535 = vmatpush.msra.mxu2 %v8446_v37  ;;  %v4264_v30 = vmax.f32 %v4182_v41, %v4223_v33  ;;  %v3769_v37 = vld [vmem:[#allocation2 + $0x129] sm:$0xff]  ;;  %v4360_v60 = vld [vmem:[%s10151_s6 + $0x38] sm:$0xff] }
 0x494   : > { %3690 = vst [vmem:[#allocation2 + $0x140] sm:$0xf] %v3649_v61  ;;  %v8621_v27 = vmax.f32 %v4266_v47, %v3979_v42  ;;  %v4021_v45 = vmax.f32 %v8562_v3, %v3769_v37  ;;  %v3983_v61 = vld [vmem:[#allocation2 + $0x166] sm:$0xf] }
 0x495   : > { %4536 = vmatpush.msra.mxu2 %v8433_v20  ;;  %v8623_v51 = vmax.f32 %v4264_v30, %v3977_v25  ;;  %v4105_v20 = vmax.f32 %v3856_v0, %v3897_v5  ;;  %v3982_v30 = vld [vmem:[#allocation2 + $0x15e] sm:$0xff]  ;;  %v3980_v0 = vld [vmem:[#allocation2 + $0x14e] sm:$0xff]  ;;  %v4183_v5 = vmax.f32 %v4019_v31, %v4060_v4 }
 0x496   : > { %4348 = vst [vmem:[#allocation3 + $0xb8] sm:$0xff] %v8621_v27  ;;  %v4355_v31 = vld [vmem:[%s10151_s6 + $0x10] sm:$0xff] }
 0x497   : > { %4537 = vmatpush.msra.mxu2 %v8418_v16  ;;  %4346 = vst [vmem:[#allocation3 + $0x78] sm:$0xff] %v8623_v51  ;;  %v3815_v16 = vld [vmem:[#allocation2 + $0x14a] sm:$0xff]  ;;  %v4228_v26 = vmax.f32 %v4105_v20, %v4146_v34 }
 0x498   : > { %v4367_v4 = vld [vmem:[%s10151_s6 + $0x70] sm:$0xff] }
 0x499   : > { %4538 = vmatpush.msra.mxu2 %v8376_v14 }
 0x49b   : > { %4539 = vmatpush.msra.mxu2 %v8337_v58  ;;  %v3731_v49 = vld [vmem:[#allocation2 + $0x140] sm:$0xf] }
 0x49c   : > { %v3772_v14 = vld [vmem:[#allocation2 + $0x141] sm:$0xf]  ;;  %4540 = vmatmul.f32.vlgmr.msra.gmra.mxu2 %v4354_v35  ;;  %v3771_v44 = vld [vmem:[#allocation2 + $0x139] sm:$0xff] }
 0x49d   : > { %v3813_v7 = vld [vmem:[#allocation2 + $0x142] sm:$0xf]  ;;  %v4024_v15 = vmax.f32 %v3731_v49, %v3772_v14  ;;  %v3812_v46 = vld [vmem:[#allocation2 + $0x13a] sm:$0xff]  ;;  %v4023_v12 = vmax.f32 %v8584_v29, %v3771_v44  ;;  %v4371_v14 = vld [vmem:[%s10151_s6 + $0x90] sm:$0xff] }
 0x49e   : > { %v4065_v58 = vmax.f32 %v3813_v7, %v3816_v9  ;;  %v3814_v55 = vld [vmem:[#allocation2 + $0x142] sm:$0xff]  ;;  %v4064_v28 = vmax.f32 %v3812_v46, %v3815_v16  ;;  %v4062_v19 = vmax.f32 %v3810_v59, %v3812_v46  ;;  %v4372_v35 = vld [vmem:[%s10151_s6 + $0x98] sm:$0xff]  ;;  %v4375_v7 = vld [vmem:[%s10151_s6 + $0xb0] sm:$0xff] }
 0x49f   : > { %v3855_v40 = vld [vmem:[#allocation2 + $0x143] sm:$0xff]  ;;  %v4063_v63 = vmax.f32 %v8603_v53, %v3814_v55  ;;  %v3854_v1 = vld [vmem:[#allocation2 + $0x13b] sm:$0xff]  ;;  %v6543_v55 = vld [vmem:[%s10146_s1 + $0x4f0] sm:$0xff] }
 0x4a0   : > { %v3895_v3 = vld [vmem:[#allocation2 + $0x13c] sm:$0xff]  ;;  %v4188_v41 = vmax.f32 %v4024_v15, %v4065_v58  ;;  %v4104_v11 = vmax.f32 %v3855_v40, %v8600_v50  ;;  %v4187_v62 = vmax.f32 %v4023_v12, %v4064_v28  ;;  %v4185_v36 = vmax.f32 %v4021_v45, %v4062_v19  ;;  %v4362_v16 = vld [vmem:[%s10151_s6 + $0x48] sm:$0xff]  ;;  %v6559_v12 = vld [vmem:[%s10146_s1 + $0x570] sm:$0xff] }
 0x4a1   : > { %v4103_v33 = vmax.f32 %v3854_v1, %v3895_v3  ;;  %v3937_v42 = vld [vmem:[#allocation2 + $0x13d] sm:$0xff]  ;;  %v4186_v52 = vmax.f32 %v4022_v38, %v4063_v63  ;;  %v4374_v45 = vld [vmem:[%s10151_s6 + $0xa8] sm:$0xff] }
 0x4a2   : > { %v4142_v47 = vmax.f32 %v3895_v3, %v3937_v42  ;;  %v4353_v29 = vld [vmem:[%s10151_s6] sm:$0xff]  ;;  %v4270_v53 = vmax.f32 %v4188_v41, %v4229_v10  ;;  %v4227_v32 = vmax.f32 %v4104_v11, %v4145_v23  ;;  %v4269_v25 = vmax.f32 %v4187_v62, %v4228_v26  ;;  %v4363_v10 = vld [vmem:[%s10151_s6 + $0x50] sm:$0xff]  ;;  %v4364_v23 = vld [vmem:[%s10151_s6 + $0x58] sm:$0xff] }
 0x4a3   : > { %v4226_v56 = vmax.f32 %v4103_v33, %v4144_v48  ;;  %4487 = vmatmul.f32.vlgmr.msra.gmra.mxu1 %v4353_v29  ;;  %v4357_v50 = vld [vmem:[%s10151_s6 + $0x20] sm:$0xff]  ;;  %v4378_v48 = vld [vmem:[%s10151_s6 + $0xc8] sm:$0xff]  ;;  %v4380_v46 = vld [vmem:[%s10151_s6 + $0xd8] sm:$0xff] }
 0x4a4   : > { %v4224_v13 = vmax.f32 %v4101_v18, %v4142_v47  ;;  %v4311_v54 = vmax.f32 %v4270_v53, %v3983_v61  ;;  %v4268_v6 = vmax.f32 %v4186_v52, %v4227_v32  ;;  %v4310_v37 = vmax.f32 %v4269_v25, %v3982_v30  ;;  %4543 = vmatmul.f32.gmra.mxu2 %v4357_v50  ;;  %v3978_v34 = vld [vmem:[#allocation2 + $0x13e] sm:$0xff]  ;;  %v4370_v44 = vld [vmem:[%s10151_s6 + $0x88] sm:$0xff]  ;;  %v4379_v11 = vld [vmem:[%s10151_s6 + $0xd0] sm:$0xff] }
 0x4a5   : > { %v4267_v22 = vmax.f32 %v4185_v36, %v4226_v56  ;;  %v4361_v49 = vld [vmem:[%s10151_s6 + $0x40] sm:$0xff]  ;;  %v6544_v26 = vld [vmem:[%s10146_s1 + $0x4f8] sm:$0xff]  ;;  %v6542_v28 = vld [vmem:[%s10146_s1 + $0x4e8] sm:$0xff] }
 0x4a6   : > { %v4265_v59 = vmax.f32 %v4183_v5, %v4224_v13  ;;  %4352 = vst [vmem:[#allocation3 + $0x58] sm:$0xf] %v4311_v54  ;;  %v4309_v2 = vmax.f32 %v4268_v6, %v3981_v21  ;;  %v4377_v15 = vld [vmem:[%s10151_s6 + $0xc0] sm:$0xff]  ;;  %4667 = vmatpush.msrb.mxu1 %v6544_v26  ;;  %v6560_v38 = vld [vmem:[%s10146_s1 + $0x578] sm:$0xff]  ;;  %v6558_v40 = vld [vmem:[%s10146_s1 + $0x568] sm:$0xff] }
 0x4a7   : > { %v4308_v20 = vmax.f32 %v4267_v22, %v3980_v0  ;;  %4351 = vst [vmem:[#allocation3 + $0x140] sm:$0xff] %v4310_v37  ;;  %v4381_v58 = vld [vmem:[%s10151_s6 + $0xe0] sm:$0xff]  ;;  %4741 = vmatpush.msrb.mxu2 %v6560_v38  ;;  %v6540_v3 = vld [vmem:[%s10146_s1 + $0x4d8] sm:$0xff]  ;;  %v4383_v33 = vld [vmem:[%s10151_s6 + $0xf0] sm:$0xff] }
 0x4a8   : > { %v4306_v8 = vmax.f32 %v4265_v59, %v3978_v34  ;;  %4350 = vst [vmem:[#allocation3 + $0x28] sm:$0xff] %v4309_v2  ;;  %4668 = vmatpush.msrb.mxu1 %v6543_v55  ;;  %v4373_v63 = vld [vmem:[%s10151_s6 + $0xa0] sm:$0xff]  ;;  %v4376_v19 = vld [vmem:[%s10151_s6 + $0xb8] sm:$0xff]  ;;  %v6539_v42 = vld [vmem:[%s10146_s1 + $0x4d0] sm:$0xff] }
 0x4a9   : > { %4349 = vst [vmem:[#allocation3 + $0x60] sm:$0xff] %v4308_v20  ;;  %4742 = vmatpush.msrb.mxu2 %v6559_v12  ;;  %v6541_v1 = vld [vmem:[%s10146_s1 + $0x4e0] sm:$0xff]  ;;  %v4384_v41 = vld [vmem:[%s10151_s6 + $0xf8] sm:$0xff]  ;;  %v4382_v61 = vld [vmem:[%s10151_s6 + $0xe8] sm:$0xff] }
 0x4aa   : > { %4347 = vst [vmem:[#allocation3 + $0x30] sm:$0xff] %v4306_v8  ;;  %4669 = vmatpush.msrb.mxu1 %v6542_v28  ;;  %v6557_v18 = vld [vmem:[%s10146_s1 + $0x560] sm:$0xff]  ;;  %v6556_v52 = vld [vmem:[%s10146_s1 + $0x558] sm:$0xff]  ;;  %v6555_v36 = vld [vmem:[%s10146_s1 + $0x550] sm:$0xff] }
 0x4ab   : > { %4490 = vmatmul.f32.gmra.mxu1 %v4356_v17  ;;  %4743 = vmatpush.msrb.mxu2 %v6558_v40  ;;  %v4385_v62 = vld [vmem:[%s10151_s6 + $0x100] sm:$0xff]  ;;  %v6554_v47 = vld [vmem:[%s10146_s1 + $0x548] sm:$0xff]  ;;  %v6576_v30 = vld [vmem:[%s10146_s1 + $0x5f8] sm:$0xff] }
 0x4ac   : > { %4546 = vmatmul.f32.gmra.mxu2 %v4360_v60  ;;  %4670 = vmatpush.msrb.mxu1 %v6541_v1  ;;  %v6538_v29 = vld [vmem:[%s10146_s1 + $0x4c8] sm:$0xff]  ;;  %v6537_v53 = vld [vmem:[%s10146_s1 + $0x4c0] sm:$0xff]  ;;  %v6575_v32 = vld [vmem:[%s10146_s1 + $0x5f0] sm:$0xff] }
 0x4ad   : > { %v4429_v9 = vld [vmem:[#allocation3 + $0x58] sm:$0xf]  ;;  %4744 = vmatpush.msrb.mxu2 %v6557_v18  ;;  %v6536_v50 = vld [vmem:[%s10146_s1 + $0x4b8] sm:$0xff]  ;;  %v6553_v25 = vld [vmem:[%s10146_s1 + $0x540] sm:$0xff] }
 0x4ae   : > { %6516 = vmatpush.msk.msra.mxu3 %vm4467_vm0, %v4429_v9  ;;  %4671 = vmatpush.msrb.mxu1 %v6540_v3  ;;  %v6574_v21 = vld [vmem:[%s10146_s1 + $0x5e8] sm:$0xff]  ;;  %v6552_v5 = vld [vmem:[%s10146_s1 + $0x538] sm:$0xff]  ;;  %v6535_v13 = vld [vmem:[%s10146_s1 + $0x4b0] sm:$0xff] }
 0x4af   : > { %4745 = vmatpush.msrb.mxu2 %v6556_v52  ;;  %v6551_v54 = vld [vmem:[%s10146_s1 + $0x530] sm:$0xff]  ;;  %v6550_v6 = vld [vmem:[%s10146_s1 + $0x528] sm:$0xff]  ;;  %v6533_v59 = vld [vmem:[%s10146_s1 + $0x4a0] sm:$0xff] }
 0x4b0   : > { %4585 = vmatpush.msra.mxu3 %v4310_v37  ;;  %4672 = vmatpush.msrb.mxu1 %v6539_v42  ;;  %v6534_v22 = vld [vmem:[%s10146_s1 + $0x4a8] sm:$0xff]  ;;  %v6573_v37 = vld [vmem:[%s10146_s1 + $0x5e0] sm:$0xff]  ;;  %v6532_v34 = vld [vmem:[%s10146_s1 + $0x498] sm:$0xff] }
 0x4b1   : > { %4746 = vmatpush.msrb.mxu2 %v6555_v36  ;;  %v6549_v17 = vld [vmem:[%s10146_s1 + $0x520] sm:$0xff]  ;;  %v4387_v60 = vld [vmem:[%s10151_s6 + $0x110] sm:$0xff]  ;;  %v6592_v18 = vld [vmem:[%s10146_s1 + $0x678] sm:$0xff] }
 0x4b2   : > { %4586 = vmatpush.msra.mxu3 %v4309_v2  ;;  %4673 = vmatpush.msrb.mxu1 %v6538_v29  ;;  %v6572_v2 = vld [vmem:[%s10146_s1 + $0x5d8] sm:$0xff]  ;;  %v6561_v12 = vld [vmem:[%s10146_s1 + $0x580] sm:$0xff] }
 0x4b3   : > { %4493 = vmatmul.f32.gmra.mxu1 %v4359_v24  ;;  %4747 = vmatpush.msrb.mxu2 %v6554_v47  ;;  %v6531_v24 = vld [vmem:[%s10146_s1 + $0x490] sm:$0xff]  ;;  %v6608_v52 = vld [vmem:[%s10146_s1 + $0x6f8] sm:$0xff] }
 0x4b4   : > { %4587 = vmatpush.msra.mxu3 %v4308_v20  ;;  %4549 = vmatmul.f32.gmra.mxu2 %v4363_v10  ;;  %v4386_v20 = vld [vmem:[%s10151_s6 + $0x108] sm:$0xff] }
 0x4b5   : > { %4674 = vmatpush.msrb.mxu1 %v6537_v53  ;;  %4748 = vmatpush.msrb.mxu2 %v6553_v25  ;;  %v6570_v10 = vld [vmem:[%s10146_s1 + $0x5c8] sm:$0xff]  ;;  %v6607_v53 = vld [vmem:[%s10146_s1 + $0x6f0] sm:$0xff] }
 0x4b6   : > { %4588 = vmatpush.msra.mxu3 %v8621_v27  ;;  %v4365_v27 = vld [vmem:[%s10151_s6 + $0x60] sm:$0xff]  ;;  %v6590_v25 = vld [vmem:[%s10146_s1 + $0x668] sm:$0xff] }
 0x4b7   : > { %4675 = vmatpush.msrb.mxu1 %v6536_v50  ;;  %4749 = vmatpush.msrb.mxu2 %v6552_v5  ;;  %v6606_v50 = vld [vmem:[%s10146_s1 + $0x6e8] sm:$0xff] }
 0x4b8   : > { %4589 = vmatpush.msra.mxu3 %v4306_v8  ;;  %v6571_v8 = vld [vmem:[%s10146_s1 + $0x5d0] sm:$0xff] }
 0x4b9   : > { %4676 = vmatpush.msrb.mxu1 %v6535_v13  ;;  %4750 = vmatpush.msrb.mxu2 %v6551_v54  ;;  %v6588_v13 = vld [vmem:[%s10146_s1 + $0x658] sm:$0xff] }
 0x4ba   : > { %4590 = vmatpush.msra.mxu3 %v8623_v51  ;;  %v4369_v51 = vld [vmem:[%s10151_s6 + $0x80] sm:$0xff]  ;;  %v6604_v54 = vld [vmem:[%s10146_s1 + $0x6d8] sm:$0xff] }
 0x4bb   : > { %4496 = vmatmul.f32.gmra.mxu1 %v4362_v16  ;;  %4751 = vmatpush.msrb.mxu2 %v6550_v6  ;;  %v4388_v16 = vld [vmem:[%s10151_s6 + $0x118] sm:$0xff]  ;;  %v6587_v6 = vld [vmem:[%s10146_s1 + $0x650] sm:$0xff] }
 0x4bc   : > { %4591 = vmatpush.msra.mxu3 %v8605_v57  ;;  %4552 = vmatmul.f32.gmra.mxu2 %v4366_v43  ;;  %v4358_v57 = vld [vmem:[%s10151_s6 + $0x28] sm:$0xff] }
 0x4bd   : > { %4677 = vmatpush.msrb.mxu1 %v6534_v22  ;;  %4752 = vmatpush.msrb.mxu2 %v6549_v17  ;;  %v6586_v17 = vld [vmem:[%s10146_s1 + $0x648] sm:$0xff] }
 0x4be   : > { %4592 = vmatpush.msra.mxu3 %v8595_v39  ;;  %v4368_v39 = vld [vmem:[%s10151_s6 + $0x78] sm:$0xff] }
 0x4bf   : > { %6517 = vmatmul.msk.f32.vlgmr.msra.gmra.mxu3 %vm4430_vm1, %v4355_v31  ;;  %4678 = vmatpush.msrb.mxu1 %v6533_v59  ;;  %v6548_v31 = vld [vmem:[%s10146_s1 + $0x518] sm:$0xff] }
 0x4c0   : > { %4831 = vmatpush.msrb.mxu3 %v6576_v30  ;;  %4753 = vmatpush.msrb.mxu2 %v6548_v31  ;;  %v6601_v31 = vld [vmem:[%s10146_s1 + $0x6c0] sm:$0xff] }
 0x4c1   : > { %4679 = vmatpush.msrb.mxu1 %v6532_v34 }
 0x4c2   : > { %4832 = vmatpush.msrb.mxu3 %v6575_v32 }
 0x4c3   : > { %4499 = vmatmul.f32.gmra.mxu1 %v4365_v27  ;;  %v6547_v27 = vld [vmem:[%s10146_s1 + $0x510] sm:$0xff] }
 0x4c4   : > { %4555 = vmatmul.f32.gmra.mxu2 %v4369_v51  ;;  %4833 = vmatpush.msrb.mxu3 %v6574_v21  ;;  %v6530_v51 = vld [vmem:[%s10146_s1 + $0x488] sm:$0xff]  ;;  %v6589_v21 = vld [vmem:[%s10146_s1 + $0x660] sm:$0xff] }
 0x4c5   : > { %4680 = vmatpush.msrb.mxu1 %v6531_v24  ;;  %4754 = vmatpush.msrb.mxu2 %v6547_v27  ;;  %v6602_v24 = vld [vmem:[%s10146_s1 + $0x6c8] sm:$0xff] }
 0x4c6   : > { %4834 = vmatpush.msrb.mxu3 %v6573_v37  ;;  %v6622_v27 = vld [vmem:[%s10146_s1 + $0x768] sm:$0xff] }
 0x4c7   : > { %6518 = vmatmul.msk.f32.gmra.mxu3 %vm4430_vm1, %v4358_v57  ;;  %v6569_v57 = vld [vmem:[%s10146_s1 + $0x5c0] sm:$0xff]  ;;  %4681 = vmatpush.msrb.mxu1 %v6530_v51  ;;  %v6583_v51 = vld [vmem:[%s10146_s1 + $0x630] sm:$0xff] }
 0x4c8   : > { %4835 = vmatpush.msrb.mxu3 %v6572_v2 }
 0x4ca   : > { %4836 = vmatpush.msrb.mxu3 %v6571_v8  ;;  %v6603_v8 = vld [vmem:[%s10146_s1 + $0x6d0] sm:$0xff] }
 0x4cb   : > { %4502 = vmatmul.f32.gmra.mxu1 %v4368_v39  ;;  %v6529_v39 = vld [vmem:[%s10146_s1 + $0x480] sm:$0xff] }
 0x4cc   : > { %4558 = vmatmul.f32.gmra.mxu2 %v4372_v35  ;;  %4837 = vmatpush.msrb.mxu3 %v6570_v10  ;;  %v6568_v35 = vld [vmem:[%s10146_s1 + $0x5b8] sm:$0xff]  ;;  %v6623_v10 = vld [vmem:[%s10146_s1 + $0x770] sm:$0xff] }
 0x4cd   : > { %4682 = vmatpush.msrb.mxu1 %v6529_v39 }
 0x4ce   : > { %4838 = vmatpush.msrb.mxu3 %v6569_v57 }
 0x4cf   : > { %6519 = vmatmul.msk.f32.gmra.mxu3 %vm4430_vm1, %v4361_v49  ;;  %v6546_v49 = vld [vmem:[%s10146_s1 + $0x508] sm:$0xff]  ;;  %4921 = vmatpush.msra.mxu1 %v6592_v18 }
 0x4d0   : > { %4839 = vmatpush.msrb.mxu3 %v6568_v35  ;;  %4755 = vmatpush.msrb.mxu2 %v6546_v49  ;;  %v6582_v35 = vld [vmem:[%s10146_s1 + $0x628] sm:$0xff]  ;;  %v6600_v49 = vld [vmem:[%s10146_s1 + $0x6b8] sm:$0xff] }
 0x4d3   : > { %4505 = vmatmul.f32.gmra.mxu1 %v4371_v14  ;;  %v6567_v14 = vld [vmem:[%s10146_s1 + $0x5b0] sm:$0xff] }
 0x4d4   : > { %4561 = vmatmul.f32.gmra.mxu2 %v4375_v7  ;;  %v6545_v7 = vld [vmem:[%s10146_s1 + $0x500] sm:$0xff]  ;;  %4840 = vmatpush.msrb.mxu3 %v6567_v14 }
 0x4d5   : > { %4756 = vmatpush.msrb.mxu2 %v6545_v7 }
 0x4d7   : > { %6520 = vmatmul.msk.f32.gmra.mxu3 %vm4430_vm1, %v4364_v23  ;;  %v6566_v23 = vld [vmem:[%s10146_s1 + $0x5a8] sm:$0xff]  ;;  %5011 = vmatpush.msra.mxu2 %v6608_v52 }
 0x4d8   : > { %4841 = vmatpush.msrb.mxu3 %v6566_v23  ;;  %v6621_v23 = vld [vmem:[%s10146_s1 + $0x760] sm:$0xff] }
 0x4d9   : > { %5012 = vmatpush.msra.mxu2 %v6607_v53 }
 0x4db   : > { %4508 = vmatmul.f32.gmra.mxu1 %v4374_v45  ;;  %5013 = vmatpush.msra.mxu2 %v6606_v50 }
 0x4dc   : > { %4564 = vmatmul.f32.gmra.mxu2 %v4378_v48 }
 0x4df   : > { %6521 = vmatmul.msk.f32.gmra.mxu3 %vm4430_vm1, %v4367_v4  ;;  %v6565_v4 = vld [vmem:[%s10146_s1 + $0x5a0] sm:$0xff] }
 0x4e0   : > { %4842 = vmatpush.msrb.mxu3 %v6565_v4 }
 0x4e3   : > { %4511 = vmatmul.f32.gmra.mxu1 %v4377_v15  ;;  %v6564_v15 = vld [vmem:[%s10146_s1 + $0x598] sm:$0xff] }
 0x4e4   : > { %4567 = vmatmul.f32.gmra.mxu2 %v4381_v58  ;;  %4843 = vmatpush.msrb.mxu3 %v6564_v15  ;;  %v6599_v15 = vld [vmem:[%s10146_s1 + $0x6b0] sm:$0xff] }
 0x4e7   : > { %6522 = vmatmul.msk.f32.gmra.mxu3 %vm4430_vm1, %v4370_v44  ;;  %v6563_v44 = vld [vmem:[%s10146_s1 + $0x590] sm:$0xff] }
 0x4e8   : > { %4844 = vmatpush.msrb.mxu3 %v6563_v44 }
 0x4eb   : > { %4514 = vmatmul.f32.gmra.mxu1 %v4380_v46  ;;  %v6562_v46 = vld [vmem:[%s10146_s1 + $0x588] sm:$0xff] }
 0x4ec   : > { %4570 = vmatmul.f32.gmra.mxu2 %v4384_v41  ;;  %4845 = vmatpush.msrb.mxu3 %v6562_v46  ;;  %v6580_v46 = vld [vmem:[%s10146_s1 + $0x618] sm:$0xff] }
 0x4ee   : > { %4846 = vmatpush.msrb.mxu3 %v6561_v12 }
 0x4ef   : > { %6523 = vmatmul.msk.f32.gmra.mxu3 %vm4430_vm1, %v4373_v63 }
 0x4f3   : > { %4517 = vmatmul.f32.gmra.mxu1 %v4383_v33 }
 0x4f4   : > { %4573 = vmatmul.f32.gmra.mxu2 %v4387_v60  ;;  %v6585_v60 = vld [vmem:[%s10146_s1 + $0x640] sm:$0xff] }
 0x4f7   : > { %6524 = vmatmul.msk.f32.gmra.mxu3 %vm4430_vm1, %v4376_v19 }
 0x4fb   : > { %4520 = vmatmul.f32.gmra.mxu1 %v4386_v20 }
 0x4ff   : > { %6525 = vmatmul.msk.f32.gmra.mxu3 %vm4430_vm1, %v4379_v11 }
 0x507   : > { %6526 = vmatmul.msk.f32.gmra.mxu3 %vm4430_vm1, %v4382_v61  ;;  %v6591_v61 = vld [vmem:[%s10146_s1 + $0x670] sm:$0xff] }
 0x508   : > { %4922 = vmatpush.msra.mxu1 %v6591_v61 }
 0x50a   : > { %4923 = vmatpush.msra.mxu1 %v6590_v25 }
 0x50c   : > { %4924 = vmatpush.msra.mxu1 %v6589_v21  ;;  %v6594_v21 = vld [vmem:[%s10146_s1 + $0x688] sm:$0xff] }
 0x50e   : > { %4925 = vmatpush.msra.mxu1 %v6588_v13 }
 0x50f   : > { %6527 = vmatmul.msk.f32.gmra.mxu3 %vm4430_vm1, %v4385_v62 }
 0x510   : > { %4926 = vmatpush.msra.mxu1 %v6587_v6 }
 0x512   : > { %4927 = vmatpush.msra.mxu1 %v6586_v17  ;;  %v6610_v17 = vld [vmem:[%s10146_s1 + $0x708] sm:$0xff] }
 0x514   : > { %4928 = vmatpush.msra.mxu1 %v6585_v60 }
 0x517   : > { %6528 = vmatmul.msk.f32.gmra.mxu3 %vm4430_vm1, %v4388_v16 }
 0x51f   : > { %v8814_v0 = vpop.f32.mrf.mxu2 }
 0x520   : > { %v8803_v56 = vpop.f32.mrf.mxu1 }
 0x521   : > { %v4542_v58 = vadd.f32 %v8814_v0, %v8803_v56  ;;  %v6605_v0 = vld [vmem:[%s10146_s1 + $0x6e0] sm:$0xff] }
 0x522   : > { %5014 = vmatpush.msra.mxu2 %v6605_v0  ;;  %v6613_v0 = vld [vmem:[%s10146_s1 + $0x720] sm:$0xff] }
 0x524   : > { %5015 = vmatpush.msra.mxu2 %v6604_v54  ;;  %v6612_v54 = vld [vmem:[%s10146_s1 + $0x718] sm:$0xff] }
 0x526   : > { %5016 = vmatpush.msra.mxu2 %v6603_v8 }
 0x527   : > { %v4544_v43 = vpop.f32.mrf.mxu2 }
 0x528   : > { %v4491_v9 = vpop.f32.mrf.mxu1  ;;  %5017 = vmatpush.msra.mxu2 %v6602_v24  ;;  %v6609_v24 = vld [vmem:[%s10146_s1 + $0x700] sm:$0xff] }
 0x529   : > { %v4545_v40 = vadd.f32 %v4544_v43, %v4491_v9  ;;  %v6624_v9 = vld [vmem:[%s10146_s1 + $0x778] sm:$0xff] }
 0x52a   : > { %5101 = vmatpush.msra.mxu3 %v6624_v9  ;;  %v6584_v43 = vld [vmem:[%s10146_s1 + $0x638] sm:$0xff]  ;;  %5018 = vmatpush.msra.mxu2 %v6601_v31 }
 0x52b   : > { %4929 = vmatpush.msra.mxu1 %v6584_v43 }
 0x52c   : > { %5102 = vmatpush.msra.mxu3 %v6623_v10  ;;  %5019 = vmatpush.msra.mxu2 %v6600_v49 }
 0x52d   : > { %4930 = vmatpush.msra.mxu1 %v6583_v51 }
 0x52e   : > { %5103 = vmatpush.msra.mxu3 %v6622_v27  ;;  %5020 = vmatpush.msra.mxu2 %v6599_v15  ;;  %v6638_v15 = vld [vmem:[%s10146_s1 + $0x7e8] sm:$0xff] }
 0x52f   : > { %v4547_v48 = vpop.f32.mrf.mxu2  ;;  %4931 = vmatpush.msra.mxu1 %v6582_v35 }
 0x530   : > { %v4494_v45 = vpop.f32.mrf.mxu1  ;;  %5104 = vmatpush.msra.mxu3 %v6621_v23 }
 0x531   : > { %v4548_v3 = vadd.f32 %v4547_v48, %v4494_v45  ;;  %v6581_v48 = vld [vmem:[%s10146_s1 + $0x620] sm:$0xff] }
 0x532   : > { %4932 = vmatpush.msra.mxu1 %v6581_v48  ;;  %v6640_v48 = vld [vmem:[%s10146_s1 + $0x7f8] sm:$0xff] }
 0x534   : > { %4933 = vmatpush.msra.mxu1 %v6580_v46  ;;  %v6636_v46 = vld [vmem:[%s10146_s1 + $0x7d8] sm:$0xff] }
 0x537   : > { %v4550_v28 = vpop.f32.mrf.mxu2 }
 0x538   : > { %v4497_v38 = vpop.f32.mrf.mxu1 }
 0x539   : > { %v4551_v62 = vadd.f32 %v4550_v28, %v4497_v38  ;;  %v6579_v38 = vld [vmem:[%s10146_s1 + $0x610] sm:$0xff] }
 0x53a   : > { %4934 = vmatpush.msra.mxu1 %v6579_v38  ;;  %v6672_v38 = vld [vmem:[%s10146_s1 + $0x8f8] sm:$0xff] }
 0x53f   : > { %v4553_v41 = vpop.f32.mrf.mxu2 }
 0x540   : > { %v4500_v19 = vpop.f32.mrf.mxu1 }
 0x541   : > { %v4554_v5 = vadd.f32 %v4553_v41, %v4500_v19  ;;  %v6578_v19 = vld [vmem:[%s10146_s1 + $0x608] sm:$0xff]  ;;  %v6617_v41 = vld [vmem:[%s10146_s1 + $0x740] sm:$0xff] }
 0x542   : > { %v4594_v26 = vpop.f32.mrf.mxu3  ;;  %4935 = vmatpush.msra.mxu1 %v6578_v19  ;;  %v6632_v19 = vld [vmem:[%s10146_s1 + $0x7b8] sm:$0xff] }
 0x543   : > { %v4595_v55 = vadd.f32 %v4594_v26, %v4542_v58  ;;  %v6620_v58 = vld [vmem:[%s10146_s1 + $0x758] sm:$0xff]  ;;  %v6598_v26 = vld [vmem:[%s10146_s1 + $0x6a8] sm:$0xff] }
 0x544   : > { %5105 = vmatpush.msra.mxu3 %v6620_v58  ;;  %5021 = vmatpush.msra.mxu2 %v6598_v26  ;;  %v6637_v58 = vld [vmem:[%s10146_s1 + $0x7e0] sm:$0xff]  ;;  %v6635_v26 = vld [vmem:[%s10146_s1 + $0x7d0] sm:$0xff] }
 0x545   : > { %4630 = vst [vmem:[#allocation4] sm:$0xff] %v4595_v55  ;;  %v6619_v55 = vld [vmem:[%s10146_s1 + $0x750] sm:$0xff] }
 0x546   : > { %5106 = vmatpush.msra.mxu3 %v6619_v55  ;;  %v6653_v55 = vld [vmem:[%s10146_s1 + $0x860] sm:$0xff] }
 0x547   : > { %v4556_v29 = vpop.f32.mrf.mxu2 }
 0x548   : > { %v4503_v36 = vpop.f32.mrf.mxu1 }
 0x549   : > { %v4557_v16 = vadd.f32 %v4556_v29, %v4503_v36  ;;  %v6595_v36 = vld [vmem:[%s10146_s1 + $0x690] sm:$0xff] }
 0x54a   : > { %v4597_v63 = vpop.f32.mrf.mxu3 }
 0x54b   : > { %v4598_v1 = vadd.f32 %v4597_v63, %v4545_v40  ;;  %v6597_v40 = vld [vmem:[%s10146_s1 + $0x6a0] sm:$0xff]  ;;  %v6618_v63 = vld [vmem:[%s10146_s1 + $0x748] sm:$0xff] }
 0x54c   : > { %5107 = vmatpush.msra.mxu3 %v6618_v63  ;;  %5022 = vmatpush.msra.mxu2 %v6597_v40  ;;  %v6633_v40 = vld [vmem:[%s10146_s1 + $0x7c0] sm:$0xff]  ;;  %v6651_v63 = vld [vmem:[%s10146_s1 + $0x850] sm:$0xff] }
 0x54d   : > { %4631 = vst [vmem:[#allocation4 + $0x8] sm:$0xff] %v4598_v1  ;;  %4757 = vmatmul.f32.vlgmr.msrb.gmra.mxu2 %v4598_v1 }
 0x54e   : > { %5108 = vmatpush.msra.mxu3 %v6617_v41  ;;  %v6671_v41 = vld [vmem:[%s10146_s1 + $0x8f0] sm:$0xff] }
 0x54f   : > { %v4559_v34 = vpop.f32.mrf.mxu2 }
 0x550   : > { %v4506_v59 = vpop.f32.mrf.mxu1 }
 0x551   : > { %v4560_v44 = vadd.f32 %v4559_v34, %v4506_v59 }
 0x552   : > { %v4600_v11 = vpop.f32.mrf.mxu3 }
 0x553   : > { %v8912_v33 = vadd.f32 %v4600_v11, %v4548_v3  ;;  %v6596_v11 = vld [vmem:[%s10146_s1 + $0x698] sm:$0xff] }
 0x554   : > { %v4642_v42 = vld [vmem:[#allocation4 + $0x7] sm:$0xff]  ;;  %5023 = vmatpush.msra.mxu2 %v6596_v11  ;;  %v6631_v11 = vld [vmem:[%s10146_s1 + $0x7b0] sm:$0xff] }
 0x555   : > { %4632 = vst [vmem:[#allocation4 + $0x10] sm:$0xff] %v8912_v33  ;;  %4683 = vmatmul.f32.vlgmr.msrb.gmra.mxu1 %v4642_v42  ;;  %4760 = vmatmul.f32.gmra.mxu2 %v8912_v33  ;;  %v6577_v42 = vld [vmem:[%s10146_s1 + $0x600] sm:$0xff] }
 0x556   : > { %4936 = vmatpush.msra.mxu1 %v6577_v42  ;;  %5024 = vmatpush.msra.mxu2 %v6595_v36  ;;  %v6650_v42 = vld [vmem:[%s10146_s1 + $0x848] sm:$0xff]  ;;  %v6629_v36 = vld [vmem:[%s10146_s1 + $0x7a0] sm:$0xff] }
 0x557   : > { %v4562_v4 = vpop.f32.mrf.mxu2 }
 0x558   : > { %v4509_v45 = vpop.f32.mrf.mxu1  ;;  %5025 = vmatpush.msra.mxu2 %v6594_v21  ;;  %5191 = vmatpush.msrb.mxu1 %v6640_v48  ;;  %v6667_v21 = vld [vmem:[%s10146_s1 + $0x8d0] sm:$0xff]  ;;  %v6662_v48 = vld [vmem:[%s10146_s1 + $0x8a8] sm:$0xff] }
 0x559   : > { %v4563_v18 = vadd.f32 %v4562_v4, %v4509_v45  ;;  %v6639_v4 = vld [vmem:[%s10146_s1 + $0x7f0] sm:$0xff] }
 0x55a   : > { %v4603_v47 = vpop.f32.mrf.mxu3  ;;  %5192 = vmatpush.msrb.mxu1 %v6639_v4 }
 0x55b   : > { %v8928_v30 = vadd.f32 %v4603_v47, %v4551_v62  ;;  %v6616_v62 = vld [vmem:[%s10146_s1 + $0x738] sm:$0xff]  ;;  %v6615_v47 = vld [vmem:[%s10146_s1 + $0x730] sm:$0xff] }
 0x55c   : > { %v8930_v32 = vld [vmem:[#allocation4 + $0xf] sm:$0xff]  ;;  %5109 = vmatpush.msra.mxu3 %v6616_v62  ;;  %5193 = vmatpush.msrb.mxu1 %v6638_v15  ;;  %v6660_v15 = vld [vmem:[%s10146_s1 + $0x898] sm:$0xff] }
 0x55d   : > { %v4806_v56 = vld [vmem:[#allocation4 + $0x9] sm:$0xff]  ;;  %4633 = vst [vmem:[#allocation4 + $0x18] sm:$0xff] %v8928_v30  ;;  %4686 = vmatmul.f32.gmra.mxu1 %v8930_v32  ;;  %4763 = vmatmul.f32.gmra.mxu2 %v8928_v30 }
 0x55e   : > { %4847 = vmatmul.f32.vlgmr.msrb.gmra.mxu3 %v4806_v56  ;;  %v6614_v56 = vld [vmem:[%s10146_s1 + $0x728] sm:$0xff]  ;;  %5194 = vmatpush.msrb.mxu1 %v6637_v58  ;;  %v6649_v62 = vld [vmem:[%s10146_s1 + $0x840] sm:$0xff] }
 0x55f   : > { %v4565_v52 = vpop.f32.mrf.mxu2  ;;  %5110 = vmatpush.msra.mxu3 %v6615_v47  ;;  %v6668_v47 = vld [vmem:[%s10146_s1 + $0x8d8] sm:$0xff]  ;;  %v6641_v58 = vld [vmem:[%s10146_s1 + $0x800] sm:$0xff] }
 0x560   : > { %v4512_v61 = vpop.f32.mrf.mxu1  ;;  %5195 = vmatpush.msrb.mxu1 %v6636_v46  ;;  %v6658_v46 = vld [vmem:[%s10146_s1 + $0x888] sm:$0xff] }
 0x561   : > { %5111 = vmatpush.msra.mxu3 %v6614_v56  ;;  %v4566_v13 = vadd.f32 %v4565_v52, %v4512_v61  ;;  %v6630_v61 = vld [vmem:[%s10146_s1 + $0x7a8] sm:$0xff]  ;;  %v6669_v52 = vld [vmem:[%s10146_s1 + $0x8e0] sm:$0xff]  ;;  %v6628_v56 = vld [vmem:[%s10146_s1 + $0x798] sm:$0xff] }
 0x562   : > { %v4606_v22 = vpop.f32.mrf.mxu3  ;;  %5196 = vmatpush.msrb.mxu1 %v6635_v26  ;;  %v6657_v26 = vld [vmem:[%s10146_s1 + $0x880] sm:$0xff] }
 0x563   : > { %v8956_v37 = vadd.f32 %v4606_v22, %v4554_v5  ;;  %v6593_v5 = vld [vmem:[%s10146_s1 + $0x680] sm:$0xff]  ;;  %5112 = vmatpush.msra.mxu3 %v6613_v0  ;;  %v6611_v22 = vld [vmem:[%s10146_s1 + $0x710] sm:$0xff] }
 0x564   : > { %v8958_v2 = vld [vmem:[#allocation4 + $0x17] sm:$0xff]  ;;  %5026 = vmatpush.msra.mxu2 %v6593_v5 }
 0x565   : > { %v8960_v20 = vld [vmem:[#allocation4 + $0x11] sm:$0xff]  ;;  %4634 = vst [vmem:[#allocation4 + $0x20] sm:$0xff] %v8956_v37  ;;  %4689 = vmatmul.f32.gmra.mxu1 %v8958_v2  ;;  %4766 = vmatmul.f32.gmra.mxu2 %v8956_v37 }
 0x566   : > { %4850 = vmatmul.f32.gmra.mxu3 %v8960_v20  ;;  %v6647_v0 = vld [vmem:[%s10146_s1 + $0x830] sm:$0xff] }
 0x567   : > { %v4568_v34 = vpop.f32.mrf.mxu2  ;;  %5113 = vmatpush.msra.mxu3 %v6612_v54  ;;  %v6627_v5 = vld [vmem:[%s10146_s1 + $0x790] sm:$0xff]  ;;  %v6646_v54 = vld [vmem:[%s10146_s1 + $0x828] sm:$0xff] }
 0x568   : > { %v4515_v6 = vpop.f32.mrf.mxu1 }
 0x569   : > { %5114 = vmatpush.msra.mxu3 %v6611_v22  ;;  %v4569_v10 = vadd.f32 %v4568_v34, %v4515_v6  ;;  %v6626_v6 = vld [vmem:[%s10146_s1 + $0x788] sm:$0xff]  ;;  %v6665_v22 = vld [vmem:[%s10146_s1 + $0x8c0] sm:$0xff] }
 0x56a   : > { %v4609_v57 = vpop.f32.mrf.mxu3 }
 0x56b   : > { %v8996_v39 = vadd.f32 %v4609_v57, %v4557_v16  ;;  %5115 = vmatpush.msra.mxu3 %v6610_v17  ;;  %v6645_v17 = vld [vmem:[%s10146_s1 + $0x820] sm:$0xff] }
 0x56c   : > { %v9004_v14 = vld [vmem:[#allocation4 + $0x1f] sm:$0xff] }
 0x56d   : > { %v9006_v7 = vld [vmem:[#allocation4 + $0x19] sm:$0xff]  ;;  %4635 = vst [vmem:[#allocation4 + $0x28] sm:$0xff] %v8996_v39  ;;  %4692 = vmatmul.f32.gmra.mxu1 %v9004_v14  ;;  %4769 = vmatmul.f32.gmra.mxu2 %v8996_v39 }
 0x56e   : > { %4853 = vmatmul.f32.gmra.mxu3 %v9006_v7 }
 0x56f   : > { %5116 = vmatpush.msra.mxu3 %v6609_v24  ;;  %v4571_v57 = vpop.f32.mrf.mxu2  ;;  %v6664_v24 = vld [vmem:[%s10146_s1 + $0x8b8] sm:$0xff] }
 0x570   : > { %v4518_v51 = vpop.f32.mrf.mxu1 }
 0x571   : > { %v4572_v35 = vadd.f32 %v4571_v57, %v4518_v51  ;;  %5371 = vmatpush.msrb.mxu3 %v6672_v38  ;;  %v6663_v51 = vld [vmem:[%s10146_s1 + $0x8b0] sm:$0xff] }
 0x572   : > { %v4612_v12 = vpop.f32.mrf.mxu3 }
 0x573   : > { %v9036_v28 = vadd.f32 %v4612_v12, %v4560_v44  ;;  %v6654_v44 = vld [vmem:[%s10146_s1 + $0x868] sm:$0xff]  ;;  %v6652_v12 = vld [vmem:[%s10146_s1 + $0x858] sm:$0xff]  ;;  %5372 = vmatpush.msrb.mxu3 %v6671_v41 }
 0x574   : > { %v9044_v1 = vld [vmem:[#allocation4 + $0x27] sm:$0xff] }
 0x575   : > { %v9046_v3 = vld [vmem:[#allocation4 + $0x21] sm:$0xff]  ;;  %4636 = vst [vmem:[#allocation4 + $0x30] sm:$0xff] %v9036_v28  ;;  %4695 = vmatmul.f32.gmra.mxu1 %v9044_v1  ;;  %4772 = vmatmul.f32.gmra.mxu2 %v9036_v28 }
 0x576   : > { %4856 = vmatmul.f32.gmra.mxu3 %v9046_v3 }
 0x578   : > { %v4521_v34 = vpop.f32.mrf.mxu1 }
 0x57a   : > { %v4615_v29 = vpop.f32.mrf.mxu3 }
 0x57b   : > { %v9073_v53 = vadd.f32 %v4615_v29, %v4563_v18  ;;  %v6670_v18 = vld [vmem:[%s10146_s1 + $0x8e8] sm:$0xff]  ;;  %v6648_v29 = vld [vmem:[%s10146_s1 + $0x838] sm:$0xff] }
 0x57c   : > { %v9078_v50 = vld [vmem:[#allocation4 + $0x2f] sm:$0xff]  ;;  %5373 = vmatpush.msrb.mxu3 %v6670_v18 }
 0x57d   : > { %v9080_v25 = vld [vmem:[#allocation4 + $0x29] sm:$0xff]  ;;  %4637 = vst [vmem:[#allocation4 + $0x38] sm:$0xff] %v9073_v53  ;;  %4698 = vmatmul.f32.gmra.mxu1 %v9078_v50  ;;  %4775 = vmatmul.f32.gmra.mxu2 %v9073_v53 }
 0x57e   : > { %4859 = vmatmul.f32.gmra.mxu3 %v9080_v25 }
 0x57f   : > { %5374 = vmatpush.msrb.mxu3 %v6669_v52 }
 0x581   : > { %5375 = vmatpush.msrb.mxu3 %v6668_v47 }
 0x582   : > { %v4618_v59 = vpop.f32.mrf.mxu3 }
 0x583   : > { %v9101_v8 = vadd.f32 %v4618_v59, %v4566_v13  ;;  %v6666_v13 = vld [vmem:[%s10146_s1 + $0x8c8] sm:$0xff]  ;;  %5376 = vmatpush.msrb.mxu3 %v6667_v21  ;;  %v6625_v59 = vld [vmem:[%s10146_s1 + $0x780] sm:$0xff] }
 0x584   : > { %v9106_v60 = vld [vmem:[#allocation4 + $0x37] sm:$0xff] }
 0x585   : > { %v9108_v9 = vld [vmem:[#allocation4 + $0x31] sm:$0xff]  ;;  %4638 = vst [vmem:[#allocation4 + $0x40] sm:$0xff] %v9101_v8  ;;  %4701 = vmatmul.f32.gmra.mxu1 %v9106_v60  ;;  %4778 = vmatmul.f32.gmra.mxu2 %v9101_v8 }
 0x586   : > { %4862 = vmatmul.f32.gmra.mxu3 %v9108_v9 }
 0x587   : > { %5377 = vmatpush.msrb.mxu3 %v6666_v13 }
 0x589   : > { %5378 = vmatpush.msrb.mxu3 %v6665_v22 }
 0x58a   : > { %v4621_v16 = vpop.f32.mrf.mxu3 }
 0x58b   : > { %v9117_v43 = vadd.f32 %v4621_v16, %v4569_v10  ;;  %v6644_v10 = vld [vmem:[%s10146_s1 + $0x818] sm:$0xff]  ;;  %v4574_v16 = vpop.f32.mrf.mxu2  ;;  %5379 = vmatpush.msrb.mxu3 %v6664_v24 }
 0x58c   : > { %v9119_v31 = vld [vmem:[#allocation4 + $0x3f] sm:$0xff] }
 0x58d   : > { %v9121_v27 = vld [vmem:[#allocation4 + $0x39] sm:$0xff]  ;;  %4704 = vmatmul.f32.gmra.mxu1 %v9119_v31  ;;  %4639 = vst [vmem:[#allocation4 + $0x48] sm:$0xff] %v9117_v43  ;;  %5027 = vmatmul.f32.vlgmr.msra.gmra.mxu2 %v8912_v33 }
 0x58e   : > { %4865 = vmatmul.f32.gmra.mxu3 %v9121_v27  ;;  %v6656_v33 = vld [vmem:[%s10146_s1 + $0x878] sm:$0xff] }
 0x58f   : > { %5281 = vmatpush.msrb.mxu2 %v6656_v33  ;;  %5380 = vmatpush.msrb.mxu3 %v6663_v51  ;;  %v6661_v33 = vld [vmem:[%s10146_s1 + $0x8a0] sm:$0xff] }
 0x591   : > { %5381 = vmatpush.msrb.mxu3 %v6662_v48 }
 0x592   : > { %v4624_v49 = vpop.f32.mrf.mxu3 }
 0x593   : > { %v9127_v23 = vadd.f32 %v4624_v49, %v4572_v35  ;;  %v4575_v35 = vadd.f32 %v4574_v16, %v4521_v34  ;;  %v6643_v49 = vld [vmem:[%s10146_s1 + $0x810] sm:$0xff]  ;;  %5382 = vmatpush.msrb.mxu3 %v6661_v33 }
 0x594   : > { %v9129_v45 = vld [vmem:[#allocation4 + $0x41] sm:$0xff] }
 0x595   : > { %4937 = vmatmul.f32.vlgmr.msra.gmra.mxu1 %v8930_v32  ;;  %4640 = vst [vmem:[#allocation4 + $0x50] sm:$0xff] %v9127_v23  ;;  %5030 = vmatmul.f32.gmra.mxu2 %v8928_v30  ;;  %v6655_v32 = vld [vmem:[%s10146_s1 + $0x870] sm:$0xff] }
 0x596   : > { %4868 = vmatmul.f32.gmra.mxu3 %v9129_v45  ;;  %5282 = vmatpush.msrb.mxu2 %v6655_v32  ;;  %v6642_v32 = vld [vmem:[%s10146_s1 + $0x808] sm:$0xff] }
 0x597   : > { %5383 = vmatpush.msrb.mxu3 %v6660_v15 }
 0x598   : > { %5283 = vmatpush.msrb.mxu2 %v6654_v44  ;;  %v6659_v44 = vld [vmem:[%s10146_s1 + $0x890] sm:$0xff] }
 0x599   : > { %5384 = vmatpush.msrb.mxu3 %v6659_v44 }
 0x59a   : > { %5284 = vmatpush.msrb.mxu2 %v6653_v55  ;;  %v4627_v57 = vpop.f32.mrf.mxu3  ;;  %v4903_v55 = vld [vmem:[#allocation4 + $0x47] sm:$0xff] }
 0x59b   : > { %v4628_v4 = vadd.f32 %v4627_v57, %v4575_v35  ;;  %5385 = vmatpush.msrb.mxu3 %v6658_v46  ;;  %v9397_v46 = vpop.permute.xlu2 %5510 }
 0x59c   : > { %5285 = vmatpush.msrb.mxu2 %v6652_v12  ;;  %v5083_v12 = vld [vmem:[#allocation4 + $0x49] sm:$0xff] }
 0x59d   : > { %4940 = vmatmul.f32.gmra.mxu1 %v8958_v2  ;;  %5033 = vmatmul.f32.gmra.mxu2 %v8956_v37  ;;  %4641 = vst [vmem:[#allocation4 + $0x58] sm:$0xff] %v4628_v4  ;;  %v9391_v4 = vpop.permute.xlu0 %5505 }
 0x59e   : > { %5117 = vmatmul.f32.vlgmr.msra.gmra.mxu3 %v8960_v20  ;;  %v6634_v20 = vld [vmem:[%s10146_s1 + $0x7c8] sm:$0xff]  ;;  %5286 = vmatpush.msrb.mxu2 %v6651_v63 }
 0x59f   : > { %5197 = vmatpush.msrb.mxu1 %v6634_v20  ;;  %5386 = vmatpush.msrb.mxu3 %v6657_v26 }
 0x5a0   : > { %5287 = vmatpush.msrb.mxu2 %v6650_v42 }
 0x5a1   : > { %5198 = vmatpush.msrb.mxu1 %v6633_v40 }
 0x5a2   : > { %5288 = vmatpush.msrb.mxu2 %v6649_v62 }
 0x5a3   : > { %5199 = vmatpush.msrb.mxu1 %v6632_v19 }
 0x5a4   : > { %5289 = vmatpush.msrb.mxu2 %v6648_v29  ;;  %v5353_v18 = vld [vmem:[#allocation4 + $0x51] sm:$0xff] }
 0x5a5   : > { %4943 = vmatmul.f32.gmra.mxu1 %v9004_v14  ;;  %5036 = vmatmul.f32.gmra.mxu2 %v8996_v39 }
 0x5a6   : > { %5120 = vmatmul.f32.gmra.mxu3 %v9006_v7  ;;  %5200 = vmatpush.msrb.mxu1 %v6631_v11 }
 0x5a7   : > { %5290 = vmatpush.msrb.mxu2 %v6647_v0 }
 0x5a8   : > { %5201 = vmatpush.msrb.mxu1 %v6630_v61 }
 0x5a9   : > { %5291 = vmatpush.msrb.mxu2 %v6646_v54 }
 0x5aa   : > { %5202 = vmatpush.msrb.mxu1 %v6629_v36 }
 0x5ab   : > { %5292 = vmatpush.msrb.mxu2 %v6645_v17 }
 0x5ac   : > { %5203 = vmatpush.msrb.mxu1 %v6628_v56 }
 0x5ad   : > { %4946 = vmatmul.f32.gmra.mxu1 %v9044_v1  ;;  %5039 = vmatmul.f32.gmra.mxu2 %v9036_v28 }
 0x5ae   : > { %5123 = vmatmul.f32.gmra.mxu3 %v9046_v3  ;;  %5204 = vmatpush.msrb.mxu1 %v6627_v5 }
 0x5af   : > { %5293 = vmatpush.msrb.mxu2 %v6644_v10 }
 0x5b0   : > { %5205 = vmatpush.msrb.mxu1 %v6626_v6 }
 0x5b1   : > { %5294 = vmatpush.msrb.mxu2 %v6643_v49 }
 0x5b2   : > { %5206 = vmatpush.msrb.mxu1 %v6625_v59 }
 0x5b3   : > { %5295 = vmatpush.msrb.mxu2 %v6642_v32 }
 0x5b5   : > { %4949 = vmatmul.f32.gmra.mxu1 %v9078_v50  ;;  %5042 = vmatmul.f32.gmra.mxu2 %v9073_v53 }
 0x5b6   : > { %5126 = vmatmul.f32.gmra.mxu3 %v9080_v25  ;;  %5296 = vmatpush.msrb.mxu2 %v6641_v58 }
 0x5bd   : > { %4952 = vmatmul.f32.gmra.mxu1 %v9106_v60  ;;  %5045 = vmatmul.f32.gmra.mxu2 %v9101_v8 }
 0x5be   : > { %5129 = vmatmul.f32.gmra.mxu3 %v9108_v9 }
 0x5c5   : > { %4955 = vmatmul.f32.gmra.mxu1 %v9119_v31  ;;  %5048 = vmatmul.f32.gmra.mxu2 %v9117_v43 }
 0x5c6   : > { %5132 = vmatmul.f32.gmra.mxu3 %v9121_v27 }
 0x5cd   : > { %4958 = vmatmul.f32.gmra.mxu1 %v4903_v55  ;;  %5297 = vmatmul.f32.vlgmr.msrb.gmra.mxu2 %v8928_v30 }
 0x5ce   : > { %5135 = vmatmul.f32.gmra.mxu3 %v9129_v45 }
 0x5d0   : > { %v9299_v20 = vpop.f32.mrf.mxu2 }
 0x5d2   : > { %v9301_v38 = vpop.f32.mrf.mxu1 }
 0x5d3   : > { %v4790_v57 = vadd.f32 %v9299_v20, %v9301_v38 }
 0x5d5   : > { %5207 = vmatmul.f32.vlgmr.msrb.gmra.mxu1 %v8958_v2  ;;  %5300 = vmatmul.f32.gmra.mxu2 %v8956_v37 }
 0x5d6   : > { %5138 = vmatmul.f32.gmra.mxu3 %v5083_v12 }
 0x5d8   : > { %v9305_v40 = vpop.f32.mrf.mxu2 }
 0x5da   : > { %v9307_v63 = vpop.f32.mrf.mxu1 }
 0x5db   : > { %v4791_v15 = vadd.f32 %v9305_v40, %v9307_v63  ;;  %v9407_v40 = vld [vmem:[%s10147_s2 + $0x1] ss:$0 sm:$0xff] }
 0x5dd   : > { %5210 = vmatmul.f32.gmra.mxu1 %v9004_v14  ;;  %5303 = vmatmul.f32.gmra.mxu2 %v8996_v39 }
 0x5de   : > { %5387 = vmatmul.f32.vlgmr.msrb.gmra.mxu3 %v9006_v7 }
 0x5e0   : > { %v9314_v19 = vpop.f32.mrf.mxu2 }
 0x5e1   : > { %v9312_v30 = vpop.f32.mrf.mxu3 }
 0x5e2   : > { %v9316_v41 = vpop.f32.mrf.mxu1  ;;  %v4880_v49 = vadd.f32 %v9312_v30, %v4790_v57  ;;  %v9411_v57 = vpop.permute.xlu2 %5495 }
 0x5e5   : > { %5213 = vmatmul.f32.gmra.mxu1 %v9044_v1  ;;  %5306 = vmatmul.f32.gmra.mxu2 %v9036_v28 }
 0x5e6   : > { %5390 = vmatmul.f32.gmra.mxu3 %v9046_v3 }
 0x5e8   : > { %v9323_v2 = vpop.f32.mrf.mxu2 }
 0x5e9   : > { %v9321_v37 = vpop.f32.mrf.mxu3 }
 0x5ea   : > { %v9325_v14 = vpop.f32.mrf.mxu1  ;;  %v4881_v26 = vadd.f32 %v9321_v37, %v4791_v15 }
 0x5ed   : > { %5216 = vmatmul.f32.gmra.mxu1 %v9078_v50  ;;  %5309 = vmatmul.f32.gmra.mxu2 %v9073_v53 }
 0x5ee   : > { %5393 = vmatmul.f32.gmra.mxu3 %v9080_v25 }
 0x5f0   : > { %v9332_v7 = vpop.f32.mrf.mxu2 }
 0x5f1   : > { %v9330_v39 = vpop.f32.mrf.mxu3 }
 0x5f2   : > { %v9334_v1 = vpop.f32.mrf.mxu1 }
 0x5f5   : > { %5219 = vmatmul.f32.gmra.mxu1 %v9106_v60  ;;  %5312 = vmatmul.f32.gmra.mxu2 %v9101_v8 }
 0x5f6   : > { %5396 = vmatmul.f32.gmra.mxu3 %v9108_v9 }
 0x5f8   : > { %v9341_v3 = vpop.f32.mrf.mxu2 }
 0x5f9   : > { %v9339_v28 = vpop.f32.mrf.mxu3 }
 0x5fa   : > { %v9343_v50 = vpop.f32.mrf.mxu1 }
 0x5fd   : > { %5222 = vmatmul.f32.gmra.mxu1 %v9119_v31  ;;  %5315 = vmatmul.f32.gmra.mxu2 %v9117_v43  ;;  %v5173_v31 = vld [vmem:[#allocation4 + $0x4f] sm:$0xff] }
 0x5fe   : > { %5399 = vmatmul.f32.gmra.mxu3 %v9121_v27 }
 0x600   : > { %v9350_v25 = vpop.f32.mrf.mxu2 }
 0x601   : > { %v9348_v53 = vpop.f32.mrf.mxu3 }
 0x602   : > { %v9352_v60 = vpop.f32.mrf.mxu1 }
 0x605   : > { %5225 = vmatmul.f32.gmra.mxu1 %v4903_v55  ;;  %5318 = vmatmul.f32.gmra.mxu2 %v9127_v23 }
 0x606   : > { %5402 = vmatmul.f32.gmra.mxu3 %v9129_v45 }
 0x608   : > { %v4779_v9 = vpop.f32.mrf.mxu2 }
 0x609   : > { %v9356_v8 = vpop.f32.mrf.mxu3 }
 0x60a   : > { %v4705_v11 = vpop.f32.mrf.mxu1 }
 0x60b   : > { %v4797_v61 = vadd.f32 %v4779_v9, %v4705_v11  ;;  %v9400_v9 = vpop.permute.xlu0 %5490  ;;  %v4792_v11 = vadd.f32 %v9314_v19, %v9316_v41 }
 0x60d   : > { %5228 = vmatmul.f32.gmra.mxu1 %v5173_v31  ;;  %v4882_v37 = vadd.f32 %v9330_v39, %v4792_v11  ;;  %v5481_v11 = vpop.permute.xlu2 %5480 }
 0x60e   : > { %5405 = vmatmul.f32.gmra.mxu3 %v5083_v12 }
 0x610   : > { %v5028_v43 = vpop.f32.mrf.mxu2 }
 0x611   : > { %v9358_v27 = vpop.f32.mrf.mxu3 }
 0x612   : > { %v4938_v42 = vpop.f32.mrf.mxu1 }
 0x613   : > { %v4970_v32 = vadd.f32 %v4938_v42, %v4880_v49  ;;  %v4793_v49 = vadd.f32 %v9323_v2, %v9325_v14  ;;  %v4794_v2 = vadd.f32 %v9332_v7, %v9334_v1 }
 0x615   : > { %v5060_v58 = vadd.f32 %v5028_v43, %v4970_v32  ;;  %v4883_v39 = vadd.f32 %v9339_v28, %v4793_v49 }
 0x616   : > { %5408 = vmatmul.f32.gmra.mxu3 %v5353_v18 }
 0x618   : > { %v5031_v45 = vpop.f32.mrf.mxu2 }
 0x619   : > { %v4869_v62 = vpop.f32.mrf.mxu3 }
 0x61a   : > { %v9360_v52 = vadd.f32 %v4869_v62, %v4797_v61  ;;  %v4941_v36 = vpop.f32.mrf.mxu1 }
 0x61b   : > { %v4971_v12 = vadd.f32 %v4941_v36, %v4881_v26 }
 0x61d   : > { %v5061_v31 = vadd.f32 %v5031_v45, %v4971_v12  ;;  %v5476_v45 = vpop.permute.xlu0 %5475  ;;  %v9417_v12 = vpop.permute.xlu1 %5500 }
 0x620   : > { %v5034_v47 = vpop.f32.mrf.mxu2 }
 0x621   : > { %v5118_v23 = vpop.f32.mrf.mxu3 }
 0x622   : > { %v4944_v29 = vpop.f32.mrf.mxu1  ;;  %v5150_v55 = vadd.f32 %v5118_v23, %v5060_v58 }
 0x623   : > { %v4972_v62 = vadd.f32 %v4944_v29, %v4882_v37 }
 0x625   : > { %v5486_v1 = vpop.permute.xlu1 %5485 }
 0x628   : > { %v9362_v21 = vpop.f32.mrf.mxu2 }
 0x629   : > { %v5121_v56 = vpop.f32.mrf.mxu3 }
 0x62a   : > { %v4947_v0 = vpop.f32.mrf.mxu1  ;;  %v5151_v43 = vadd.f32 %v5121_v56, %v5061_v31 }
 0x62b   : > { %v4973_v26 = vadd.f32 %v4947_v0, %v4883_v39  ;;  %v4796_v39 = vadd.f32 %v9350_v25, %v9352_v60 }
 0x62d   : > { %v5063_v14 = vadd.f32 %v9362_v21, %v4973_v26  ;;  %v4795_v21 = vadd.f32 %v9341_v3, %v9343_v50 }
 0x630   : > { %v9364_v13 = vpop.f32.mrf.mxu2 }
 0x631   : > { %v5124_v5 = vpop.f32.mrf.mxu3 }
 0x632   : > { %v9366_v54 = vpop.f32.mrf.mxu1 }
 0x638   : > { %v9370_v22 = vpop.f32.mrf.mxu2 }
 0x639   : > { %v9368_v6 = vpop.f32.mrf.mxu3 }
 0x63a   : > { %v9372_v59 = vpop.f32.mrf.mxu1  ;;  %v5153_v0 = vadd.f32 %v9368_v6, %v5063_v14  ;;  %v4885_v6 = vadd.f32 %v9356_v8, %v4795_v21 }
 0x63c   : > { %v4975_v3 = vadd.f32 %v9372_v59, %v4885_v6 }
 0x640   : > { %v9376_v17 = vpop.f32.mrf.mxu2 }
 0x641   : > { %v9374_v34 = vpop.f32.mrf.mxu3 }
 0x642   : > { %v9378_v24 = vpop.f32.mrf.mxu1 }
 0x648   : > { %v9382_v16 = vpop.f32.mrf.mxu2 }
 0x649   : > { %v9380_v10 = vpop.f32.mrf.mxu3 }
 0x64a   : > { %v9384_v51 = vpop.f32.mrf.mxu1 }
 0x650   : > { %v5298_v48 = vpop.f32.mrf.mxu2 }
 0x651   : > { %v9388_v35 = vpop.f32.mrf.mxu3 }
 0x652   : > { %v5208_v33 = vpop.f32.mrf.mxu1 }
 0x653   : > { %v5240_v30 = vadd.f32 %v5208_v33, %v5150_v55 }
 0x655   : > { %v5330_v42 = vadd.f32 %v5298_v48, %v5240_v30  ;;  %v5062_v48 = vadd.f32 %v5034_v47, %v4972_v62 }
 0x657   : > { %v5152_v56 = vadd.f32 %v5124_v5, %v5062_v48 }
 0x658   : > { %v5301_v38 = vpop.f32.mrf.mxu2 }
 0x659   : > { %v9395_v44 = vpop.f32.mrf.mxu3 }
 0x65a   : > { %v5211_v20 = vpop.f32.mrf.mxu1 }
 0x65b   : > { %v5241_v36 = vadd.f32 %v5211_v20, %v5151_v43 }
 0x65d   : > { %v5331_v33 = vadd.f32 %v5301_v38, %v5241_v36  ;;  %v4884_v38 = vadd.f32 %v9348_v53, %v4794_v2 }
 0x65f   : > { %v4974_v37 = vadd.f32 %v9366_v54, %v4884_v38 }
 0x660   : > { %v5304_v19 = vpop.f32.mrf.mxu2 }
 0x661   : > { %v5388_v63 = vpop.f32.mrf.mxu3 }
 0x662   : > { %v5420_v18 = vadd.f32 %v5388_v63, %v5330_v42  ;;  %v5214_v61 = vpop.f32.mrf.mxu1 }
 0x663   : > { %v5242_v55 = vadd.f32 %v5214_v61, %v5152_v56  ;;  %v5064_v61 = vadd.f32 %v9364_v13, %v4974_v37 }
 0x664   : > { %v5449_v23 = vadd.f32 %v9407_v40, %v5420_v18 }
 0x665   : > { %v5332_v47 = vadd.f32 %v5304_v19, %v5242_v55  ;;  %v5154_v54 = vadd.f32 %v9374_v34, %v5064_v61  ;;  %v5065_v34 = vadd.f32 %v9370_v22, %v4975_v3 }
 0x666   : > { %v5457_v41 = vmax.f32 %v5449_v23, 0.0 }
 0x667   : > { %v5155_v59 = vadd.f32 %v9380_v10, %v5065_v34  ;;  %v4977_v10 = vadd.f32 %v9384_v51, %v9360_v52 }
 0x668   : > { %v5513_v32 = vmul.f32 %v5476_v45, %v5457_v41  ;;  %v5307_v31 = vpop.f32.mrf.mxu2 }
 0x669   : > { %v5391_v15 = vpop.f32.mrf.mxu3 }
 0x66a   : > { %5521 = vst [vmem:[#allocation2] sm:$0xff] %v5513_v32  ;;  %v5421_v29 = vadd.f32 %v5391_v15, %v5331_v33  ;;  %v5217_v58 = vpop.f32.mrf.mxu1 }
 0x66b   : > { %v5243_v43 = vadd.f32 %v5217_v58, %v5153_v0  ;;  %v4886_v58 = vadd.f32 %v9358_v27, %v4796_v39  ;;  %v5067_v0 = vadd.f32 %v9382_v16, %v4977_v10 }
 0x66c   : > { %v5450_v20 = vadd.f32 %v9407_v40, %v5421_v29 }
 0x66d   : > { %v5333_v62 = vadd.f32 %v5307_v31, %v5243_v43 }
 0x66e   : > { %v5458_v30 = vmax.f32 %v5450_v20, 0.0  ;;  %v4976_v20 = vadd.f32 %v9378_v24, %v4886_v58 }
 0x670   : > { %v9422_v28 = vmul.f32 %v5481_v11, %v5458_v30  ;;  %v5310_v36 = vpop.f32.mrf.mxu2  ;;  %v5066_v60 = vadd.f32 %v9376_v17, %v4976_v20 }
 0x671   : > { %v5394_v5 = vpop.f32.mrf.mxu3 }
 0x672   : > { %5522 = vst [vmem:[#allocation2 + $0x8] sm:$0xff] %v9422_v28  ;;  %v5422_v42 = vadd.f32 %v5394_v5, %v5332_v47  ;;  %v5220_v63 = vpop.f32.mrf.mxu1  ;;  %v5156_v27 = vadd.f32 %v9388_v35, %v5066_v60  ;;  %v5157_v35 = vadd.f32 %v9395_v44, %v5067_v0 }
 0x673   : > { %v5244_v50 = vadd.f32 %v5220_v63, %v5154_v54 }
 0x674   : > { %v5451_v18 = vadd.f32 %v9407_v40, %v5422_v42 }
 0x675   : > { %v5334_v56 = vadd.f32 %v5310_v36, %v5244_v50 }
 0x676   : > { %v5459_v7 = vmax.f32 %v5451_v18, 0.0 }
 0x678   : > { %v9432_v53 = vmul.f32 %v5486_v1, %v5459_v7  ;;  %v5313_v55 = vpop.f32.mrf.mxu2 }
 0x679   : > { %v5397_v23 = vpop.f32.mrf.mxu3  ;;  %v5537_v19 = vld [vmem:[#allocation2 + $0x1] sm:$0xff] }
 0x67a   : > { %v5545_v41 = vld [vmem:[#allocation2 + $0x2] sm:$0xff]  ;;  %5523 = vst [vmem:[#allocation2 + $0x10] sm:$0xff] %v9432_v53  ;;  %v5423_v45 = vadd.f32 %v5397_v23, %v5333_v62  ;;  %v5559_v49 = vmax.f32 %v5513_v32, %v5537_v19  ;;  %v5223_v8 = vpop.f32.mrf.mxu1 }
 0x67b   : > { %v5567_v48 = vmax.f32 %v5545_v41, %v9422_v28  ;;  %v5245_v30 = vadd.f32 %v5223_v8, %v5155_v59  ;;  %v5554_v59 = vld [vmem:[#allocation2 + $0x41] sm:$0xff] }
 0x67c   : > { %v5452_v13 = vadd.f32 %v9407_v40, %v5423_v45 }
 0x67d   : > { %v9440_v33 = vmax.f32 %v5559_v49, %v5567_v48  ;;  %v5335_v22 = vadd.f32 %v5313_v55, %v5245_v30  ;;  %v5557_v55 = vld [vmem:[#allocation2 + $0x49] sm:$0xff] }
 0x67e   : > { %v5460_v15 = vmax.f32 %v5452_v13, 0.0 }
 0x680   : > { %v5516_v29 = vmul.f32 %v9400_v9, %v5460_v15  ;;  %v5316_v5 = vpop.f32.mrf.mxu2 }
 0x681   : > { %v5400_v32 = vpop.f32.mrf.mxu3 }
 0x682   : > { %v5424_v26 = vadd.f32 %v5400_v32, %v5334_v56  ;;  %5524 = vst [vmem:[#allocation2 + $0x18] sm:$0xff] %v5516_v29  ;;  %v5226_v25 = vpop.f32.mrf.mxu1 }
 0x683   : > { %v5246_v47 = vadd.f32 %v5226_v25, %v5156_v27 }
 0x684   : > { %v5453_v11 = vadd.f32 %v9407_v40, %v5424_v26  ;;  %v5555_v26 = vld [vmem:[#allocation2 + $0x42] sm:$0xff] }
 0x685   : > { %v5336_v42 = vadd.f32 %v5316_v5, %v5246_v47 }
 0x686   : > { %v5461_v31 = vmax.f32 %v5453_v11, 0.0 }
 0x688   : > { %v5517_v9 = vmul.f32 %v9411_v57, %v5461_v31  ;;  %v5319_v16 = vpop.f32.mrf.mxu2 }
 0x689   : > { %v5403_v2 = vpop.f32.mrf.mxu3  ;;  %v9463_v51 = vld [vmem:[#allocation2 + $0x11] sm:$0xff] }
 0x68a   : > { %v5425_v14 = vadd.f32 %v5403_v2, %v5335_v22  ;;  %5525 = vst [vmem:[#allocation2 + $0x20] sm:$0xff] %v5517_v9  ;;  %v5229_v57 = vpop.f32.mrf.mxu1  ;;  %v9465_v18 = vld [vmem:[#allocation2 + $0x12] sm:$0xff]  ;;  %v9472_v44 = vmax.f32 %v9432_v53, %v9463_v51 }
 0x68b   : > { %v5247_v43 = vadd.f32 %v5229_v57, %v5157_v35  ;;  %v5569_v62 = vmax.f32 %v9465_v18, %v5516_v29 }
 0x68c   : > { %v5454_v24 = vadd.f32 %v9407_v40, %v5425_v14  ;;  %v5553_v14 = vld [vmem:[#allocation2 + $0x40] sm:$0xff] }
 0x68d   : > { %v5587_v45 = vmax.f32 %v9472_v44, %v5569_v62 }
 0x68e   : > { %v5462_v38 = vmax.f32 %v5454_v24, 0.0 }
 0x690   : > { %v9458_v17 = vmul.f32 %v9417_v12, %v5462_v38  ;;  %v5337_v12 = vadd.f32 %v5319_v16, %v5247_v43 }
 0x691   : > { %v5406_v63 = vpop.f32.mrf.mxu3  ;;  %v5540_v1 = vld [vmem:[#allocation2 + $0x19] sm:$0xff] }
 0x692   : > { %v5426_v37 = vadd.f32 %v5406_v63, %v5336_v42  ;;  %5526 = vst [vmem:[#allocation2 + $0x28] sm:$0xff] %v9458_v17  ;;  %v9467_v21 = vld [vmem:[#allocation2 + $0x1a] sm:$0xff]  ;;  %v5562_v13 = vmax.f32 %v5516_v29, %v5540_v1  ;;  %v5556_v29 = vld [vmem:[#allocation2 + $0x48] sm:$0xff]  ;;  %v5583_v42 = vmax.f32 %v5553_v14, %v5554_v59 }
 0x693   : > { %v5577_v41 = vmax.f32 %v5540_v1, %v9467_v21  ;;  %v5570_v8 = vmax.f32 %v9467_v21, %v5517_v9  ;;  %v5584_v2 = vmax.f32 %v5556_v29, %v5557_v55  ;;  %v5626_v55 = vld [vmem:[%s10152_s7 + $0x8] sm:$0xff]  ;;  %v5628_v29 = vld [vmem:[%s10152_s7 + $0x18] sm:$0xff] }
 0x694   : > { %v5455_v52 = vadd.f32 %v9407_v40, %v5426_v37 }
 0x696   : > { %v5463_v7 = vmax.f32 %v5455_v52, 0.0 }
 0x698   : > { %v5519_v61 = vmul.f32 %v9391_v4, %v5463_v7 }
 0x699   : > { %v5409_v6 = vpop.f32.mrf.mxu3  ;;  %v5541_v36 = vld [vmem:[#allocation2 + $0x21] sm:$0xff] }
 0x69a   : > { %v5427_v23 = vadd.f32 %v5409_v6, %v5337_v12  ;;  %5527 = vst [vmem:[#allocation2 + $0x30] sm:$0xff] %v5519_v61  ;;  %v5563_v19 = vmax.f32 %v5517_v9, %v5541_v36  ;;  %v5549_v3 = vld [vmem:[#allocation2 + $0x22] sm:$0xff]  ;;  %v5582_v9 = vmax.f32 %v5554_v59, %v5555_v26  ;;  %v5546_v6 = vld [vmem:[#allocation2 + $0xa] sm:$0xff] }
 0x69b   : > { %v5578_v56 = vmax.f32 %v5541_v36, %v5549_v3  ;;  %v5558_v36 = vld [vmem:[#allocation2 + $0x4a] sm:$0xff] }
 0x69c   : > { %v5456_v54 = vadd.f32 %v9407_v40, %v5427_v23  ;;  %v5595_v49 = vmax.f32 %v5577_v41, %v5563_v19  ;;  %v5588_v40 = vmax.f32 %v5562_v13, %v5570_v8  ;;  %v5600_v7 = vmax.f32 %v5582_v9, %v5584_v2  ;;  %v6687_v59 = vld [vmem:[%s10146_s1 + $0x948] sm:$0xff]  ;;  %v6724_v9 = vld [vmem:[%s10146_s1 + $0xa70] sm:$0xff] }
 0x69d   : > { %v6684_v2 = vld [vmem:[%s10146_s1 + $0x930] sm:$0xff] }
 0x69e   : > { %v5464_v48 = vmax.f32 %v5456_v54, 0.0  ;;  %v5603_v4 = vmax.f32 %v5587_v45, %v5595_v49  ;;  %v5568_v49 = vmax.f32 %v5546_v6, %v9432_v53  ;;  %v6692_v53 = vld [vmem:[%s10146_s1 + $0x970] sm:$0xff] }
 0x6a0   : > { %v5520_v50 = vmul.f32 %v9397_v46, %v5464_v48  ;;  %v9480_v15 = vmax.f32 %v5603_v4, %v5549_v3  ;;  %v5571_v46 = vmax.f32 %v5549_v3, %v9458_v17  ;;  %v5576_v48 = vmax.f32 %v9463_v51, %v9465_v18 }
 0x6a1   : > { %v5542_v39 = vld [vmem:[#allocation2 + $0x29] sm:$0xff] }
 0x6a2   : > { %5528 = vst [vmem:[#allocation2 + $0x38] sm:$0xff] %v5520_v50  ;;  %v5564_v34 = vmax.f32 %v9458_v17, %v5542_v39  ;;  %v5550_v58 = vld [vmem:[#allocation2 + $0x2a] sm:$0xff]  ;;  %v5589_v17 = vmax.f32 %v5563_v19, %v5571_v46  ;;  %v5594_v3 = vmax.f32 %v5576_v48, %v5562_v13  ;;  %v6714_v48 = vld [vmem:[%s10146_s1 + $0xa20] sm:$0xff] }
 0x6a3   : > { %5619 = vst [vmem:[#allocation3 + $0x10] sm:$0xff] %v9480_v15  ;;  %v5572_v30 = vmax.f32 %v5550_v58, %v5519_v61  ;;  %v5579_v22 = vmax.f32 %v5542_v39, %v5550_v58  ;;  %v6691_v13 = vld [vmem:[%s10146_s1 + $0x968] sm:$0xff]  ;;  %v5627_v46 = vld [vmem:[%s10152_s7 + $0x10] sm:$0xff] }
 0x6a4   : > { %v5596_v32 = vmax.f32 %v5578_v56, %v5564_v34  ;;  %v6708_v56 = vld [vmem:[%s10146_s1 + $0x9f0] sm:$0xff] }
 0x6a5   : > { %v5590_v57 = vmax.f32 %v5564_v34, %v5572_v30  ;;  %v6705_v30 = vld [vmem:[%s10146_s1 + $0x9d8] sm:$0xff] }
 0x6a6   : > { %v5604_v20 = vmax.f32 %v5588_v40, %v5596_v32  ;;  %v5625_v32 = vld [vmem:[%s10152_s7] sm:$0xff] }
 0x6a8   : > { %v5612_v11 = vmax.f32 %v5604_v20, %v5550_v58  ;;  %v6688_v58 = vld [vmem:[%s10146_s1 + $0x950] sm:$0xff]  ;;  %v6685_v20 = vld [vmem:[%s10146_s1 + $0x938] sm:$0xff] }
 0x6a9   : > { %v5543_v31 = vld [vmem:[#allocation2 + $0x31] sm:$0xff]  ;;  %v5544_v25 = vld [vmem:[#allocation2 + $0x39] sm:$0xff] }
 0x6aa   : > { %v5551_v60 = vld [vmem:[#allocation2 + $0x32] sm:$0xff]  ;;  %v5552_v27 = vld [vmem:[#allocation2 + $0x3a] sm:$0xff]  ;;  %v5565_v10 = vmax.f32 %v5519_v61, %v5543_v31  ;;  %v5566_v47 = vmax.f32 %v5520_v50, %v5544_v25  ;;  %5620 = vst [vmem:[#allocation3 + $0x48] sm:$0xff] %v5612_v11  ;;  %v5538_v61 = vld [vmem:[#allocation2 + $0x9] sm:$0xff] }
 0x6ab   : > { %v5573_v24 = vmax.f32 %v5551_v60, %v5520_v50  ;;  %v5580_v5 = vmax.f32 %v5543_v31, %v5551_v60  ;;  %v5574_v38 = vmax.f32 %v5552_v27, %v5553_v14  ;;  %v5581_v0 = vmax.f32 %v5544_v25, %v5552_v27  ;;  %v6703_v31 = vld [vmem:[%s10146_s1 + $0x9c8] sm:$0xff]  ;;  %v6702_v25 = vld [vmem:[%s10146_s1 + $0x9c0] sm:$0xff] }
 0x6ac   : > { %v5597_v35 = vmax.f32 %v5579_v22, %v5565_v10  ;;  %v5560_v19 = vmax.f32 %v9422_v28, %v5538_v61  ;;  %v5575_v4 = vmax.f32 %v5538_v61, %v5546_v6  ;;  %v6693_v28 = vld [vmem:[%s10146_s1 + $0x978] sm:$0xff]  ;;  %v6723_v14 = vld [vmem:[%s10146_s1 + $0xa68] sm:$0xff]  ;;  %v6740_v6 = vld [vmem:[%s10146_s1 + $0xaf0] sm:$0xff] }
 0x6ad   : > { %v5591_v63 = vmax.f32 %v5565_v10, %v5573_v24  ;;  %v5598_v37 = vmax.f32 %v5580_v5, %v5566_v47  ;;  %v5592_v43 = vmax.f32 %v5566_v47, %v5574_v38  ;;  %v5599_v52 = vmax.f32 %v5581_v0, %v5583_v42  ;;  %5702 = vmatpush.msra.mxu2 %v6693_v28  ;;  %v6701_v22 = vld [vmem:[%s10146_s1 + $0x9b8] sm:$0xff]  ;;  %v6683_v10 = vld [vmem:[%s10146_s1 + $0x928] sm:$0xff]  ;;  %v6722_v24 = vld [vmem:[%s10146_s1 + $0xa60] sm:$0xff] }
 0x6ae   : > { %v5605_v16 = vmax.f32 %v5589_v17, %v5597_v35  ;;  %v5586_v50 = vmax.f32 %v5560_v19, %v5568_v49  ;;  %v5593_v8 = vmax.f32 %v5575_v4, %v9472_v44  ;;  %v6709_v44 = vld [vmem:[%s10146_s1 + $0x9f8] sm:$0xff]  ;;  %v6699_v47 = vld [vmem:[%s10146_s1 + $0x9a8] sm:$0xff]  ;;  %v6682_v5 = vld [vmem:[%s10146_s1 + $0x920] sm:$0xff] }
 0x6af   : > { %v5606_v1 = vmax.f32 %v5590_v57, %v5598_v37  ;;  %v5607_v12 = vmax.f32 %v5591_v63, %v5599_v52  ;;  %v5608_v62 = vmax.f32 %v5592_v43, %v5600_v7  ;;  %5703 = vmatpush.msra.mxu2 %v6692_v53  ;;  %5746 = vmatpush.msra.mxu3 %v6709_v44  ;;  %v6698_v38 = vld [vmem:[%s10146_s1 + $0x9a0] sm:$0xff]  ;;  %v6721_v0 = vld [vmem:[%s10146_s1 + $0xa58] sm:$0xff]  ;;  %v6720_v57 = vld [vmem:[%s10146_s1 + $0xa50] sm:$0xff] }
 0x6b0   : > { %v5613_v23 = vmax.f32 %v5605_v16, %v5551_v60  ;;  %v5602_v39 = vmax.f32 %v5586_v50, %v5594_v3  ;;  %v5601_v51 = vmax.f32 %v9440_v33, %v5593_v8  ;;  %v6690_v33 = vld [vmem:[%s10146_s1 + $0x960] sm:$0xff]  ;;  %v6725_v60 = vld [vmem:[%s10146_s1 + $0xa78] sm:$0xff]  ;;  %v6680_v63 = vld [vmem:[%s10146_s1 + $0x910] sm:$0xff] }
 0x6b1   : > { %v5614_v41 = vmax.f32 %v5606_v1, %v5552_v27  ;;  %v5615_v54 = vmax.f32 %v5607_v12, %v5555_v26  ;;  %v5616_v45 = vmax.f32 %v5608_v62, %v5558_v36  ;;  %5704 = vmatpush.msra.mxu2 %v6691_v13  ;;  %5747 = vmatpush.msra.mxu3 %v6708_v56  ;;  %v6686_v26 = vld [vmem:[%s10146_s1 + $0x940] sm:$0xff]  ;;  %v6700_v27 = vld [vmem:[%s10146_s1 + $0x9b0] sm:$0xff]  ;;  %v6681_v42 = vld [vmem:[%s10146_s1 + $0x918] sm:$0xff] }
 0x6b2   : > { %5621 = vst [vmem:[#allocation3 + $0x120] sm:$0xff] %v5613_v23  ;;  %v5610_v34 = vmax.f32 %v5602_v39, %v9467_v21  ;;  %v5609_v40 = vmax.f32 %v5601_v51, %v9465_v18  ;;  %v6707_v21 = vld [vmem:[%s10146_s1 + $0x9e8] sm:$0xff]  ;;  %v6706_v18 = vld [vmem:[%s10146_s1 + $0x9e0] sm:$0xff]  ;;  %v6697_v17 = vld [vmem:[%s10146_s1 + $0x998] sm:$0xff] }
 0x6b3   : > { %5622 = vst [vmem:[#allocation3 + $0x38] sm:$0xff] %v5614_v41  ;;  %5658 = vmatpush.msra.mxu1 %v5616_v45  ;;  %5705 = vmatpush.msra.mxu2 %v6690_v33  ;;  %v6696_v35 = vld [vmem:[%s10146_s1 + $0x990] sm:$0xff]  ;;  %v6719_v37 = vld [vmem:[%s10146_s1 + $0xa48] sm:$0xff]  ;;  %v6718_v7 = vld [vmem:[%s10146_s1 + $0xa40] sm:$0xff] }
 0x6b4   : > { %5623 = vst [vmem:[#allocation3 + $0xf8] sm:$0xff] %v5615_v54  ;;  %5748 = vmatpush.msra.mxu3 %v6707_v21  ;;  %v6679_v43 = vld [vmem:[%s10146_s1 + $0x908] sm:$0xff]  ;;  %v6678_v16 = vld [vmem:[%s10146_s1 + $0x900] sm:$0xff]  ;;  %v6741_v12 = vld [vmem:[%s10146_s1 + $0xaf8] sm:$0xff] }
 0x6b5   : > { %5624 = vst [vmem:[#allocation3 + $0x100] sm:$0xff] %v5616_v45  ;;  %5659 = vmatpush.msra.mxu1 %v5615_v54  ;;  %v6695_v52 = vld [vmem:[%s10146_s1 + $0x988] sm:$0xff]  ;;  %v6694_v1 = vld [vmem:[%s10146_s1 + $0x980] sm:$0xff]  ;;  %v6757_v62 = vld [vmem:[%s10146_s1 + $0xb78] sm:$0xff] }
 0x6b6   : > { %5749 = vmatpush.msra.mxu3 %v6706_v18  ;;  %v6717_v61 = vld [vmem:[%s10146_s1 + $0xa38] sm:$0xff]  ;;  %v6756_v36 = vld [vmem:[%s10146_s1 + $0xb70] sm:$0xff]  ;;  %v6755_v54 = vld [vmem:[%s10146_s1 + $0xb68] sm:$0xff] }
 0x6b7   : > { %5660 = vmatpush.msra.mxu1 %v5614_v41  ;;  %v6739_v41 = vld [vmem:[%s10146_s1 + $0xae8] sm:$0xff]  ;;  %v6738_v19 = vld [vmem:[%s10146_s1 + $0xae0] sm:$0xff]  ;;  %v6773_v4 = vld [vmem:[%s10146_s1 + $0xbf8] sm:$0xff] }
 0x6b8   : > { %5750 = vmatpush.msra.mxu3 %v6705_v30  ;;  %v6715_v45 = vld [vmem:[%s10146_s1 + $0xa28] sm:$0xff]  ;;  %v6754_v49 = vld [vmem:[%s10146_s1 + $0xb60] sm:$0xff]  ;;  %v6737_v3 = vld [vmem:[%s10146_s1 + $0xad8] sm:$0xff]  ;;  %5938 = vmatpush.msrb.mxu0 %v6773_v4 }
 0x6b9   : > { %5661 = vmatpush.msra.mxu1 %v5613_v23  ;;  %v6716_v23 = vld [vmem:[%s10146_s1 + $0xa30] sm:$0xff]  ;;  %v6753_v50 = vld [vmem:[%s10146_s1 + $0xb58] sm:$0xff]  ;;  %v6771_v13 = vld [vmem:[%s10146_s1 + $0xbe8] sm:$0xff] }
 0x6ba   : > { %v6713_v8 = vld [vmem:[%s10146_s1 + $0xa18] sm:$0xff]  ;;  %v6772_v39 = vld [vmem:[%s10146_s1 + $0xbf0] sm:$0xff]  ;;  %v6735_v44 = vld [vmem:[%s10146_s1 + $0xac8] sm:$0xff] }
 0x6bb   : > { %5662 = vmatpush.msra.mxu1 %v5612_v11  ;;  %v6704_v11 = vld [vmem:[%s10146_s1 + $0x9d0] sm:$0xff]  ;;  %5939 = vmatpush.msrb.mxu0 %v6772_v39  ;;  %v6711_v56 = vld [vmem:[%s10146_s1 + $0xa08] sm:$0xff]  ;;  %v6770_v33 = vld [vmem:[%s10146_s1 + $0xbe0] sm:$0xff] }
 0x6bc   : > { %5751 = vmatpush.msra.mxu3 %v6704_v11  ;;  %v6736_v28 = vld [vmem:[%s10146_s1 + $0xad0] sm:$0xff]  ;;  %v6710_v21 = vld [vmem:[%s10146_s1 + $0xa00] sm:$0xff]  ;;  %v6789_v18 = vld [vmem:[%s10146_s1 + $0xc78] sm:$0xff] }
 0x6bd   : > { %5663 = vmatpush.msra.mxu1 %v9480_v15  ;;  %v6689_v15 = vld [vmem:[%s10146_s1 + $0x958] sm:$0xff]  ;;  %v6752_v53 = vld [vmem:[%s10146_s1 + $0xb50] sm:$0xff]  ;;  %5940 = vmatpush.msrb.mxu0 %v6771_v13  ;;  %v6787_v30 = vld [vmem:[%s10146_s1 + $0xc68] sm:$0xff] }
 0x6be   : > { %5706 = vmatpush.msra.mxu2 %v6689_v15  ;;  %5752 = vmatpush.msra.mxu3 %v6703_v31  ;;  %v6712_v51 = vld [vmem:[%s10146_s1 + $0xa10] sm:$0xff]  ;;  %v6769_v15 = vld [vmem:[%s10146_s1 + $0xbd8] sm:$0xff]  ;;  %v6731_v11 = vld [vmem:[%s10146_s1 + $0xaa8] sm:$0xff] }
 0x6bf   : > { %5664 = vmatpush.msra.mxu1 %v5610_v34  ;;  %v6751_v34 = vld [vmem:[%s10146_s1 + $0xb48] sm:$0xff]  ;;  %5941 = vmatpush.msrb.mxu0 %v6770_v33  ;;  %v6804_v39 = vld [vmem:[%s10146_s1 + $0xcf0] sm:$0xff]  ;;  %v6802_v13 = vld [vmem:[%s10146_s1 + $0xce0] sm:$0xff] }
 0x6c0   : > { %5707 = vmatpush.msra.mxu2 %v6688_v58  ;;  %5753 = vmatpush.msra.mxu3 %v6702_v25  ;;  %v6733_v58 = vld [vmem:[%s10146_s1 + $0xab8] sm:$0xff]  ;;  %v6747_v31 = vld [vmem:[%s10146_s1 + $0xb28] sm:$0xff]  ;;  %v6766_v25 = vld [vmem:[%s10146_s1 + $0xbc0] sm:$0xff] }
 0x6c1   : > { %5665 = vmatpush.msra.mxu1 %v5609_v40  ;;  %v6734_v40 = vld [vmem:[%s10146_s1 + $0xac0] sm:$0xff]  ;;  %5942 = vmatpush.msrb.mxu0 %v6769_v15 }
 0x6c2   : > { %6674 = vmatmul.msk.f32.vlgmr.msra.gmra.mxu1 %vm5637_vm2, %v5625_v32  ;;  %5708 = vmatpush.msra.mxu2 %v6687_v59  ;;  %v6750_v32 = vld [vmem:[%s10146_s1 + $0xb40] sm:$0xff]  ;;  %v6749_v59 = vld [vmem:[%s10146_s1 + $0xb38] sm:$0xff] }
 0x6c3   : > { %5794 = vmatpush.msrb.mxu1 %v6725_v60  ;;  %5754 = vmatpush.msra.mxu3 %v6701_v22  ;;  %v6786_v60 = vld [vmem:[%s10146_s1 + $0xc60] sm:$0xff] }
 0x6c4   : > { %5709 = vmatpush.msra.mxu2 %v6686_v26  ;;  %v6768_v26 = vld [vmem:[%s10146_s1 + $0xbd0] sm:$0xff]  ;;  %v6730_v22 = vld [vmem:[%s10146_s1 + $0xaa0] sm:$0xff] }
 0x6c5   : > { %5795 = vmatpush.msrb.mxu1 %v6724_v9  ;;  %5755 = vmatpush.msra.mxu3 %v6700_v27  ;;  %v6746_v9 = vld [vmem:[%s10146_s1 + $0xb20] sm:$0xff]  ;;  %v6785_v27 = vld [vmem:[%s10146_s1 + $0xc58] sm:$0xff] }
 0x6c6   : > { %5710 = vmatpush.msra.mxu2 %v6685_v20  ;;  %v6732_v20 = vld [vmem:[%s10146_s1 + $0xab0] sm:$0xff]  ;;  %5943 = vmatpush.msrb.mxu0 %v6768_v26  ;;  %v6798_v26 = vld [vmem:[%s10146_s1 + $0xcc0] sm:$0xff] }
 0x6c7   : > { %5796 = vmatpush.msrb.mxu1 %v6723_v14  ;;  %5756 = vmatpush.msra.mxu3 %v6699_v47  ;;  %v6729_v14 = vld [vmem:[%s10146_s1 + $0xa98] sm:$0xff]  ;;  %v6764_v47 = vld [vmem:[%s10146_s1 + $0xbb0] sm:$0xff] }
 0x6c8   : > { %5711 = vmatpush.msra.mxu2 %v6684_v2  ;;  %v6765_v2 = vld [vmem:[%s10146_s1 + $0xbb8] sm:$0xff] }
 0x6c9   : > { %5797 = vmatpush.msrb.mxu1 %v6722_v24  ;;  %5757 = vmatpush.msra.mxu3 %v6698_v38  ;;  %v6784_v24 = vld [vmem:[%s10146_s1 + $0xc50] sm:$0xff] }
 0x6ca   : > { %6675 = vmatmul.msk.f32.gmra.mxu1 %vm5637_vm2, %v5626_v55  ;;  %5712 = vmatpush.msra.mxu2 %v6683_v10  ;;  %v6788_v55 = vld [vmem:[%s10146_s1 + $0xc70] sm:$0xff]  ;;  %v6745_v10 = vld [vmem:[%s10146_s1 + $0xb18] sm:$0xff] }
 0x6cb   : > { %5798 = vmatpush.msrb.mxu1 %v6721_v0  ;;  %5758 = vmatpush.msra.mxu3 %v6697_v17  ;;  %v6744_v38 = vld [vmem:[%s10146_s1 + $0xb10] sm:$0xff]  ;;  %v6763_v0 = vld [vmem:[%s10146_s1 + $0xba8] sm:$0xff] }
 0x6cc   : > { %5713 = vmatpush.msra.mxu2 %v6682_v5  ;;  %v6728_v5 = vld [vmem:[%s10146_s1 + $0xa90] sm:$0xff]  ;;  %v6727_v17 = vld [vmem:[%s10146_s1 + $0xa88] sm:$0xff] }
 0x6cd   : > { %5799 = vmatpush.msrb.mxu1 %v6720_v57  ;;  %5759 = vmatpush.msra.mxu3 %v6696_v35  ;;  %v6743_v57 = vld [vmem:[%s10146_s1 + $0xb08] sm:$0xff]  ;;  %v6762_v35 = vld [vmem:[%s10146_s1 + $0xba0] sm:$0xff] }
 0x6ce   : > { %5714 = vmatpush.msra.mxu2 %v6681_v42  ;;  %v6783_v42 = vld [vmem:[%s10146_s1 + $0xc48] sm:$0xff] }
 0x6cf   : > { %5800 = vmatpush.msrb.mxu1 %v6719_v37  ;;  %5760 = vmatpush.msra.mxu3 %v6695_v52  ;;  %v6782_v37 = vld [vmem:[%s10146_s1 + $0xc40] sm:$0xff]  ;;  %v6761_v52 = vld [vmem:[%s10146_s1 + $0xb98] sm:$0xff] }
 0x6d0   : > { %5715 = vmatpush.msra.mxu2 %v6680_v63  ;;  %v6726_v63 = vld [vmem:[%s10146_s1 + $0xa80] sm:$0xff] }
 0x6d1   : > { %5801 = vmatpush.msrb.mxu1 %v6718_v7  ;;  %5761 = vmatpush.msra.mxu3 %v6694_v1  ;;  %v6781_v7 = vld [vmem:[%s10146_s1 + $0xc38] sm:$0xff]  ;;  %v6780_v1 = vld [vmem:[%s10146_s1 + $0xc30] sm:$0xff] }
 0x6d2   : > { %6676 = vmatmul.msk.f32.gmra.mxu1 %vm5637_vm2, %v5627_v46  ;;  %5716 = vmatpush.msra.mxu2 %v6679_v43  ;;  %v6748_v46 = vld [vmem:[%s10146_s1 + $0xb30] sm:$0xff]  ;;  %v6742_v43 = vld [vmem:[%s10146_s1 + $0xb00] sm:$0xff] }
 0x6d3   : > { %5890 = vmatpush.msrb.mxu3 %v6757_v62  ;;  %5802 = vmatpush.msrb.mxu1 %v6717_v61  ;;  %v6779_v61 = vld [vmem:[%s10146_s1 + $0xc28] sm:$0xff] }
 0x6d4   : > { %5717 = vmatpush.msra.mxu2 %v6678_v16  ;;  %v6760_v16 = vld [vmem:[%s10146_s1 + $0xb90] sm:$0xff] }
 0x6d5   : > { %5891 = vmatpush.msrb.mxu3 %v6756_v36  ;;  %5803 = vmatpush.msrb.mxu1 %v6716_v23  ;;  %v6778_v36 = vld [vmem:[%s10146_s1 + $0xc20] sm:$0xff]  ;;  %v6777_v23 = vld [vmem:[%s10146_s1 + $0xc18] sm:$0xff] }
 0x6d6   : > { %5842 = vmatpush.msrb.mxu2 %v6741_v12  ;;  %v6759_v12 = vld [vmem:[%s10146_s1 + $0xb88] sm:$0xff] }
 0x6d7   : > { %5892 = vmatpush.msrb.mxu3 %v6755_v54  ;;  %5804 = vmatpush.msrb.mxu1 %v6715_v45  ;;  %v6775_v54 = vld [vmem:[%s10146_s1 + $0xc08] sm:$0xff] }
 0x6d8   : > { %5843 = vmatpush.msrb.mxu2 %v6740_v6  ;;  %v6758_v6 = vld [vmem:[%s10146_s1 + $0xb80] sm:$0xff] }
 0x6d9   : > { %5893 = vmatpush.msrb.mxu3 %v6754_v49  ;;  %5805 = vmatpush.msrb.mxu1 %v6714_v48  ;;  %v6805_v49 = vld [vmem:[%s10146_s1 + $0xcf8] sm:$0xff] }
 0x6da   : > { %6677 = vmatmul.msk.f32.gmra.mxu1 %vm5637_vm2, %v5628_v29  ;;  %5844 = vmatpush.msrb.mxu2 %v6739_v41  ;;  %v6767_v29 = vld [vmem:[%s10146_s1 + $0xbc8] sm:$0xff]  ;;  %v6776_v41 = vld [vmem:[%s10146_s1 + $0xc10] sm:$0xff]  ;;  %v6821_v48 = vld [vmem:[%s10146_s1 + $0xd78] sm:$0xff] }
 0x6db   : > { %5894 = vmatpush.msrb.mxu3 %v6753_v50  ;;  %5806 = vmatpush.msrb.mxu1 %v6713_v8 }
 0x6dc   : > { %5845 = vmatpush.msrb.mxu2 %v6738_v19  ;;  %5944 = vmatpush.msrb.mxu0 %v6767_v29  ;;  %v6774_v19 = vld [vmem:[%s10146_s1 + $0xc00] sm:$0xff] }
 0x6dd   : > { %5895 = vmatpush.msrb.mxu3 %v6752_v53  ;;  %5807 = vmatpush.msrb.mxu1 %v6712_v51  ;;  %v6803_v53 = vld [vmem:[%s10146_s1 + $0xce8] sm:$0xff] }
 0x6de   : > { %5846 = vmatpush.msrb.mxu2 %v6737_v3  ;;  %5945 = vmatpush.msrb.mxu0 %v6766_v25  ;;  %v6819_v51 = vld [vmem:[%s10146_s1 + $0xd68] sm:$0xff]  ;;  %v6813_v25 = vld [vmem:[%s10146_s1 + $0xd38] sm:$0xff] }
 0x6df   : > { %5896 = vmatpush.msrb.mxu3 %v6751_v34  ;;  %5808 = vmatpush.msrb.mxu1 %v6711_v56  ;;  %v6818_v34 = vld [vmem:[%s10146_s1 + $0xd60] sm:$0xff] }
 0x6e0   : > { %5847 = vmatpush.msrb.mxu2 %v6736_v28  ;;  %5946 = vmatpush.msrb.mxu0 %v6765_v2  ;;  %v6820_v28 = vld [vmem:[%s10146_s1 + $0xd70] sm:$0xff]  ;;  %v6811_v2 = vld [vmem:[%s10146_s1 + $0xd28] sm:$0xff] }
 0x6e1   : > { %5897 = vmatpush.msrb.mxu3 %v6750_v32  ;;  %5809 = vmatpush.msrb.mxu1 %v6710_v21  ;;  %v6800_v21 = vld [vmem:[%s10146_s1 + $0xcd0] sm:$0xff] }
 0x6e2   : > { %5848 = vmatpush.msrb.mxu2 %v6735_v44  ;;  %5947 = vmatpush.msrb.mxu0 %v6764_v47  ;;  %v6801_v44 = vld [vmem:[%s10146_s1 + $0xcd8] sm:$0xff] }
 0x6e3   : > { %5898 = vmatpush.msrb.mxu3 %v6749_v59  ;;  %5986 = vmatpush.msra.mxu1 %v6789_v18  ;;  %v6817_v18 = vld [vmem:[%s10146_s1 + $0xd58] sm:$0xff]  ;;  %v6816_v59 = vld [vmem:[%s10146_s1 + $0xd50] sm:$0xff] }
 0x6e4   : > { %5849 = vmatpush.msrb.mxu2 %v6734_v40  ;;  %5948 = vmatpush.msrb.mxu0 %v6763_v0  ;;  %v6808_v0 = vld [vmem:[%s10146_s1 + $0xd10] sm:$0xff] }
 0x6e5   : > { %5899 = vmatpush.msrb.mxu3 %v6748_v46  ;;  %5987 = vmatpush.msra.mxu1 %v6788_v55  ;;  %v6797_v55 = vld [vmem:[%s10146_s1 + $0xcb8] sm:$0xff] }
 0x6e6   : > { %5850 = vmatpush.msrb.mxu2 %v6733_v58  ;;  %5949 = vmatpush.msrb.mxu0 %v6762_v35  ;;  %v6799_v58 = vld [vmem:[%s10146_s1 + $0xcc8] sm:$0xff] }
 0x6e7   : > { %5900 = vmatpush.msrb.mxu3 %v6747_v31  ;;  %5988 = vmatpush.msra.mxu1 %v6787_v30  ;;  %v6796_v30 = vld [vmem:[%s10146_s1 + $0xcb0] sm:$0xff]  ;;  %v6795_v31 = vld [vmem:[%s10146_s1 + $0xca8] sm:$0xff] }
 0x6e8   : > { %5851 = vmatpush.msrb.mxu2 %v6732_v20  ;;  %5950 = vmatpush.msrb.mxu0 %v6761_v52  ;;  %v6815_v20 = vld [vmem:[%s10146_s1 + $0xd48] sm:$0xff] }
 0x6e9   : > { %5901 = vmatpush.msrb.mxu3 %v6746_v9  ;;  %5989 = vmatpush.msra.mxu1 %v6786_v60  ;;  %v6794_v60 = vld [vmem:[%s10146_s1 + $0xca0] sm:$0xff]  ;;  %v6793_v9 = vld [vmem:[%s10146_s1 + $0xc98] sm:$0xff] }
 0x6ea   : > { %5852 = vmatpush.msrb.mxu2 %v6731_v11  ;;  %5951 = vmatpush.msrb.mxu0 %v6760_v16  ;;  %v6814_v11 = vld [vmem:[%s10146_s1 + $0xd40] sm:$0xff] }
 0x6eb   : > { %5902 = vmatpush.msrb.mxu3 %v6745_v10  ;;  %5990 = vmatpush.msra.mxu1 %v6785_v27  ;;  %v6810_v10 = vld [vmem:[%s10146_s1 + $0xd20] sm:$0xff] }
 0x6ec   : > { %5853 = vmatpush.msrb.mxu2 %v6730_v22  ;;  %5952 = vmatpush.msrb.mxu0 %v6759_v12  ;;  %v6812_v22 = vld [vmem:[%s10146_s1 + $0xd30] sm:$0xff] }
 0x6ed   : > { %5903 = vmatpush.msrb.mxu3 %v6744_v38  ;;  %5991 = vmatpush.msra.mxu1 %v6784_v24  ;;  %v6791_v24 = vld [vmem:[%s10146_s1 + $0xc88] sm:$0xff]  ;;  %v6790_v38 = vld [vmem:[%s10146_s1 + $0xc80] sm:$0xff] }
 0x6ee   : > { %5854 = vmatpush.msrb.mxu2 %v6729_v14  ;;  %5953 = vmatpush.msrb.mxu0 %v6758_v6  ;;  %v6792_v14 = vld [vmem:[%s10146_s1 + $0xc90] sm:$0xff] }
 0x6ef   : > { %5904 = vmatpush.msrb.mxu3 %v6743_v57  ;;  %5992 = vmatpush.msra.mxu1 %v6783_v42  ;;  %v6807_v42 = vld [vmem:[%s10146_s1 + $0xd08] sm:$0xff] }
 0x6f0   : > { %5855 = vmatpush.msrb.mxu2 %v6728_v5  ;;  %v6809_v5 = vld [vmem:[%s10146_s1 + $0xd18] sm:$0xff] }
 0x6f1   : > { %5905 = vmatpush.msrb.mxu3 %v6742_v43  ;;  %5993 = vmatpush.msra.mxu1 %v6782_v37 }
 0x6f2   : > { %5856 = vmatpush.msrb.mxu2 %v6727_v17  ;;  %v6806_v17 = vld [vmem:[%s10146_s1 + $0xd00] sm:$0xff] }
 0x6f3   : > { %5994 = vmatpush.msra.mxu1 %v6781_v7 }
 0x6f4   : > { %5857 = vmatpush.msrb.mxu2 %v6726_v63 }
 0x6f5   : > { %5995 = vmatpush.msra.mxu1 %v6780_v1 }
 0x6f7   : > { %5996 = vmatpush.msra.mxu1 %v6779_v61 }
 0x6f9   : > { %5997 = vmatpush.msra.mxu1 %v6778_v36 }
 0x6fb   : > { %5998 = vmatpush.msra.mxu1 %v6777_v23 }
 0x6fd   : > { %5999 = vmatpush.msra.mxu1 %v6776_v41 }
 0x6ff   : > { %6000 = vmatpush.msra.mxu1 %v6775_v54 }
 0x701   : > { %6001 = vmatpush.msra.mxu1 %v6774_v19 }
 0x73f   : > { %v5667_v62 = vpop.f32.mrf.mxu1 }
 0x740   : > { %5679 = vst [vmem:[#allocation5] sm:$0xff] %v5667_v62 }
 0x747   : > { %v5670_v45 = vpop.f32.mrf.mxu1 }
 0x748   : > { %5680 = vst [vmem:[#allocation5 + $0x8] sm:$0xff] %v5670_v45 }
 0x74f   : > { %v9852_v4 = vpop.f32.mrf.mxu1  ;;  %v5683_v3 = vld [vmem:[#allocation5 + $0x3] sm:$0xff] }
 0x750   : > { %v5727_v50 = vld [vmem:[#allocation5 + $0x4] sm:$0xff]  ;;  %5681 = vst [vmem:[#allocation5 + $0x10] sm:$0xff] %v9852_v4  ;;  %5718 = vmatmul.f32.vlgmr.msra.gmra.mxu2 %v5683_v3 }
 0x751   : > { %v5775_v8 = vld [vmem:[#allocation5 + $0x5] sm:$0xff]  ;;  %5762 = vmatmul.f32.vlgmr.msra.gmra.mxu3 %v5727_v50  ;;  %6034 = vmatpush.msra.mxu2 %v6805_v49 }
 0x752   : > { %5810 = vmatmul.f32.vlgmr.msrb.gmra.mxu1 %v5775_v8  ;;  %6082 = vmatpush.msra.mxu3 %v6821_v48  ;;  %v5823_v46 = vld [vmem:[#allocation5 + $0x7] sm:$0xff] }
 0x753   : > { %6035 = vmatpush.msra.mxu2 %v6804_v39 }
 0x754   : > { %6083 = vmatpush.msra.mxu3 %v6820_v28 }
 0x755   : > { %6036 = vmatpush.msra.mxu2 %v6803_v53 }
 0x756   : > { %6084 = vmatpush.msra.mxu3 %v6819_v51  ;;  %v6907_v51 = vld [vmem:[%s10147_s2 + $0x2] ss:$0 sm:$0xff] }
 0x757   : > { %v5684_v56 = vld [vmem:[#allocation5 + $0xb] sm:$0xff]  ;;  %6037 = vmatpush.msra.mxu2 %v6802_v13  ;;  %v5676_v32 = vpop.f32.mrf.mxu1 }
 0x758   : > { %v9876_v33 = vld [vmem:[#allocation5 + $0xc] sm:$0xff]  ;;  %5721 = vmatmul.f32.gmra.mxu2 %v5684_v56  ;;  %5682 = vst [vmem:[#allocation5 + $0x18] sm:$0xff] %v5676_v32  ;;  %6085 = vmatpush.msra.mxu3 %v6818_v34 }
 0x759   : > { %v9878_v40 = vld [vmem:[#allocation5 + $0xd] sm:$0xff]  ;;  %5765 = vmatmul.f32.gmra.mxu3 %v9876_v33  ;;  %6038 = vmatpush.msra.mxu2 %v6801_v44 }
 0x75a   : > { %v5919_v15 = vld [vmem:[#allocation5 + $0x9] sm:$0xff]  ;;  %5813 = vmatmul.f32.gmra.mxu1 %v9878_v40  ;;  %6086 = vmatpush.msra.mxu3 %v6817_v18 }
 0x75b   : > { %5954 = vmatmul.f32.vlgmr.msrb.gmra.mxu0 %v5919_v15  ;;  %6039 = vmatpush.msra.mxu2 %v6800_v21  ;;  %v5824_v27 = vld [vmem:[#allocation5 + $0xf] sm:$0xff]  ;;  %v6127_v15 = vpop.permute.xlu2 %6126 }
 0x75c   : > { %6087 = vmatpush.msra.mxu3 %v6816_v59 }
 0x75d   : > { %6040 = vmatpush.msra.mxu2 %v6799_v58 }
 0x75e   : > { %6088 = vmatpush.msra.mxu3 %v6815_v20  ;;  %v6132_v20 = vpop.permute.xlu1 %6131 }
 0x75f   : > { %6041 = vmatpush.msra.mxu2 %v6798_v26  ;;  %v5920_v29 = vld [vmem:[#allocation5 + $0x11] sm:$0xff] }
 0x760   : > { %5858 = vmatmul.f32.vlgmr.msrb.gmra.mxu2 %v5823_v46  ;;  %6089 = vmatpush.msra.mxu3 %v6814_v11  ;;  %v5968_v47 = vld [vmem:[#allocation5 + $0x13] sm:$0xff] }
 0x761   : > { %5906 = vmatmul.f32.vlgmr.msrb.gmra.mxu3 %v5670_v45  ;;  %6042 = vmatpush.msra.mxu2 %v6797_v55  ;;  %v6016_v57 = vld [vmem:[#allocation5 + $0x14] sm:$0xff] }
 0x762   : > { %6002 = vmatmul.f32.vlgmr.msra.gmra.mxu1 %v5684_v56  ;;  %6090 = vmatpush.msra.mxu3 %v6813_v25  ;;  %v6064_v63 = vld [vmem:[#allocation5 + $0x15] sm:$0xff] }
 0x763   : > { %5957 = vmatmul.f32.gmra.mxu0 %v5920_v29  ;;  %6043 = vmatpush.msra.mxu2 %v6796_v30  ;;  %v6151_v29 = vld [vmem:[#allocation2 + $0x11] sm:$0xff] }
 0x764   : > { %6091 = vmatpush.msra.mxu3 %v6812_v22 }
 0x765   : > { %6044 = vmatpush.msra.mxu2 %v6795_v31 }
 0x766   : > { %6092 = vmatpush.msra.mxu3 %v6811_v2 }
 0x767   : > { %6045 = vmatpush.msra.mxu2 %v6794_v60 }
 0x768   : > { %5861 = vmatmul.f32.gmra.mxu2 %v5824_v27  ;;  %6093 = vmatpush.msra.mxu3 %v6810_v10 }
 0x769   : > { %5909 = vmatmul.f32.gmra.mxu3 %v9852_v4  ;;  %6046 = vmatpush.msra.mxu2 %v6793_v9 }
 0x76a   : > { %6005 = vmatmul.f32.gmra.mxu1 %v5968_v47  ;;  %6094 = vmatpush.msra.mxu3 %v6809_v5 }
 0x76b   : > { %6047 = vmatpush.msra.mxu2 %v6792_v14 }
 0x76c   : > { %6095 = vmatpush.msra.mxu3 %v6808_v0 }
 0x76d   : > { %6048 = vmatpush.msra.mxu2 %v6791_v24 }
 0x76e   : > { %6096 = vmatpush.msra.mxu3 %v6807_v42 }
 0x76f   : > { %6049 = vmatpush.msra.mxu2 %v6790_v38  ;;  %v6150_v38 = vld [vmem:[#allocation2 + $0x10] sm:$0xff] }
 0x770   : > { %6050 = vmatmul.f32.vlgmr.msra.gmra.mxu2 %v9876_v33  ;;  %6097 = vmatpush.msra.mxu3 %v6806_v17  ;;  %v6159_v17 = vmax.f32 %v6150_v38, %v6151_v29  ;;  %v6854_v29 = vld [vmem:[%s10154_s9 + $0x168] sm:$0xff]  ;;  %v6843_v38 = vld [vmem:[%s10154_s9 + $0x110] sm:$0xff] }
 0x771   : > { %6098 = vmatmul.f32.vlgmr.msra.gmra.mxu3 %v9878_v40 }
 0x778   : > { %6053 = vmatmul.f32.gmra.mxu2 %v6016_v57 }
 0x779   : > { %6101 = vmatmul.f32.gmra.mxu3 %v6064_v63 }
 0x7cf   : > { %v5811_v43 = vpop.f32.mrf.mxu1 }
 0x7d3   : > { %v5719_v35 = vpop.f32.mrf.mxu2 }
 0x7d4   : > { %v5763_v37 = vpop.f32.mrf.mxu3 }
 0x7d5   : > { %v5771_v16 = vadd.f32 %v5763_v37, %v5719_v35 }
 0x7d7   : > { %v5819_v62 = vadd.f32 %v5811_v43, %v5771_v16  ;;  %v5814_v61 = vpop.f32.mrf.mxu1 }
 0x7d8   : > { %v5955_v54 = vpop.f32.mrf.mxu0 }
 0x7db   : > { %v5722_v52 = vpop.f32.mrf.mxu2 }
 0x7dc   : > { %v5766_v7 = vpop.f32.mrf.mxu3 }
 0x7dd   : > { %v5772_v36 = vadd.f32 %v5766_v7, %v5722_v52  ;;  %v6152_v7 = vld [vmem:[#allocation2 + $0x12] sm:$0xff] }
 0x7df   : > { %v5820_v45 = vadd.f32 %v5814_v61, %v5772_v36  ;;  %v6003_v4 = vpop.f32.mrf.mxu1  ;;  %v6211_v61 = vld [vmem:[%s10154_s9 + $0x70] sm:$0xff]  ;;  %v6209_v36 = vld [vmem:[%s10154_s9 + $0x60] sm:$0xff] }
 0x7e0   : > { %v5958_v28 = vpop.f32.mrf.mxu0 }
 0x7e3   : > { %v5859_v1 = vpop.f32.mrf.mxu2 }
 0x7e4   : > { %v5907_v12 = vpop.f32.mrf.mxu3  ;;  %v5867_v6 = vadd.f32 %v5859_v1, %v5819_v62  ;;  %v6212_v62 = vld [vmem:[%s10154_s9 + $0x78] sm:$0xff] }
 0x7e6   : > { %v5915_v23 = vadd.f32 %v5907_v12, %v5867_v6  ;;  %v6170_v12 = vld [vmem:[%s10153_s8] sm:$0x1]  ;;  %v6210_v6 = vld [vmem:[%s10154_s9 + $0x68] sm:$0xff] }
 0x7e7   : > { %v6006_v34 = vpop.f32.mrf.mxu1 }
 0x7e8   : > { %v5963_v48 = vadd.f32 %v5955_v54, %v5915_v23  ;;  %v6208_v23 = vld [vmem:[%s10154_s9 + $0x58] sm:$0xff]  ;;  %v6206_v54 = vld [vmem:[%s10154_s9 + $0x48] sm:$0xff] }
 0x7ea   : > { %v6011_v50 = vadd.f32 %v6003_v4, %v5963_v48  ;;  %v6202_v48 = vld [vmem:[%s10154_s9 + $0x28] sm:$0xff]  ;;  %v6201_v4 = vld [vmem:[%s10154_s9 + $0x20] sm:$0xff] }
 0x7eb   : > { %v5862_v41 = vpop.f32.mrf.mxu2 }
 0x7ec   : > { %v5910_v19 = vpop.f32.mrf.mxu3  ;;  %v5868_v49 = vadd.f32 %v5862_v41, %v5820_v45  ;;  %v6207_v41 = vld [vmem:[%s10154_s9 + $0x50] sm:$0xff]  ;;  %v6205_v45 = vld [vmem:[%s10154_s9 + $0x40] sm:$0xff] }
 0x7ee   : > { %v5916_v3 = vadd.f32 %v5910_v19, %v5868_v49  ;;  %v6204_v19 = vld [vmem:[%s10154_s9 + $0x38] sm:$0xff]  ;;  %v6203_v49 = vld [vmem:[%s10154_s9 + $0x30] sm:$0xff] }
 0x7f0   : > { %v5964_v53 = vadd.f32 %v5958_v28, %v5916_v3  ;;  %v6200_v3 = vld [vmem:[%s10154_s9 + $0x18] sm:$0xff] }
 0x7f1   : > { %v6839_v28 = vld [vmem:[%s10154_s9 + $0xf8] sm:$0xff] }
 0x7f2   : > { %v6012_v56 = vadd.f32 %v6006_v34, %v5964_v53  ;;  %v6838_v53 = vld [vmem:[%s10154_s9 + $0xf0] sm:$0xff]  ;;  %6254 = vmatpush.msrb.mxu1 %v6839_v28 }
 0x7f3   : > { %v6051_v8 = vpop.f32.mrf.mxu2  ;;  %v6834_v34 = vld [vmem:[%s10154_s9 + $0xd0] sm:$0xff] }
 0x7f4   : > { %v6059_v39 = vadd.f32 %v6051_v8, %v6011_v50  ;;  %v6099_v13 = vpop.f32.mrf.mxu3  ;;  %v6199_v50 = vld [vmem:[%s10154_s9 + $0x10] sm:$0xff]  ;;  %v6198_v8 = vld [vmem:[%s10154_s9 + $0x8] sm:$0xff]  ;;  %6255 = vmatpush.msrb.mxu1 %v6838_v53 }
 0x7f6   : > { %v6107_v44 = vadd.f32 %v6099_v13, %v6059_v39  ;;  %v6197_v39 = vld [vmem:[%s10154_s9] sm:$0xff] }
 0x7f7   : > { %v6836_v13 = vld [vmem:[%s10154_s9 + $0xe0] sm:$0xff] }
 0x7f8   : > { %v6118_v33 = vadd.f32 %v6907_v51, %v6107_v44  ;;  %v6835_v44 = vld [vmem:[%s10154_s9 + $0xd8] sm:$0xff] }
 0x7fa   : > { %v6120_v21 = vmax.f32 %v6118_v33, 0.0  ;;  %v6832_v33 = vld [vmem:[%s10154_s9 + $0xc0] sm:$0xff] }
 0x7fb   : > { %v6054_v40 = vpop.f32.mrf.mxu2 }
 0x7fc   : > { %v6060_v32 = vadd.f32 %v6054_v40, %v6012_v56  ;;  %v6134_v18 = vmul.f32 %v6127_v15, %v6120_v21  ;;  %v6102_v58 = vpop.f32.mrf.mxu3  ;;  %v6833_v56 = vld [vmem:[%s10154_s9 + $0xc8] sm:$0xff]  ;;  %v6831_v40 = vld [vmem:[%s10154_s9 + $0xb8] sm:$0xff]  ;;  %v6828_v15 = vld [vmem:[%s10154_s9 + $0xa0] sm:$0xff] }
 0x7fd   : > { %v6829_v21 = vld [vmem:[%s10154_s9 + $0xa8] sm:$0xff] }
 0x7fe   : > { %v6108_v59 = vadd.f32 %v6102_v58, %v6060_v32  ;;  %6136 = vst [vmem:[#allocation2] sm:$0xff] %v6134_v18  ;;  %v6830_v32 = vld [vmem:[%s10154_s9 + $0xb0] sm:$0xff] }
 0x800   : > { %v6119_v26 = vadd.f32 %v6907_v51, %v6108_v59  ;;  %v6837_v51 = vld [vmem:[%s10154_s9 + $0xe8] sm:$0xff]  ;;  %v6826_v59 = vld [vmem:[%s10154_s9 + $0x90] sm:$0xff] }
 0x801   : > { %6256 = vmatpush.msrb.mxu1 %v6837_v51 }
 0x802   : > { %v6121_v55 = vmax.f32 %v6119_v26, 0.0  ;;  %v6825_v26 = vld [vmem:[%s10154_s9 + $0x88] sm:$0xff] }
 0x803   : > { %6257 = vmatpush.msrb.mxu1 %v6836_v13 }
 0x804   : > { %v6135_v46 = vmul.f32 %v6132_v20, %v6121_v55  ;;  %v6824_v55 = vld [vmem:[%s10154_s9 + $0x80] sm:$0xff]  ;;  %v6856_v20 = vld [vmem:[%s10154_s9 + $0x178] sm:$0xff] }
 0x805   : > { %6258 = vmatpush.msrb.mxu1 %v6835_v44  ;;  %6294 = vmatpush.msrb.mxu2 %v6856_v20 }
 0x806   : > { %6137 = vst [vmem:[#allocation2 + $0x8] sm:$0xff] %v6135_v46 }
 0x807   : > { %6259 = vmatpush.msrb.mxu1 %v6834_v34 }
 0x809   : > { %6260 = vmatpush.msrb.mxu1 %v6833_v56 }
 0x80b   : > { %6261 = vmatpush.msrb.mxu1 %v6832_v33 }
 0x80d   : > { %v6140_v30 = vld [vmem:[#allocation2 + $0x1] sm:$0xff]  ;;  %v6141_v11 = vld [vmem:[#allocation2 + $0x9] sm:$0xff]  ;;  %6262 = vmatpush.msrb.mxu1 %v6831_v40 }
 0x80e   : > { %v6142_v31 = vld [vmem:[#allocation2 + $0x2] sm:$0xff]  ;;  %v6143_v25 = vld [vmem:[#allocation2 + $0xa] sm:$0xff]  ;;  %v6153_v9 = vmax.f32 %v6134_v18, %v6140_v30  ;;  %v6154_v2 = vmax.f32 %v6135_v46, %v6141_v11  ;;  %v6827_v18 = vld [vmem:[%s10154_s9 + $0x98] sm:$0xff] }
 0x80f   : > { %v6144_v60 = vld [vmem:[#allocation2 + $0x4] sm:$0xff]  ;;  %v6145_v22 = vld [vmem:[#allocation2 + $0xc] sm:$0xff]  ;;  %6263 = vmatpush.msrb.mxu1 %v6830_v32  ;;  %v6852_v11 = vld [vmem:[%s10154_s9 + $0x158] sm:$0xff] }
 0x810   : > { %v6146_v27 = vld [vmem:[#allocation2 + $0x5] sm:$0xff]  ;;  %v6147_v14 = vld [vmem:[#allocation2 + $0xd] sm:$0xff]  ;;  %v6155_v47 = vmax.f32 %v6142_v31, %v6144_v60  ;;  %v6156_v24 = vmax.f32 %v6143_v25, %v6145_v22  ;;  %v6848_v22 = vld [vmem:[%s10154_s9 + $0x138] sm:$0xff] }
 0x811   : > { %v6148_v10 = vld [vmem:[#allocation2 + $0x6] sm:$0xff]  ;;  %v6149_v5 = vld [vmem:[#allocation2 + $0xe] sm:$0xff]  ;;  %6264 = vmatpush.msrb.mxu1 %v6829_v21 }
 0x812   : > { %v6157_v0 = vmax.f32 %v6146_v27, %v6148_v10  ;;  %v6158_v42 = vmax.f32 %v6147_v14, %v6149_v5  ;;  %v6160_v57 = vmax.f32 %v6153_v9, %v6155_v47  ;;  %v6161_v63 = vmax.f32 %v6154_v2, %v6156_v24  ;;  %v6855_v46 = vld [vmem:[%s10154_s9 + $0x170] sm:$0xff]  ;;  %v6853_v30 = vld [vmem:[%s10154_s9 + $0x160] sm:$0xff]  ;;  %v6844_v14 = vld [vmem:[%s10154_s9 + $0x118] sm:$0xff] }
 0x813   : > { %6265 = vmatpush.msrb.mxu1 %v6828_v15  ;;  %6295 = vmatpush.msrb.mxu2 %v6855_v46  ;;  %v6851_v31 = vld [vmem:[%s10154_s9 + $0x150] sm:$0xff]  ;;  %v6849_v60 = vld [vmem:[%s10154_s9 + $0x140] sm:$0xff] }
 0x814   : > { %v6162_v35 = vmax.f32 %v6157_v0, %v6154_v2  ;;  %v6163_v37 = vmax.f32 %v6158_v42, %v6159_v17  ;;  %v6847_v9 = vld [vmem:[%s10154_s9 + $0x130] sm:$0xff]  ;;  %v6846_v2 = vld [vmem:[%s10154_s9 + $0x128] sm:$0xff]  ;;  %v6845_v27 = vld [vmem:[%s10154_s9 + $0x120] sm:$0xff] }
 0x815   : > { %6266 = vmatpush.msrb.mxu1 %v6827_v18  ;;  %6296 = vmatpush.msrb.mxu2 %v6854_v29  ;;  %v6213_v10 = vld [vmem:[%s10155_s10] sm:$0x1]  ;;  %v6842_v0 = vld [vmem:[%s10154_s9 + $0x108] sm:$0xff]  ;;  %v6840_v17 = vld [vmem:[%s10155_s10 + $0x1] sm:$0x1] }
 0x816   : > { %v6164_v43 = vmax.f32 %v6160_v57, %v6162_v35  ;;  %v6165_v52 = vmax.f32 %v6161_v63, %v6163_v37  ;;  %v6841_v42 = vld [vmem:[%s10154_s9 + $0x100] sm:$0xff] }
 0x817   : > { %6267 = vmatpush.msrb.mxu1 %v6826_v59  ;;  %6297 = vmatpush.msrb.mxu2 %v6853_v30  ;;  %v6857_v37 = vld [vmem:[%s10155_s10 + $0x2] sm:$0x1] }
 0x818   : > { %v6166_v16 = vmax.f32 %v6164_v43, %v6143_v25  ;;  %v6167_v1 = vmax.f32 %v6165_v52, %v6152_v7  ;;  %v6850_v25 = vld [vmem:[%s10154_s9 + $0x148] sm:$0xff] }
 0x819   : > { %6268 = vmatpush.msrb.mxu1 %v6825_v26  ;;  %6298 = vmatpush.msrb.mxu2 %v6852_v11 }
 0x81a   : > { %6168 = vst [vmem:[#allocation3 + $0xb0] sm:$0xff] %v6166_v16  ;;  %6191 = vmatpush.msra.mxu0 %v6167_v1 }
 0x81b   : > { %6169 = vst [vmem:[#allocation3 + $0xd0] sm:$0xff] %v6167_v1  ;;  %6269 = vmatpush.msrb.mxu1 %v6824_v55  ;;  %6299 = vmatpush.msrb.mxu2 %v6851_v31 }
 0x81c   : > { %6192 = vmatpush.msra.mxu0 %v6166_v16 }
 0x81d   : > { %6823 = vmatmul.msk.f32.vlgmr.msra.gmra.mxu0 %vm6173_vm3, %v6170_v12  ;;  %6300 = vmatpush.msrb.mxu2 %v6850_v25 }
 0x81e   : > { %6214 = vmatpush.msrb.mxu0 %v6212_v62 }
 0x81f   : > { %6301 = vmatpush.msrb.mxu2 %v6849_v60 }
 0x820   : > { %6215 = vmatpush.msrb.mxu0 %v6211_v61 }
 0x821   : > { %6302 = vmatpush.msrb.mxu2 %v6848_v22 }
 0x822   : > { %6216 = vmatpush.msrb.mxu0 %v6210_v6 }
 0x823   : > { %6303 = vmatpush.msrb.mxu2 %v6847_v9 }
 0x824   : > { %6217 = vmatpush.msrb.mxu0 %v6209_v36 }
 0x825   : > { %6304 = vmatpush.msrb.mxu2 %v6846_v2 }
 0x826   : > { %6218 = vmatpush.msrb.mxu0 %v6208_v23 }
 0x827   : > { %6305 = vmatpush.msrb.mxu2 %v6845_v27 }
 0x828   : > { %6219 = vmatpush.msrb.mxu0 %v6207_v41 }
 0x829   : > { %6306 = vmatpush.msrb.mxu2 %v6844_v14 }
 0x82a   : > { %6220 = vmatpush.msrb.mxu0 %v6206_v54 }
 0x82b   : > { %6307 = vmatpush.msrb.mxu2 %v6843_v38 }
 0x82c   : > { %6221 = vmatpush.msrb.mxu0 %v6205_v45 }
 0x82d   : > { %6308 = vmatpush.msrb.mxu2 %v6842_v0 }
 0x82e   : > { %6222 = vmatpush.msrb.mxu0 %v6204_v19 }
 0x82f   : > { %6309 = vmatpush.msrb.mxu2 %v6841_v42 }
 0x830   : > { %6223 = vmatpush.msrb.mxu0 %v6203_v49 }
 0x832   : > { %6224 = vmatpush.msrb.mxu0 %v6202_v48 }
 0x834   : > { %6225 = vmatpush.msrb.mxu0 %v6201_v4 }
 0x836   : > { %6226 = vmatpush.msrb.mxu0 %v6200_v3 }
 0x838   : > { %6227 = vmatpush.msrb.mxu0 %v6199_v50 }
 0x83a   : > { %6228 = vmatpush.msrb.mxu0 %v6198_v8 }
 0x83c   : > { %6229 = vmatpush.msrb.mxu0 %v6197_v39 }
 0x89a   : > { %v6194_v58 = vpop.f32.mrf.mxu0 }
 0x89b   : > { %6230 = vmatmul.f32.vlgmr.msrb.gmra.mxu0 %v6194_v58 }
 0x918   : > { %v6231_v47 = vpop.f32.mrf.mxu0 }
 0x919   : > { %v6232_v24 = vadd.f32 %v6231_v47, %v6213_v10 }
 0x91b   : > { %v6234_v5 = vmax.f32 %v6232_v24, 0.0 }
 0x91d   : > { %6270 = vmatmul.f32.vlgmr.msrb.gmra.mxu1 %v6234_v5 }
 0x99a   : > { %v6271_v57 = vpop.f32.mrf.mxu1 }
 0x99b   : > { %v6272_v63 = vadd.f32 %v6840_v17, %v6271_v57 }
 0x99d   : > { %v6274_v35 = vmax.f32 %v6272_v63, 0.0 }
 0x99f   : > { %6310 = vmatmul.f32.vlgmr.msrb.gmra.mxu2 %v6274_v35 }
 0xa22   : > { %v6311_v43 = vpop.f32.mrf.mxu2 }
 0xa23   : > { %v6312_v52 = vadd.f32 %v6857_v37, %v6311_v43 }
 0xa25   : > { %6314 = vst [vmem:[%s378_s24] sm:$0x1] %v6312_v52 }
 0xa26   : > { %6937 = shalt.err (!%p6934_p3)
}
 0xa27   : > { %6861 = dma.vmem_to_hbm [thread:$0]  (%p7074_p5), %s6327_s16, 16, %s6329_s22, %s6316_s12  }
 0xa28 PF: > { %p6867_p4 = scmp.ge.s32.totalorder %s6972_s20, 2  ;;  %s6340_s30 = sand.u32 1, %s6960_s17  }
 0xa29   : > { %s6341_s14 = scalar_lea.sflag [#allocation7], %s6340_s30 }
 0xa2a   : > { %p6864_p7 = pnand %p6867_p4, %p7078_p6 }
 0xa2c   : > { %p6865_p8 = pneg %p6864_p7 }
 0xa2e   : > { %6955 = dma.done.wait (%p6865_p8), %s6341_s14, 16  }
 0xa2f   : > { %6957 = vsyncadd (%p6865_p8), %s6341_s14, 4294967280  ;;  %s10217_s0 = sld [smem:[#allocation9_spill]]  ;;  %p21_p9 = scmp.ge.s32.totalorder %s7061_s23, 4  }
 0xa30   : > { %s10218_s17 = smov %s6964_s18  ;;  %s10219_s18 = smov %s6968_s19 }
 0xa31   : > { %s10221_s20 = smov %s7061_s23  ;;  %23 = sbr.rel (!%p21_p9) target bundleno = 5 (0x5), region = 131 }
 0xa35   : > { %s10220_s19 = smov %s10217_s0 }
 0xa36   :  { %6346 = vsyncpa [#allocation7], 1 }
 0xa37   :  { %6348 = vsyncpa [#allocation7 + $0x1], 1 }

</bundles_post_ra>
